<compile_context>
chip_gen: v5e
topology: v5e:2x2
jax: 0.10.0
libtpu: 0.0.40
codegen_flags: <defaults>
</compile_context>

<pallas_src>
import functools
import math

import jax
import jax.numpy as jnp
from jax.experimental import pallas as pl
from jax.experimental.pallas import tpu as pltpu


def _styled_modconv_kernel(x_ref, latent_ref, mlp_wt_ref, mlp_b_ref, w_ref, b_ref,
                           o_ref, *, H, W, fin, fout, ksize, mlp_scale, conv_scale,
                           demod, activate, neg_slope, gain):
    f32 = jnp.float32

    # ---- Style MLP (EqualLinear), fused:  s = (latent @ W_mlp^T) * eqlr_scale + b.
    # The eq-lr scale is applied to the (1, fin) result (smallest operand), and the
    # MLP weight arrives pre-transposed K-major -> natural MXU lhs(K-minor) x rhs(K-major).
    lat = latent_ref[0]                                            # (1, latent_dim)
    s = jax.lax.dot_general(lat, mlp_wt_ref[...],
                            dimension_numbers=(((1,), (0,)), ((), ())),
                            preferred_element_type=f32)
    s = s * mlp_scale + mlp_b_ref[...].astype(f32)                 # (1, fin)

    w = w_ref[...].astype(f32)                                     # (k*k, fin, fout)

    # ---- Demodulation:  d[o] = rsqrt(sum_{k,i} (conv_scale * s_i * W[k,i,o])^2 + 1e-5)
    if demod:
        wsq = w[0] * w[0]
        for t in range(1, ksize * ksize):
            wsq = wsq + w[t] * w[t]                                # (fin, fout)
        den = jax.lax.dot_general(s * s, wsq,
                                  dimension_numbers=(((1,), (0,)), ((), ())),
                                  preferred_element_type=f32)      # (1, fout)
        d = jax.lax.rsqrt(den * (conv_scale * conv_scale) + 1e-5)
        out_scale = d * conv_scale                                 # (1, fout)
    else:
        out_scale = conv_scale

    # ---- k x k conv as shifted (H*W, fin) x (fin, fout) MXU matmuls.
    # Per-sample style modulation is applied once to the input channels (cheaper than
    # modulating the k*k*fin*fout weight); the per-output-channel demod scale and the
    # conv eq-lr scale are applied to the (H*W, fout) accumulator in the epilogue.
    xs = x_ref[0].astype(f32) * s.reshape(1, 1, fin)               # (H+2p, W+2p, fin)
    acc = jnp.zeros((H * W, fout), f32)
    for kh in range(ksize):
        for kw in range(ksize):
            patch = xs[kh:kh + H, kw:kw + W, :].reshape(H * W, fin)
            acc = acc + jnp.dot(patch, w[kh * ksize + kw],
                                preferred_element_type=f32)

    y = acc * out_scale + b_ref[...].astype(f32)                   # bias add, fused
    if activate:                                                    # LeakyReLU * actvn_gain
        y = jnp.where(y >= 0.0, y, neg_slope * y) * gain
    o_ref[...] = y.reshape(1, H * W, fout).astype(o_ref.dtype)


def styled_modulated_conv(x_nchw, latent, conv_w, conv_b, mlp_w, mlp_b, *,
                          activate=True, neg_slope=0.2, gain=math.sqrt(2.0)):
    """Fused ModulatedConv2d (+ LeakyReLU*gain) — one pallas_call.

    x_nchw : (B, fin, H, W)     latent : (B, latent_dim)
    conv_w : (fout, fin, k, k)  conv_b : (fout,)
    mlp_w  : (fin, latent_dim)  mlp_b  : (fin,)      (nn.Linear layout)
    returns: (B, fout, H, W)
    """
    B, fin, H, W = x_nchw.shape
    fout, fin_w, k, k2 = conv_w.shape
    assert fin == fin_w and k == k2
    latent_dim = latent.shape[1]
    pad = k // 2
    Hp, Wp = H + 2 * pad, W + 2 * pad
    demod = k != 1

    mlp_scale = math.sqrt(2.0 / latent_dim)       # EqualLinear fan_in = latent_dim
    conv_scale = math.sqrt(2.0 / (fin * k * k))   # conv fan_in = fin * k * k

    # One-time parameter layout prep (K-major rhs per conv tap; no in-kernel transpose).
    w_kio = jnp.transpose(conv_w, (2, 3, 1, 0)).reshape(k * k, fin, fout)
    mlp_wt = jnp.transpose(mlp_w, (1, 0))         # (latent_dim, fin)
    mlp_b2 = mlp_b.reshape(1, fin)
    bias2 = conv_b.reshape(1, fout)

    # Activations: NCHW -> NHWC (channels on lanes) + zero spatial padding.
    # TODO(synk): padding_type='reflect' (ReflectionPad2d) not implemented; zero pad only.
    x_pad = jnp.pad(jnp.transpose(x_nchw, (0, 2, 3, 1)),
                    ((0, 0), (pad, pad), (pad, pad), (0, 0)))
    lat3 = latent.reshape(B, 1, latent_dim)

    kern = functools.partial(
        _styled_modconv_kernel, H=H, W=W, fin=fin, fout=fout, ksize=k,
        mlp_scale=mlp_scale, conv_scale=conv_scale, demod=demod,
        activate=activate, neg_slope=neg_slope, gain=gain)

    flops = B * (2 * H * W * fin * fout * k * k + 2 * latent_dim * fin + 2 * fin * fout)
    bytes_accessed = 4 * (x_pad.size + lat3.size + mlp_wt.size + mlp_b2.size
                          + w_kio.size + bias2.size + B * H * W * fout)

    out = pl.pallas_call(
        kern,
        out_shape=jax.ShapeDtypeStruct((B, H * W, fout), x_nchw.dtype),
        grid=(B,),
        in_specs=[
            pl.BlockSpec((1, Hp, Wp, fin), lambda b: (b, 0, 0, 0)),   # padded input
            pl.BlockSpec((1, 1, latent_dim), lambda b: (b, 0, 0)),    # latent row
            pl.BlockSpec((latent_dim, fin), lambda b: (0, 0)),        # MLP weight (K-major)
            pl.BlockSpec((1, fin), lambda b: (0, 0)),                 # MLP bias
            pl.BlockSpec((k * k, fin, fout), lambda b: (0, 0, 0)),    # conv weight per tap
            pl.BlockSpec((1, fout), lambda b: (0, 0)),                # conv bias
        ],
        out_specs=pl.BlockSpec((1, H * W, fout), lambda b: (b, 0, 0)),
        compiler_params=pltpu.CompilerParams(
            dimension_semantics=("parallel",)),
        cost_estimate=pl.CostEstimate(
            flops=int(flops), transcendentals=int(B * fout),
            bytes_accessed=int(bytes_accessed)),
    )(x_pad, lat3, mlp_wt, mlp_b2, w_kio, bias2)

    return jnp.transpose(out.reshape(B, H, W, fout), (0, 3, 1, 2))


def styled_conv_block(x, latent, params):
    """StyledConvBlock.forward (modulated_conv=True, actvn='lrelu', padding='zero')."""
    gain = math.sqrt(2.0)   # actvn_gain for the modulated-conv branch
    out = styled_modulated_conv(x, latent, params["w0"], params["b0"],
                                params["mlp_w0"], params["mlp_b0"],
                                neg_slope=0.2, gain=gain)
    out = styled_modulated_conv(out, latent, params["w1"], params["b1"],
                                params["mlp_w1"], params["mlp_b1"],
                                neg_slope=0.2, gain=gain)
    return out


# ------------------------- pure-JAX reference (mirrors the PyTorch module) ---------------
def _modulated_conv2d_ref(x, latent, conv_w, conv_b, mlp_w, mlp_b):
    B, fin, H, W = x.shape
    fout, _, k, _ = conv_w.shape
    latent_dim = latent.shape[1]
    hp = jax.lax.Precision.HIGHEST
    w = conv_w * math.sqrt(2.0 / (fin * k * k))
    s = jnp.dot(latent, (mlp_w * math.sqrt(2.0 / latent_dim)).T, precision=hp) + mlp_b
    w = s[:, None, :, None, None] * w[None]                       # (B, fout, fin, k, k)
    if k != 1:
        d = jax.lax.rsqrt(jnp.sum(w * w, axis=(2, 3, 4)) + 1e-5)
        w = w * d[:, :, None, None, None]
    w = w.reshape(B * fout, fin, k, k)
    out = jax.lax.conv_general_dilated(
        x.reshape(1, B * fin, H, W), w, window_strides=(1, 1),
        padding=[(k // 2, k // 2)] * 2,
        dimension_numbers=("NCHW", "OIHW", "NCHW"),
        feature_group_count=B, precision=hp)
    return out.reshape(B, fout, H, W) + conv_b.reshape(1, fout, 1, 1)


def styled_conv_block_ref(x, latent, params):
    gain = math.sqrt(2.0)
    out = _modulated_conv2d_ref(x, latent, params["w0"], params["b0"],
                                params["mlp_w0"], params["mlp_b0"])
    out = jnp.where(out >= 0.0, out, 0.2 * out) * gain
    out = _modulated_conv2d_ref(out, latent, params["w1"], params["b1"],
                                params["mlp_w1"], params["mlp_b1"])
    out = jnp.where(out >= 0.0, out, 0.2 * out) * gain
    return out


if __name__ == "__main__":
    key = jax.random.PRNGKey(0)
    ks = jax.random.split(key, 10)

    # Small but TPU-friendly sizes: 128 channels keep the kernel output lane-dense
    # (last dim a multiple of 128 -> no masked partial stores). latent_dim=256 is the
    # StyledConvBlock default.
    B, fin, fout, H, W, latent_dim = 2, 128, 128, 16, 16, 256

    x = jax.random.normal(ks[0], (B, fin, H, W), dtype=jnp.float32)
    latent = jax.random.normal(ks[1], (B, latent_dim), dtype=jnp.float32)

    # Parameters in the exact PyTorch layouts.  Conv/MLP weights use .normal_(); the
    # biases are zero-initialised by the module but randomised here (small) so the fused
    # bias paths are actually exercised — forward semantics are unchanged.
    params = dict(
        w0=jax.random.normal(ks[2], (fout, fin, 3, 3), jnp.float32),
        b0=0.1 * jax.random.normal(ks[3], (fout,), jnp.float32),
        mlp_w0=jax.random.normal(ks[4], (fin, latent_dim), jnp.float32),
        mlp_b0=0.1 * jax.random.normal(ks[5], (fin,), jnp.float32),
        w1=jax.random.normal(ks[6], (fout, fout, 3, 3), jnp.float32),
        b1=0.1 * jax.random.normal(ks[7], (fout,), jnp.float32),
        mlp_w1=jax.random.normal(ks[8], (fout, latent_dim), jnp.float32),
        mlp_b1=0.1 * jax.random.normal(ks[9], (fout,), jnp.float32),
    )

    y = jax.jit(styled_conv_block)(x, latent, params)
    y = jax.block_until_ready(y)

    y_ref = styled_conv_block_ref(x, latent, params)
    assert y.shape == (B, fout, H, W)
    err = float(jnp.max(jnp.abs(y - y_ref)))
    assert jnp.allclose(y, y_ref, atol=5e-3, rtol=5e-3), \
        f"mismatch vs reference (max abs err {err})"

    print("KERNEL_OK")
</pallas_src>

<mosaic_0001>
module attributes {stable_mosaic.version = 11 : i64} {
  func.func @_styled_modconv_kernel(%arg0: i32, %arg1: memref<1x18x18x128xf32, #tpu.memory_space<vmem>>, %arg2: memref<1x1x256xf32, #tpu.memory_space<vmem>>, %arg3: memref<256x128xf32, #tpu.memory_space<vmem>>, %arg4: memref<1x128xf32, #tpu.memory_space<vmem>>, %arg5: memref<9x128x128xf32, #tpu.memory_space<vmem>>, %arg6: memref<1x128xf32, #tpu.memory_space<vmem>>, %arg7: memref<1x256x128xf32, #tpu.memory_space<vmem>>) attributes {dimension_semantics = [#tpu.dimension_semantics<parallel>], iteration_bounds = array<i64: 2>, scalar_prefetch = 0 : i64, scratch_operands = 0 : i64, tpu.core_type = #tpu.core_type<tc>, window_params = [{transform_indices = @transform_0, window_bounds = array<i64: 1, 18, 18, 128>}, {transform_indices = @transform_1, window_bounds = array<i64: 1, 1, 256>}, {pipeline_mode = #tpu.pipeline_mode<synchronous>, transform_indices = @transform_2, window_bounds = array<i64: 256, 128>}, {pipeline_mode = #tpu.pipeline_mode<synchronous>, transform_indices = @transform_3, window_bounds = array<i64: 1, 128>}, {pipeline_mode = #tpu.pipeline_mode<synchronous>, transform_indices = @transform_4, window_bounds = array<i64: 9, 128, 128>}, {pipeline_mode = #tpu.pipeline_mode<synchronous>, transform_indices = @transform_5, window_bounds = array<i64: 1, 128>}, {transform_indices = @transform_6, window_bounds = array<i64: 1, 256, 128>}]} {
    %c0 = arith.constant 0 : index
    %c0_0 = arith.constant 0 : index
    %c0_1 = arith.constant 0 : index
    %0 = vector.load %arg2[%c0, %c0_0, %c0_1] : memref<1x1x256xf32, #tpu.memory_space<vmem>>, vector<1x1x256xf32>
    %1 = vector.shape_cast %0 : vector<1x1x256xf32> to vector<1x256xf32>
    %c0_2 = arith.constant 0 : index
    %c0_3 = arith.constant 0 : index
    %2 = vector.load %arg3[%c0_2, %c0_3] : memref<256x128xf32, #tpu.memory_space<vmem>>, vector<256x128xf32>
    %cst = arith.constant dense<0.000000e+00> : vector<1x128xf32>
    %3 = tpu.matmul %1, %2, %cst {dimension_numbers = #tpu.dot_dimension_numbers<[1], [0], [0], [1], [0, 0, 1, 1], [], []>} : vector<1x256xf32>, vector<256x128xf32>, vector<1x128xf32> -> vector<1x128xf32>
    %cst_4 = arith.constant 0.0883883461 : f32
    %4 = vector.broadcast %cst_4 : f32 to vector<1x128xf32>
    %5 = arith.mulf %3, %4 : vector<1x128xf32>
    %c0_5 = arith.constant 0 : index
    %c0_6 = arith.constant 0 : index
    %6 = vector.load %arg4[%c0_5, %c0_6] : memref<1x128xf32, #tpu.memory_space<vmem>>, vector<1x128xf32>
    %7 = arith.addf %5, %6 : vector<1x128xf32>
    %c0_7 = arith.constant 0 : index
    %c0_8 = arith.constant 0 : index
    %c0_9 = arith.constant 0 : index
    %8 = vector.load %arg5[%c0_7, %c0_8, %c0_9] : memref<9x128x128xf32, #tpu.memory_space<vmem>>, vector<9x128x128xf32>
    %9 = vector.extract_strided_slice %8 {offsets = [0, 0, 0], sizes = [1, 128, 128], strides = [1, 1, 1]} : vector<9x128x128xf32> to vector<1x128x128xf32>
    %10 = vector.shape_cast %9 : vector<1x128x128xf32> to vector<128x128xf32>
    %11 = vector.extract_strided_slice %8 {offsets = [0, 0, 0], sizes = [1, 128, 128], strides = [1, 1, 1]} : vector<9x128x128xf32> to vector<1x128x128xf32>
    %12 = vector.shape_cast %11 : vector<1x128x128xf32> to vector<128x128xf32>
    %13 = arith.mulf %10, %12 : vector<128x128xf32>
    %14 = vector.extract_strided_slice %8 {offsets = [1, 0, 0], sizes = [1, 128, 128], strides = [1, 1, 1]} : vector<9x128x128xf32> to vector<1x128x128xf32>
    %15 = vector.shape_cast %14 : vector<1x128x128xf32> to vector<128x128xf32>
    %16 = vector.extract_strided_slice %8 {offsets = [1, 0, 0], sizes = [1, 128, 128], strides = [1, 1, 1]} : vector<9x128x128xf32> to vector<1x128x128xf32>
    %17 = vector.shape_cast %16 : vector<1x128x128xf32> to vector<128x128xf32>
    %18 = arith.mulf %15, %17 : vector<128x128xf32>
    %19 = arith.addf %13, %18 : vector<128x128xf32>
    %20 = vector.extract_strided_slice %8 {offsets = [2, 0, 0], sizes = [1, 128, 128], strides = [1, 1, 1]} : vector<9x128x128xf32> to vector<1x128x128xf32>
    %21 = vector.shape_cast %20 : vector<1x128x128xf32> to vector<128x128xf32>
    %22 = vector.extract_strided_slice %8 {offsets = [2, 0, 0], sizes = [1, 128, 128], strides = [1, 1, 1]} : vector<9x128x128xf32> to vector<1x128x128xf32>
    %23 = vector.shape_cast %22 : vector<1x128x128xf32> to vector<128x128xf32>
    %24 = arith.mulf %21, %23 : vector<128x128xf32>
    %25 = arith.addf %19, %24 : vector<128x128xf32>
    %26 = vector.extract_strided_slice %8 {offsets = [3, 0, 0], sizes = [1, 128, 128], strides = [1, 1, 1]} : vector<9x128x128xf32> to vector<1x128x128xf32>
    %27 = vector.shape_cast %26 : vector<1x128x128xf32> to vector<128x128xf32>
    %28 = vector.extract_strided_slice %8 {offsets = [3, 0, 0], sizes = [1, 128, 128], strides = [1, 1, 1]} : vector<9x128x128xf32> to vector<1x128x128xf32>
    %29 = vector.shape_cast %28 : vector<1x128x128xf32> to vector<128x128xf32>
    %30 = arith.mulf %27, %29 : vector<128x128xf32>
    %31 = arith.addf %25, %30 : vector<128x128xf32>
    %32 = vector.extract_strided_slice %8 {offsets = [4, 0, 0], sizes = [1, 128, 128], strides = [1, 1, 1]} : vector<9x128x128xf32> to vector<1x128x128xf32>
    %33 = vector.shape_cast %32 : vector<1x128x128xf32> to vector<128x128xf32>
    %34 = vector.extract_strided_slice %8 {offsets = [4, 0, 0], sizes = [1, 128, 128], strides = [1, 1, 1]} : vector<9x128x128xf32> to vector<1x128x128xf32>
    %35 = vector.shape_cast %34 : vector<1x128x128xf32> to vector<128x128xf32>
    %36 = arith.mulf %33, %35 : vector<128x128xf32>
    %37 = arith.addf %31, %36 : vector<128x128xf32>
    %38 = vector.extract_strided_slice %8 {offsets = [5, 0, 0], sizes = [1, 128, 128], strides = [1, 1, 1]} : vector<9x128x128xf32> to vector<1x128x128xf32>
    %39 = vector.shape_cast %38 : vector<1x128x128xf32> to vector<128x128xf32>
    %40 = vector.extract_strided_slice %8 {offsets = [5, 0, 0], sizes = [1, 128, 128], strides = [1, 1, 1]} : vector<9x128x128xf32> to vector<1x128x128xf32>
    %41 = vector.shape_cast %40 : vector<1x128x128xf32> to vector<128x128xf32>
    %42 = arith.mulf %39, %41 : vector<128x128xf32>
    %43 = arith.addf %37, %42 : vector<128x128xf32>
    %44 = vector.extract_strided_slice %8 {offsets = [6, 0, 0], sizes = [1, 128, 128], strides = [1, 1, 1]} : vector<9x128x128xf32> to vector<1x128x128xf32>
    %45 = vector.shape_cast %44 : vector<1x128x128xf32> to vector<128x128xf32>
    %46 = vector.extract_strided_slice %8 {offsets = [6, 0, 0], sizes = [1, 128, 128], strides = [1, 1, 1]} : vector<9x128x128xf32> to vector<1x128x128xf32>
    %47 = vector.shape_cast %46 : vector<1x128x128xf32> to vector<128x128xf32>
    %48 = arith.mulf %45, %47 : vector<128x128xf32>
    %49 = arith.addf %43, %48 : vector<128x128xf32>
    %50 = vector.extract_strided_slice %8 {offsets = [7, 0, 0], sizes = [1, 128, 128], strides = [1, 1, 1]} : vector<9x128x128xf32> to vector<1x128x128xf32>
    %51 = vector.shape_cast %50 : vector<1x128x128xf32> to vector<128x128xf32>
    %52 = vector.extract_strided_slice %8 {offsets = [7, 0, 0], sizes = [1, 128, 128], strides = [1, 1, 1]} : vector<9x128x128xf32> to vector<1x128x128xf32>
    %53 = vector.shape_cast %52 : vector<1x128x128xf32> to vector<128x128xf32>
    %54 = arith.mulf %51, %53 : vector<128x128xf32>
    %55 = arith.addf %49, %54 : vector<128x128xf32>
    %56 = vector.extract_strided_slice %8 {offsets = [8, 0, 0], sizes = [1, 128, 128], strides = [1, 1, 1]} : vector<9x128x128xf32> to vector<1x128x128xf32>
    %57 = vector.shape_cast %56 : vector<1x128x128xf32> to vector<128x128xf32>
    %58 = vector.extract_strided_slice %8 {offsets = [8, 0, 0], sizes = [1, 128, 128], strides = [1, 1, 1]} : vector<9x128x128xf32> to vector<1x128x128xf32>
    %59 = vector.shape_cast %58 : vector<1x128x128xf32> to vector<128x128xf32>
    %60 = arith.mulf %57, %59 : vector<128x128xf32>
    %61 = arith.addf %55, %60 : vector<128x128xf32>
    %62 = arith.mulf %7, %7 : vector<1x128xf32>
    %cst_10 = arith.constant dense<0.000000e+00> : vector<1x128xf32>
    %63 = tpu.matmul %62, %61, %cst_10 {dimension_numbers = #tpu.dot_dimension_numbers<[1], [0], [0], [1], [0, 0, 1, 1], [], []>} : vector<1x128xf32>, vector<128x128xf32>, vector<1x128xf32> -> vector<1x128xf32>
    %cst_11 = arith.constant 0.00173611112 : f32
    %64 = vector.broadcast %cst_11 : f32 to vector<1x128xf32>
    %65 = arith.mulf %63, %64 : vector<1x128xf32>
    %cst_12 = arith.constant 9.99999974E-6 : f32
    %66 = vector.broadcast %cst_12 : f32 to vector<1x128xf32>
    %67 = arith.addf %65, %66 : vector<1x128xf32>
    %68 = math.rsqrt %67 : vector<1x128xf32>
    %cst_13 = arith.constant 0.0416666679 : f32
    %69 = vector.broadcast %cst_13 : f32 to vector<1x128xf32>
    %70 = arith.mulf %68, %69 : vector<1x128xf32>
    %c0_14 = arith.constant 0 : index
    %c0_15 = arith.constant 0 : index
    %c0_16 = arith.constant 0 : index
    %c0_17 = arith.constant 0 : index
    %71 = vector.load %arg1[%c0_14, %c0_15, %c0_16, %c0_17] : memref<1x18x18x128xf32, #tpu.memory_space<vmem>>, vector<1x18x18x128xf32>
    %72 = vector.shape_cast %71 : vector<1x18x18x128xf32> to vector<18x18x128xf32>
    %73 = vector.shape_cast %7 : vector<1x128xf32> to vector<1x1x128xf32>
    %74 = vector.broadcast %73 : vector<1x1x128xf32> to vector<18x18x128xf32>
    %75 = arith.mulf %72, %74 : vector<18x18x128xf32>
    %cst_18 = arith.constant 0.000000e+00 : f32
    %76 = vector.broadcast %cst_18 : f32 to vector<256x128xf32>
    %77 = vector.extract_strided_slice %75 {offsets = [0, 0, 0], sizes = [16, 16, 128], strides = [1, 1, 1]} : vector<18x18x128xf32> to vector<16x16x128xf32>
    %78 = vector.shape_cast %77 : vector<16x16x128xf32> to vector<256x128xf32>
    %79 = vector.extract_strided_slice %8 {offsets = [0, 0, 0], sizes = [1, 128, 128], strides = [1, 1, 1]} : vector<9x128x128xf32> to vector<1x128x128xf32>
    %80 = vector.shape_cast %79 : vector<1x128x128xf32> to vector<128x128xf32>
    %cst_19 = arith.constant dense<0.000000e+00> : vector<256x128xf32>
    %81 = tpu.matmul %78, %80, %cst_19 {dimension_numbers = #tpu.dot_dimension_numbers<[1], [0], [0], [1], [0, 0, 1, 1], [], []>} : vector<256x128xf32>, vector<128x128xf32>, vector<256x128xf32> -> vector<256x128xf32>
    %82 = arith.addf %76, %81 : vector<256x128xf32>
    %83 = vector.extract_strided_slice %75 {offsets = [0, 1, 0], sizes = [16, 16, 128], strides = [1, 1, 1]} : vector<18x18x128xf32> to vector<16x16x128xf32>
    %84 = vector.shape_cast %83 : vector<16x16x128xf32> to vector<256x128xf32>
    %85 = vector.extract_strided_slice %8 {offsets = [1, 0, 0], sizes = [1, 128, 128], strides = [1, 1, 1]} : vector<9x128x128xf32> to vector<1x128x128xf32>
    %86 = vector.shape_cast %85 : vector<1x128x128xf32> to vector<128x128xf32>
    %cst_20 = arith.constant dense<0.000000e+00> : vector<256x128xf32>
    %87 = tpu.matmul %84, %86, %cst_20 {dimension_numbers = #tpu.dot_dimension_numbers<[1], [0], [0], [1], [0, 0, 1, 1], [], []>} : vector<256x128xf32>, vector<128x128xf32>, vector<256x128xf32> -> vector<256x128xf32>
    %88 = arith.addf %82, %87 : vector<256x128xf32>
    %89 = vector.extract_strided_slice %75 {offsets = [0, 2, 0], sizes = [16, 16, 128], strides = [1, 1, 1]} : vector<18x18x128xf32> to vector<16x16x128xf32>
    %90 = vector.shape_cast %89 : vector<16x16x128xf32> to vector<256x128xf32>
    %91 = vector.extract_strided_slice %8 {offsets = [2, 0, 0], sizes = [1, 128, 128], strides = [1, 1, 1]} : vector<9x128x128xf32> to vector<1x128x128xf32>
    %92 = vector.shape_cast %91 : vector<1x128x128xf32> to vector<128x128xf32>
    %cst_21 = arith.constant dense<0.000000e+00> : vector<256x128xf32>
    %93 = tpu.matmul %90, %92, %cst_21 {dimension_numbers = #tpu.dot_dimension_numbers<[1], [0], [0], [1], [0, 0, 1, 1], [], []>} : vector<256x128xf32>, vector<128x128xf32>, vector<256x128xf32> -> vector<256x128xf32>
    %94 = arith.addf %88, %93 : vector<256x128xf32>
    %95 = vector.extract_strided_slice %75 {offsets = [1, 0, 0], sizes = [16, 16, 128], strides = [1, 1, 1]} : vector<18x18x128xf32> to vector<16x16x128xf32>
    %96 = vector.shape_cast %95 : vector<16x16x128xf32> to vector<256x128xf32>
    %97 = vector.extract_strided_slice %8 {offsets = [3, 0, 0], sizes = [1, 128, 128], strides = [1, 1, 1]} : vector<9x128x128xf32> to vector<1x128x128xf32>
    %98 = vector.shape_cast %97 : vector<1x128x128xf32> to vector<128x128xf32>
    %cst_22 = arith.constant dense<0.000000e+00> : vector<256x128xf32>
    %99 = tpu.matmul %96, %98, %cst_22 {dimension_numbers = #tpu.dot_dimension_numbers<[1], [0], [0], [1], [0, 0, 1, 1], [], []>} : vector<256x128xf32>, vector<128x128xf32>, vector<256x128xf32> -> vector<256x128xf32>
    %100 = arith.addf %94, %99 : vector<256x128xf32>
    %101 = vector.extract_strided_slice %75 {offsets = [1, 1, 0], sizes = [16, 16, 128], strides = [1, 1, 1]} : vector<18x18x128xf32> to vector<16x16x128xf32>
    %102 = vector.shape_cast %101 : vector<16x16x128xf32> to vector<256x128xf32>
    %103 = vector.extract_strided_slice %8 {offsets = [4, 0, 0], sizes = [1, 128, 128], strides = [1, 1, 1]} : vector<9x128x128xf32> to vector<1x128x128xf32>
    %104 = vector.shape_cast %103 : vector<1x128x128xf32> to vector<128x128xf32>
    %cst_23 = arith.constant dense<0.000000e+00> : vector<256x128xf32>
    %105 = tpu.matmul %102, %104, %cst_23 {dimension_numbers = #tpu.dot_dimension_numbers<[1], [0], [0], [1], [0, 0, 1, 1], [], []>} : vector<256x128xf32>, vector<128x128xf32>, vector<256x128xf32> -> vector<256x128xf32>
    %106 = arith.addf %100, %105 : vector<256x128xf32>
    %107 = vector.extract_strided_slice %75 {offsets = [1, 2, 0], sizes = [16, 16, 128], strides = [1, 1, 1]} : vector<18x18x128xf32> to vector<16x16x128xf32>
    %108 = vector.shape_cast %107 : vector<16x16x128xf32> to vector<256x128xf32>
    %109 = vector.extract_strided_slice %8 {offsets = [5, 0, 0], sizes = [1, 128, 128], strides = [1, 1, 1]} : vector<9x128x128xf32> to vector<1x128x128xf32>
    %110 = vector.shape_cast %109 : vector<1x128x128xf32> to vector<128x128xf32>
    %cst_24 = arith.constant dense<0.000000e+00> : vector<256x128xf32>
    %111 = tpu.matmul %108, %110, %cst_24 {dimension_numbers = #tpu.dot_dimension_numbers<[1], [0], [0], [1], [0, 0, 1, 1], [], []>} : vector<256x128xf32>, vector<128x128xf32>, vector<256x128xf32> -> vector<256x128xf32>
    %112 = arith.addf %106, %111 : vector<256x128xf32>
    %113 = vector.extract_strided_slice %75 {offsets = [2, 0, 0], sizes = [16, 16, 128], strides = [1, 1, 1]} : vector<18x18x128xf32> to vector<16x16x128xf32>
    %114 = vector.shape_cast %113 : vector<16x16x128xf32> to vector<256x128xf32>
    %115 = vector.extract_strided_slice %8 {offsets = [6, 0, 0], sizes = [1, 128, 128], strides = [1, 1, 1]} : vector<9x128x128xf32> to vector<1x128x128xf32>
    %116 = vector.shape_cast %115 : vector<1x128x128xf32> to vector<128x128xf32>
    %cst_25 = arith.constant dense<0.000000e+00> : vector<256x128xf32>
    %117 = tpu.matmul %114, %116, %cst_25 {dimension_numbers = #tpu.dot_dimension_numbers<[1], [0], [0], [1], [0, 0, 1, 1], [], []>} : vector<256x128xf32>, vector<128x128xf32>, vector<256x128xf32> -> vector<256x128xf32>
    %118 = arith.addf %112, %117 : vector<256x128xf32>
    %119 = vector.extract_strided_slice %75 {offsets = [2, 1, 0], sizes = [16, 16, 128], strides = [1, 1, 1]} : vector<18x18x128xf32> to vector<16x16x128xf32>
    %120 = vector.shape_cast %119 : vector<16x16x128xf32> to vector<256x128xf32>
    %121 = vector.extract_strided_slice %8 {offsets = [7, 0, 0], sizes = [1, 128, 128], strides = [1, 1, 1]} : vector<9x128x128xf32> to vector<1x128x128xf32>
    %122 = vector.shape_cast %121 : vector<1x128x128xf32> to vector<128x128xf32>
    %cst_26 = arith.constant dense<0.000000e+00> : vector<256x128xf32>
    %123 = tpu.matmul %120, %122, %cst_26 {dimension_numbers = #tpu.dot_dimension_numbers<[1], [0], [0], [1], [0, 0, 1, 1], [], []>} : vector<256x128xf32>, vector<128x128xf32>, vector<256x128xf32> -> vector<256x128xf32>
    %124 = arith.addf %118, %123 : vector<256x128xf32>
    %125 = vector.extract_strided_slice %75 {offsets = [2, 2, 0], sizes = [16, 16, 128], strides = [1, 1, 1]} : vector<18x18x128xf32> to vector<16x16x128xf32>
    %126 = vector.shape_cast %125 : vector<16x16x128xf32> to vector<256x128xf32>
    %127 = vector.extract_strided_slice %8 {offsets = [8, 0, 0], sizes = [1, 128, 128], strides = [1, 1, 1]} : vector<9x128x128xf32> to vector<1x128x128xf32>
    %128 = vector.shape_cast %127 : vector<1x128x128xf32> to vector<128x128xf32>
    %cst_27 = arith.constant dense<0.000000e+00> : vector<256x128xf32>
    %129 = tpu.matmul %126, %128, %cst_27 {dimension_numbers = #tpu.dot_dimension_numbers<[1], [0], [0], [1], [0, 0, 1, 1], [], []>} : vector<256x128xf32>, vector<128x128xf32>, vector<256x128xf32> -> vector<256x128xf32>
    %130 = arith.addf %124, %129 : vector<256x128xf32>
    %131 = vector.broadcast %70 : vector<1x128xf32> to vector<256x128xf32>
    %132 = arith.mulf %130, %131 : vector<256x128xf32>
    %c0_28 = arith.constant 0 : index
    %c0_29 = arith.constant 0 : index
    %133 = vector.load %arg6[%c0_28, %c0_29] : memref<1x128xf32, #tpu.memory_space<vmem>>, vector<1x128xf32>
    %134 = vector.broadcast %133 : vector<1x128xf32> to vector<256x128xf32>
    %135 = arith.addf %132, %134 : vector<256x128xf32>
    %cst_30 = arith.constant 0.000000e+00 : f32
    %136 = vector.broadcast %cst_30 : f32 to vector<256x128xf32>
    %137 = arith.cmpf oge, %135, %136 : vector<256x128xf32>
    %cst_31 = arith.constant 2.000000e-01 : f32
    %138 = vector.broadcast %cst_31 : f32 to vector<256x128xf32>
    %139 = arith.mulf %138, %135 : vector<256x128xf32>
    %140 = arith.select %137, %135, %139 : vector<256x128xi1>, vector<256x128xf32>
    %cst_32 = arith.constant 1.41421354 : f32
    %141 = vector.broadcast %cst_32 : f32 to vector<256x128xf32>
    %142 = arith.mulf %140, %141 : vector<256x128xf32>
    %143 = vector.shape_cast %142 : vector<256x128xf32> to vector<1x256x128xf32>
    %c0_33 = arith.constant 0 : index
    %c0_34 = arith.constant 0 : index
    %c0_35 = arith.constant 0 : index
    %144 = vector.load %arg7[%c0_33, %c0_34, %c0_35] : memref<1x256x128xf32, #tpu.memory_space<vmem>>, vector<1x256x128xf32>
    tpu.vector_store %arg7[%c0_33, %c0_34, %c0_35], %143 {strides = array<i32>} : memref<1x256x128xf32, #tpu.memory_space<vmem>>, vector<1x256x128xf32>,
    return
  }
  func.func @transform_0(%arg0: i32) -> (i32, i32, i32, i32) {
    %c0_i32 = arith.constant 0 : i32
    %c0_i32_0 = arith.constant 0 : i32
    %c0_i32_1 = arith.constant 0 : i32
    %c0_i32_2 = arith.constant 0 : i32
    return %arg0, %c0_i32, %c0_i32_0, %c0_i32_1 : i32, i32, i32, i32
  }
  func.func @transform_1(%arg0: i32) -> (i32, i32, i32) {
    %c0_i32 = arith.constant 0 : i32
    %c0_i32_0 = arith.constant 0 : i32
    %c0_i32_1 = arith.constant 0 : i32
    return %arg0, %c0_i32, %c0_i32_0 : i32, i32, i32
  }
  func.func @transform_2(%arg0: i32) -> (i32, i32) {
    %c0_i32 = arith.constant 0 : i32
    %c0_i32_0 = arith.constant 0 : i32
    %c0_i32_1 = arith.constant 0 : i32
    return %c0_i32, %c0_i32_0 : i32, i32
  }
  func.func @transform_3(%arg0: i32) -> (i32, i32) {
    %c0_i32 = arith.constant 0 : i32
    %c0_i32_0 = arith.constant 0 : i32
    %c0_i32_1 = arith.constant 0 : i32
    return %c0_i32, %c0_i32_0 : i32, i32
  }
  func.func @transform_4(%arg0: i32) -> (i32, i32, i32) {
    %c0_i32 = arith.constant 0 : i32
    %c0_i32_0 = arith.constant 0 : i32
    %c0_i32_1 = arith.constant 0 : i32
    %c0_i32_2 = arith.constant 0 : i32
    return %c0_i32, %c0_i32_0, %c0_i32_1 : i32, i32, i32
  }
  func.func @transform_5(%arg0: i32) -> (i32, i32) {
    %c0_i32 = arith.constant 0 : i32
    %c0_i32_0 = arith.constant 0 : i32
    %c0_i32_1 = arith.constant 0 : i32
    return %c0_i32, %c0_i32_0 : i32, i32
  }
  func.func @transform_6(%arg0: i32) -> (i32, i32, i32) {
    %c0_i32 = arith.constant 0 : i32
    %c0_i32_0 = arith.constant 0 : i32
    %c0_i32_1 = arith.constant 0 : i32
    return %arg0, %c0_i32, %c0_i32_0 : i32, i32, i32
  }
}

module attributes {stable_mosaic.version = 11 : i64} {
  func.func @_styled_modconv_kernel(%arg0: i32, %arg1: memref<1x18x18x128xf32, #tpu.memory_space<vmem>>, %arg2: memref<1x1x256xf32, #tpu.memory_space<vmem>>, %arg3: memref<256x128xf32, #tpu.memory_space<vmem>>, %arg4: memref<1x128xf32, #tpu.memory_space<vmem>>, %arg5: memref<9x128x128xf32, #tpu.memory_space<vmem>>, %arg6: memref<1x128xf32, #tpu.memory_space<vmem>>, %arg7: memref<1x256x128xf32, #tpu.memory_space<vmem>>) attributes {dimension_semantics = [#tpu.dimension_semantics<parallel>], iteration_bounds = array<i64: 2>, scalar_prefetch = 0 : i64, scratch_operands = 0 : i64, tpu.core_type = #tpu.core_type<tc>, window_params = [{transform_indices = @transform_0, window_bounds = array<i64: 1, 18, 18, 128>}, {transform_indices = @transform_1, window_bounds = array<i64: 1, 1, 256>}, {pipeline_mode = #tpu.pipeline_mode<synchronous>, transform_indices = @transform_2, window_bounds = array<i64: 256, 128>}, {pipeline_mode = #tpu.pipeline_mode<synchronous>, transform_indices = @transform_3, window_bounds = array<i64: 1, 128>}, {pipeline_mode = #tpu.pipeline_mode<synchronous>, transform_indices = @transform_4, window_bounds = array<i64: 9, 128, 128>}, {pipeline_mode = #tpu.pipeline_mode<synchronous>, transform_indices = @transform_5, window_bounds = array<i64: 1, 128>}, {transform_indices = @transform_6, window_bounds = array<i64: 1, 256, 128>}]} {
    %c0 = arith.constant 0 : index
    %c0_0 = arith.constant 0 : index
    %c0_1 = arith.constant 0 : index
    %0 = vector.load %arg2[%c0, %c0_0, %c0_1] : memref<1x1x256xf32, #tpu.memory_space<vmem>>, vector<1x1x256xf32>
    %1 = vector.shape_cast %0 : vector<1x1x256xf32> to vector<1x256xf32>
    %c0_2 = arith.constant 0 : index
    %c0_3 = arith.constant 0 : index
    %2 = vector.load %arg3[%c0_2, %c0_3] : memref<256x128xf32, #tpu.memory_space<vmem>>, vector<256x128xf32>
    %cst = arith.constant dense<0.000000e+00> : vector<1x128xf32>
    %3 = tpu.matmul %1, %2, %cst {dimension_numbers = #tpu.dot_dimension_numbers<[1], [0], [0], [1], [0, 0, 1, 1], [], []>} : vector<1x256xf32>, vector<256x128xf32>, vector<1x128xf32> -> vector<1x128xf32>
    %cst_4 = arith.constant 0.0883883461 : f32
    %4 = vector.broadcast %cst_4 : f32 to vector<1x128xf32>
    %5 = arith.mulf %3, %4 : vector<1x128xf32>
    %c0_5 = arith.constant 0 : index
    %c0_6 = arith.constant 0 : index
    %6 = vector.load %arg4[%c0_5, %c0_6] : memref<1x128xf32, #tpu.memory_space<vmem>>, vector<1x128xf32>
    %7 = arith.addf %5, %6 : vector<1x128xf32>
    %c0_7 = arith.constant 0 : index
    %c0_8 = arith.constant 0 : index
    %c0_9 = arith.constant 0 : index
    %8 = vector.load %arg5[%c0_7, %c0_8, %c0_9] : memref<9x128x128xf32, #tpu.memory_space<vmem>>, vector<9x128x128xf32>
    %9 = vector.extract_strided_slice %8 {offsets = [0, 0, 0], sizes = [1, 128, 128], strides = [1, 1, 1]} : vector<9x128x128xf32> to vector<1x128x128xf32>
    %10 = vector.shape_cast %9 : vector<1x128x128xf32> to vector<128x128xf32>
    %11 = vector.extract_strided_slice %8 {offsets = [0, 0, 0], sizes = [1, 128, 128], strides = [1, 1, 1]} : vector<9x128x128xf32> to vector<1x128x128xf32>
    %12 = vector.shape_cast %11 : vector<1x128x128xf32> to vector<128x128xf32>
    %13 = arith.mulf %10, %12 : vector<128x128xf32>
    %14 = vector.extract_strided_slice %8 {offsets = [1, 0, 0], sizes = [1, 128, 128], strides = [1, 1, 1]} : vector<9x128x128xf32> to vector<1x128x128xf32>
    %15 = vector.shape_cast %14 : vector<1x128x128xf32> to vector<128x128xf32>
    %16 = vector.extract_strided_slice %8 {offsets = [1, 0, 0], sizes = [1, 128, 128], strides = [1, 1, 1]} : vector<9x128x128xf32> to vector<1x128x128xf32>
    %17 = vector.shape_cast %16 : vector<1x128x128xf32> to vector<128x128xf32>
    %18 = arith.mulf %15, %17 : vector<128x128xf32>
    %19 = arith.addf %13, %18 : vector<128x128xf32>
    %20 = vector.extract_strided_slice %8 {offsets = [2, 0, 0], sizes = [1, 128, 128], strides = [1, 1, 1]} : vector<9x128x128xf32> to vector<1x128x128xf32>
    %21 = vector.shape_cast %20 : vector<1x128x128xf32> to vector<128x128xf32>
    %22 = vector.extract_strided_slice %8 {offsets = [2, 0, 0], sizes = [1, 128, 128], strides = [1, 1, 1]} : vector<9x128x128xf32> to vector<1x128x128xf32>
    %23 = vector.shape_cast %22 : vector<1x128x128xf32> to vector<128x128xf32>
    %24 = arith.mulf %21, %23 : vector<128x128xf32>
    %25 = arith.addf %19, %24 : vector<128x128xf32>
    %26 = vector.extract_strided_slice %8 {offsets = [3, 0, 0], sizes = [1, 128, 128], strides = [1, 1, 1]} : vector<9x128x128xf32> to vector<1x128x128xf32>
    %27 = vector.shape_cast %26 : vector<1x128x128xf32> to vector<128x128xf32>
    %28 = vector.extract_strided_slice %8 {offsets = [3, 0, 0], sizes = [1, 128, 128], strides = [1, 1, 1]} : vector<9x128x128xf32> to vector<1x128x128xf32>
    %29 = vector.shape_cast %28 : vector<1x128x128xf32> to vector<128x128xf32>
    %30 = arith.mulf %27, %29 : vector<128x128xf32>
    %31 = arith.addf %25, %30 : vector<128x128xf32>
    %32 = vector.extract_strided_slice %8 {offsets = [4, 0, 0], sizes = [1, 128, 128], strides = [1, 1, 1]} : vector<9x128x128xf32> to vector<1x128x128xf32>
    %33 = vector.shape_cast %32 : vector<1x128x128xf32> to vector<128x128xf32>
    %34 = vector.extract_strided_slice %8 {offsets = [4, 0, 0], sizes = [1, 128, 128], strides = [1, 1, 1]} : vector<9x128x128xf32> to vector<1x128x128xf32>
    %35 = vector.shape_cast %34 : vector<1x128x128xf32> to vector<128x128xf32>
    %36 = arith.mulf %33, %35 : vector<128x128xf32>
    %37 = arith.addf %31, %36 : vector<128x128xf32>
    %38 = vector.extract_strided_slice %8 {offsets = [5, 0, 0], sizes = [1, 128, 128], strides = [1, 1, 1]} : vector<9x128x128xf32> to vector<1x128x128xf32>
    %39 = vector.shape_cast %38 : vector<1x128x128xf32> to vector<128x128xf32>
    %40 = vector.extract_strided_slice %8 {offsets = [5, 0, 0], sizes = [1, 128, 128], strides = [1, 1, 1]} : vector<9x128x128xf32> to vector<1x128x128xf32>
    %41 = vector.shape_cast %40 : vector<1x128x128xf32> to vector<128x128xf32>
    %42 = arith.mulf %39, %41 : vector<128x128xf32>
    %43 = arith.addf %37, %42 : vector<128x128xf32>
    %44 = vector.extract_strided_slice %8 {offsets = [6, 0, 0], sizes = [1, 128, 128], strides = [1, 1, 1]} : vector<9x128x128xf32> to vector<1x128x128xf32>
    %45 = vector.shape_cast %44 : vector<1x128x128xf32> to vector<128x128xf32>
    %46 = vector.extract_strided_slice %8 {offsets = [6, 0, 0], sizes = [1, 128, 128], strides = [1, 1, 1]} : vector<9x128x128xf32> to vector<1x128x128xf32>
    %47 = vector.shape_cast %46 : vector<1x128x128xf32> to vector<128x128xf32>
    %48 = arith.mulf %45, %47 : vector<128x128xf32>
    %49 = arith.addf %43, %48 : vector<128x128xf32>
    %50 = vector.extract_strided_slice %8 {offsets = [7, 0, 0], sizes = [1, 128, 128], strides = [1, 1, 1]} : vector<9x128x128xf32> to vector<1x128x128xf32>
    %51 = vector.shape_cast %50 : vector<1x128x128xf32> to vector<128x128xf32>
    %52 = vector.extract_strided_slice %8 {offsets = [7, 0, 0], sizes = [1, 128, 128], strides = [1, 1, 1]} : vector<9x128x128xf32> to vector<1x128x128xf32>
    %53 = vector.shape_cast %52 : vector<1x128x128xf32> to vector<128x128xf32>
    %54 = arith.mulf %51, %53 : vector<128x128xf32>
    %55 = arith.addf %49, %54 : vector<128x128xf32>
    %56 = vector.extract_strided_slice %8 {offsets = [8, 0, 0], sizes = [1, 128, 128], strides = [1, 1, 1]} : vector<9x128x128xf32> to vector<1x128x128xf32>
    %57 = vector.shape_cast %56 : vector<1x128x128xf32> to vector<128x128xf32>
    %58 = vector.extract_strided_slice %8 {offsets = [8, 0, 0], sizes = [1, 128, 128], strides = [1, 1, 1]} : vector<9x128x128xf32> to vector<1x128x128xf32>
    %59 = vector.shape_cast %58 : vector<1x128x128xf32> to vector<128x128xf32>
    %60 = arith.mulf %57, %59 : vector<128x128xf32>
    %61 = arith.addf %55, %60 : vector<128x128xf32>
    %62 = arith.mulf %7, %7 : vector<1x128xf32>
    %cst_10 = arith.constant dense<0.000000e+00> : vector<1x128xf32>
    %63 = tpu.matmul %62, %61, %cst_10 {dimension_numbers = #tpu.dot_dimension_numbers<[1], [0], [0], [1], [0, 0, 1, 1], [], []>} : vector<1x128xf32>, vector<128x128xf32>, vector<1x128xf32> -> vector<1x128xf32>
    %cst_11 = arith.constant 0.00173611112 : f32
    %64 = vector.broadcast %cst_11 : f32 to vector<1x128xf32>
    %65 = arith.mulf %63, %64 : vector<1x128xf32>
    %cst_12 = arith.constant 9.99999974E-6 : f32
    %66 = vector.broadcast %cst_12 : f32 to vector<1x128xf32>
    %67 = arith.addf %65, %66 : vector<1x128xf32>
    %68 = math.rsqrt %67 : vector<1x128xf32>
    %cst_13 = arith.constant 0.0416666679 : f32
    %69 = vector.broadcast %cst_13 : f32 to vector<1x128xf32>
    %70 = arith.mulf %68, %69 : vector<1x128xf32>
    %c0_14 = arith.constant 0 : index
    %c0_15 = arith.constant 0 : index
    %c0_16 = arith.constant 0 : index
    %c0_17 = arith.constant 0 : index
    %71 = vector.load %arg1[%c0_14, %c0_15, %c0_16, %c0_17] : memref<1x18x18x128xf32, #tpu.memory_space<vmem>>, vector<1x18x18x128xf32>
    %72 = vector.shape_cast %71 : vector<1x18x18x128xf32> to vector<18x18x128xf32>
    %73 = vector.shape_cast %7 : vector<1x128xf32> to vector<1x1x128xf32>
    %74 = vector.broadcast %73 : vector<1x1x128xf32> to vector<18x18x128xf32>
    %75 = arith.mulf %72, %74 : vector<18x18x128xf32>
    %cst_18 = arith.constant 0.000000e+00 : f32
    %76 = vector.broadcast %cst_18 : f32 to vector<256x128xf32>
    %77 = vector.extract_strided_slice %75 {offsets = [0, 0, 0], sizes = [16, 16, 128], strides = [1, 1, 1]} : vector<18x18x128xf32> to vector<16x16x128xf32>
    %78 = vector.shape_cast %77 : vector<16x16x128xf32> to vector<256x128xf32>
    %79 = vector.extract_strided_slice %8 {offsets = [0, 0, 0], sizes = [1, 128, 128], strides = [1, 1, 1]} : vector<9x128x128xf32> to vector<1x128x128xf32>
    %80 = vector.shape_cast %79 : vector<1x128x128xf32> to vector<128x128xf32>
    %cst_19 = arith.constant dense<0.000000e+00> : vector<256x128xf32>
    %81 = tpu.matmul %78, %80, %cst_19 {dimension_numbers = #tpu.dot_dimension_numbers<[1], [0], [0], [1], [0, 0, 1, 1], [], []>} : vector<256x128xf32>, vector<128x128xf32>, vector<256x128xf32> -> vector<256x128xf32>
    %82 = arith.addf %76, %81 : vector<256x128xf32>
    %83 = vector.extract_strided_slice %75 {offsets = [0, 1, 0], sizes = [16, 16, 128], strides = [1, 1, 1]} : vector<18x18x128xf32> to vector<16x16x128xf32>
    %84 = vector.shape_cast %83 : vector<16x16x128xf32> to vector<256x128xf32>
    %85 = vector.extract_strided_slice %8 {offsets = [1, 0, 0], sizes = [1, 128, 128], strides = [1, 1, 1]} : vector<9x128x128xf32> to vector<1x128x128xf32>
    %86 = vector.shape_cast %85 : vector<1x128x128xf32> to vector<128x128xf32>
    %cst_20 = arith.constant dense<0.000000e+00> : vector<256x128xf32>
    %87 = tpu.matmul %84, %86, %cst_20 {dimension_numbers = #tpu.dot_dimension_numbers<[1], [0], [0], [1], [0, 0, 1, 1], [], []>} : vector<256x128xf32>, vector<128x128xf32>, vector<256x128xf32> -> vector<256x128xf32>
    %88 = arith.addf %82, %87 : vector<256x128xf32>
    %89 = vector.extract_strided_slice %75 {offsets = [0, 2, 0], sizes = [16, 16, 128], strides = [1, 1, 1]} : vector<18x18x128xf32> to vector<16x16x128xf32>
    %90 = vector.shape_cast %89 : vector<16x16x128xf32> to vector<256x128xf32>
    %91 = vector.extract_strided_slice %8 {offsets = [2, 0, 0], sizes = [1, 128, 128], strides = [1, 1, 1]} : vector<9x128x128xf32> to vector<1x128x128xf32>
    %92 = vector.shape_cast %91 : vector<1x128x128xf32> to vector<128x128xf32>
    %cst_21 = arith.constant dense<0.000000e+00> : vector<256x128xf32>
    %93 = tpu.matmul %90, %92, %cst_21 {dimension_numbers = #tpu.dot_dimension_numbers<[1], [0], [0], [1], [0, 0, 1, 1], [], []>} : vector<256x128xf32>, vector<128x128xf32>, vector<256x128xf32> -> vector<256x128xf32>
    %94 = arith.addf %88, %93 : vector<256x128xf32>
    %95 = vector.extract_strided_slice %75 {offsets = [1, 0, 0], sizes = [16, 16, 128], strides = [1, 1, 1]} : vector<18x18x128xf32> to vector<16x16x128xf32>
    %96 = vector.shape_cast %95 : vector<16x16x128xf32> to vector<256x128xf32>
    %97 = vector.extract_strided_slice %8 {offsets = [3, 0, 0], sizes = [1, 128, 128], strides = [1, 1, 1]} : vector<9x128x128xf32> to vector<1x128x128xf32>
    %98 = vector.shape_cast %97 : vector<1x128x128xf32> to vector<128x128xf32>
    %cst_22 = arith.constant dense<0.000000e+00> : vector<256x128xf32>
    %99 = tpu.matmul %96, %98, %cst_22 {dimension_numbers = #tpu.dot_dimension_numbers<[1], [0], [0], [1], [0, 0, 1, 1], [], []>} : vector<256x128xf32>, vector<128x128xf32>, vector<256x128xf32> -> vector<256x128xf32>
    %100 = arith.addf %94, %99 : vector<256x128xf32>
    %101 = vector.extract_strided_slice %75 {offsets = [1, 1, 0], sizes = [16, 16, 128], strides = [1, 1, 1]} : vector<18x18x128xf32> to vector<16x16x128xf32>
    %102 = vector.shape_cast %101 : vector<16x16x128xf32> to vector<256x128xf32>
    %103 = vector.extract_strided_slice %8 {offsets = [4, 0, 0], sizes = [1, 128, 128], strides = [1, 1, 1]} : vector<9x128x128xf32> to vector<1x128x128xf32>
    %104 = vector.shape_cast %103 : vector<1x128x128xf32> to vector<128x128xf32>
    %cst_23 = arith.constant dense<0.000000e+00> : vector<256x128xf32>
    %105 = tpu.matmul %102, %104, %cst_23 {dimension_numbers = #tpu.dot_dimension_numbers<[1], [0], [0], [1], [0, 0, 1, 1], [], []>} : vector<256x128xf32>, vector<128x128xf32>, vector<256x128xf32> -> vector<256x128xf32>
    %106 = arith.addf %100, %105 : vector<256x128xf32>
    %107 = vector.extract_strided_slice %75 {offsets = [1, 2, 0], sizes = [16, 16, 128], strides = [1, 1, 1]} : vector<18x18x128xf32> to vector<16x16x128xf32>
    %108 = vector.shape_cast %107 : vector<16x16x128xf32> to vector<256x128xf32>
    %109 = vector.extract_strided_slice %8 {offsets = [5, 0, 0], sizes = [1, 128, 128], strides = [1, 1, 1]} : vector<9x128x128xf32> to vector<1x128x128xf32>
    %110 = vector.shape_cast %109 : vector<1x128x128xf32> to vector<128x128xf32>
    %cst_24 = arith.constant dense<0.000000e+00> : vector<256x128xf32>
    %111 = tpu.matmul %108, %110, %cst_24 {dimension_numbers = #tpu.dot_dimension_numbers<[1], [0], [0], [1], [0, 0, 1, 1], [], []>} : vector<256x128xf32>, vector<128x128xf32>, vector<256x128xf32> -> vector<256x128xf32>
    %112 = arith.addf %106, %111 : vector<256x128xf32>
    %113 = vector.extract_strided_slice %75 {offsets = [2, 0, 0], sizes = [16, 16, 128], strides = [1, 1, 1]} : vector<18x18x128xf32> to vector<16x16x128xf32>
    %114 = vector.shape_cast %113 : vector<16x16x128xf32> to vector<256x128xf32>
    %115 = vector.extract_strided_slice %8 {offsets = [6, 0, 0], sizes = [1, 128, 128], strides = [1, 1, 1]} : vector<9x128x128xf32> to vector<1x128x128xf32>
    %116 = vector.shape_cast %115 : vector<1x128x128xf32> to vector<128x128xf32>
    %cst_25 = arith.constant dense<0.000000e+00> : vector<256x128xf32>
    %117 = tpu.matmul %114, %116, %cst_25 {dimension_numbers = #tpu.dot_dimension_numbers<[1], [0], [0], [1], [0, 0, 1, 1], [], []>} : vector<256x128xf32>, vector<128x128xf32>, vector<256x128xf32> -> vector<256x128xf32>
    %118 = arith.addf %112, %117 : vector<256x128xf32>
    %119 = vector.extract_strided_slice %75 {offsets = [2, 1, 0], sizes = [16, 16, 128], strides = [1, 1, 1]} : vector<18x18x128xf32> to vector<16x16x128xf32>
    %120 = vector.shape_cast %119 : vector<16x16x128xf32> to vector<256x128xf32>
    %121 = vector.extract_strided_slice %8 {offsets = [7, 0, 0], sizes = [1, 128, 128], strides = [1, 1, 1]} : vector<9x128x128xf32> to vector<1x128x128xf32>
    %122 = vector.shape_cast %121 : vector<1x128x128xf32> to vector<128x128xf32>
    %cst_26 = arith.constant dense<0.000000e+00> : vector<256x128xf32>
    %123 = tpu.matmul %120, %122, %cst_26 {dimension_numbers = #tpu.dot_dimension_numbers<[1], [0], [0], [1], [0, 0, 1, 1], [], []>} : vector<256x128xf32>, vector<128x128xf32>, vector<256x128xf32> -> vector<256x128xf32>
    %124 = arith.addf %118, %123 : vector<256x128xf32>
    %125 = vector.extract_strided_slice %75 {offsets = [2, 2, 0], sizes = [16, 16, 128], strides = [1, 1, 1]} : vector<18x18x128xf32> to vector<16x16x128xf32>
    %126 = vector.shape_cast %125 : vector<16x16x128xf32> to vector<256x128xf32>
    %127 = vector.extract_strided_slice %8 {offsets = [8, 0, 0], sizes = [1, 128, 128], strides = [1, 1, 1]} : vector<9x128x128xf32> to vector<1x128x128xf32>
    %128 = vector.shape_cast %127 : vector<1x128x128xf32> to vector<128x128xf32>
    %cst_27 = arith.constant dense<0.000000e+00> : vector<256x128xf32>
    %129 = tpu.matmul %126, %128, %cst_27 {dimension_numbers = #tpu.dot_dimension_numbers<[1], [0], [0], [1], [0, 0, 1, 1], [], []>} : vector<256x128xf32>, vector<128x128xf32>, vector<256x128xf32> -> vector<256x128xf32>
    %130 = arith.addf %124, %129 : vector<256x128xf32>
    %131 = vector.broadcast %70 : vector<1x128xf32> to vector<256x128xf32>
    %132 = arith.mulf %130, %131 : vector<256x128xf32>
    %c0_28 = arith.constant 0 : index
    %c0_29 = arith.constant 0 : index
    %133 = vector.load %arg6[%c0_28, %c0_29] : memref<1x128xf32, #tpu.memory_space<vmem>>, vector<1x128xf32>
    %134 = vector.broadcast %133 : vector<1x128xf32> to vector<256x128xf32>
    %135 = arith.addf %132, %134 : vector<256x128xf32>
    %cst_30 = arith.constant 0.000000e+00 : f32
    %136 = vector.broadcast %cst_30 : f32 to vector<256x128xf32>
    %137 = arith.cmpf oge, %135, %136 : vector<256x128xf32>
    %cst_31 = arith.constant 2.000000e-01 : f32
    %138 = vector.broadcast %cst_31 : f32 to vector<256x128xf32>
    %139 = arith.mulf %138, %135 : vector<256x128xf32>
    %140 = arith.select %137, %135, %139 : vector<256x128xi1>, vector<256x128xf32>
    %cst_32 = arith.constant 1.41421354 : f32
    %141 = vector.broadcast %cst_32 : f32 to vector<256x128xf32>
    %142 = arith.mulf %140, %141 : vector<256x128xf32>
    %143 = vector.shape_cast %142 : vector<256x128xf32> to vector<1x256x128xf32>
    %c0_33 = arith.constant 0 : index
    %c0_34 = arith.constant 0 : index
    %c0_35 = arith.constant 0 : index
    %144 = vector.load %arg7[%c0_33, %c0_34, %c0_35] : memref<1x256x128xf32, #tpu.memory_space<vmem>>, vector<1x256x128xf32>
    tpu.vector_store %arg7[%c0_33, %c0_34, %c0_35], %143 {strides = array<i32>} : memref<1x256x128xf32, #tpu.memory_space<vmem>>, vector<1x256x128xf32>,
    return
  }
  func.func @transform_0(%arg0: i32) -> (i32, i32, i32, i32) {
    %c0_i32 = arith.constant 0 : i32
    %c0_i32_0 = arith.constant 0 : i32
    %c0_i32_1 = arith.constant 0 : i32
    %c0_i32_2 = arith.constant 0 : i32
    return %arg0, %c0_i32, %c0_i32_0, %c0_i32_1 : i32, i32, i32, i32
  }
  func.func @transform_1(%arg0: i32) -> (i32, i32, i32) {
    %c0_i32 = arith.constant 0 : i32
    %c0_i32_0 = arith.constant 0 : i32
    %c0_i32_1 = arith.constant 0 : i32
    return %arg0, %c0_i32, %c0_i32_0 : i32, i32, i32
  }
  func.func @transform_2(%arg0: i32) -> (i32, i32) {
    %c0_i32 = arith.constant 0 : i32
    %c0_i32_0 = arith.constant 0 : i32
    %c0_i32_1 = arith.constant 0 : i32
    return %c0_i32, %c0_i32_0 : i32, i32
  }
  func.func @transform_3(%arg0: i32) -> (i32, i32) {
    %c0_i32 = arith.constant 0 : i32
    %c0_i32_0 = arith.constant 0 : i32
    %c0_i32_1 = arith.constant 0 : i32
    return %c0_i32, %c0_i32_0 : i32, i32
  }
  func.func @transform_4(%arg0: i32) -> (i32, i32, i32) {
    %c0_i32 = arith.constant 0 : i32
    %c0_i32_0 = arith.constant 0 : i32
    %c0_i32_1 = arith.constant 0 : i32
    %c0_i32_2 = arith.constant 0 : i32
    return %c0_i32, %c0_i32_0, %c0_i32_1 : i32, i32, i32
  }
  func.func @transform_5(%arg0: i32) -> (i32, i32) {
    %c0_i32 = arith.constant 0 : i32
    %c0_i32_0 = arith.constant 0 : i32
    %c0_i32_1 = arith.constant 0 : i32
    return %c0_i32, %c0_i32_0 : i32, i32
  }
  func.func @transform_6(%arg0: i32) -> (i32, i32, i32) {
    %c0_i32 = arith.constant 0 : i32
    %c0_i32_0 = arith.constant 0 : i32
    %c0_i32_1 = arith.constant 0 : i32
    return %arg0, %c0_i32, %c0_i32_0 : i32, i32, i32
  }
}

</mosaic_0001>

<bundles_post_ra>
// kernel: styled_conv_block.3
= control target key start
LH: loop header
LB: loop body
LE: loop exit
PB: predicated region body
PF: predicated region fallthrough
CT: control target
= control target key end

     0   :  { %11 = vsyncpa [#allocation3], 0  ;;  %s5694_s0 = inlined_call_operand.vmem [shape: f32[2,18,18,128], index: 0, kind: input, shape index: {}]   ;;  %s5695_s1 = inlined_call_operand.vmem [shape: f32[2,1,256], index: 1, kind: input, shape index: {}]   ;;  %s5696_s2 = inlined_call_operand.vmem [shape: f32[256,128], index: 2, kind: input, shape index: {}]   ;;  %s5697_s3 = inlined_call_operand.vmem [shape: f32[1,128], index: 3, kind: input, shape index: {}]   ;;  %s5698_s4 = inlined_call_operand.vmem [shape: f32[9,128,128], index: 4, kind: input, shape index: {}]   ;;  %s5699_s5 = inlined_call_operand.vmem [shape: f32[1,128], index: 5, kind: input, shape index: {}]   ;;  %s5700_s6 = inlined_call_operand.hbm [shape: f32[2,256,128], index: 6, kind: output, shape index: {}]  }
   0x1   :  { %13 = vsyncpa [#allocation3 + $0x1], 0  ;;  %s3023_s21 = smov 0   ;;  %s3025_s22 = smov 0  }
   0x2   :  { %s3027_s23 = smov 0   ;;  %s3029_s24 = smov 0  }
   0x3 LB: > { %s3044_s25 = sadd.s32 4294967295, %s2984_s24   ;;  %s2775_s26 = sadd.s32 4294967294, %s2984_s24   ;;  %s2984_s24 = sphi %s3029_s24, %s6258_s24   ;;  %s2980_s23 = sphi %s3027_s23, %s6257_s23   ;;  %s2976_s22 = sphi %s3025_s22, %s6256_s22   ;;  %s2972_s21 = sphi %s3023_s21, %s6255_s21  }
   0x4   : > { %s3048_s27 = sadd.s32 1, %s2984_s24   ;;  %s162_s28 = sadd.s32 1, %s2980_s23 }
   0x5   : > { %s159_s29 = ssub.s32 %s2984_s24, %s3048_s27  ;;  %p172_p0 = scmp.ne.s32.totalorder %s2980_s23, %s2976_s22 }
   0x6   : > { %p160_p1 = scmp.eq.s32.totalorder %s159_s29, 0  ;;  %p173_p2 = scmp.eq.s32.totalorder %s3044_s25, 1 }
   0x7   : > { %p178_p3 = scmp.ne.s32.totalorder %s2976_s22, %s2972_s21  ;;  %p179_p4 = scmp.eq.s32.totalorder %s2775_s26, 1 }
   0x8   : > { %s3059_s30 = scalar_select %p160_p1, %s2980_s23, %s162_s28  }
   0x9   : > { %p3061_p5 = por %p173_p2, %p172_p0  ;;  %p3065_p6 = por %p179_p4, %p178_p3 }
   0xa   : > { %p2778_p7 = scmp.ge.s32.totalorder %s2984_s24, 1  ;;  %p224_p8 = scmp.lt.s32.totalorder %s2984_s24, 3 }
   0xc   : > { %p225_p9 = pnand %p2778_p7, %p224_p8 }
   0xe   : > { %228 = sbr.rel (%p225_p9) target bundleno = 933 (0x3a5), region = 44 }
  0x13   : > { %v283_v0 = vld [vmem:[%s5696_s2 + $0x78] sm:$0xff]  ;;  %v282_v2 = vld [vmem:[%s5696_s2 + $0x70] sm:$0xff]  ;;  %v281_v4 = vld [vmem:[%s5696_s2 + $0x68] sm:$0xff]  ;;  %p258_p10 = scmp.lt.s32.totalorder %s3044_s25, 1  ;;  %vm955_vm0 = vcmask 1046528   ;;  %vm1294_vm1 = vcmask 1045504  }
  0x14   : > { %v299_v1 = vld [vmem:[%s5696_s2 + $0xf8] sm:$0xff]  ;;  %305 = vmatpush.msra.mxu0 %v283_v0  ;;  %v298_v3 = vld [vmem:[%s5696_s2 + $0xf0] sm:$0xff]  ;;  %v297_v5 = vld [vmem:[%s5696_s2 + $0xe8] sm:$0xff]  ;;  %s255_s17 = sand.u32 1, %s2976_s22   ;;  %s2942_s15 = scalar_lea.hbm %s5700_s6, 512 }
  0x15   : > { %325 = vmatpush.msra.mxu1 %v299_v1  ;;  %v280_v6 = vld [vmem:[%s5696_s2 + $0x60] sm:$0xff]  ;;  %v279_v8 = vld [vmem:[%s5696_s2 + $0x58] sm:$0xff]  ;;  %v278_v10 = vld [vmem:[%s5696_s2 + $0x50] sm:$0xff]  ;;  %s3142_s26 = scalar_select %p258_p10, %s3044_s25, 1 }
  0x16   : > { %306 = vmatpush.msra.mxu0 %v282_v2  ;;  %v296_v7 = vld [vmem:[%s5696_s2 + $0xe0] sm:$0xff]  ;;  %v295_v9 = vld [vmem:[%s5696_s2 + $0xd8] sm:$0xff]  ;;  %v294_v11 = vld [vmem:[%s5696_s2 + $0xd0] sm:$0xff]  ;;  %s2779_s18 = sshll.u32 %s255_s17, 8 }
  0x17   : > { %326 = vmatpush.msra.mxu1 %v298_v3  ;;  %v277_v12 = vld [vmem:[%s5696_s2 + $0x48] sm:$0xff]  ;;  %v276_v14 = vld [vmem:[%s5696_s2 + $0x40] sm:$0xff]  ;;  %v3123_v16 = vld [vmem:[%s5698_s4 + $0x78] sm:$0xff]  ;;  %s2781_s9 = sshll.u32 %s3142_s26, 1  ;;  %s2836_s28 = smul.u32 432, %s3142_s26 }
  0x18   : > { %307 = vmatpush.msra.mxu0 %v281_v4  ;;  %v293_v13 = vld [vmem:[%s5696_s2 + $0xc8] sm:$0xff]  ;;  %v292_v15 = vld [vmem:[%s5696_s2 + $0xc0] sm:$0xff]  ;;  %v3128_v17 = vld [vmem:[%s5698_s4 + $0xf8] sm:$0xff]  ;;  %v507_v24 = vmul.f32 %v3123_v16, %v3123_v16  ;;  %s266_s19 = scalar_lea.vmem %s5695_s1, %s2781_s9  ;;  %s5403_s20 = scalar_lea.vmem [#allocation2], %s2779_s18 }
  0x19   : > { %327 = vmatpush.msra.mxu1 %v297_v5  ;;  %v395_v18 = vld [vmem:[%s5698_s4 + $0x178] sm:$0xff]  ;;  %v523_v25 = vmul.f32 %v3128_v17, %v3128_v17  ;;  %2790 = vmatpush.msra.mxu3 %v3128_v17  ;;  %v274_v30 = vld [vmem:[%s5696_s2 + $0x30] sm:$0xff]  ;;  %v273_v43 = vld [vmem:[%s5696_s2 + $0x28] sm:$0xff]  ;;  %s4167_s9 = scalar_lea.vmem %s5694_s0, %s2836_s28  ;;  %s2787_s28 = sshll.u32 %s3044_s25, 8 }
  0x1a   : > { %308 = vmatpush.msra.mxu0 %v280_v6  ;;  %v275_v19 = vld [vmem:[%s5696_s2 + $0x38] sm:$0xff]  ;;  %v555_v26 = vmul.f32 %v395_v18, %v395_v18  ;;  %v3177_v34 = vld [vmem:[%s5698_s4 + $0x70] sm:$0xff]  ;;  %v289_v44 = vld [vmem:[%s5696_s2 + $0xa8] sm:$0xff]  ;;  %s2697_s11 = scalar_lea.hbm %s5700_s6, %s2787_s28  ;;  %s2686_s25 = scalar_lea.sflag [#allocation3], %s255_s17 }
  0x1b   : > { %328 = vmatpush.msra.mxu1 %v296_v7  ;;  %v291_v20 = vld [vmem:[%s5696_s2 + $0xb8] sm:$0xff]  ;;  %v539_v31 = vadd.f32 %v523_v25, %v507_v24  ;;  %v3182_v35 = vld [vmem:[%s5698_s4 + $0xf0] sm:$0xff]  ;;  %v506_v40 = vmul.f32 %v3177_v34, %v3177_v34  ;;  %v3229_v54 = vld [vmem:[%s5698_s4 + $0x68] sm:$0xff]  ;;  %s2700_s26 = sshll.u32 %s2697_s11, 4  ;;  %s2701_s26 = int_to_ptr.hbm [resolvable:$true] %s2700_s26 }
  0x1c   : > { %309 = vmatpush.msra.mxu0 %v279_v8  ;;  %v411_v21 = vld [vmem:[%s5698_s4 + $0x1f8] sm:$0xff]  ;;  %v3187_v36 = vld [vmem:[%s5698_s4 + $0x170] sm:$0xff]  ;;  %v522_v41 = vmul.f32 %v3182_v35, %v3182_v35  ;;  %2793 = vmatpush.msra.mxu3 %v3182_v35  ;;  %v3234_v55 = vld [vmem:[%s5698_s4 + $0xe8] sm:$0xff]  ;;  %v505_v62 = vmul.f32 %v3229_v54, %v3229_v54  ;;  %s2936_s12 = sshra.s32 %s2701_s26, 4  ;;  %s2937_s12 = int_to_ptr.hbm [resolvable:$true] %s2936_s12 }
  0x1d   : > { %329 = vmatpush.msra.mxu1 %v295_v9  ;;  %v3150_v22 = vld [vmem:[%s5698_s4 + $0x278] sm:$0xff]  ;;  %v587_v32 = vmul.f32 %v411_v21, %v411_v21  ;;  %v290_v37 = vld [vmem:[%s5696_s2 + $0xb0] sm:$0xff]  ;;  %v554_v42 = vmul.f32 %v3187_v36, %v3187_v36  ;;  %v571_v45 = vadd.f32 %v555_v26, %v539_v31  ;;  %v3239_v56 = vld [vmem:[%s5698_s4 + $0x168] sm:$0xff]  ;;  %v521_v63 = vmul.f32 %v3234_v55, %v3234_v55  ;;  %s2938_s13 = scalar_lea.hbm %s2937_s12, 256  ;;  %p2943_p0 = scmp.lt.s32.totalorder %s2937_s12, %s5700_s6 }
  0x1e   : > { %310 = vmatpush.msra.mxu0 %v278_v10  ;;  %v443_v23 = vld [vmem:[%s5698_s4 + $0x2f8] sm:$0xff]  ;;  %v619_v33 = vmul.f32 %v3150_v22, %v3150_v22  ;;  %v410_v38 = vld [vmem:[%s5698_s4 + $0x1f0] sm:$0xff]  ;;  %v538_v52 = vadd.f32 %v522_v41, %v506_v40  ;;  %v409_v61 = vld [vmem:[%s5698_s4 + $0x1e8] sm:$0xff]  ;;  %2796 = vmatpush.msra.mxu3 %v3234_v55  ;;  %v553_v5 = vmul.f32 %v3239_v56, %v3239_v56  ;;  %p2939_p11 = scmp.ne.s32.totalorder %s2937_s12, %s2938_s13  ;;  %p2944_p1 = scmp.lt.s32.totalorder %s2942_s15, %s2938_s13 }
  0x1f   : > { %330 = vmatpush.msra.mxu1 %v294_v11  ;;  %v459_v27 = vld [vmem:[%s5698_s4 + $0x378] sm:$0xff]  ;;  %v3198_v39 = vld [vmem:[%s5698_s4 + $0x270] sm:$0xff]  ;;  %v651_v46 = vmul.f32 %v443_v23, %v443_v23  ;;  %v586_v53 = vmul.f32 %v410_v38, %v410_v38  ;;  %v603_v57 = vadd.f32 %v587_v32, %v571_v45  ;;  %v272_v0 = vld [vmem:[%s5696_s2 + $0x20] sm:$0xff]  ;;  %v537_v8 = vadd.f32 %v521_v63, %v505_v62 }
  0x20   : > { %311 = vmatpush.msra.mxu0 %v277_v12  ;;  %v475_v28 = vld [vmem:[%s5698_s4 + $0x3f8] sm:$0xff]  ;;  %v3213_v47 = vmul.f32 %v459_v27, %v459_v27  ;;  %v442_v49 = vld [vmem:[%s5698_s4 + $0x2f0] sm:$0xff]  ;;  %v618_v60 = vmul.f32 %v3198_v39, %v3198_v39  ;;  %v288_v1 = vld [vmem:[%s5696_s2 + $0xa0] sm:$0xff]  ;;  %v570_v2 = vadd.f32 %v554_v42, %v538_v52  ;;  %v585_v9 = vmul.f32 %v409_v61, %v409_v61  ;;  %p2940_p12 = pnand %p2939_p11, %p3061_p5  ;;  %p2945_p2 = por %p2944_p1, %p2943_p0 }
  0x21   : > { %331 = vmatpush.msra.mxu1 %v293_v13  ;;  %v491_v29 = vld [vmem:[%s5698_s4 + $0x478] sm:$0xff]  ;;  %v3215_v48 = vmul.f32 %v475_v28, %v475_v28  ;;  %v458_v50 = vld [vmem:[%s5698_s4 + $0x370] sm:$0xff]  ;;  %v650_v3 = vmul.f32 %v442_v49, %v442_v49  ;;  %v3269_v4 = vld [vmem:[%s5698_s4 + $0x268] sm:$0xff]  ;;  %v635_v6 = vadd.f32 %v619_v33, %v603_v57  ;;  %v569_v25 = vadd.f32 %v553_v5, %v537_v8 }
  0x22   : > { %312 = vmatpush.msra.mxu0 %v276_v14  ;;  %v3224_v51 = vmul.f32 %v491_v29, %v491_v29  ;;  %v474_v58 = vld [vmem:[%s5698_s4 + $0x3f0] sm:$0xff]  ;;  %v682_v7 = vmul.f32 %v458_v50, %v458_v50  ;;  %v3276_v10 = vld [vmem:[%s5698_s4 + $0x60] sm:$0xff]  ;;  %v271_v13 = vld [vmem:[%s5696_s2 + $0x18] sm:$0xff]  ;;  %v602_v14 = vadd.f32 %v586_v53, %v570_v2  ;;  %v617_v26 = vmul.f32 %v3269_v4, %v3269_v4  ;;  %p2941_p13 = pneg %p2940_p12 }
  0x23   : > { %332 = vmatpush.msra.mxu1 %v292_v15  ;;  %v490_v59 = vld [vmem:[%s5698_s4 + $0x470] sm:$0xff]  ;;  %v3281_v11 = vld [vmem:[%s5698_s4 + $0xe0] sm:$0xff]  ;;  %v714_v15 = vmul.f32 %v474_v58, %v474_v58  ;;  %v287_v21 = vld [vmem:[%s5696_s2 + $0x98] sm:$0xff]  ;;  %v667_v24 = vadd.f32 %v651_v46, %v635_v6  ;;  %v504_v28 = vmul.f32 %v3276_v10, %v3276_v10  ;;  %v601_v42 = vadd.f32 %v585_v9, %v569_v25 }
  0x24   : > { %313 = vmatpush.msra.mxu0 %v275_v19  ;;  %v3286_v12 = vld [vmem:[%s5698_s4 + $0x160] sm:$0xff]  ;;  %v3291_v18 = vmul.f32 %v490_v59, %v490_v59  ;;  %v441_v19 = vld [vmem:[%s5698_s4 + $0x2e8] sm:$0xff]  ;;  %2799 = vmatpush.msra.mxu3 %v3281_v11  ;;  %v634_v29 = vadd.f32 %v618_v60, %v602_v14  ;;  %v520_v32 = vmul.f32 %v3281_v11, %v3281_v11  ;;  %v270_v38 = vld [vmem:[%s5696_s2 + $0x10] sm:$0xff]  ;;  %p2946_p3 = pnand %p2945_p2, %p2941_p13 }
  0x25   : > { %333 = vmatpush.msra.mxu1 %v291_v20  ;;  %v457_v20 = vld [vmem:[%s5698_s4 + $0x368] sm:$0xff]  ;;  %v3302_v23 = vld [vmem:[%s266_s19] sm:$0x3]  ;;  %v552_v33 = vmul.f32 %v3286_v12, %v3286_v12  ;;  %v286_v40 = vld [vmem:[%s5696_s2 + $0x90] sm:$0xff]  ;;  %v699_v41 = vadd.f32 %v3213_v47, %v667_v24  ;;  %v633_v59 = vadd.f32 %v617_v26, %v601_v42  ;;  %s2698_s19 = sshll.u32 %s5403_s20, 4  ;;  %s2699_s19 = int_to_ptr.vmem [resolvable:$true] %s2698_s19 }
  0x26   : > { %314 = vmatpush.msra.mxu0 %v274_v30  ;;  %v408_v27 = vld [vmem:[%s5698_s4 + $0x1e0] sm:$0xff]  ;;  %v473_v30 = vld [vmem:[%s5698_s4 + $0x3e8] sm:$0xff]  ;;  %v301_v46 = vperm.slane %v3302_v23, 0  ;;  %v666_v49 = vadd.f32 %v650_v3, %v634_v29  ;;  %v536_v50 = vadd.f32 %v520_v32, %v504_v28  ;;  %v3344_v47 = vld [vmem:[%s5698_s4 + $0x58] sm:$0xff]  ;;  %v302_v63 = vperm.slane %v3302_v23, 1 }
  0x27   : > { %334 = vmatpush.msra.mxu1 %v290_v37  ;;  %v3318_v31 = vld [vmem:[%s5698_s4 + $0x260] sm:$0xff]  ;;  %v3327_v37 = vld [vmem:[%s5698_s4 + $0xd8] sm:$0xff]  ;;  %v584_v52 = vmul.f32 %v408_v27, %v408_v27  ;;  %v269_v53 = vld [vmem:[%s5696_s2 + $0x8] sm:$0xff]  ;;  %v731_v58 = vadd.f32 %v3215_v48, %v699_v41  ;;  %v713_v60 = vmul.f32 %v473_v30, %v473_v30  ;;  %v503_v14 = vmul.f32 %v3344_v47, %v3344_v47 }
  0x28   : > { %315 = vmatpush.msra.mxu0 %v273_v43  ;;  %v649_v43 = vmul.f32 %v441_v19, %v441_v19  ;;  %v440_v45 = vld [vmem:[%s5698_s4 + $0x2e0] sm:$0xff]  ;;  %2802 = vmatpush.msra.mxu3 %v3327_v37  ;;  %v285_v57 = vld [vmem:[%s5696_s2 + $0x88] sm:$0xff]  ;;  %v616_v61 = vmul.f32 %v3318_v31, %v3318_v31  ;;  %v3358_v62 = vld [vmem:[%s5698_s4 + $0x158] sm:$0xff]  ;;  %v568_v48 = vadd.f32 %v552_v33, %v536_v50 }
  0x29   : > { %335 = vmatpush.msra.mxu1 %v289_v44  ;;  %v681_v44 = vmul.f32 %v457_v20, %v457_v20  ;;  %v648_v2 = vmul.f32 %v440_v45, %v440_v45  ;;  %v407_v3 = vld [vmem:[%s5698_s4 + $0x1d8] sm:$0xff]  ;;  %v3370_v5 = vld [vmem:[%s5698_s4 + $0xd0] sm:$0xff]  ;;  %v268_v6 = vld [vmem:[%s5696_s2] sm:$0xff]  ;;  %v763_v8 = vadd.f32 %v3224_v51, %v731_v58  ;;  %v519_v19 = vmul.f32 %v3327_v37, %v3327_v37 }
  0x2a   : > { %316 = vmatpush.msra.mxu0 %v272_v0  ;;  %v698_v0 = vadd.f32 %v682_v7, %v666_v49  ;;  %5884 = vst [vmem:[#allocation5_spill] sm:$0xff] %v3370_v5  ;;  %v284_v7 = vld [vmem:[%s5696_s2 + $0x80] sm:$0xff]  ;;  %v665_v9 = vadd.f32 %v649_v43, %v633_v59  ;;  %2805 = vmatpush.msra.mxu3 %v3370_v5  ;;  %v3390_v51 = vld [vmem:[%s5698_s4 + $0x258] sm:$0xff]  ;;  %v3403_v29 = vld [vmem:[%s5698_s4 + $0x50] sm:$0xff] }
  0x2b   : > { %336 = vmatpush.msra.mxu1 %v288_v1  ;;  %v489_v1 = vld [vmem:[%s5698_s4 + $0x468] sm:$0xff]  ;;  %v551_v23 = vmul.f32 %v3358_v62, %v3358_v62  ;;  %765 = vmatpush.msra.mxu2 %v763_v8  ;;  %v472_v26 = vld [vmem:[%s5698_s4 + $0x3e0] sm:$0xff]  ;;  %v535_v27 = vadd.f32 %v519_v19, %v503_v14  ;;  %v583_v28 = vmul.f32 %v407_v3, %v407_v3  ;;  %v455_v45 = vld [vmem:[%s5698_s4 + $0x358] sm:$0xff] }
  0x2c   : > { %317 = vmatpush.msra.mxu0 %v271_v13  ;;  %v456_v13 = vld [vmem:[%s5698_s4 + $0x360] sm:$0xff]  ;;  %v730_v20 = vadd.f32 %v714_v15, %v698_v0  ;;  %v697_v24 = vadd.f32 %v681_v44, %v665_v9  ;;  %v745_v25 = vmul.f32 %v489_v1, %v489_v1  ;;  %v439_v15 = vld [vmem:[%s5698_s4 + $0x2d8] sm:$0xff]  ;;  %v615_v43 = vmul.f32 %v3390_v51, %v3390_v51  ;;  %v3445_v1 = vld [vmem:[%s5698_s4 + $0x250] sm:$0xff] }
  0x2d   : > { %337 = vmatpush.msra.mxu1 %v287_v21  ;;  %v600_v21 = vadd.f32 %v584_v52, %v568_v48  ;;  %v680_v33 = vmul.f32 %v456_v13, %v456_v13  ;;  %v488_v41 = vld [vmem:[%s5698_s4 + $0x460] sm:$0xff]  ;;  %v567_v42 = vadd.f32 %v551_v23, %v535_v27  ;;  %v712_v44 = vmul.f32 %v472_v26, %v472_v26  ;;  %v3450_v48 = vld [vmem:[%s5698_s4 + $0x148] sm:$0xff]  ;;  %v454_v19 = vld [vmem:[%s5698_s4 + $0x350] sm:$0xff] }
  0x2e   : > { %318 = vmatpush.msra.mxu0 %v270_v38  ;;  %v762_v30 = vadd.f32 %v3291_v18, %v730_v20  ;;  %v3409_v38 = vld [vmem:[%s5698_s4 + $0x150] sm:$0xff]  ;;  %v647_v49 = vmul.f32 %v439_v15, %v439_v15  ;;  %v502_v50 = vmul.f32 %v3403_v29, %v3403_v29  ;;  %v518_v58 = vmul.f32 %v3370_v5, %v3370_v5  ;;  %v3459_v9 = vld [vmem:[%s5698_s4 + $0x1c8] sm:$0xff]  ;;  %v3484_v27 = vld [vmem:[%s5698_s4 + $0x40] sm:$0xff] }
  0x2f   : > { %338 = vmatpush.msra.mxu1 %v286_v40  ;;  %v632_v32 = vadd.f32 %v616_v61, %v600_v21  ;;  %v729_v40 = vadd.f32 %v713_v60, %v697_v24  ;;  %v550_v59 = vmul.f32 %v3409_v38, %v3409_v38  ;;  %v3434_v60 = vld [vmem:[%s5698_s4 + $0x48] sm:$0xff]  ;;  %v744_v0 = vmul.f32 %v488_v41, %v488_v41 }
  0x30   : > { %319 = vmatpush.msra.mxu0 %v269_v53  ;;  %766 = vmatpush.msra.mxu2 %v762_v30  ;;  %v471_v53 = vld [vmem:[%s5698_s4 + $0x3d8] sm:$0xff]  ;;  %v3439_v61 = vld [vmem:[%s5698_s4 + $0xc8] sm:$0xff]  ;;  %5886 = vst [vmem:[#allocation7_spill] sm:$0xff] %v3459_v9  ;;  %v501_v20 = vmul.f32 %v3434_v60, %v3434_v60  ;;  %v549_v15 = vmul.f32 %v3450_v48, %v3450_v48 }
  0x31   : > { %339 = vmatpush.msra.mxu1 %v285_v57  ;;  %v664_v18 = vadd.f32 %v648_v2, %v632_v32  ;;  %v761_v52 = vadd.f32 %v745_v25, %v729_v40  ;;  %v599_v57 = vadd.f32 %v583_v28, %v567_v42  ;;  %5885 = vst [vmem:[#allocation6_spill] sm:$0xff] %v3439_v61  ;;  %v487_v2 = vld [vmem:[%s5698_s4 + $0x458] sm:$0xff]  ;;  %v3477_v26 = vld [vmem:[%s5698_s4 + $0x248] sm:$0xff]  ;;  %v3489_v28 = vld [vmem:[%s5698_s4 + $0xc0] sm:$0xff] }
  0x32   : > { %320 = vmatpush.msra.mxu0 %v268_v6  ;;  %v679_v6 = vmul.f32 %v455_v45, %v455_v45  ;;  %v711_v14 = vmul.f32 %v471_v53, %v471_v53  ;;  %v517_v21 = vmul.f32 %v3439_v61, %v3439_v61  ;;  %v614_v25 = vmul.f32 %v3445_v1, %v3445_v1  ;;  %v3500_v42 = vld [vmem:[%s5698_s4 + $0x140] sm:$0xff]  ;;  %v437_v45 = vld [vmem:[%s5698_s4 + $0x2c8] sm:$0xff] }
  0x33   : > { %340 = vmatpush.msra.mxu1 %v284_v7  ;;  %321 = vmatmul.f32.vlgmr.msra.gmra.mxu0 %v301_v46  ;;  %v406_v46 = vld [vmem:[%s5698_s4 + $0x1d0] sm:$0xff]  ;;  %v631_v3 = vadd.f32 %v615_v43, %v599_v57  ;;  %v534_v7 = vadd.f32 %v518_v58, %v502_v50  ;;  %5887 = vst [vmem:[#allocation8_spill] sm:$0xff] %v3489_v28  ;;  %v453_v50 = vld [vmem:[%s5698_s4 + $0x348] sm:$0xff] }
  0x34   : > { %341 = vmatmul.f32.vlgmr.msra.gmra.mxu1 %v302_v63  ;;  %1068 = vmatpush.msrb.mxu0 %v3128_v17  ;;  %v696_v63 = vadd.f32 %v680_v33, %v664_v18  ;;  %v582_v8 = vmul.f32 %v406_v46, %v406_v46  ;;  %v743_v32 = vmul.f32 %v487_v2, %v487_v2  ;;  %v470_v33 = vld [vmem:[%s5698_s4 + $0x3d0] sm:$0xff]  ;;  %v3529_v2 = vld [vmem:[%s5698_s4 + $0x240] sm:$0xff] }
  0x35   : > { %2788 = vmatpush.msrb.mxu1 %v3128_v17  ;;  %767 = vmatpush.msra.mxu2 %v761_v52  ;;  %v438_v17 = vld [vmem:[%s5698_s4 + $0x2d0] sm:$0xff]  ;;  %v663_v23 = vadd.f32 %v647_v49, %v631_v3  ;;  %v566_v24 = vadd.f32 %v550_v59, %v534_v7  ;;  %v533_v40 = vadd.f32 %v517_v21, %v501_v20  ;;  %v3509_v49 = vld [vmem:[%s5698_s4 + $0x1c0] sm:$0xff]  ;;  %v469_v7 = vld [vmem:[%s5698_s4 + $0x3c8] sm:$0xff] }
  0x36   : > { %v728_v13 = vadd.f32 %v712_v44, %v696_v63  ;;  %1069 = vmatpush.msrb.mxu0 %v3182_v35  ;;  %v581_v41 = vmul.f32 %v3459_v9, %v3459_v9  ;;  %v678_v44 = vmul.f32 %v454_v19, %v454_v19  ;;  %5888 = vst [vmem:[#allocation9_spill] sm:$0xff] %v3509_v49  ;;  %v3515_v46 = vld [vmem:[%s5698_s4 + $0x450] sm:$0xff]  ;;  %v3547_v19 = vld [vmem:[%s5698_s4 + $0xb8] sm:$0xff] }
  0x37   : > { %2791 = vmatpush.msrb.mxu1 %v3182_v35  ;;  %v695_v43 = vadd.f32 %v679_v6, %v663_v23  ;;  %v598_v18 = vadd.f32 %v582_v8, %v566_v24  ;;  %v646_v35 = vmul.f32 %v438_v17, %v438_v17  ;;  %5889 = vst [vmem:[#allocation10_spill] sm:$0xff] %v3515_v46  ;;  %v3536_v6 = vld [vmem:[%s5698_s4 + $0x38] sm:$0xff] }
  0x38   : > { %v760_v30 = vadd.f32 %v744_v0, %v728_v13  ;;  %1070 = vmatpush.msrb.mxu0 %v3234_v55  ;;  %v565_v52 = vadd.f32 %v549_v15, %v533_v40  ;;  %v613_v53 = vmul.f32 %v3477_v26, %v3477_v26  ;;  %v500_v57 = vmul.f32 %v3484_v27, %v3484_v27  ;;  %v3552_v20 = vld [vmem:[%s5698_s4 + $0x138] sm:$0xff] }
  0x39   : > { %2794 = vmatpush.msrb.mxu1 %v3234_v55  ;;  %v516_v58 = vmul.f32 %v3489_v28, %v3489_v28  ;;  %v727_v59 = vadd.f32 %v711_v14, %v695_v43  ;;  %v630_v63 = vadd.f32 %v614_v25, %v598_v18  ;;  %v710_v0 = vmul.f32 %v470_v33, %v470_v33  ;;  %v3560_v25 = vld [vmem:[%s5698_s4 + $0x448] sm:$0xff]  ;;  %v3578_v43 = vld [vmem:[%s5698_s4 + $0x1b8] sm:$0xff] }
  0x3a   : > { %768 = vmatpush.msra.mxu2 %v760_v30  ;;  %v548_v3 = vmul.f32 %v3500_v42, %v3500_v42  ;;  %1071 = vmatpush.msrb.mxu0 %v3281_v11  ;;  %v597_v8 = vadd.f32 %v581_v41, %v565_v52  ;;  %v645_v13 = vmul.f32 %v437_v45, %v437_v45  ;;  %v3565_v30 = vld [vmem:[%s5698_s4 + $0x2c0] sm:$0xff] }
  0x3b   : > { %v532_v14 = vadd.f32 %v516_v58, %v500_v57  ;;  %v580_v17 = vmul.f32 %v3509_v49, %v3509_v49  ;;  %5890 = vst [vmem:[#allocation11_spill] sm:$0xff] %v3547_v19  ;;  %2797 = vmatpush.msrb.mxu1 %v3281_v11  ;;  %v759_v21 = vadd.f32 %v743_v32, %v727_v59  ;;  %v3571_v32 = vld [vmem:[%s5698_s4 + $0x340] sm:$0xff]  ;;  %v3595_v57 = vld [vmem:[%s5698_s4 + $0x30] sm:$0xff] }
  0x3c   : > { %v662_v23 = vadd.f32 %v646_v35, %v630_v63  ;;  %v742_v24 = vmul.f32 %v3515_v46, %v3515_v46  ;;  %5891 = vst [vmem:[#allocation12_spill] sm:$0xff] %v3560_v25  ;;  %v677_v15 = vmul.f32 %v453_v50, %v453_v50  ;;  %1072 = vmatpush.msrb.mxu0 %v3327_v37  ;;  %v3586_v50 = vld [vmem:[%s5698_s4 + $0x238] sm:$0xff] }
  0x3d   : > { %5892 = vst [vmem:[#allocation13_spill] sm:$0xff] %v3565_v30  ;;  %v629_v33 = vadd.f32 %v613_v53, %v597_v8  ;;  %v564_v40 = vadd.f32 %v548_v3, %v532_v14  ;;  %v612_v41 = vmul.f32 %v3529_v2, %v3529_v2  ;;  %v499_v18 = vmul.f32 %v3536_v6, %v3536_v6  ;;  %v3604_v3 = vld [vmem:[%s5698_s4 + $0xb0] sm:$0xff]  ;;  %v3618_v14 = vld [vmem:[%s5698_s4 + $0x440] sm:$0xff] }
  0x3e   : > { %5893 = vst [vmem:[#allocation14_spill] sm:$0xff] %v3571_v32  ;;  %2800 = vmatpush.msrb.mxu1 %v3327_v37  ;;  %769 = vmatpush.msra.mxu2 %v759_v21  ;;  %v694_v35 = vadd.f32 %v678_v44, %v662_v23  ;;  %v709_v45 = vmul.f32 %v469_v7, %v469_v7  ;;  %v3609_v7 = vld [vmem:[%s5698_s4 + $0x130] sm:$0xff] }
  0x3f   : > { %5894 = vst [vmem:[#allocation15_spill] sm:$0xff] %v3578_v43  ;;  %v515_v52 = vmul.f32 %v3547_v19, %v3547_v19  ;;  %v547_v53 = vmul.f32 %v3552_v20, %v3552_v20  ;;  %v661_v58 = vadd.f32 %v645_v13, %v629_v33  ;;  %v741_v44 = vmul.f32 %v3560_v25, %v3560_v25  ;;  %v468_v13 = vld [vmem:[%s5698_s4 + $0x3c0] sm:$0xff] }
  0x40   : > { %v596_v59 = vadd.f32 %v580_v17, %v564_v40  ;;  %v644_v63 = vmul.f32 %v3565_v30, %v3565_v30  ;;  %5895 = vst [vmem:[#allocation16_spill] sm:$0xff] %v3604_v3  ;;  %1073 = vmatpush.msrb.mxu0 %v3370_v5  ;;  %v726_v8 = vadd.f32 %v710_v0, %v694_v35  ;;  %v3628_v40 = vld [vmem:[%s5698_s4 + $0x2b8] sm:$0xff] }
  0x41   : > { %5896 = vst [vmem:[#allocation17_spill] sm:$0xff] %v3618_v14  ;;  %v676_v17 = vmul.f32 %v3571_v32, %v3571_v32  ;;  %v531_v21 = vadd.f32 %v515_v52, %v499_v18  ;;  %v579_v23 = vmul.f32 %v3578_v43, %v3578_v43  ;;  %2803 = vmatpush.msrb.mxu1 %v3370_v5  ;;  %v3635_v32 = vld [vmem:[%s5698_s4 + $0x1b0] sm:$0xff]  ;;  %v3737_v5 = vld [vmem:[%s5698_s4 + $0xa0] sm:$0xff] }
  0x42   : > { %v693_v33 = vadd.f32 %v677_v15, %v661_v58  ;;  %v628_v0 = vadd.f32 %v612_v41, %v596_v59  ;;  %5897 = vst [vmem:[#allocation18_spill] sm:$0xff] %v3628_v40  ;;  %v611_v35 = vmul.f32 %v3586_v50, %v3586_v50  ;;  %v498_v18 = vmul.f32 %v3595_v57, %v3595_v57  ;;  %v3643_v41 = vld [vmem:[%s5698_s4 + $0x338] sm:$0xff]  ;;  %v3648_v58 = vld [vmem:[%s5698_s4 + $0x230] sm:$0xff] }
  0x43   : > { %5898 = vst [vmem:[#allocation19_spill] sm:$0xff] %v3635_v32  ;;  %1074 = vmatpush.msrb.mxu0 %v3439_v61  ;;  %v758_v15 = vadd.f32 %v742_v24, %v726_v8  ;;  %v563_v52 = vadd.f32 %v547_v53, %v531_v21  ;;  %v514_v59 = vmul.f32 %v3604_v3, %v3604_v3  ;;  %v3660_v53 = vld [vmem:[%s5698_s4 + $0x28] sm:$0xff] }
  0x44   : > { %5899 = vst [vmem:[#allocation20_spill] sm:$0xff] %v3643_v41  ;;  %v546_v30 = vmul.f32 %v3609_v7, %v3609_v7  ;;  %2806 = vmatpush.msrb.mxu1 %v3439_v61  ;;  %v725_v24 = vadd.f32 %v709_v45, %v693_v33  ;;  %v660_v8 = vadd.f32 %v644_v63, %v628_v0  ;;  %v3665_v21 = vld [vmem:[%s5698_s4 + $0xa8] sm:$0xff]  ;;  %v467_v45 = vld [vmem:[%s5698_s4 + $0x3b8] sm:$0xff]  ;;  %v3676_v33 = vld [vmem:[%s5698_s4 + $0x2b0] sm:$0xff] }
  0x45   : > { %v708_v25 = vmul.f32 %v468_v13, %v468_v13  ;;  %v740_v46 = vmul.f32 %v3618_v14, %v3618_v14  ;;  %5900 = vst [vmem:[#allocation21_spill] sm:$0xff] %v3660_v53  ;;  %2808 = vmatpush.msra.mxu3 %v3439_v61  ;;  %770 = vmatpush.msra.mxu2 %v758_v15  ;;  %v3683_v15 = vld [vmem:[%s5698_s4 + $0x128] sm:$0xff] }
  0x46   : > { %5901 = vst [vmem:[#allocation22_spill] sm:$0xff] %v3665_v21  ;;  %v595_v63 = vadd.f32 %v579_v23, %v563_v52  ;;  %v643_v13 = vmul.f32 %v3628_v40, %v3628_v40  ;;  %v530_v0 = vadd.f32 %v514_v59, %v498_v18  ;;  %v578_v14 = vmul.f32 %v3635_v32, %v3635_v32  ;;  %v3692_v18 = vld [vmem:[%s5698_s4 + $0x1a8] sm:$0xff]  ;;  %v3698_v59 = vld [vmem:[%s5698_s4 + $0x438] sm:$0xff] }
  0x47   : > { %5902 = vst [vmem:[#allocation23_spill] sm:$0xff] %v3676_v33  ;;  %v757_v43 = vadd.f32 %v741_v44, %v725_v24  ;;  %v692_v49 = vadd.f32 %v676_v17, %v660_v8  ;;  %v675_v23 = vmul.f32 %v3643_v41, %v3643_v41  ;;  %v610_v52 = vmul.f32 %v3648_v58, %v3648_v58  ;;  %v3703_v17 = vld [vmem:[%s5698_s4 + $0x330] sm:$0xff]  ;;  %v3708_v8 = vld [vmem:[%s5698_s4 + $0x228] sm:$0xff] }
  0x48   : > { %5903 = vst [vmem:[#allocation24_spill] sm:$0xff] %v3683_v15  ;;  %1075 = vmatpush.msrb.mxu0 %v3489_v28  ;;  %v627_v44 = vadd.f32 %v611_v35, %v595_v63  ;;  %v562_v24 = vadd.f32 %v546_v30, %v530_v0  ;;  %v497_v41 = vmul.f32 %v3660_v53, %v3660_v53  ;;  %v466_v30 = vld [vmem:[%s5698_s4 + $0x3b0] sm:$0xff]  ;;  %v3820_v53 = vld [vmem:[%s5698_s4 + $0x320] sm:$0xff] }
  0x49   : > { %5904 = vst [vmem:[#allocation25_spill] sm:$0xff] %v3692_v18  ;;  %v513_v40 = vmul.f32 %v3665_v21, %v3665_v21  ;;  %2809 = vmatpush.msrb.mxu1 %v3489_v28  ;;  %771 = vmatpush.msra.mxu2 %v757_v43  ;;  %v724_v35 = vadd.f32 %v708_v25, %v692_v49  ;;  %v3721_v0 = vld [vmem:[%s5698_s4 + $0x430] sm:$0xff]  ;;  %v3730_v49 = vld [vmem:[%s5698_s4 + $0x20] sm:$0xff] }
  0x4a   : > { %5905 = vst [vmem:[#allocation26_spill] sm:$0xff] %v3698_v59  ;;  %v707_v63 = vmul.f32 %v467_v45, %v467_v45  ;;  %v642_v32 = vmul.f32 %v3676_v33, %v3676_v33  ;;  %v545_v9 = vmul.f32 %v3683_v15, %v3683_v15  ;;  %v659_v25 = vadd.f32 %v643_v13, %v627_v44  ;;  %v3742_v33 = vld [vmem:[%s5698_s4 + $0x120] sm:$0xff] }
  0x4b   : > { %5906 = vst [vmem:[#allocation27_spill] sm:$0xff] %v3703_v17  ;;  %v594_v43 = vadd.f32 %v578_v14, %v562_v24  ;;  %v529_v45 = vadd.f32 %v513_v40, %v497_v41  ;;  %v577_v61 = vmul.f32 %v3692_v18, %v3692_v18  ;;  %2811 = vmatpush.msra.mxu3 %v3489_v28  ;;  %v3752_v41 = vld [vmem:[%s5698_s4 + $0x2a8] sm:$0xff] }
  0x4c   : > { %5907 = vst [vmem:[#allocation28_spill] sm:$0xff] %v3708_v8  ;;  %v756_v15 = vadd.f32 %v740_v46, %v724_v35  ;;  %v739_v14 = vmul.f32 %v3698_v59, %v3698_v59  ;;  %v674_v40 = vmul.f32 %v3703_v17, %v3703_v17  ;;  %v609_v13 = vmul.f32 %v3708_v8, %v3708_v8  ;;  %v3760_v46 = vld [vmem:[%s5698_s4 + $0x328] sm:$0xff]  ;;  %v3768_v59 = vld [vmem:[%s5698_s4 + $0x1a0] sm:$0xff] }
  0x4d   : > { %5908 = vst [vmem:[#allocation29_spill] sm:$0xff] %v3721_v0  ;;  %1076 = vmatpush.msrb.mxu0 %v3547_v19  ;;  %v691_v44 = vadd.f32 %v675_v23, %v659_v25  ;;  %v626_v24 = vadd.f32 %v610_v52, %v594_v43  ;;  %v465_v35 = vld [vmem:[%s5698_s4 + $0x3a8] sm:$0xff]  ;;  %v561_v17 = vadd.f32 %v545_v9, %v529_v45  ;;  %v3782_v43 = vld [vmem:[%s5698_s4 + $0x18] sm:$0xff] }
  0x4e   : > { %5909 = vst [vmem:[#allocation30_spill] sm:$0xff] %v3730_v49  ;;  %v496_v18 = vmul.f32 %v3730_v49, %v3730_v49  ;;  %2812 = vmatpush.msrb.mxu1 %v3547_v19  ;;  %772 = vmatpush.msra.mxu2 %v756_v15  ;;  %v706_v23 = vmul.f32 %v466_v30, %v466_v30  ;;  %v3789_v30 = vld [vmem:[%s5698_s4 + $0x220] sm:$0xff] }
  0x4f   : > { %5910 = vst [vmem:[#allocation31_spill] sm:$0xff] %v3737_v5  ;;  %v738_v52 = vmul.f32 %v3721_v0, %v3721_v0  ;;  %v512_v25 = vmul.f32 %v3737_v5, %v3737_v5  ;;  %v544_v9 = vmul.f32 %v3742_v33, %v3742_v33  ;;  %v723_v45 = vadd.f32 %v707_v63, %v691_v44  ;;  %v3794_v0 = vld [vmem:[%s5698_s4 + $0x98] sm:$0xff]  ;;  %v3812_v63 = vld [vmem:[%s5698_s4 + $0x2a0] sm:$0xff] }
  0x50   : > { %5911 = vst [vmem:[#allocation32_spill] sm:$0xff] %v3742_v33  ;;  %v658_v28 = vadd.f32 %v642_v32, %v626_v24  ;;  %v593_v49 = vadd.f32 %v577_v61, %v561_v17  ;;  %v641_v15 = vmul.f32 %v3752_v41, %v3752_v41  ;;  %v3799_v33 = vld [vmem:[%s5698_s4 + $0x118] sm:$0xff]  ;;  %2814 = vmatpush.msra.mxu3 %v3547_v19  ;;  %v3805_v61 = vld [vmem:[%s5698_s4 + $0x428] sm:$0xff] }
  0x51   : > { %5912 = vst [vmem:[#allocation33_spill] sm:$0xff] %v3752_v41  ;;  %v673_v32 = vmul.f32 %v3760_v46, %v3760_v46  ;;  %v705_v17 = vmul.f32 %v465_v35, %v465_v35  ;;  %v528_v44 = vadd.f32 %v512_v25, %v496_v18  ;;  %v576_v24 = vmul.f32 %v3768_v59, %v3768_v59  ;;  %v3825_v35 = vld [vmem:[%s5698_s4 + $0x198] sm:$0xff] }
  0x52   : > { %5913 = vst [vmem:[#allocation34_spill] sm:$0xff] %v3760_v46  ;;  %1077 = vmatpush.msrb.mxu0 %v3604_v3  ;;  %v755_v41 = vadd.f32 %v739_v14, %v723_v45  ;;  %v690_v19 = vadd.f32 %v674_v40, %v658_v28  ;;  %v625_v8 = vadd.f32 %v609_v13, %v593_v49  ;;  %v3835_v49 = vld [vmem:[%s5698_s4 + $0x218] sm:$0xff]  ;;  %v3844_v13 = vld [vmem:[%s5698_s4 + $0x10] sm:$0xff] }
  0x53   : > { %5914 = vst [vmem:[#allocation35_spill] sm:$0xff] %v3768_v59  ;;  %v495_v18 = vmul.f32 %v3782_v43, %v3782_v43  ;;  %2815 = vmatpush.msrb.mxu1 %v3604_v3  ;;  %v560_v25 = vadd.f32 %v544_v9, %v528_v44  ;;  %v608_v28 = vmul.f32 %v3789_v30, %v3789_v30  ;;  %v3854_v59 = vld [vmem:[%s5698_s4 + $0x90] sm:$0xff] }
  0x54   : > { %5915 = vst [vmem:[#allocation36_spill] sm:$0xff] %v3782_v43  ;;  %v511_v14 = vmul.f32 %v3794_v0, %v3794_v0  ;;  %v543_v40 = vmul.f32 %v3799_v33, %v3799_v33  ;;  %2817 = vmatpush.msra.mxu3 %v3604_v3  ;;  %773 = vmatpush.msra.mxu2 %v755_v41 }
  0x55   : > { %5916 = vst [vmem:[#allocation37_spill] sm:$0xff] %v3789_v30  ;;  %v722_v9 = vadd.f32 %v706_v23, %v690_v19  ;;  %v657_v45 = vadd.f32 %v641_v15, %v625_v8  ;;  %v737_v44 = vmul.f32 %v3805_v61, %v3805_v61  ;;  %v640_v46 = vmul.f32 %v3812_v63, %v3812_v63  ;;  %v464_v19 = vld [vmem:[%s5698_s4 + $0x3a0] sm:$0xff]  ;;  %v3874_v15 = vld [vmem:[%s5698_s4 + $0x298] sm:$0xff] }
  0x56   : > { %5917 = vst [vmem:[#allocation38_spill] sm:$0xff] %v3794_v0  ;;  %v3867_v8 = vld [vmem:[%s5698_s4 + $0x420] sm:$0xff]  ;;  %v592_v41 = vadd.f32 %v576_v24, %v560_v25  ;;  %v672_v23 = vmul.f32 %v3820_v53, %v3820_v53  ;;  %1078 = vmatpush.msrb.mxu0 %v3665_v21  ;;  %v607_v30 = vmul.f32 %v3835_v49, %v3835_v49  ;;  %v3884_v24 = vld [vmem:[%s5698_s4 + $0x190] sm:$0xff] }
  0x57   : > { %5918 = vst [vmem:[#allocation39_spill] sm:$0xff] %v3799_v33  ;;  %v3859_v33 = vld [vmem:[%s5698_s4 + $0x110] sm:$0xff]  ;;  %v754_v3 = vadd.f32 %v738_v52, %v722_v9  ;;  %v689_v43 = vadd.f32 %v673_v32, %v657_v45  ;;  %v494_v25 = vmul.f32 %v3844_v13, %v3844_v13  ;;  %2818 = vmatpush.msrb.mxu1 %v3665_v21 }
  0x58   : > { %5919 = vst [vmem:[#allocation40_spill] sm:$0xff] %v3805_v61  ;;  %v575_v61 = vmul.f32 %v3825_v35, %v3825_v35  ;;  %v3897_v32 = vld [vmem:[%s5698_s4 + $0x210] sm:$0xff]  ;;  %v510_v9 = vmul.f32 %v3854_v59, %v3854_v59  ;;  %v542_v45 = vmul.f32 %v3859_v33, %v3859_v33  ;;  %2820 = vmatpush.msra.mxu3 %v3665_v21 }
  0x59   : > { %5920 = vst [vmem:[#allocation41_spill] sm:$0xff] %v3812_v63  ;;  %v527_v63 = vadd.f32 %v511_v14, %v495_v18  ;;  %v624_v18 = vadd.f32 %v608_v28, %v592_v41  ;;  %v3892_v14 = vld [vmem:[%s5698_s4 + $0x318] sm:$0xff]  ;;  %v3906_v28 = vld [vmem:[%s5698_s4 + $0x8] sm:$0xff]  ;;  %774 = vmatpush.msra.mxu2 %v754_v3  ;;  %v736_v41 = vmul.f32 %v3867_v8, %v3867_v8  ;;  %v3924_v3 = vld [vmem:[%s5698_s4 + $0x290] sm:$0xff] }
  0x5a   : > { %5921 = vst [vmem:[#allocation42_spill] sm:$0xff] %v3820_v53  ;;  %v463_v53 = vld [vmem:[%s5698_s4 + $0x398] sm:$0xff]  ;;  %1079 = vmatpush.msrb.mxu0 %v3737_v5  ;;  %2821 = vmatpush.msrb.mxu1 %v3737_v5 }
  0x5b   : > { %5922 = vst [vmem:[#allocation43_spill] sm:$0xff] %v3825_v35  ;;  %v559_v52 = vadd.f32 %v543_v40, %v527_v63  ;;  %v721_v63 = vadd.f32 %v705_v17, %v689_v43  ;;  %v704_v40 = vmul.f32 %v464_v19, %v464_v19  ;;  %v639_v35 = vmul.f32 %v3874_v15, %v3874_v15  ;;  %v3931_v19 = vld [vmem:[%s5698_s4 + $0x108] sm:$0xff] }
  0x5c   : > { %5923 = vst [vmem:[#allocation44_spill] sm:$0xff] %v3835_v49  ;;  %v526_v43 = vadd.f32 %v510_v9, %v494_v25  ;;  %v574_v17 = vmul.f32 %v3884_v24, %v3884_v24  ;;  %v671_v25 = vmul.f32 %v3892_v14, %v3892_v14  ;;  %2823 = vmatpush.msra.mxu3 %v3737_v5 }
  0x5d   : > { %5924 = vst [vmem:[#allocation45_spill] sm:$0xff] %v3844_v13  ;;  %v656_v13 = vadd.f32 %v640_v46, %v624_v18  ;;  %v591_v21 = vadd.f32 %v575_v61, %v559_v52  ;;  %v753_v46 = vadd.f32 %v737_v44, %v721_v63  ;;  %v3942_v61 = vld [vmem:[%s5698_s4 + $0x418] sm:$0xff]  ;;  %v606_v18 = vmul.f32 %v3897_v32, %v3897_v32  ;;  %v3954_v44 = vld [vmem:[%s5698_s4 + $0x310] sm:$0xff] }
  0x5e   : > { %5925 = vst [vmem:[#allocation46_spill] sm:$0xff] %v3859_v33  ;;  %v3919_v33 = vld [vmem:[%s5698_s4 + $0x88] sm:$0xff]  ;;  %v493_v52 = vmul.f32 %v3906_v28, %v3906_v28  ;;  %v558_v63 = vadd.f32 %v542_v45, %v526_v43  ;;  %1080 = vmatpush.msrb.mxu0 %v3794_v0  ;;  %2824 = vmatpush.msrb.mxu1 %v3794_v0 }
  0x5f   : > { %5926 = vst [vmem:[#allocation47_spill] sm:$0xff] %v3867_v8  ;;  %v688_v9 = vadd.f32 %v672_v23, %v656_v13  ;;  %v623_v8 = vadd.f32 %v607_v30, %v591_v21  ;;  %775 = vmatpush.msra.mxu2 %v753_v46  ;;  %v703_v21 = vmul.f32 %v463_v53, %v463_v53  ;;  %v3983_v53 = vld [vmem:[%s5698_s4 + $0x80] sm:$0xff] }
  0x60   : > { %5927 = vst [vmem:[#allocation48_spill] sm:$0xff] %v3874_v15  ;;  %v3936_v15 = vld [vmem:[%s5698_s4 + $0x188] sm:$0xff]  ;;  %v638_v30 = vmul.f32 %v3924_v3, %v3924_v3  ;;  %v541_v13 = vmul.f32 %v3931_v19, %v3931_v19  ;;  %v590_v49 = vadd.f32 %v574_v17, %v558_v63  ;;  %v3988_v46 = vld [vmem:[%s5698_s4 + $0x100] sm:$0xff]  ;;  %v4008_v63 = vld [vmem:[%s5698_s4 + $0x410] sm:$0xff]  ;;  %2826 = vmatpush.msra.mxu3 %v3794_v0 }
  0x61   : > { %5928 = vst [vmem:[#allocation49_spill] sm:$0xff] %v3884_v24  ;;  %v509_v24 = vmul.f32 %v3919_v33, %v3919_v33  ;;  %v573_v23 = vmul.f32 %v3936_v15, %v3936_v15  ;;  %v720_v45 = vadd.f32 %v704_v40, %v688_v9  ;;  %v655_v43 = vadd.f32 %v639_v35, %v623_v8  ;;  %v4040_v0 = vld [vmem:[%s5698_s4 + $0x388] sm:$0xff] }
  0x62   : > { %5929 = vst [vmem:[#allocation50_spill] sm:$0xff] %v3892_v14  ;;  %v3959_v14 = vld [vmem:[%s5698_s4 + $0x208] sm:$0xff]  ;;  %v735_v35 = vmul.f32 %v3942_v61, %v3942_v61  ;;  %v670_v8 = vmul.f32 %v3954_v44, %v3954_v44  ;;  %1081 = vmatpush.msrb.mxu0 %v3854_v59  ;;  %2827 = vmatpush.msrb.mxu1 %v3854_v59 }
  0x63   : > { %5930 = vst [vmem:[#allocation51_spill] sm:$0xff] %v3897_v32  ;;  %v3978_v32 = vld [vmem:[%s5698_s4 + $0x390] sm:$0xff]  ;;  %v525_v5 = vadd.f32 %v509_v24, %v493_v52  ;;  %v3998_v24 = vld [vmem:[%s5698_s4 + $0x288] sm:$0xff]  ;;  %v605_v40 = vmul.f32 %v3959_v14, %v3959_v14  ;;  %v752_v52 = vadd.f32 %v736_v41, %v720_v45  ;;  %v687_v9 = vadd.f32 %v671_v25, %v655_v43  ;;  %v4033_v43 = vld [vmem:[%s5698_s4 + $0x200] sm:$0xff] }
  0x64   : > { %5931 = vst [vmem:[#allocation52_spill] sm:$0xff] %v3906_v28  ;;  %v3966_v28 = vld [vmem:[%s5698_s4] sm:$0xff]  ;;  %v702_v41 = vmul.f32 %v3978_v32, %v3978_v32  ;;  %v508_v25 = vmul.f32 %v3983_v53, %v3983_v53  ;;  %v637_v45 = vmul.f32 %v3998_v24, %v3998_v24  ;;  %2829 = vmatpush.msra.mxu3 %v3854_v59 }
  0x65   : > { %5932 = vst [vmem:[#allocation53_spill] sm:$0xff] %v3924_v3  ;;  %v492_v17 = vmul.f32 %v3966_v28, %v3966_v28  ;;  %v4013_v3 = vld [vmem:[%s5698_s4 + $0x308] sm:$0xff]  ;;  %776 = vmatpush.msra.mxu2 %v752_v52  ;;  %1082 = vmatpush.msrb.mxu0 %v3919_v33 }
  0x66   : > { %5933 = vst [vmem:[#allocation54_spill] sm:$0xff] %v3936_v15  ;;  %v4018_v15 = vld [vmem:[%s5698_s4 + $0x180] sm:$0xff]  ;;  %2830 = vmatpush.msrb.mxu1 %v3919_v33  ;;  %2832 = vmatpush.msra.mxu3 %v3919_v33 }
  0x67   : > { %5934 = vst [vmem:[#allocation55_spill] sm:$0xff] %v3942_v61  ;;  %v557_v61 = vadd.f32 %v541_v13, %v525_v5  ;;  %v719_v5 = vadd.f32 %v703_v21, %v687_v9  ;;  %v572_v21 = vmul.f32 %v4018_v15, %v4018_v15  ;;  %v4050_v9 = vld [vmem:[%s5698_s4 + $0x280] sm:$0xff]  ;;  %1083 = vmatpush.msrb.mxu0 %v3983_v53 }
  0x68   : > { %5935 = vst [vmem:[#allocation56_spill] sm:$0xff] %v3954_v44  ;;  %v622_v44 = vadd.f32 %v606_v18, %v590_v49  ;;  %v540_v49 = vmul.f32 %v3988_v46, %v3988_v46  ;;  %2833 = vmatpush.msrb.mxu1 %v3983_v53  ;;  %2835 = vmatpush.msra.mxu3 %v3983_v53 }
  0x69   : > { %5936 = vst [vmem:[#allocation57_spill] sm:$0xff] %v3978_v32  ;;  %v589_v13 = vadd.f32 %v573_v23, %v557_v61  ;;  %v734_v32 = vmul.f32 %v4008_v63, %v4008_v63  ;;  %v524_v61 = vadd.f32 %v508_v25, %v492_v17  ;;  %v4057_v17 = vld [vmem:[%s5698_s4 + $0x408] sm:$0xff]  ;;  %1181 = vmatpush.msra.mxu0 %v3123_v16 }
  0x6a   : > { %v654_v18 = vadd.f32 %v638_v30, %v622_v44  ;;  %v669_v44 = vmul.f32 %v4013_v3, %v4013_v3  ;;  %v751_v30 = vadd.f32 %v735_v35, %v719_v5  ;;  %v604_v35 = vmul.f32 %v4033_v43, %v4033_v43  ;;  %1707 = vmatpush.msrb.mxu3 %v3150_v22 }
  0x6b   : > { %v621_v52 = vadd.f32 %v605_v40, %v589_v13  ;;  %v556_v25 = vadd.f32 %v540_v49, %v524_v61  ;;  %v701_v5 = vmul.f32 %v4040_v0, %v4040_v0  ;;  %v636_v49 = vmul.f32 %v4050_v9, %v4050_v9  ;;  %1182 = vmatpush.msra.mxu0 %v3177_v34 }
  0x6c   : > { %v686_v23 = vadd.f32 %v670_v8, %v654_v18  ;;  %777 = vmatpush.msra.mxu2 %v751_v30  ;;  %v4067_v18 = vld [vmem:[%s5698_s4 + $0x300] sm:$0xff]  ;;  %v733_v61 = vmul.f32 %v4057_v17, %v4057_v17  ;;  %1708 = vmatpush.msrb.mxu3 %v3198_v39  ;;  %v2882_v39 = vld [vmem:[%s5698_s4 + $0xf8] sm:$0xff] }
  0x6d   : > { %v653_v40 = vadd.f32 %v637_v45, %v621_v52  ;;  %v588_v13 = vadd.f32 %v572_v21, %v556_v25  ;;  %v4079_v30 = vld [vmem:[%s5698_s4 + $0x380] sm:$0xff]  ;;  %1183 = vmatpush.msra.mxu0 %v3229_v54  ;;  %v2883_v54 = vld [vmem:[%s5698_s4 + $0xf0] sm:$0xff] }
  0x6e   : > { %v718_v8 = vadd.f32 %v702_v41, %v686_v23  ;;  %v668_v23 = vmul.f32 %v4067_v18, %v4067_v18  ;;  %v4092_v52 = vld [vmem:[%s5698_s4 + $0x400] sm:$0xff]  ;;  %v700_v25 = vmul.f32 %v4079_v30, %v4079_v30  ;;  %1709 = vmatpush.msrb.mxu3 %v3269_v4 }
  0x6f   : > { %v685_v45 = vadd.f32 %v669_v44, %v653_v40  ;;  %v620_v21 = vadd.f32 %v604_v35, %v588_v13  ;;  %1184 = vmatpush.msra.mxu0 %v3276_v10  ;;  %v5939_v4 = vld [vmem:[#allocation5_spill] sm:$0xff]  ;;  %v5940_v10 = vld [vmem:[#allocation24_spill] sm:$0xff]  ;;  %v820_v13 = vld [vmem:[%s4167_s9 + $0xb0] sm:$0xff] }
  0x70   : > { %v750_v41 = vadd.f32 %v734_v32, %v718_v8  ;;  %v2881_v32 = vld [vmem:[%s5698_s4 + $0x178] sm:$0xff]  ;;  %v732_v8 = vmul.f32 %v4092_v52, %v4092_v52  ;;  %1710 = vmatpush.msrb.mxu3 %v3318_v31  ;;  %v5943_v31 = vld [vmem:[#allocation6_spill] sm:$0xff]  ;;  %v830_v40 = vld [vmem:[%s4167_s9 + $0x100] sm:$0x3] }
  0x71   : > { %1407 = vmatpush.msra.mxu1 %v2881_v32  ;;  %v717_v44 = vadd.f32 %v701_v5, %v685_v45  ;;  %v652_v16 = vadd.f32 %v636_v49, %v620_v21  ;;  %1185 = vmatpush.msra.mxu0 %v3344_v47  ;;  %v5944_v47 = vld [vmem:[#allocation32_spill] sm:$0xff]  ;;  %v819_v5 = vld [vmem:[%s4167_s9 + $0xa8] sm:$0xff] }
  0x72   : > { %778 = vmatpush.msra.mxu2 %v750_v41  ;;  %1711 = vmatpush.msrb.mxu3 %v3390_v51  ;;  %v5947_v51 = vld [vmem:[#allocation8_spill] sm:$0xff] }
  0x73   : > { %1408 = vmatpush.msra.mxu1 %v3187_v36  ;;  %v749_v22 = vadd.f32 %v733_v61, %v717_v44  ;;  %v684_v35 = vadd.f32 %v668_v23, %v652_v16  ;;  %1186 = vmatpush.msra.mxu0 %v3403_v29  ;;  %v5948_v29 = vld [vmem:[#allocation39_spill] sm:$0xff] }
  0x74   : > { %1712 = vmatpush.msrb.mxu3 %v3445_v1  ;;  %v5951_v1 = vld [vmem:[#allocation11_spill] sm:$0xff] }
  0x75   : > { %1409 = vmatpush.msra.mxu1 %v3239_v56  ;;  %779 = vmatpush.msra.mxu2 %v749_v22  ;;  %v716_v34 = vadd.f32 %v700_v25, %v684_v35  ;;  %v5937_v56 = vld [vmem:[#allocation21_spill] sm:$0xff]  ;;  %v800_v16 = vld [vmem:[%s4167_s9 + $0x10] sm:$0x3]  ;;  %v2884_v22 = vld [vmem:[%s5698_s4 + $0x1f8] sm:$0xff] }
  0x76   : > { %1713 = vmatpush.msrb.mxu3 %v3477_v26  ;;  %1187 = vmatpush.msra.mxu0 %v3434_v60  ;;  %v5950_v60 = vld [vmem:[#allocation51_spill] sm:$0xff]  ;;  %v5953_v26 = vld [vmem:[#allocation52_spill] sm:$0xff]  ;;  %v810_v25 = vld [vmem:[%s4167_s9 + $0x60] sm:$0xff] }
  0x77   : > { %1410 = vmatpush.msra.mxu1 %v3286_v12  ;;  %v748_v36 = vadd.f32 %v732_v8, %v716_v34  ;;  %v5941_v12 = vld [vmem:[#allocation30_spill] sm:$0xff] }
  0x78   : > { %1188 = vmatpush.msra.mxu0 %v3484_v27  ;;  %1714 = vmatpush.msrb.mxu3 %v3529_v2  ;;  %v5954_v27 = vld [vmem:[#allocation16_spill] sm:$0xff]  ;;  %v5956_v2 = vld [vmem:[#allocation31_spill] sm:$0xff] }
  0x79   : > { %1411 = vmatpush.msra.mxu1 %v3358_v62  ;;  %780 = vmatpush.msra.mxu2 %v748_v36  ;;  %v5945_v62 = vld [vmem:[#allocation36_spill] sm:$0xff] }
  0x7a   : > { %1189 = vmatpush.msra.mxu0 %v3536_v6  ;;  %1715 = vmatpush.msrb.mxu3 %v3586_v50  ;;  %v5957_v6 = vld [vmem:[#allocation38_spill] sm:$0xff] }
  0x7b   : > { %2789 = vmatpush.msrb.mxu2 %v2882_v39  ;;  %1412 = vmatpush.msra.mxu1 %v3409_v38  ;;  %v5949_v38 = vld [vmem:[#allocation45_spill] sm:$0xff]  ;;  %v811_v39 = vld [vmem:[%s4167_s9 + $0x68] sm:$0xff] }
  0x7c   : > { %1190 = vmatpush.msra.mxu0 %v3595_v57  ;;  %1716 = vmatpush.msrb.mxu3 %v3648_v58 }
  0x7d   : > { %2792 = vmatpush.msrb.mxu2 %v2883_v54  ;;  %1413 = vmatpush.msra.mxu1 %v3450_v48  ;;  %v5952_v48 = vld [vmem:[#allocation46_spill] sm:$0xff] }
  0x7e   : > { %1191 = vmatpush.msra.mxu0 %v5937_v56 }
  0x7f   : > { %2795 = vmatpush.msrb.mxu2 %v3234_v55  ;;  %1414 = vmatpush.msra.mxu1 %v3500_v42  ;;  %v5938_v55 = vld [vmem:[#allocation28_spill] sm:$0xff]  ;;  %v5955_v42 = vld [vmem:[#allocation22_spill] sm:$0xff] }
  0x80   : > { %1717 = vmatpush.msrb.mxu3 %v5938_v55  ;;  %1192 = vmatpush.msra.mxu0 %v5941_v12  ;;  %v832_v12 = vld [vmem:[%s4167_s9 + $0x110] sm:$0xff] }
  0x81   : > { %2798 = vmatpush.msrb.mxu2 %v3281_v11  ;;  %1415 = vmatpush.msra.mxu1 %v3552_v20  ;;  %v5942_v11 = vld [vmem:[#allocation37_spill] sm:$0xff] }
  0x82   : > { %1718 = vmatpush.msrb.mxu3 %v5942_v11  ;;  %1193 = vmatpush.msra.mxu0 %v5945_v62  ;;  %v2885_v11 = vld [vmem:[%s5698_s4 + $0x1f0] sm:$0xff] }
  0x83   : > { %2801 = vmatpush.msrb.mxu2 %v3327_v37  ;;  %1416 = vmatpush.msra.mxu1 %v3609_v7  ;;  %v5946_v37 = vld [vmem:[#allocation44_spill] sm:$0xff]  ;;  %v346_v7 = vld [vmem:[%s5697_s3] sm:$0x1] }
  0x84   : > { %1719 = vmatpush.msrb.mxu3 %v5946_v37  ;;  %1194 = vmatpush.msra.mxu0 %v5949_v38 }
  0x85   : > { %2804 = vmatpush.msrb.mxu2 %v5939_v4  ;;  %1417 = vmatpush.msra.mxu1 %v5940_v10  ;;  %v831_v10 = vld [vmem:[%s4167_s9 + $0x108] sm:$0xff] }
  0x86   : > { %1720 = vmatpush.msrb.mxu3 %v5950_v60  ;;  %1195 = vmatpush.msra.mxu0 %v5953_v26 }
  0x87   : > { %2807 = vmatpush.msrb.mxu2 %v5943_v31  ;;  %1418 = vmatpush.msra.mxu1 %v5944_v47 }
  0x88   : > { %1721 = vmatpush.msrb.mxu3 %v3959_v14  ;;  %1196 = vmatpush.msra.mxu0 %v3966_v28  ;;  %v799_v14 = vld [vmem:[%s4167_s9 + $0x8] sm:$0xff]  ;;  %v808_v28 = vld [vmem:[%s4167_s9 + $0x50] sm:$0xff] }
  0x89   : > { %2810 = vmatpush.msrb.mxu2 %v5947_v51  ;;  %1419 = vmatpush.msra.mxu1 %v5948_v29  ;;  %v821_v51 = vld [vmem:[%s4167_s9 + $0xb8] sm:$0x3] }
  0x8a   : > { %1722 = vmatpush.msrb.mxu3 %v4033_v43 }
  0x8b   : > { %2813 = vmatpush.msrb.mxu2 %v5951_v1  ;;  %1420 = vmatpush.msra.mxu1 %v5952_v48  ;;  %v2886_v48 = vld [vmem:[%s5698_s4 + $0x1e8] sm:$0xff] }
  0x8d   : > { %2816 = vmatpush.msrb.mxu2 %v5954_v27  ;;  %1421 = vmatpush.msra.mxu1 %v3931_v19  ;;  %v809_v19 = vld [vmem:[%s4167_s9 + $0x58] sm:$0x3] }
  0x8f   : > { %2819 = vmatpush.msrb.mxu2 %v5955_v42  ;;  %1422 = vmatpush.msra.mxu1 %v3988_v46  ;;  %v801_v42 = vld [vmem:[%s4167_s9 + $0x18] sm:$0xff] }
  0x91   : > { %2822 = vmatpush.msrb.mxu2 %v5956_v2  ;;  %v2887_v2 = vld [vmem:[%s5698_s4 + $0x2f8] sm:$0xff] }
  0x93   : > { %2825 = vmatpush.msrb.mxu2 %v5957_v6  ;;  %v2888_v6 = vld [vmem:[%s5698_s4 + $0x478] sm:$0xff] }
  0x95   : > { %2828 = vmatpush.msrb.mxu2 %v3854_v59  ;;  %v798_v59 = vld [vmem:[%s4167_s9] sm:$0xff] }
  0x97   : > { %2831 = vmatpush.msrb.mxu2 %v3919_v33 }
  0x99   : > { %2834 = vmatpush.msrb.mxu2 %v3983_v53  ;;  %v829_v53 = vld [vmem:[%s4167_s9 + $0xf8] sm:$0xff] }
  0xb0   : > { %v322_v20 = vpop.f32.mrf.mxu0 }
  0xb1   : > { %v342_v50 = vpop.f32.mrf.mxu1 }
  0xb2   : > { %v343_v57 = vadd.f32 %v342_v50, %v322_v20 }
  0xb4   : > { %v345_v58 = vmul.f32 0.088388346, %v343_v57 }
  0xb6   : > { %v347_v33 = vadd.f32 %v346_v7, %v345_v58  ;;  %v802_v7 = vld [vmem:[%s4167_s9 + $0x20] sm:$0xff]  ;;  %v2889_v58 = vld [vmem:[%s5698_s4 + $0x378] sm:$0xff] }
  0xb8   : > { %v764_v46 = vmul.f32 %v347_v33, %v347_v33  ;;  %v4177_v43 = vperm.slane %v347_v33, 0 }
  0xba   : > { %781 = vmatmul.f32.vlgmr.msra.gmra.mxu2 %v764_v46  ;;  %v4183_v49 = vmul.f32 %v4177_v43, %v798_v59  ;;  %v4186_v41 = vmul.f32 %v4177_v43, %v799_v14  ;;  %v4189_v45 = vmul.f32 %v4177_v43, %v808_v28  ;;  %v4192_v61 = vmul.f32 %v4177_v43, %v809_v19  ;;  %v812_v14 = vld [vmem:[%s4167_s9 + $0x70] sm:$0x3]  ;;  %v2890_v28 = vld [vmem:[%s5698_s4 + $0x1e0] sm:$0xff]  ;;  %v833_v46 = vld [vmem:[%s4167_s9 + $0x118] sm:$0x3] }
  0xbb   : > { %v4195_v21 = vmul.f32 %v4177_v43, %v829_v53  ;;  %v4198_v23 = vmul.f32 %v4177_v43, %v830_v40  ;;  %v4201_v32 = vmul.f32 %v4177_v43, %v819_v5  ;;  %v4204_v44 = vmul.f32 %v4177_v43, %v820_v13  ;;  %1552 = vmatpush.msra.mxu2 %v2884_v22  ;;  %v2891_v19 = vld [vmem:[%s5698_s4 + $0x2f0] sm:$0xff] }
  0xbc   : > { %5958 = vst [vmem:[#allocation21_spill] sm:$0xff] %v4189_v45  ;;  %v956_v35 = vrot.slane %v4183_v49, 1  ;;  %v957_v8 = vrot.slane %v4186_v41, 1  ;;  %v5755_v34 = vrot.slane %v4189_v45, 1  ;;  %v974_v36 = vrot.slane %v4192_v61, 1  ;;  %v2892_v40 = vld [vmem:[%s5698_s4 + $0x470] sm:$0xff] }
  0xbd   : > { %5959 = vst [vmem:[#allocation28_spill] sm:$0xff] %v4192_v61  ;;  %v5754_v54 = vrot.slane %v4195_v21, 1  ;;  %v1009_v56 = vrot.slane %v4198_v23, 1  ;;  %v991_v55 = vrot.slane %v4201_v32, 1  ;;  %v992_v4 = vrot.slane %v4204_v44, 1  ;;  %1553 = vmatpush.msra.mxu2 %v2885_v11  ;;  %v2893_v5 = vld [vmem:[%s5698_s4 + $0x370] sm:$0xff] }
  0xbe   : > { %5960 = vst [vmem:[#allocation5_spill] sm:$0xff] %v4201_v32  ;;  %v958_v31 = vsel %vm955_vm0, %v956_v35, %v957_v8  ;;  %v4229_v47 = vsel %vm955_vm0, %v5755_v34, %v974_v36  ;;  %v4232_v62 = vmul.f32 %v4177_v43, %v800_v16  ;;  %v4235_v37 = vmul.f32 %v4177_v43, %v810_v25  ;;  %v2894_v25 = vld [vmem:[%s5698_s4 + $0x1d8] sm:$0xff]  ;;  %v6009_v61 = vld [vmem:[#allocation27_spill] sm:$0xff] }
  0xbf   : > { %5961 = vst [vmem:[#allocation24_spill] sm:$0xff] %v4204_v44  ;;  %1084 = vmatmul.f32.vlgmr.msrb.gmra.mxu0 %v958_v31  ;;  %1105 = vmatmul.f32.vlgmr.msrb.gmra.mxu1 %v4229_v47  ;;  %v4242_v29 = vsel %vm955_vm0, %v5754_v54, %v1009_v56  ;;  %v4245_v38 = vmul.f32 %v4177_v43, %v811_v39  ;;  %v822_v39 = vld [vmem:[%s4167_s9 + $0xc0] sm:$0xff]  ;;  %v823_v56 = vld [vmem:[%s4167_s9 + $0xc8] sm:$0xff]  ;;  %v2897_v31 = vld [vmem:[%s5698_s4 + $0x1d0] sm:$0xff] }
  0xc0   : > { %5962 = vst [vmem:[#allocation30_spill] sm:$0xff] %v4229_v47  ;;  %1147 = vmatmul.f32.vlgmr.msra.gmra.mxu3 %v4242_v29  ;;  %v4249_v60 = vmul.f32 %v4177_v43, %v831_v10  ;;  %v4252_v1 = vmul.f32 %v4177_v43, %v832_v12  ;;  %1554 = vmatpush.msra.mxu2 %v2886_v48  ;;  %v959_v20 = vrot.slane %v4232_v62, 1  ;;  %v976_v50 = vrot.slane %v4235_v37, 1  ;;  %v2896_v10 = vld [vmem:[%s5698_s4 + $0x468] sm:$0xff]  ;;  %v6002_v32 = vld [vmem:[#allocation20_spill] sm:$0xff]  ;;  %v838_v47 = vld [vmem:[%s4167_s9 + $0x140] sm:$0xff] }
  0xc1   : > { %5963 = vst [vmem:[#allocation37_spill] sm:$0xff] %v4235_v37  ;;  %v4260_v26 = vsel %vm955_vm0, %v991_v55, %v992_v4  ;;  %v4263_v27 = vmul.f32 %v4177_v43, %v821_v51  ;;  %1859 = vmatpush.msrb.mxu0 %v2887_v2  ;;  %2311 = vmatpush.msra.mxu3 %v2888_v6  ;;  %v977_v57 = vrot.slane %v4245_v38, 1  ;;  %v2895_v55 = vld [vmem:[%s5698_s4 + $0x2e8] sm:$0xff] }
  0xc2   : > { %5964 = vst [vmem:[#allocation6_spill] sm:$0xff] %v4242_v29  ;;  %1126 = vmatmul.f32.vlgmr.msrb.gmra.mxu2 %v4260_v26  ;;  %2004 = vmatpush.msrb.mxu1 %v2889_v58  ;;  %v1011_v33 = vrot.slane %v4249_v60, 1  ;;  %v1012_v59 = vrot.slane %v4252_v1, 1  ;;  %v4290_v53 = vmul.f32 %v4177_v43, %v801_v42  ;;  %v4301_v16 = vmul.f32 %v4177_v43, %v802_v7  ;;  %v2898_v6 = vld [vmem:[%s5698_s4 + $0x368] sm:$0xff] }
  0xc3   : > { %5965 = vst [vmem:[#allocation32_spill] sm:$0xff] %v4245_v38  ;;  %1555 = vmatpush.msra.mxu2 %v2890_v28  ;;  %1860 = vmatpush.msrb.mxu0 %v2891_v19  ;;  %v994_v13 = vrot.slane %v4263_v27, 1  ;;  %v960_v22 = vsel %vm955_vm0, %v957_v8, %v959_v20  ;;  %v4310_v35 = vsel %vm955_vm0, %v976_v50, %v977_v57  ;;  %v2900_v50 = vld [vmem:[%s5698_s4 + $0x460] sm:$0xff]  ;;  %v803_v58 = vld [vmem:[%s4167_s9 + $0x28] sm:$0x3]  ;;  %v5974_v28 = vld [vmem:[#allocation7_spill] sm:$0xff] }
  0xc4   : > { %5966 = vst [vmem:[#allocation36_spill] sm:$0xff] %v4249_v60  ;;  %2312 = vmatpush.msra.mxu3 %v2892_v40  ;;  %2005 = vmatpush.msrb.mxu1 %v2893_v5  ;;  %v4313_v36 = vmul.f32 %v4177_v43, %v812_v14  ;;  %v4327_v8 = vsel %vm955_vm0, %v1011_v33, %v1012_v59  ;;  %v961_v11 = vrot.slane %v4290_v53, 1  ;;  %v5757_v48 = vrot.slane %v4301_v16, 1  ;;  %v813_v33 = vld [vmem:[%s4167_s9 + $0x78] sm:$0xff]  ;;  %v814_v14 = vld [vmem:[%s4167_s9 + $0x80] sm:$0xff]  ;;  %v5992_v60 = vld [vmem:[#allocation14_spill] sm:$0xff] }
  0xc5   : > { %5967 = vst [vmem:[#allocation44_spill] sm:$0xff] %v4252_v1  ;;  %1556 = vmatpush.msra.mxu2 %v2894_v25  ;;  %1861 = vmatpush.msrb.mxu0 %v2895_v55  ;;  %v4330_v12 = vmul.f32 %v4177_v43, %v833_v46  ;;  %v4340_v51 = vsel %vm955_vm0, %v992_v4, %v994_v13  ;;  %v2899_v4 = vld [vmem:[%s5698_s4 + $0x2e0] sm:$0xff]  ;;  %v835_v46 = vld [vmem:[%s4167_s9 + $0x128] sm:$0xff]  ;;  %v2902_v5 = vld [vmem:[%s5698_s4 + $0x2d8] sm:$0xff] }
  0xc6   : > { %5968 = vst [vmem:[#allocation8_spill] sm:$0xff] %v4260_v26  ;;  %2313 = vmatpush.msra.mxu3 %v2896_v10  ;;  %v4344_v42 = vmul.f32 %v4177_v43, %v822_v39  ;;  %v4347_v2 = vmul.f32 %v4177_v43, %v823_v56  ;;  %2006 = vmatpush.msrb.mxu1 %v2898_v6  ;;  %v979_v20 = vrot.slane %v4313_v36, 1  ;;  %v834_v19 = vld [vmem:[%s4167_s9 + $0x120] sm:$0xff]  ;;  %v824_v39 = vld [vmem:[%s4167_s9 + $0xd0] sm:$0x3]  ;;  %v2903_v55 = vld [vmem:[%s5698_s4 + $0x458] sm:$0xff] }
  0xc7   : > { %5969 = vst [vmem:[#allocation39_spill] sm:$0xff] %v4310_v35  ;;  %1087 = vmatmul.f32.gmra.mxu0 %v960_v22  ;;  %1108 = vmatmul.f32.gmra.mxu1 %v4310_v35  ;;  %v1014_v7 = vrot.slane %v4330_v12, 1  ;;  %v2901_v40 = vld [vmem:[%s5698_s4 + $0x360] sm:$0xff]  ;;  %v4376_v13 = vsel %vm955_vm0, %v961_v11, %v5757_v48  ;;  %v4391_v11 = vmul.f32 %v4177_v43, %v803_v58  ;;  %v807_v37 = vld [vmem:[%s4167_s9 + $0x48] sm:$0xff] }
  0xc8   : > { %5970 = vst [vmem:[#allocation45_spill] sm:$0xff] %v4327_v8  ;;  %1150 = vmatmul.f32.gmra.mxu3 %v4327_v8  ;;  %1557 = vmatpush.msra.mxu2 %v2897_v31  ;;  %v996_v25 = vrot.slane %v4344_v42, 1  ;;  %v5756_v22 = vrot.slane %v4347_v2, 1  ;;  %v5975_v56 = vld [vmem:[#allocation9_spill] sm:$0xff]  ;;  %v4388_v10 = vsel %vm955_vm0, %v977_v57, %v979_v20  ;;  %v4394_v31 = vmul.f32 %v4177_v43, %v813_v33  ;;  %v5981_v33 = vld [vmem:[#allocation15_spill] sm:$0xff] }
  0xc9   : > { %5971 = vst [vmem:[#allocation51_spill] sm:$0xff] %v4340_v51  ;;  %1862 = vmatpush.msrb.mxu0 %v2899_v4  ;;  %2314 = vmatpush.msra.mxu3 %v2900_v50  ;;  %v4397_v6 = vmul.f32 %v4177_v43, %v814_v14  ;;  %v2904_v4 = vld [vmem:[%s5698_s4 + $0x358] sm:$0xff]  ;;  %v4407_v57 = vsel %vm955_vm0, %v1012_v59, %v1014_v7  ;;  %v804_v7 = vld [vmem:[%s4167_s9 + $0x30] sm:$0xff]  ;;  %v5987_v8 = vld [vmem:[#allocation13_spill] sm:$0xff] }
  0xca   : > { %5972 = vst [vmem:[#allocation11_spill] sm:$0xff] %v4344_v42  ;;  %1129 = vmatmul.f32.gmra.mxu2 %v4340_v51  ;;  %2007 = vmatpush.msrb.mxu1 %v2901_v40  ;;  %v4410_v20 = vmul.f32 %v4177_v43, %v834_v19  ;;  %v4413_v50 = vmul.f32 %v4177_v43, %v835_v46  ;;  %v841_v14 = vld [vmem:[%s4167_s9 + $0x158] sm:$0xff]  ;;  %v5983_v19 = vld [vmem:[#allocation10_spill] sm:$0xff]  ;;  %v964_v46 = vrot.slane %v4391_v11, 1  ;;  %v981_v40 = vrot.slane %v4394_v31, 1 }
  0xcb   : > { %5973 = vst [vmem:[#allocation46_spill] sm:$0xff] %v4347_v2  ;;  %1558 = vmatpush.msra.mxu2 %v5974_v28  ;;  %1863 = vmatpush.msrb.mxu0 %v2902_v5  ;;  %v4417_v58 = vmul.f32 %v4177_v43, %v824_v39  ;;  %v4423_v59 = vsel %vm955_vm0, %v996_v25, %v5756_v22  ;;  %v2905_v28 = vld [vmem:[%s5698_s4 + $0x2d0] sm:$0xff]  ;;  %v805_v25 = vld [vmem:[%s4167_s9 + $0x38] sm:$0xff]  ;;  %v815_v39 = vld [vmem:[%s4167_s9 + $0x88] sm:$0x3] }
  0xcc   : > { %2315 = vmatpush.msra.mxu3 %v2903_v55  ;;  %5976 = vst [vmem:[#allocation52_spill] sm:$0xff] %v4388_v10  ;;  %2008 = vmatpush.msrb.mxu1 %v2904_v4  ;;  %v1016_v55 = vrot.slane %v4410_v20, 1  ;;  %v4449_v34 = vmul.f32 %v4177_v43, %v804_v7  ;;  %v4453_v22 = vmul.f32 %v4177_v43, %v841_v14  ;;  %v842_v4 = vld [vmem:[%s4167_s9 + $0x160] sm:$0x3]  ;;  %v5985_v5 = vld [vmem:[#allocation12_spill] sm:$0xff]  ;;  %v843_v14 = vld [vmem:[%s4167_s9 + $0x168] sm:$0xff] }
  0xcd   : > { %1559 = vmatpush.msra.mxu2 %v5975_v56  ;;  %5977 = vst [vmem:[#allocation16_spill] sm:$0xff] %v4394_v31  ;;  %1864 = vmatpush.msrb.mxu0 %v2905_v28  ;;  %v2906_v56 = vld [vmem:[%s5698_s4 + $0x350] sm:$0xff]  ;;  %v999_v54 = vrot.slane %v4417_v58, 1  ;;  %v4464_v48 = vmul.f32 %v4177_v43, %v815_v39  ;;  %v826_v7 = vld [vmem:[%s4167_s9 + $0xe0] sm:$0xff]  ;;  %v6001_v42 = vld [vmem:[#allocation26_spill] sm:$0xff] }
  0xce   : > { %5978 = vst [vmem:[#allocation22_spill] sm:$0xff] %v4397_v6  ;;  %2316 = vmatpush.msra.mxu3 %v5983_v19  ;;  %2009 = vmatpush.msrb.mxu1 %v2906_v56  ;;  %v5984_v28 = vld [vmem:[#allocation19_spill] sm:$0xff]  ;;  %v2907_v19 = vld [vmem:[%s5698_s4 + $0x2c8] sm:$0xff]  ;;  %v825_v56 = vld [vmem:[%s4167_s9 + $0xd8] sm:$0xff] }
  0xcf   : > { %1090 = vmatmul.f32.gmra.mxu0 %v4376_v13  ;;  %1111 = vmatmul.f32.gmra.mxu1 %v4388_v10  ;;  %5979 = vst [vmem:[#allocation31_spill] sm:$0xff] %v4407_v57  ;;  %v984_v51 = vrot.slane %v4464_v48, 1  ;;  %v6004_v10 = vld [vmem:[#allocation43_spill] sm:$0xff]  ;;  %v6008_v31 = vld [vmem:[#allocation29_spill] sm:$0xff] }
  0xd0   : > { %5980 = vst [vmem:[#allocation38_spill] sm:$0xff] %v4410_v20  ;;  %1153 = vmatmul.f32.gmra.mxu3 %v4407_v57  ;;  %1560 = vmatpush.msra.mxu2 %v5981_v33  ;;  %v836_v33 = vld [vmem:[%s4167_s9 + $0x130] sm:$0x3]  ;;  %v5986_v57 = vld [vmem:[#allocation25_spill] sm:$0xff] }
  0xd1   : > { %5982 = vst [vmem:[#allocation7_spill] sm:$0xff] %v4423_v59  ;;  %1865 = vmatpush.msrb.mxu0 %v2907_v19  ;;  %2317 = vmatpush.msra.mxu3 %v5985_v5  ;;  %v4461_v19 = vmul.f32 %v4177_v43, %v805_v25  ;;  %v5988_v5 = vrot.slane %v4301_v16, 1  ;;  %v4481_v39 = vmul.f32 %v4177_v43, %v836_v33  ;;  %v844_v20 = vld [vmem:[%s4167_s9 + $0x170] sm:$0xff] }
  0xd2   : > { %1132 = vmatmul.f32.gmra.mxu2 %v4423_v59  ;;  %v816_v59 = vld [vmem:[%s4167_s9 + $0x90] sm:$0xff]  ;;  %v4522_v26 = vmul.f32 %v4177_v43, %v844_v20 }
  0xd3   : > { %1561 = vmatpush.msra.mxu2 %v5984_v28  ;;  %v2908_v28 = vld [vmem:[%s5698_s4 + $0x348] sm:$0xff]  ;;  %1866 = vmatpush.msrb.mxu0 %v5987_v8  ;;  %v4473_v29 = vsel %vm955_vm0, %v5988_v5, %v964_v46  ;;  %v5993_v8 = vrot.slane %v4413_v50, 1  ;;  %v4498_v5 = vmul.f32 %v4177_v43, %v842_v4  ;;  %v5999_v33 = vld [vmem:[#allocation35_spill] sm:$0xff]  ;;  %v4515_v4 = vmul.f32 %v4177_v43, %v843_v14 }
  0xd4   : > { %2010 = vmatpush.msrb.mxu1 %v2908_v28  ;;  %v5989_v28 = vrot.slane %v4397_v6, 1  ;;  %v1019_v14 = vrot.slane %v4481_v39, 1  ;;  %v4537_v20 = vmul.f32 %v4177_v43, %v816_v59 }
  0xd5   : > { %1562 = vmatpush.msra.mxu2 %v5986_v57  ;;  %v5991_v57 = vld [vmem:[#allocation17_spill] sm:$0xff]  ;;  %v4491_v46 = vsel %vm955_vm0, %v1016_v55, %v5993_v8  ;;  %v966_v55 = vrot.slane %v4449_v34, 1  ;;  %v4509_v8 = vmul.f32 %v4177_v43, %v826_v7  ;;  %v6000_v7 = vld [vmem:[#allocation18_spill] sm:$0xff] }
  0xd6   : > { %v4478_v25 = vsel %vm955_vm0, %v981_v40, %v5989_v28  ;;  %2318 = vmatpush.msra.mxu3 %v5991_v57  ;;  %2011 = vmatpush.msrb.mxu1 %v5992_v60  ;;  %5994 = vst [vmem:[#allocation15_spill] sm:$0xff] %v4491_v46  ;;  %v4494_v40 = vmul.f32 %v4177_v43, %v825_v56  ;;  %v845_v28 = vld [vmem:[%s4167_s9 + $0x178] sm:$0x3]  ;;  %v5996_v60 = vrot.slane %v4347_v2, 1  ;;  %v806_v56 = vld [vmem:[%s4167_s9 + $0x40] sm:$0x3] }
  0xd7   : > { %5990 = vst [vmem:[#allocation9_spill] sm:$0xff] %v4478_v25  ;;  %1093 = vmatmul.f32.gmra.mxu0 %v4473_v29  ;;  %1114 = vmatmul.f32.gmra.mxu1 %v4478_v25  ;;  %v4534_v25 = vmul.f32 %v4177_v43, %v806_v56  ;;  %v6013_v56 = vld [vmem:[#allocation49_spill] sm:$0xff] }
  0xd8   : > { %5995 = vst [vmem:[#allocation10_spill] sm:$0xff] %v4494_v40  ;;  %1156 = vmatmul.f32.gmra.mxu3 %v4491_v46  ;;  %v4505_v57 = vsel %vm955_vm0, %v5996_v60, %v999_v54  ;;  %1563 = vmatpush.msra.mxu2 %v5999_v33  ;;  %v817_v54 = vld [vmem:[%s4167_s9 + $0x98] sm:$0xff]  ;;  %v1029_v60 = vrot.slane %v4498_v5, 1  ;;  %v818_v33 = vld [vmem:[%s4167_s9 + $0xa0] sm:$0x3]  ;;  %v4530_v46 = vmul.f32 %v4177_v43, %v845_v28  ;;  %v6006_v28 = vld [vmem:[#allocation23_spill] sm:$0xff] }
  0xd9   : > { %5997 = vst [vmem:[#allocation19_spill] sm:$0xff] %v4505_v57  ;;  %1867 = vmatpush.msrb.mxu0 %v6000_v7  ;;  %2319 = vmatpush.msra.mxu3 %v6001_v42  ;;  %v837_v7 = vld [vmem:[%s4167_s9 + $0x138] sm:$0xff]  ;;  %v6005_v42 = vrot.slane %v4453_v22, 1  ;;  %v4551_v59 = vmul.f32 %v4177_v43, %v817_v54  ;;  %v4568_v54 = vmul.f32 %v4177_v43, %v818_v33  ;;  %v6023_v33 = vld [vmem:[#allocation54_spill] sm:$0xff] }
  0xda   : > { %5998 = vst [vmem:[#allocation12_spill] sm:$0xff] %v4509_v8  ;;  %1135 = vmatmul.f32.gmra.mxu2 %v4505_v57  ;;  %2012 = vmatpush.msrb.mxu1 %v6002_v32  ;;  %v1001_v32 = vrot.slane %v4494_v40, 1  ;;  %v6014_v40 = vld [vmem:[#allocation33_spill] sm:$0xff] }
  0xdb   : > { %6003 = vst [vmem:[#allocation25_spill] sm:$0xff] %v4537_v20  ;;  %1564 = vmatpush.msra.mxu2 %v6004_v10  ;;  %v4544_v57 = vsel %vm955_vm0, %v6005_v42, %v1029_v60  ;;  %1868 = vmatpush.msrb.mxu0 %v6006_v28  ;;  %v1034_v10 = vrot.slane %v4530_v46, 1  ;;  %v6010_v60 = vrot.slane %v4461_v19, 1  ;;  %v6011_v28 = vrot.slane %v4397_v6, 1 }
  0xdc   : > { %6007 = vst [vmem:[#allocation13_spill] sm:$0xff] %v4551_v59  ;;  %2320 = vmatpush.msra.mxu3 %v6008_v31  ;;  %2013 = vmatpush.msrb.mxu1 %v6009_v61  ;;  %v6015_v61 = vrot.slane %v4413_v50, 1 }
  0xdd   : > { %v4560_v42 = vsel %vm955_vm0, %v966_v55, %v6010_v60  ;;  %v4565_v35 = vsel %vm955_vm0, %v6011_v28, %v984_v51  ;;  %1565 = vmatpush.msra.mxu2 %v6013_v56  ;;  %1869 = vmatpush.msrb.mxu0 %v6014_v40  ;;  %v4578_v55 = vmul.f32 %v4177_v43, %v837_v7  ;;  %v827_v60 = vld [vmem:[%s4167_s9 + $0xe8] sm:$0x3]  ;;  %v6018_v51 = vrot.slane %v4522_v26, 1  ;;  %v6019_v56 = vld [vmem:[#allocation40_spill] sm:$0xff] }
  0xde   : > { %6012 = vst [vmem:[#allocation17_spill] sm:$0xff] %v4565_v35  ;;  %v4575_v31 = vsel %vm955_vm0, %v6015_v61, %v1019_v14  ;;  %2321 = vmatpush.msra.mxu3 %v6019_v56  ;;  %v6020_v40 = vld [vmem:[#allocation34_spill] sm:$0xff]  ;;  %v969_v14 = vrot.slane %v4534_v25, 1  ;;  %v986_v7 = vrot.slane %v4537_v20, 1  ;;  %v4594_v61 = vmul.f32 %v4177_v43, %v838_v47 }
  0xdf   : > { %6016 = vst [vmem:[#allocation14_spill] sm:$0xff] %v4575_v31  ;;  %v4584_v28 = vsel %vm955_vm0, %v6018_v51, %v1034_v10  ;;  %2014 = vmatpush.msrb.mxu1 %v6020_v40  ;;  %1096 = vmatmul.f32.gmra.mxu0 %v4560_v42  ;;  %v1318_v10 = vrot.slane %v4313_v36, 2  ;;  %v6021_v51 = vrot.slane %v4509_v8, 1  ;;  %v1323_v20 = vrot.slane %v4464_v48, 2  ;;  %v6026_v40 = vld [vmem:[#allocation41_spill] sm:$0xff] }
  0xe0   : > { %6017 = vst [vmem:[#allocation35_spill] sm:$0xff] %v4578_v55  ;;  %1117 = vmatmul.f32.gmra.mxu1 %v4565_v35  ;;  %1159 = vmatmul.f32.gmra.mxu3 %v4575_v31  ;;  %v5806_v35 = vrot.slane %v4397_v6, 2  ;;  %v882_v47 = vmul.f32 %v4177_v43, %v827_v60  ;;  %v6024_v36 = vrot.slane %v4245_v38, 2  ;;  %v5810_v60 = vrot.slane %v4204_v44, 2 }
  0xe1   : > { %v4601_v56 = vsel %vm955_vm0, %v1001_v32, %v6021_v51  ;;  %1566 = vmatpush.msra.mxu2 %v6023_v33  ;;  %v1328_v51 = vrot.slane %v4568_v54, 2  ;;  %1870 = vmatpush.msrb.mxu0 %v6026_v40  ;;  %v6027_v33 = vld [vmem:[#allocation47_spill] sm:$0xff]  ;;  %v1021_v32 = vrot.slane %v4578_v55, 1  ;;  %v839_v40 = vld [vmem:[%s4167_s9 + $0x148] sm:$0x3] }
  0xe2   : > { %6022 = vst [vmem:[#allocation18_spill] sm:$0xff] %v4601_v56  ;;  %v4612_v31 = vsel %vm1294_vm1, %v6024_v36, %v1318_v10  ;;  %2322 = vmatpush.msra.mxu3 %v6027_v33  ;;  %1138 = vmatmul.f32.gmra.mxu2 %v4601_v56  ;;  %v4622_v48 = vsel %vm1294_vm1, %v5806_v35, %v1323_v20  ;;  %v1333_v10 = vrot.slane %v4263_v27, 2  ;;  %v6029_v36 = vld [vmem:[#allocation42_spill] sm:$0xff]  ;;  %v6030_v33 = vrot.slane %v4551_v59, 2  ;;  %v6032_v35 = vld [vmem:[#allocation48_spill] sm:$0xff] }
  0xe3   : > { %6025 = vst [vmem:[#allocation26_spill] sm:$0xff] %v4612_v31  ;;  %2015 = vmatpush.msrb.mxu1 %v6029_v36  ;;  %1567 = vmatpush.msra.mxu2 %v4018_v15  ;;  %v6033_v27 = vrot.slane %v4461_v19, 1  ;;  %v4644_v31 = vmul.f32 %v4177_v43, %v807_v37  ;;  %v2909_v15 = vld [vmem:[%s5698_s4 + $0x3f8] sm:$0xff]  ;;  %v1004_v37 = vrot.slane %v882_v47, 1  ;;  %v5811_v20 = vrot.slane %v4509_v8, 2 }
  0xe4   : > { %6028 = vst [vmem:[#allocation20_spill] sm:$0xff] %v4622_v48  ;;  %v4634_v56 = vsel %vm1294_vm1, %v6030_v33, %v1328_v51  ;;  %1871 = vmatpush.msrb.mxu0 %v6032_v35  ;;  %v4652_v51 = vsel %vm1294_vm1, %v5810_v60, %v1333_v10  ;;  %v1338_v35 = vrot.slane %v4417_v58, 2  ;;  %v6035_v33 = vld [vmem:[#allocation55_spill] sm:$0xff]  ;;  %v1343_v55 = vrot.slane %v882_v47, 2 }
  0xe5   : > { %6031 = vst [vmem:[#allocation43_spill] sm:$0xff] %v4634_v56  ;;  %v4641_v36 = vsel %vm955_vm0, %v6033_v27, %v969_v14  ;;  %2159 = vmatpush.msrb.mxu2 %v2909_v15  ;;  %2323 = vmatpush.msra.mxu3 %v6035_v33  ;;  %v6036_v14 = vrot.slane %v4551_v59, 1  ;;  %v6038_v56 = vld [vmem:[#allocation50_spill] sm:$0xff]  ;;  %v6039_v15 = vld [vmem:[#allocation53_spill] sm:$0xff]  ;;  %v4665_v10 = vmul.f32 %v4177_v43, %v839_v40  ;;  %v828_v60 = vld [vmem:[%s4167_s9 + $0xf0] sm:$0xff]  ;;  %v5814_v47 = vrot.slane %v4195_v21, 2 }
  0xe6   : > { %6034 = vst [vmem:[#allocation23_spill] sm:$0xff] %v4652_v51  ;;  %2016 = vmatpush.msrb.mxu1 %v6038_v56  ;;  %1872 = vmatpush.msrb.mxu0 %v6039_v15  ;;  %v2910_v58 = vld [vmem:[%s5698_s4 + $0x3f0] sm:$0xff]  ;;  %v1348_v56 = vrot.slane %v4198_v23, 2  ;;  %v6042_v40 = vrot.slane %v4594_v61, 1  ;;  %v5815_v23 = vrot.slane %v4252_v1, 2  ;;  %v1353_v15 = vrot.slane %v4330_v12, 2 }
  0xe7   : > { %v4659_v27 = vsel %vm955_vm0, %v986_v7, %v6036_v14  ;;  %2160 = vmatpush.msrb.mxu2 %v2910_v58  ;;  %v6040_v7 = vrot.slane %v4347_v2, 2  ;;  %2324 = vmatpush.msra.mxu3 %v4008_v63  ;;  %v971_v63 = vrot.slane %v4644_v31, 1  ;;  %v2911_v58 = vld [vmem:[%s5698_s4 + $0x3e8] sm:$0xff] }
  0xe8   : > { %6037 = vst [vmem:[#allocation29_spill] sm:$0xff] %v4659_v27  ;;  %1099 = vmatmul.f32.gmra.mxu0 %v4641_v36  ;;  %1120 = vmatmul.f32.gmra.mxu1 %v4659_v27  ;;  %v4684_v14 = vsel %vm955_vm0, %v1021_v32, %v6042_v40  ;;  %v4701_v32 = vsel %vm1294_vm1, %v5814_v47, %v1348_v56  ;;  %v6048_v56 = vld [vmem:[#allocation56_spill] sm:$0xff]  ;;  %v846_v47 = vld [vmem:[%s4167_s9 + $0x180] sm:$0xff] }
  0xe9   : > { %v4674_v33 = vsel %vm1294_vm1, %v6040_v7, %v1338_v35  ;;  %6043 = vst [vmem:[#allocation49_spill] sm:$0xff] %v4684_v14  ;;  %v4689_v35 = vsel %vm1294_vm1, %v5811_v20, %v1343_v55  ;;  %1162 = vmatmul.f32.gmra.mxu3 %v4684_v14  ;;  %2161 = vmatpush.msrb.mxu2 %v2911_v58  ;;  %v6046_v7 = vrot.slane %v4509_v8, 1  ;;  %v840_v20 = vld [vmem:[%s4167_s9 + $0x150] sm:$0xff]  ;;  %v1358_v14 = vrot.slane %v4481_v39, 2 }
  0xea   : > { %6041 = vst [vmem:[#allocation27_spill] sm:$0xff] %v4674_v33  ;;  %v4710_v40 = vmul.f32 %v4177_v43, %v828_v60  ;;  %v4716_v58 = vsel %vm1294_vm1, %v5815_v23, %v1353_v15  ;;  %2017 = vmatpush.msrb.mxu1 %v6048_v56  ;;  %1873 = vmatpush.msrb.mxu0 %v3998_v24  ;;  %v1024_v60 = vrot.slane %v4665_v10, 1  ;;  %v1363_v55 = vrot.slane %v4665_v10, 2  ;;  %v847_v15 = vld [vmem:[%s4167_s9 + $0x188] sm:$0xff]  ;;  %v2912_v24 = vld [vmem:[%s5698_s4 + $0x3e0] sm:$0xff] }
  0xeb   : > { %6044 = vst [vmem:[#allocation33_spill] sm:$0xff] %v4689_v35  ;;  %v4707_v12 = vsel %vm955_vm0, %v6046_v7, %v1004_v37  ;;  %v989_v37 = vrot.slane %v4568_v54, 1  ;;  %2325 = vmatpush.msra.mxu3 %v4057_v17  ;;  %v1295_v39 = vrot.slane %v4183_v49, 2  ;;  %2162 = vmatpush.msrb.mxu2 %v2912_v24  ;;  %v6049_v56 = vrot.slane %v4413_v50, 2  ;;  %v848_v17 = vld [vmem:[%s4167_s9 + $0x190] sm:$0x3] }
  0xec   : > { %6045 = vst [vmem:[#allocation40_spill] sm:$0xff] %v4701_v32  ;;  %1141 = vmatmul.f32.gmra.mxu2 %v4707_v12  ;;  %v5819_v23 = vrot.slane %v4453_v22, 2  ;;  %v1368_v10 = vrot.slane %v4498_v5, 2  ;;  %2018 = vmatpush.msrb.mxu1 %v4013_v3  ;;  %v4743_v7 = vmul.f32 %v4177_v43, %v840_v20  ;;  %v849_v3 = vld [vmem:[%s4167_s9 + $0x198] sm:$0xff]  ;;  %v1006_v5 = vrot.slane %v4710_v40, 1 }
  0xed   : > { %6047 = vst [vmem:[#allocation34_spill] sm:$0xff] %v4716_v58  ;;  %v4736_v54 = vsel %vm1294_vm1, %v6049_v56, %v1358_v14  ;;  %v6051_v58 = vrot.slane %v4594_v61, 2  ;;  %v4752_v56 = vmul.f32 %v4177_v43, %v846_v47  ;;  %1874 = vmatpush.msrb.mxu0 %v4050_v9  ;;  %2326 = vmatpush.msra.mxu3 %v4092_v52  ;;  %v2913_v20 = vld [vmem:[%s5698_s4 + $0x3d8] sm:$0xff]  ;;  %v1373_v47 = vrot.slane %v4530_v46, 2  ;;  %v850_v9 = vld [vmem:[%s4167_s9 + $0x1a0] sm:$0xff] }
  0xee   : > { %6050 = vst [vmem:[#allocation54_spill] sm:$0xff] %v4736_v54  ;;  %2163 = vmatpush.msrb.mxu2 %v2913_v20  ;;  %2019 = vmatpush.msrb.mxu1 %v4067_v18  ;;  %v851_v52 = vld [vmem:[%s4167_s9 + $0x1a8] sm:$0x3]  ;;  %v6055_v14 = vrot.slane %v4189_v45, 1  ;;  %v6057_v20 = vrot.slane %v4551_v59, 1  ;;  %v6061_v18 = vrot.slane %v4522_v26, 2 }
  0xef   : > { %v4748_v24 = vsel %vm1294_vm1, %v6051_v58, %v1363_v55  ;;  %6053 = vst [vmem:[#allocation47_spill] sm:$0xff] %v4752_v56  ;;  %v4764_v55 = vsel %vm1294_vm1, %v5819_v23, %v1368_v10  ;;  %v4768_v58 = vmul.f32 %v4177_v43, %v847_v15  ;;  %v6059_v10 = vrot.slane %v4594_v61, 1 }
  0xf0   : > { %6052 = vst [vmem:[#allocation41_spill] sm:$0xff] %v4748_v24  ;;  %v4776_v56 = vsel %vm955_vm0, %v971_v63, %v6055_v14  ;;  %v4781_v24 = vsel %vm955_vm0, %v6057_v20, %v989_v37  ;;  %v903_v15 = vmul.f32 %v4177_v43, %v848_v17  ;;  %v4794_v63 = vsel %vm1294_vm1, %v6061_v18, %v1373_v47 }
  0xf1   : > { %6054 = vst [vmem:[#allocation42_spill] sm:$0xff] %v4764_v55  ;;  %v4786_v46 = vsel %vm955_vm0, %v6059_v10, %v1024_v60  ;;  %1102 = vmatmul.f32.gmra.mxu0 %v4776_v56  ;;  %1123 = vmatmul.f32.gmra.mxu1 %v4781_v24  ;;  %v4799_v20 = vmul.f32 %v4177_v43, %v849_v3  ;;  %v2914_v60 = vld [vmem:[%s5698_s4 + $0x3d0] sm:$0xff]  ;;  %v6065_v23 = vrot.slane %v4195_v21, 1  ;;  %v1296_v3 = vrot.slane %v4186_v41, 2 }
  0xf2   : > { %6056 = vst [vmem:[#allocation48_spill] sm:$0xff] %v4776_v56  ;;  %1165 = vmatmul.f32.gmra.mxu3 %v4786_v46  ;;  %2164 = vmatpush.msrb.mxu2 %v2914_v60  ;;  %v1703_v17 = vrot.slane %v903_v15, 1  ;;  %v4806_v10 = vmul.f32 %v4177_v43, %v850_v9  ;;  %v1855_v47 = vrot.slane %v903_v15, 2  ;;  %v906_v18 = vmul.f32 %v4177_v43, %v851_v52 }
  0xf3   : > { %6058 = vst [vmem:[#allocation55_spill] sm:$0xff] %v4781_v24  ;;  %v4812_v37 = vsel %vm955_vm0, %v1006_v5, %v6065_v23  ;;  %v2152_v14 = vrot.slane %v4799_v20, 1  ;;  %v6066_v60 = vrot.slane %v4768_v58, 1  ;;  %v6068_v52 = vrot.slane %v4768_v58, 2 }
  0xf4   : > { %6060 = vst [vmem:[#allocation50_spill] sm:$0xff] %v4786_v46  ;;  %1144 = vmatmul.f32.gmra.mxu2 %v4812_v37  ;;  %v2153_v43 = vrot.slane %v4806_v10, 1  ;;  %v2155_v5 = vrot.slane %v906_v18, 1  ;;  %v1026_v15 = vrot.slane %v4743_v7, 1  ;;  %v2305_v46 = vrot.slane %v4806_v10, 2 }
  0xf5   : > { %6062 = vst [vmem:[#allocation53_spill] sm:$0xff] %v4794_v63  ;;  %v2304_v63 = vrot.slane %v4799_v20, 2  ;;  %v4821_v9 = vsel %vm955_vm0, %v6066_v60, %v1703_v17  ;;  %v4827_v23 = vsel %vm1294_vm1, %v6068_v52, %v1855_v47  ;;  %v2307_v55 = vrot.slane %v906_v18, 2  ;;  %v2916_v47 = vld [vmem:[%s5698_s4 + $0x3c0] sm:$0xff] }
  0xf6   : > { %6063 = vst [vmem:[#allocation56_spill] sm:$0xff] %v4799_v20  ;;  %v2915_v20 = vld [vmem:[%s5698_s4 + $0x3c8] sm:$0xff]  ;;  %v4835_v17 = vsel %vm955_vm0, %v2152_v14, %v2153_v43  ;;  %v4838_v60 = vsel %vm955_vm0, %v2153_v43, %v2155_v5  ;;  %v6074_v18 = vrot.slane %v4453_v22, 1  ;;  %v1300_v43 = vrot.slane %v4290_v53, 2 }
  0xf7   : > { %6064 = vst [vmem:[#allocation58_spill] sm:$0xff] %v4806_v10  ;;  %2165 = vmatpush.msrb.mxu2 %v2915_v20  ;;  %v4844_v52 = vsel %vm1294_vm1, %v2304_v63, %v2305_v46  ;;  %v1297_v20 = vsel %vm1294_vm1, %v1295_v39, %v1296_v3  ;;  %v2917_v63 = vld [vmem:[%s5698_s4 + $0x3b8] sm:$0xff]  ;;  %v2918_v39 = vld [vmem:[%s5698_s4 + $0x3b0] sm:$0xff]  ;;  %v1301_v5 = vrot.slane %v4301_v16, 2 }
  0xf8   : > { %6067 = vst [vmem:[#allocation59_spill] sm:$0xff] %v4821_v9  ;;  %v4853_v14 = vsel %vm955_vm0, %v1026_v15, %v6074_v18  ;;  %v1031_v15 = vrot.slane %v4515_v4, 1  ;;  %v6111_v9 = vrot.slane %v4347_v2, 2 }
  0xf9   : > { %6069 = vst [vmem:[#allocation60_spill] sm:$0xff] %v4827_v23  ;;  %2166 = vmatpush.msrb.mxu2 %v2916_v47  ;;  %v4847_v23 = vsel %vm1294_vm1, %v2305_v46, %v2307_v55  ;;  %1197 = vmatmul.f32.vlgmr.msra.gmra.mxu0 %v4183_v49  ;;  %v1298_v55 = vrot.slane %v4232_v62, 2  ;;  %v2919_v49 = vld [vmem:[%s5698_s4 + $0x3a8] sm:$0xff]  ;;  %v2920_v62 = vld [vmem:[%s5698_s4 + $0x3a0] sm:$0xff]  ;;  %v4883_v47 = vsel %vm1294_vm1, %v1300_v43, %v1301_v5 }
  0xfa   : > { %6070 = vst [vmem:[#allocation61_spill] sm:$0xff] %v4835_v17  ;;  %1423 = vmatmul.f32.vlgmr.msra.gmra.mxu1 %v1297_v20  ;;  %1168 = vmatmul.f32.gmra.mxu3 %v4853_v14  ;;  %v6076_v20 = vrot.slane %v4522_v26, 1 }
  0xfb   : > { %6071 = vst [vmem:[#allocation62_spill] sm:$0xff] %v4838_v60  ;;  %2167 = vmatpush.msrb.mxu2 %v2917_v63  ;;  %v1299_v46 = vsel %vm1294_vm1, %v1296_v3, %v1298_v55  ;;  %v6075_v3 = vld [vmem:[#allocation57_spill] sm:$0xff]  ;;  %v1303_v63 = vrot.slane %v4391_v11, 2  ;;  %v1310_v11 = vrot.slane %v4644_v31, 2 }
  0xfc   : > { %6072 = vst [vmem:[#allocation63_spill] sm:$0xff] %v4844_v52  ;;  %1568 = vmatmul.f32.vlgmr.msra.gmra.mxu2 %v4290_v53  ;;  %v4888_v18 = vsel %vm955_vm0, %v1031_v15, %v6076_v20  ;;  %v6092_v52 = vld [vmem:[#allocation25_spill] sm:$0xff] }
  0xfd   : > { %6073 = vst [vmem:[#allocation64_spill] sm:$0xff] %v4847_v23  ;;  %2168 = vmatpush.msrb.mxu2 %v2918_v39  ;;  %v4898_v55 = vsel %vm1294_vm1, %v1301_v5, %v1303_v63  ;;  %v6082_v5 = vrot.slane %v4245_v38, 2  ;;  %v6091_v23 = vld [vmem:[#allocation39_spill] sm:$0xff] }
  0xff   : > { %2169 = vmatpush.msrb.mxu2 %v2919_v49  ;;  %v1311_v49 = vrot.slane %v4189_v45, 2 }
 0x101   : > { %1200 = vmatmul.f32.gmra.mxu0 %v4186_v41  ;;  %2170 = vmatpush.msrb.mxu2 %v2920_v62  ;;  %v2921_v41 = vld [vmem:[%s5698_s4 + $0x398] sm:$0xff] }
 0x102   : > { %1426 = vmatmul.f32.gmra.mxu1 %v1299_v46  ;;  %1171 = vmatmul.f32.gmra.mxu3 %v4544_v57  ;;  %v6080_v46 = vld [vmem:[#allocation28_spill] sm:$0xff] }
 0x103   : > { %2171 = vmatpush.msrb.mxu2 %v2921_v41  ;;  %v1313_v62 = vrot.slane %v6080_v46, 2  ;;  %v6084_v41 = vld [vmem:[#allocation16_spill] sm:$0xff] }
 0x104   : > { %1571 = vmatmul.f32.gmra.mxu2 %v4301_v16 }
 0x105   : > { %2172 = vmatpush.msrb.mxu2 %v6075_v3 }
 0x107   : > { %2173 = vmatpush.msrb.mxu2 %v4040_v0  ;;  %v1306_v0 = vrot.slane %v4461_v19, 2 }
 0x109   : > { %1203 = vmatmul.f32.gmra.mxu0 %v4290_v53  ;;  %2174 = vmatpush.msrb.mxu2 %v4079_v30  ;;  %v1305_v53 = vrot.slane %v4449_v34, 2  ;;  %v1308_v30 = vrot.slane %v4534_v25, 2  ;;  %v6079_v25 = vld [vmem:[#allocation37_spill] sm:$0xff] }
 0x10a   : > { %1429 = vmatmul.f32.gmra.mxu1 %v4883_v47  ;;  %1174 = vmatmul.f32.gmra.mxu3 %v4888_v18  ;;  %v1315_v43 = vrot.slane %v6079_v25, 2 }
 0x10b   : > { %v4907_v39 = vsel %vm1294_vm1, %v1305_v53, %v1306_v0  ;;  %v6086_v53 = vld [vmem:[#allocation26_spill] sm:$0xff] }
 0x10c   : > { %1574 = vmatmul.f32.gmra.mxu2 %v4449_v34  ;;  %v4942_v15 = vsel %vm1294_vm1, %v1315_v43, %v6082_v5  ;;  %v6089_v43 = vrot.slane %v4397_v6, 2 }
 0x10d   : > { %6083 = vst [vmem:[#allocation66_spill] sm:$0xff] %v4942_v15 }
 0x111   : > { %1206 = vmatmul.f32.gmra.mxu0 %v4301_v16  ;;  %v4915_v16 = vsel %vm1294_vm1, %v1306_v0, %v1308_v30  ;;  %v6087_v0 = vld [vmem:[#allocation30_spill] sm:$0xff]  ;;  %v1320_v30 = vrot.slane %v6084_v41, 2 }
 0x112   : > { %1432 = vmatmul.f32.gmra.mxu1 %v4898_v55  ;;  %1177 = vmatmul.f32.gmra.mxu3 %v4584_v28  ;;  %6077 = vst [vmem:[#allocation57_spill] sm:$0xff] %v4915_v16 }
 0x113   : > { %v4970_v5 = vsel %vm1294_vm1, %v1320_v30, %v6089_v43  ;;  %v6094_v30 = vld [vmem:[#allocation52_spill] sm:$0xff]  ;;  %v1325_v43 = vrot.slane %v6092_v52, 2 }
 0x114   : > { %1577 = vmatmul.f32.gmra.mxu2 %v4461_v19  ;;  %6090 = vst [vmem:[#allocation69_spill] sm:$0xff] %v4970_v5 }
 0x119   : > { %1209 = vmatmul.f32.gmra.mxu0 %v4449_v34 }
 0x11a   : > { %1435 = vmatmul.f32.gmra.mxu1 %v4907_v39  ;;  %1723 = vmatmul.f32.vlgmr.msrb.gmra.mxu3 %v4376_v13  ;;  %v4924_v13 = vsel %vm1294_vm1, %v1310_v11, %v1311_v49 }
 0x11b   : > { %6078 = vst [vmem:[#allocation65_spill] sm:$0xff] %v4924_v13 }
 0x11c   : > { %1580 = vmatmul.f32.gmra.mxu2 %v4644_v31 }
 0x121   : > { %1212 = vmatmul.f32.gmra.mxu0 %v4461_v19 }
 0x122   : > { %1438 = vmatmul.f32.gmra.mxu1 %v4915_v16  ;;  %1726 = vmatmul.f32.gmra.mxu3 %v4473_v29  ;;  %v4932_v29 = vsel %vm1294_vm1, %v1311_v49, %v1313_v62 }
 0x123   : > { %6081 = vst [vmem:[#allocation28_spill] sm:$0xff] %v4932_v29 }
 0x124   : > { %1583 = vmatmul.f32.gmra.mxu2 %v4189_v45 }
 0x129   : > { %1215 = vmatmul.f32.gmra.mxu0 %v4644_v31 }
 0x12a   : > { %1441 = vmatmul.f32.gmra.mxu1 %v4924_v13  ;;  %1729 = vmatmul.f32.gmra.mxu3 %v4560_v42 }
 0x12c   : > { %1586 = vmatmul.f32.gmra.mxu2 %v6079_v25 }
 0x131   : > { %1218 = vmatmul.f32.gmra.mxu0 %v4189_v45 }
 0x132   : > { %1444 = vmatmul.f32.gmra.mxu1 %v4932_v29  ;;  %1732 = vmatmul.f32.gmra.mxu3 %v4641_v36 }
 0x134   : > { %1589 = vmatmul.f32.gmra.mxu2 %v4245_v38 }
 0x139   : > { %1221 = vmatmul.f32.gmra.mxu0 %v6079_v25  ;;  %v6104_v25 = vrot.slane %v4204_v44, 2 }
 0x13a   : > { %1447 = vmatmul.f32.gmra.mxu1 %v4942_v15  ;;  %1735 = vmatmul.f32.gmra.mxu3 %v4776_v56  ;;  %v6096_v15 = vrot.slane %v4551_v59, 2 }
 0x13c   : > { %1592 = vmatmul.f32.gmra.mxu2 %v6084_v41  ;;  %v4948_v3 = vpop.f32.mrf.mxu0  ;;  %v4950_v20 = vpop.f32.mrf.mxu1 }
 0x13d   : > { %v4952_v63 = vpop.f32.mrf.mxu2 }
 0x13e   : > { %6085 = vst [vmem:[#allocation67_spill] sm:$0xff] %v4952_v63 }
 0x141   : > { %1224 = vmatmul.f32.gmra.mxu0 %v4245_v38 }
 0x142   : > { %1450 = vmatmul.f32.gmra.mxu1 %v6086_v53  ;;  %1738 = vmatmul.f32.gmra.mxu3 %v6087_v0 }
 0x143   : > { %v4959_v11 = vpop.f32.mrf.mxu3 }
 0x144   : > { %1595 = vmatmul.f32.gmra.mxu2 %v4397_v6  ;;  %6088 = vst [vmem:[#allocation68_spill] sm:$0xff] %v4959_v11  ;;  %v4961_v49 = vpop.f32.mrf.mxu0  ;;  %v4963_v46 = vpop.f32.mrf.mxu1 }
 0x145   : > { %v4965_v62 = vpop.f32.mrf.mxu2 }
 0x149   : > { %1227 = vmatmul.f32.gmra.mxu0 %v6084_v41 }
 0x14a   : > { %1453 = vmatmul.f32.gmra.mxu1 %v4970_v5  ;;  %1741 = vmatmul.f32.gmra.mxu3 %v6091_v23 }
 0x14b   : > { %v4976_v60 = vpop.f32.mrf.mxu3 }
 0x14c   : > { %1598 = vmatmul.f32.gmra.mxu2 %v6092_v52  ;;  %6093 = vst [vmem:[#allocation70_spill] sm:$0xff] %v4976_v60  ;;  %v4978_v10 = vpop.f32.mrf.mxu0  ;;  %v4980_v17 = vpop.f32.mrf.mxu1 }
 0x14d   : > { %v4982_v63 = vpop.f32.mrf.mxu2 }
 0x151   : > { %1230 = vmatmul.f32.gmra.mxu0 %v4397_v6  ;;  %v5000_v6 = vsel %vm1294_vm1, %v1325_v43, %v6096_v15  ;;  %v6101_v15 = vld [vmem:[#allocation43_spill] sm:$0xff]  ;;  %v6102_v43 = vld [vmem:[#allocation17_spill] sm:$0xff] }
 0x152   : > { %1456 = vmatmul.f32.gmra.mxu1 %v4622_v48  ;;  %1744 = vmatmul.f32.gmra.mxu3 %v6094_v30  ;;  %6097 = vst [vmem:[#allocation72_spill] sm:$0xff] %v5000_v6  ;;  %v6098_v48 = vld [vmem:[#allocation9_spill] sm:$0xff] }
 0x153   : > { %v4989_v5 = vpop.f32.mrf.mxu3  ;;  %v6099_v30 = vld [vmem:[#allocation5_spill] sm:$0xff] }
 0x154   : > { %1601 = vmatmul.f32.gmra.mxu2 %v4551_v59  ;;  %6095 = vst [vmem:[#allocation71_spill] sm:$0xff] %v4989_v5  ;;  %v4991_v53 = vpop.f32.mrf.mxu0  ;;  %v4993_v60 = vpop.f32.mrf.mxu1 }
 0x155   : > { %v4995_v41 = vpop.f32.mrf.mxu2 }
 0x159   : > { %1233 = vmatmul.f32.gmra.mxu0 %v6092_v52 }
 0x15a   : > { %1459 = vmatmul.f32.gmra.mxu1 %v5000_v6  ;;  %1747 = vmatmul.f32.gmra.mxu3 %v6098_v48  ;;  %v1330_v6 = vrot.slane %v6099_v30, 2 }
 0x15b   : > { %v5006_v5 = vpop.f32.mrf.mxu3 }
 0x15c   : > { %1604 = vmatmul.f32.gmra.mxu2 %v6099_v30  ;;  %6100 = vst [vmem:[#allocation73_spill] sm:$0xff] %v5006_v5  ;;  %v5008_v11 = vpop.f32.mrf.mxu0 }
 0x15d   : > { %v5010_v38 = vpop.f32.mrf.mxu1  ;;  %v5012_v29 = vpop.f32.mrf.mxu2 }
 0x161   : > { %1236 = vmatmul.f32.gmra.mxu0 %v4551_v59  ;;  %v5030_v59 = vsel %vm1294_vm1, %v1330_v6, %v6104_v25 }
 0x162   : > { %1462 = vmatmul.f32.gmra.mxu1 %v6101_v15  ;;  %1750 = vmatmul.f32.gmra.mxu3 %v6102_v43  ;;  %6105 = vst [vmem:[#allocation75_spill] sm:$0xff] %v5030_v59  ;;  %v6106_v15 = vld [vmem:[#allocation11_spill] sm:$0xff] }
 0x163   : > { %v5019_v52 = vpop.f32.mrf.mxu3  ;;  %v1335_v6 = vrot.slane %v6106_v15, 2 }
 0x164   : > { %1607 = vmatmul.f32.gmra.mxu2 %v4204_v44  ;;  %6103 = vst [vmem:[#allocation74_spill] sm:$0xff] %v5019_v52 }
 0x165   : > { %v5021_v48 = vpop.f32.mrf.mxu0  ;;  %v5023_v5 = vpop.f32.mrf.mxu1 }
 0x166   : > { %v5025_v23 = vpop.f32.mrf.mxu2 }
 0x169   : > { %1239 = vmatmul.f32.gmra.mxu0 %v6099_v30 }
 0x16a   : > { %1465 = vmatmul.f32.gmra.mxu1 %v5030_v59  ;;  %1753 = vmatmul.f32.gmra.mxu3 %v4659_v27 }
 0x16c   : > { %1610 = vmatmul.f32.gmra.mxu2 %v6106_v15  ;;  %v5036_v52 = vpop.f32.mrf.mxu3 }
 0x16d   : > { %6107 = vst [vmem:[#allocation11_spill] sm:$0xff] %v5036_v52 }
 0x16e   : > { %v5038_v43 = vpop.f32.mrf.mxu0  ;;  %v5040_v13 = vpop.f32.mrf.mxu1 }
 0x16f   : > { %v5042_v0 = vpop.f32.mrf.mxu2 }
 0x170   : > { %6108 = vst [vmem:[#allocation76_spill] sm:$0xff] %v5042_v0  ;;  %v6114_v0 = vld [vmem:[#allocation10_spill] sm:$0xff] }
 0x171   : > { %1242 = vmatmul.f32.gmra.mxu0 %v4204_v44  ;;  %v5057_v44 = vsel %vm1294_vm1, %v1335_v6, %v6111_v9  ;;  %v6116_v9 = vld [vmem:[#allocation51_spill] sm:$0xff] }
 0x172   : > { %1468 = vmatmul.f32.gmra.mxu1 %v4652_v51  ;;  %1756 = vmatmul.f32.gmra.mxu3 %v4781_v24  ;;  %6112 = vst [vmem:[#allocation79_spill] sm:$0xff] %v5057_v44  ;;  %v6113_v24 = vld [vmem:[#allocation8_spill] sm:$0xff] }
 0x174   : > { %1613 = vmatmul.f32.gmra.mxu2 %v4347_v2 }
 0x175   : > { %v5049_v25 = vpop.f32.mrf.mxu3 }
 0x176   : > { %6109 = vst [vmem:[#allocation77_spill] sm:$0xff] %v5049_v25  ;;  %v1198_v59 = vpop.f32.mrf.mxu0 }
 0x177   : > { %v1424_v52 = vpop.f32.mrf.mxu1  ;;  %v1199_v30 = vadd.f32 %v1198_v59, %v4948_v3  ;;  %v5052_v27 = vpop.f32.mrf.mxu2 }
 0x178   : > { %6110 = vst [vmem:[#allocation78_spill] sm:$0xff] %v5052_v27 }
 0x179   : > { %v1520_v51 = vadd.f32 %v1424_v52, %v1199_v30  ;;  %1245 = vmatmul.f32.gmra.mxu0 %v6106_v15  ;;  %v1340_v52 = vrot.slane %v6114_v0, 2 }
 0x17a   : > { %1471 = vmatmul.f32.gmra.mxu1 %v5057_v44  ;;  %1759 = vmatmul.f32.gmra.mxu3 %v6113_v24 }
 0x17c   : > { %1616 = vmatmul.f32.gmra.mxu2 %v6114_v0 }
 0x17d   : > { %v5063_v25 = vpop.f32.mrf.mxu3 }
 0x17e   : > { %6115 = vst [vmem:[#allocation8_spill] sm:$0xff] %v5063_v25  ;;  %v1201_v45 = vpop.f32.mrf.mxu0 }
 0x17f   : > { %v1427_v59 = vpop.f32.mrf.mxu1  ;;  %v1202_v3 = vadd.f32 %v1201_v45, %v4961_v49  ;;  %v1569_v27 = vpop.f32.mrf.mxu2 }
 0x180   : > { %v1665_v16 = vadd.f32 %v1569_v27, %v1520_v51  ;;  %v6118_v51 = vrot.slane %v4509_v8, 2 }
 0x181   : > { %v1521_v56 = vadd.f32 %v1427_v59, %v1202_v3  ;;  %1248 = vmatmul.f32.gmra.mxu0 %v4347_v2  ;;  %v6120_v3 = vld [vmem:[#allocation7_spill] sm:$0xff] }
 0x182   : > { %1474 = vmatmul.f32.gmra.mxu1 %v4674_v33  ;;  %1762 = vmatmul.f32.gmra.mxu3 %v6116_v9  ;;  %v5077_v27 = vsel %vm1294_vm1, %v1340_v52, %v6118_v51 }
 0x183   : > { %6119 = vst [vmem:[#allocation80_spill] sm:$0xff] %v5077_v27 }
 0x184   : > { %1619 = vmatmul.f32.gmra.mxu2 %v4509_v8 }
 0x185   : > { %v5071_v30 = vpop.f32.mrf.mxu3 }
 0x186   : > { %6117 = vst [vmem:[#allocation51_spill] sm:$0xff] %v5071_v30  ;;  %v1204_v6 = vpop.f32.mrf.mxu0 }
 0x187   : > { %v1430_v44 = vpop.f32.mrf.mxu1  ;;  %v1205_v25 = vadd.f32 %v1204_v6, %v4978_v10  ;;  %v1572_v45 = vpop.f32.mrf.mxu2 }
 0x188   : > { %v1666_v49 = vadd.f32 %v1572_v45, %v1521_v56 }
 0x189   : > { %v1522_v59 = vadd.f32 %v1430_v44, %v1205_v25  ;;  %1251 = vmatmul.f32.gmra.mxu0 %v6114_v0  ;;  %v6122_v44 = vld [vmem:[#allocation19_spill] sm:$0xff]  ;;  %v1345_v25 = vrot.slane %v4710_v40, 2 }
 0x18a   : > { %1477 = vmatmul.f32.gmra.mxu1 %v5077_v27  ;;  %1765 = vmatmul.f32.gmra.mxu3 %v6120_v3 }
 0x18c   : > { %1622 = vmatmul.f32.gmra.mxu2 %v4710_v40 }
 0x18d   : > { %v5083_v33 = vpop.f32.mrf.mxu3 }
 0x18e   : > { %6121 = vst [vmem:[#allocation7_spill] sm:$0xff] %v5083_v33  ;;  %v1207_v30 = vpop.f32.mrf.mxu0 }
 0x18f   : > { %v1433_v10 = vpop.f32.mrf.mxu1  ;;  %v1208_v56 = vadd.f32 %v1207_v30, %v4991_v53  ;;  %v1575_v6 = vpop.f32.mrf.mxu2 }
 0x190   : > { %v1667_v45 = vadd.f32 %v1575_v6, %v1522_v59  ;;  %v6124_v59 = vrot.slane %v4195_v21, 2  ;;  %v6125_v6 = vld [vmem:[#allocation18_spill] sm:$0xff] }
 0x191   : > { %v1523_v2 = vadd.f32 %v1433_v10, %v1208_v56  ;;  %1254 = vmatmul.f32.gmra.mxu0 %v4509_v8 }
 0x192   : > { %1480 = vmatmul.f32.gmra.mxu1 %v4689_v35  ;;  %1768 = vmatmul.f32.gmra.mxu3 %v6122_v44  ;;  %v5097_v10 = vsel %vm1294_vm1, %v1345_v25, %v6124_v59  ;;  %v6126_v35 = vld [vmem:[#allocation36_spill] sm:$0xff] }
 0x194   : > { %1625 = vmatmul.f32.gmra.mxu2 %v4195_v21 }
 0x195   : > { %v5091_v52 = vpop.f32.mrf.mxu3 }
 0x196   : > { %6123 = vst [vmem:[#allocation19_spill] sm:$0xff] %v5091_v52  ;;  %v1210_v51 = vpop.f32.mrf.mxu0 }
 0x197   : > { %v1436_v27 = vpop.f32.mrf.mxu1  ;;  %v1211_v33 = vadd.f32 %v1210_v51, %v5008_v11  ;;  %v1578_v53 = vpop.f32.mrf.mxu2 }
 0x198   : > { %v1668_v30 = vadd.f32 %v1578_v53, %v1523_v2 }
 0x199   : > { %v1524_v56 = vadd.f32 %v1436_v27, %v1211_v33  ;;  %1257 = vmatmul.f32.gmra.mxu0 %v4710_v40  ;;  %v1350_v33 = vrot.slane %v6126_v35, 2 }
 0x19a   : > { %1483 = vmatmul.f32.gmra.mxu1 %v5097_v10  ;;  %1771 = vmatmul.f32.gmra.mxu3 %v6125_v6 }
 0x19c   : > { %1628 = vmatmul.f32.gmra.mxu2 %v6126_v35 }
 0x19d   : > { %v1724_v52 = vpop.f32.mrf.mxu3 }
 0x19e   : > { %v5103_v8 = vadd.f32 %v1724_v52, %v1665_v16  ;;  %v1213_v11 = vpop.f32.mrf.mxu0 }
 0x19f   : > { %v1439_v51 = vpop.f32.mrf.mxu1  ;;  %v1214_v2 = vadd.f32 %v1213_v11, %v5021_v48  ;;  %v1581_v53 = vpop.f32.mrf.mxu2 }
 0x1a0   : > { %6127 = vst [vmem:[#allocation18_spill] sm:$0xff] %v5103_v8  ;;  %v1669_v0 = vadd.f32 %v1581_v53, %v1524_v56 }
 0x1a1   : > { %v1525_v25 = vadd.f32 %v1439_v51, %v1214_v2  ;;  %1260 = vmatmul.f32.gmra.mxu0 %v4195_v21  ;;  %v6129_v51 = vrot.slane %v4252_v1, 2 }
 0x1a2   : > { %1486 = vmatmul.f32.gmra.mxu1 %v4701_v32  ;;  %1774 = vmatmul.f32.gmra.mxu3 %v4707_v12 }
 0x1a3   : > { %v5117_v2 = vsel %vm1294_vm1, %v1350_v33, %v6129_v51  ;;  %v6133_v33 = vld [vmem:[#allocation34_spill] sm:$0xff] }
 0x1a4   : > { %1631 = vmatmul.f32.gmra.mxu2 %v4252_v1  ;;  %6130 = vst [vmem:[#allocation81_spill] sm:$0xff] %v5117_v2 }
 0x1a5   : > { %v1727_v27 = vpop.f32.mrf.mxu3 }
 0x1a6   : > { %v5111_v16 = vadd.f32 %v1727_v27, %v1666_v49  ;;  %v1216_v52 = vpop.f32.mrf.mxu0  ;;  %v6131_v49 = vld [vmem:[#allocation38_spill] sm:$0xff] }
 0x1a7   : > { %v1442_v59 = vpop.f32.mrf.mxu1  ;;  %v1217_v48 = vadd.f32 %v1216_v52, %v5038_v43  ;;  %v1584_v11 = vpop.f32.mrf.mxu2  ;;  %v1355_v51 = vrot.slane %v6131_v49, 2 }
 0x1a8   : > { %6128 = vst [vmem:[#allocation36_spill] sm:$0xff] %v5111_v16  ;;  %v1670_v56 = vadd.f32 %v1584_v11, %v1525_v25 }
 0x1a9   : > { %v1526_v53 = vadd.f32 %v1442_v59, %v1217_v48  ;;  %1263 = vmatmul.f32.gmra.mxu0 %v6126_v35  ;;  %v6134_v48 = vld [vmem:[#allocation6_spill] sm:$0xff] }
 0x1aa   : > { %1489 = vmatmul.f32.gmra.mxu1 %v5117_v2  ;;  %1777 = vmatmul.f32.gmra.mxu3 %v4812_v37 }
 0x1ac   : > { %1634 = vmatmul.f32.gmra.mxu2 %v6131_v49 }
 0x1ad   : > { %v1730_v27 = vpop.f32.mrf.mxu3 }
 0x1ae   : > { %v5123_v16 = vadd.f32 %v1730_v27, %v1667_v45  ;;  %v1219_v43 = vpop.f32.mrf.mxu0 }
 0x1af   : > { %v1445_v52 = vpop.f32.mrf.mxu1  ;;  %v1587_v25 = vpop.f32.mrf.mxu2  ;;  %v1220_v59 = vadd.f32 %v1219_v43, %v4950_v20  ;;  %v6137_v43 = vld [vmem:[#allocation45_spill] sm:$0xff] }
 0x1b0   : > { %6132 = vst [vmem:[#allocation38_spill] sm:$0xff] %v5123_v16  ;;  %v1671_v11 = vadd.f32 %v1587_v25, %v1526_v53  ;;  %v6136_v25 = vrot.slane %v4413_v50, 2 }
 0x1b1   : > { %1266 = vmatmul.f32.gmra.mxu0 %v4252_v1  ;;  %v1527_v8 = vadd.f32 %v1445_v52, %v1220_v59  ;;  %v6138_v52 = vld [vmem:[#allocation35_spill] sm:$0xff] }
 0x1b2   : > { %1492 = vmatmul.f32.gmra.mxu1 %v6133_v33  ;;  %1780 = vmatmul.f32.gmra.mxu3 %v6134_v48  ;;  %v5136_v33 = vsel %vm1294_vm1, %v1355_v51, %v6136_v25  ;;  %v6140_v25 = vld [vmem:[#allocation31_spill] sm:$0xff] }
 0x1b4   : > { %1637 = vmatmul.f32.gmra.mxu2 %v4413_v50 }
 0x1b5   : > { %v1733_v2 = vpop.f32.mrf.mxu3 }
 0x1b6   : > { %v5131_v45 = vadd.f32 %v1733_v2, %v1668_v30  ;;  %v1222_v27 = vpop.f32.mrf.mxu0 }
 0x1b7   : > { %v1448_v16 = vpop.f32.mrf.mxu1  ;;  %v1590_v32 = vpop.f32.mrf.mxu2  ;;  %v1223_v20 = vadd.f32 %v1222_v27, %v4963_v46  ;;  %v1360_v46 = vrot.slane %v6138_v52, 2 }
 0x1b8   : > { %6135 = vst [vmem:[#allocation6_spill] sm:$0xff] %v5131_v45  ;;  %v1672_v53 = vadd.f32 %v1590_v32, %v1527_v8 }
 0x1b9   : > { %1269 = vmatmul.f32.gmra.mxu0 %v6131_v49  ;;  %v1528_v2 = vadd.f32 %v1448_v16, %v1223_v20 }
 0x1ba   : > { %1495 = vmatmul.f32.gmra.mxu1 %v5136_v33  ;;  %1783 = vmatmul.f32.gmra.mxu3 %v6137_v43 }
 0x1bc   : > { %1640 = vmatmul.f32.gmra.mxu2 %v6138_v52 }
 0x1bd   : > { %v1736_v30 = vpop.f32.mrf.mxu3 }
 0x1be   : > { %v5143_v59 = vadd.f32 %v1736_v30, %v1669_v0  ;;  %v1225_v8 = vpop.f32.mrf.mxu0 }
 0x1bf   : > { %v1451_v32 = vpop.f32.mrf.mxu1  ;;  %v1593_v45 = vpop.f32.mrf.mxu2  ;;  %v1226_v51 = vadd.f32 %v1225_v8, %v4980_v17  ;;  %v6144_v8 = vld [vmem:[#allocation15_spill] sm:$0xff] }
 0x1c0   : > { %6139 = vst [vmem:[#allocation45_spill] sm:$0xff] %v5143_v59  ;;  %v1673_v1 = vadd.f32 %v1593_v45, %v1528_v2  ;;  %v6142_v2 = vrot.slane %v4594_v61, 2 }
 0x1c1   : > { %1272 = vmatmul.f32.gmra.mxu0 %v4413_v50  ;;  %v1529_v16 = vadd.f32 %v1451_v32, %v1226_v51 }
 0x1c2   : > { %1498 = vmatmul.f32.gmra.mxu1 %v4736_v54  ;;  %1786 = vmatmul.f32.gmra.mxu3 %v6140_v25  ;;  %v5156_v54 = vsel %vm1294_vm1, %v1360_v46, %v6142_v2  ;;  %v6146_v46 = vld [vmem:[#allocation41_spill] sm:$0xff] }
 0x1c3   : > { %6143 = vst [vmem:[#allocation31_spill] sm:$0xff] %v5156_v54 }
 0x1c4   : > { %1643 = vmatmul.f32.gmra.mxu2 %v4594_v61 }
 0x1c5   : > { %v1739_v27 = vpop.f32.mrf.mxu3 }
 0x1c6   : > { %v5151_v0 = vadd.f32 %v1739_v27, %v1670_v56  ;;  %v1228_v20 = vpop.f32.mrf.mxu0 }
 0x1c7   : > { %v1454_v30 = vpop.f32.mrf.mxu1  ;;  %v1596_v59 = vpop.f32.mrf.mxu2  ;;  %v1229_v17 = vadd.f32 %v1228_v20, %v4993_v60  ;;  %v1365_v60 = vrot.slane %v4743_v7, 2 }
 0x1c8   : > { %6141 = vst [vmem:[#allocation35_spill] sm:$0xff] %v5151_v0  ;;  %v1674_v45 = vadd.f32 %v1596_v59, %v1529_v16 }
 0x1c9   : > { %1275 = vmatmul.f32.gmra.mxu0 %v6138_v52  ;;  %v1530_v32 = vadd.f32 %v1454_v30, %v1229_v17 }
 0x1ca   : > { %1501 = vmatmul.f32.gmra.mxu1 %v5156_v54  ;;  %1789 = vmatmul.f32.gmra.mxu3 %v6144_v8  ;;  %v6147_v54 = vld [vmem:[#allocation14_spill] sm:$0xff] }
 0x1cc   : > { %1646 = vmatmul.f32.gmra.mxu2 %v4743_v7 }
 0x1cd   : > { %v1742_v56 = vpop.f32.mrf.mxu3 }
 0x1ce   : > { %v5163_v51 = vadd.f32 %v1742_v56, %v1671_v11  ;;  %v1231_v59 = vpop.f32.mrf.mxu0 }
 0x1cf   : > { %v1457_v27 = vpop.f32.mrf.mxu1  ;;  %v1599_v16 = vpop.f32.mrf.mxu2  ;;  %v1232_v2 = vadd.f32 %v1231_v59, %v5010_v38  ;;  %v6151_v59 = vld [vmem:[#allocation49_spill] sm:$0xff] }
 0x1d0   : > { %6145 = vst [vmem:[#allocation15_spill] sm:$0xff] %v5163_v51  ;;  %v1675_v0 = vadd.f32 %v1599_v16, %v1530_v32  ;;  %v6149_v16 = vrot.slane %v4453_v22, 2 }
 0x1d1   : > { %1278 = vmatmul.f32.gmra.mxu0 %v4594_v61  ;;  %v1531_v30 = vadd.f32 %v1457_v27, %v1232_v2 }
 0x1d2   : > { %1504 = vmatmul.f32.gmra.mxu1 %v6146_v46  ;;  %1792 = vmatmul.f32.gmra.mxu3 %v6147_v54  ;;  %v5176_v46 = vsel %vm1294_vm1, %v1365_v60, %v6149_v16  ;;  %v6153_v60 = vld [vmem:[#allocation42_spill] sm:$0xff] }
 0x1d3   : > { %6150 = vst [vmem:[#allocation82_spill] sm:$0xff] %v5176_v46 }
 0x1d4   : > { %1649 = vmatmul.f32.gmra.mxu2 %v4453_v22 }
 0x1d5   : > { %v1745_v20 = vpop.f32.mrf.mxu3 }
 0x1d6   : > { %v5171_v11 = vadd.f32 %v1745_v20, %v1672_v53  ;;  %v1234_v17 = vpop.f32.mrf.mxu0 }
 0x1d7   : > { %v1460_v56 = vpop.f32.mrf.mxu1  ;;  %v1602_v51 = vpop.f32.mrf.mxu2  ;;  %v1235_v38 = vadd.f32 %v1234_v17, %v5023_v5  ;;  %v1370_v5 = vrot.slane %v4515_v4, 2 }
 0x1d8   : > { %6148 = vst [vmem:[#allocation14_spill] sm:$0xff] %v5171_v11  ;;  %v1676_v32 = vadd.f32 %v1602_v51, %v1531_v30 }
 0x1d9   : > { %1281 = vmatmul.f32.gmra.mxu0 %v4743_v7  ;;  %v1532_v27 = vadd.f32 %v1460_v56, %v1235_v38 }
 0x1da   : > { %1507 = vmatmul.f32.gmra.mxu1 %v5176_v46  ;;  %1795 = vmatmul.f32.gmra.mxu3 %v6151_v59  ;;  %v6154_v46 = vld [vmem:[#allocation50_spill] sm:$0xff] }
 0x1dc   : > { %1652 = vmatmul.f32.gmra.mxu2 %v4515_v4 }
 0x1dd   : > { %v1748_v53 = vpop.f32.mrf.mxu3 }
 0x1de   : > { %v5183_v2 = vadd.f32 %v1748_v53, %v1673_v1  ;;  %v1237_v51 = vpop.f32.mrf.mxu0 }
 0x1df   : > { %v1463_v20 = vpop.f32.mrf.mxu1  ;;  %v1605_v30 = vpop.f32.mrf.mxu2  ;;  %v1238_v16 = vadd.f32 %v1237_v51, %v5040_v13  ;;  %v6158_v51 = vld [vmem:[#allocation47_spill] sm:$0xff] }
 0x1e0   : > { %6152 = vst [vmem:[#allocation49_spill] sm:$0xff] %v5183_v2  ;;  %v1677_v11 = vadd.f32 %v1605_v30, %v1532_v27  ;;  %v6156_v30 = vrot.slane %v4522_v26, 2 }
 0x1e1   : > { %1284 = vmatmul.f32.gmra.mxu0 %v4453_v22  ;;  %v1533_v56 = vadd.f32 %v1463_v20, %v1238_v16 }
 0x1e2   : > { %1510 = vmatmul.f32.gmra.mxu1 %v6153_v60  ;;  %1798 = vmatmul.f32.gmra.mxu3 %v6154_v46  ;;  %v5196_v60 = vsel %vm1294_vm1, %v1370_v5, %v6156_v30  ;;  %v6159_v5 = vld [vmem:[#allocation53_spill] sm:$0xff] }
 0x1e3   : > { %6157 = vst [vmem:[#allocation83_spill] sm:$0xff] %v5196_v60 }
 0x1e4   : > { %1655 = vmatmul.f32.gmra.mxu2 %v4522_v26 }
 0x1e5   : > { %v1751_v17 = vpop.f32.mrf.mxu3 }
 0x1e6   : > { %v5191_v1 = vadd.f32 %v1751_v17, %v1674_v45  ;;  %v1240_v38 = vpop.f32.mrf.mxu0 }
 0x1e7   : > { %v1466_v53 = vpop.f32.mrf.mxu1  ;;  %v1608_v2 = vpop.f32.mrf.mxu2  ;;  %v1241_v13 = vadd.f32 %v1240_v38, %v4965_v62 }
 0x1e8   : > { %6155 = vst [vmem:[#allocation50_spill] sm:$0xff] %v5191_v1  ;;  %v1678_v27 = vadd.f32 %v1608_v2, %v1533_v56 }
 0x1e9   : > { %1287 = vmatmul.f32.gmra.mxu0 %v4515_v4  ;;  %v1534_v20 = vadd.f32 %v1466_v53, %v1241_v13 }
 0x1ea   : > { %1513 = vmatmul.f32.gmra.mxu1 %v5196_v60  ;;  %1801 = vmatmul.f32.gmra.mxu3 %v4853_v14 }
 0x1ec   : > { %1658 = vmatmul.f32.gmra.mxu2 %v6158_v51 }
 0x1ed   : > { %v1754_v45 = vpop.f32.mrf.mxu3 }
 0x1ee   : > { %v5203_v16 = vadd.f32 %v1754_v45, %v1675_v0  ;;  %v1243_v2 = vpop.f32.mrf.mxu0 }
 0x1ef   : > { %v1469_v17 = vpop.f32.mrf.mxu1  ;;  %v1611_v56 = vpop.f32.mrf.mxu2  ;;  %v1244_v30 = vadd.f32 %v1243_v2, %v4982_v63 }
 0x1f0   : > { %v1679_v1 = vadd.f32 %v1611_v56, %v1534_v20 }
 0x1f1   : > { %1290 = vmatmul.f32.gmra.mxu0 %v4522_v26  ;;  %v1535_v38 = vadd.f32 %v1469_v17, %v1244_v30 }
 0x1f2   : > { %1516 = vmatmul.f32.gmra.mxu1 %v6159_v5  ;;  %1804 = vmatmul.f32.gmra.mxu3 %v4544_v57 }
 0x1f4   : > { %1661 = vmatmul.f32.gmra.mxu2 %v4768_v58 }
 0x1f5   : > { %v1757_v62 = vpop.f32.mrf.mxu3 }
 0x1f6   : > { %v5210_v60 = vadd.f32 %v1757_v62, %v1676_v32  ;;  %v1246_v0 = vpop.f32.mrf.mxu0 }
 0x1f7   : > { %v1472_v53 = vpop.f32.mrf.mxu1  ;;  %v1614_v13 = vpop.f32.mrf.mxu2  ;;  %v1247_v20 = vadd.f32 %v1246_v0, %v4995_v41 }
 0x1f8   : > { %v1680_v45 = vadd.f32 %v1614_v13, %v1535_v38 }
 0x1f9   : > { %1875 = vmatmul.f32.vlgmr.msrb.gmra.mxu0 %v4883_v47  ;;  %v1536_v2 = vadd.f32 %v1472_v53, %v1247_v20 }
 0x1fa   : > { %2020 = vmatmul.f32.vlgmr.msrb.gmra.mxu1 %v4449_v34  ;;  %1807 = vmatmul.f32.gmra.mxu3 %v4888_v18 }
 0x1fc   : > { %2175 = vmatmul.f32.vlgmr.msrb.gmra.mxu2 %v4560_v42  ;;  %v1700_v42 = vrot.slane %v6158_v51, 1 }
 0x1fd   : > { %v1760_v63 = vpop.f32.mrf.mxu3 }
 0x1fe   : > { %v5217_v56 = vadd.f32 %v1760_v63, %v1677_v11  ;;  %v1249_v32 = vpop.f32.mrf.mxu0 }
 0x1ff   : > { %v1475_v17 = vpop.f32.mrf.mxu1  ;;  %v1617_v30 = vpop.f32.mrf.mxu2  ;;  %v1250_v34 = vadd.f32 %v1249_v32, %v5012_v29  ;;  %v6161_v29 = vld [vmem:[#allocation48_spill] sm:$0xff] }
 0x200   : > { %v1681_v62 = vadd.f32 %v1617_v30, %v1536_v2 }
 0x201   : > { %1878 = vmatmul.f32.gmra.mxu0 %v4898_v55  ;;  %v1537_v41 = vadd.f32 %v1475_v17, %v1250_v34  ;;  %v6160_v55 = vrot.slane %v4768_v58, 1  ;;  %v6163_v34 = vld [vmem:[#allocation57_spill] sm:$0xff] }
 0x202   : > { %2023 = vmatmul.f32.gmra.mxu1 %v4461_v19  ;;  %1810 = vmatmul.f32.gmra.mxu3 %v4584_v28 }
 0x203   : > { %v5230_v19 = vsel %vm955_vm0, %v1700_v42, %v6160_v55  ;;  %v6165_v42 = vld [vmem:[#allocation76_spill] sm:$0xff] }
 0x204   : > { %2178 = vmatmul.f32.gmra.mxu2 %v4641_v36 }
 0x205   : > { %v1763_v47 = vpop.f32.mrf.mxu3 }
 0x206   : > { %v5225_v11 = vadd.f32 %v1763_v47, %v1678_v27  ;;  %v1252_v38 = vpop.f32.mrf.mxu0  ;;  %v6164_v47 = vld [vmem:[#allocation21_spill] sm:$0xff] }
 0x207   : > { %v1478_v0 = vpop.f32.mrf.mxu1  ;;  %v1620_v53 = vpop.f32.mrf.mxu2  ;;  %v1253_v36 = vadd.f32 %v1252_v38, %v5025_v23  ;;  %v6167_v23 = vld [vmem:[#allocation30_spill] sm:$0xff] }
 0x208   : > { %v1682_v13 = vadd.f32 %v1620_v53, %v1537_v41  ;;  %v6166_v41 = vld [vmem:[#allocation59_spill] sm:$0xff] }
 0x209   : > { %1881 = vmatmul.f32.gmra.mxu0 %v4907_v39  ;;  %v1538_v20 = vadd.f32 %v1478_v0, %v1253_v36 }
 0x20a   : > { %2026 = vmatmul.f32.gmra.mxu1 %v4644_v31  ;;  %1813 = vmatmul.f32.gmra.mxu3 %v5230_v19 }
 0x20c   : > { %2181 = vmatmul.f32.gmra.mxu2 %v6161_v29 }
 0x20d   : > { %v1766_v27 = vpop.f32.mrf.mxu3 }
 0x20e   : > { %v5237_v63 = vadd.f32 %v1766_v27, %v1679_v1  ;;  %v1255_v2 = vpop.f32.mrf.mxu0  ;;  %v6169_v27 = vld [vmem:[#allocation65_spill] sm:$0xff] }
 0x20f   : > { %v1481_v32 = vpop.f32.mrf.mxu1  ;;  %v1623_v17 = vpop.f32.mrf.mxu2  ;;  %v1256_v31 = vadd.f32 %v1255_v2, %v6165_v42  ;;  %v6172_v2 = vld [vmem:[#allocation39_spill] sm:$0xff] }
 0x210   : > { %6162 = vst [vmem:[#allocation47_spill] sm:$0xff] %v5237_v63  ;;  %v1683_v30 = vadd.f32 %v1623_v17, %v1538_v20  ;;  %v6170_v20 = vld [vmem:[#allocation37_spill] sm:$0xff]  ;;  %v6171_v17 = vld [vmem:[#allocation78_spill] sm:$0xff] }
 0x211   : > { %1884 = vmatmul.f32.gmra.mxu0 %v6163_v34  ;;  %v1539_v53 = vadd.f32 %v1481_v32, %v1256_v31 }
 0x212   : > { %2029 = vmatmul.f32.gmra.mxu1 %v6164_v47  ;;  %1816 = vmatmul.f32.gmra.mxu3 %v6166_v41 }
 0x214   : > { %2184 = vmatmul.f32.gmra.mxu2 %v6167_v23 }
 0x215   : > { %v1769_v38 = vpop.f32.mrf.mxu3 }
 0x216   : > { %v5244_v55 = vadd.f32 %v1769_v38, %v1680_v45  ;;  %v1258_v1 = vpop.f32.mrf.mxu0 }
 0x217   : > { %v1484_v0 = vpop.f32.mrf.mxu1  ;;  %v1626_v36 = vpop.f32.mrf.mxu2  ;;  %v1259_v47 = vadd.f32 %v1258_v1, %v6171_v17  ;;  %v6177_v1 = vld [vmem:[#allocation52_spill] sm:$0xff] }
 0x218   : > { %6168 = vst [vmem:[#allocation53_spill] sm:$0xff] %v5244_v55  ;;  %v1684_v29 = vadd.f32 %v1626_v36, %v1539_v53  ;;  %v6174_v55 = vld [vmem:[#allocation28_spill] sm:$0xff] }
 0x219   : > { %1887 = vmatmul.f32.gmra.mxu0 %v6169_v27  ;;  %v1540_v23 = vadd.f32 %v1484_v0, %v1259_v47  ;;  %v6175_v53 = vld [vmem:[#allocation32_spill] sm:$0xff] }
 0x21a   : > { %2032 = vmatmul.f32.gmra.mxu1 %v6170_v20  ;;  %2327 = vmatmul.f32.vlgmr.msra.gmra.mxu3 %v4907_v39  ;;  %v6176_v36 = vld [vmem:[#allocation68_spill] sm:$0xff] }
 0x21c   : > { %2187 = vmatmul.f32.gmra.mxu2 %v6172_v2 }
 0x21d   : > { %v1772_v42 = vpop.f32.mrf.mxu3 }
 0x21e   : > { %v5251_v63 = vadd.f32 %v1772_v42, %v1681_v62  ;;  %v1261_v45 = vpop.f32.mrf.mxu0 }
 0x21f   : > { %v1487_v32 = vpop.f32.mrf.mxu1  ;;  %v1629_v31 = vpop.f32.mrf.mxu2  ;;  %v1262_v20 = vadd.f32 %v1261_v45, %v6176_v36  ;;  %v6182_v45 = vld [vmem:[#allocation9_spill] sm:$0xff] }
 0x220   : > { %6173 = vst [vmem:[#allocation48_spill] sm:$0xff] %v5251_v63  ;;  %v1685_v38 = vadd.f32 %v1629_v31, %v1540_v23  ;;  %v6179_v63 = vld [vmem:[#allocation66_spill] sm:$0xff]  ;;  %v6180_v23 = vld [vmem:[#allocation16_spill] sm:$0xff] }
 0x221   : > { %1890 = vmatmul.f32.gmra.mxu0 %v6174_v55  ;;  %v1541_v17 = vadd.f32 %v1487_v32, %v1262_v20  ;;  %v6181_v31 = vld [vmem:[#allocation70_spill] sm:$0xff] }
 0x222   : > { %2035 = vmatmul.f32.gmra.mxu1 %v6175_v53  ;;  %2330 = vmatmul.f32.gmra.mxu3 %v6163_v34 }
 0x224   : > { %2190 = vmatmul.f32.gmra.mxu2 %v6177_v1 }
 0x225   : > { %v1775_v39 = vpop.f32.mrf.mxu3 }
 0x226   : > { %v5258_v2 = vadd.f32 %v1775_v39, %v1682_v13  ;;  %v1264_v62 = vpop.f32.mrf.mxu0 }
 0x227   : > { %v1490_v0 = vpop.f32.mrf.mxu1  ;;  %v1632_v47 = vpop.f32.mrf.mxu2  ;;  %v1265_v53 = vadd.f32 %v1264_v62, %v6181_v31  ;;  %v6187_v62 = vld [vmem:[#allocation17_spill] sm:$0xff] }
 0x228   : > { %6178 = vst [vmem:[#allocation57_spill] sm:$0xff] %v5258_v2  ;;  %v1686_v42 = vadd.f32 %v1632_v47, %v1541_v17  ;;  %v6184_v2 = vld [vmem:[#allocation26_spill] sm:$0xff]  ;;  %v6186_v47 = vld [vmem:[#allocation71_spill] sm:$0xff] }
 0x229   : > { %1893 = vmatmul.f32.gmra.mxu0 %v6179_v63  ;;  %v1542_v36 = vadd.f32 %v1490_v0, %v1265_v53  ;;  %v6185_v17 = vld [vmem:[#allocation22_spill] sm:$0xff] }
 0x22a   : > { %2038 = vmatmul.f32.gmra.mxu1 %v6180_v23  ;;  %2333 = vmatmul.f32.gmra.mxu3 %v6169_v27 }
 0x22c   : > { %2193 = vmatmul.f32.gmra.mxu2 %v6182_v45 }
 0x22d   : > { %v1778_v34 = vpop.f32.mrf.mxu3 }
 0x22e   : > { %v5265_v1 = vadd.f32 %v1778_v34, %v1683_v30  ;;  %v1267_v13 = vpop.f32.mrf.mxu0 }
 0x22f   : > { %v1493_v32 = vpop.f32.mrf.mxu1  ;;  %v1635_v20 = vpop.f32.mrf.mxu2  ;;  %v1268_v23 = vadd.f32 %v1267_v13, %v6186_v47  ;;  %v6192_v13 = vld [vmem:[#allocation29_spill] sm:$0xff] }
 0x230   : > { %6183 = vst [vmem:[#allocation21_spill] sm:$0xff] %v5265_v1  ;;  %v1687_v39 = vadd.f32 %v1635_v20, %v1542_v36  ;;  %v6189_v1 = vld [vmem:[#allocation69_spill] sm:$0xff] }
 0x231   : > { %1896 = vmatmul.f32.gmra.mxu0 %v6184_v2  ;;  %v1543_v31 = vadd.f32 %v1493_v32, %v1268_v23  ;;  %v6190_v36 = vld [vmem:[#allocation25_spill] sm:$0xff] }
 0x232   : > { %2041 = vmatmul.f32.gmra.mxu1 %v6185_v17  ;;  %2336 = vmatmul.f32.gmra.mxu3 %v6174_v55  ;;  %v6191_v20 = vld [vmem:[#allocation73_spill] sm:$0xff] }
 0x234   : > { %2196 = vmatmul.f32.gmra.mxu2 %v6187_v62 }
 0x235   : > { %v1781_v27 = vpop.f32.mrf.mxu3 }
 0x236   : > { %v5272_v45 = vadd.f32 %v1781_v27, %v1684_v29  ;;  %v1270_v30 = vpop.f32.mrf.mxu0 }
 0x237   : > { %v1496_v0 = vpop.f32.mrf.mxu1  ;;  %v1638_v53 = vpop.f32.mrf.mxu2  ;;  %v1271_v17 = vadd.f32 %v1270_v30, %v6191_v20  ;;  %v6197_v30 = vld [vmem:[#allocation55_spill] sm:$0xff] }
 0x238   : > { %6188 = vst [vmem:[#allocation76_spill] sm:$0xff] %v5272_v45  ;;  %v1688_v34 = vadd.f32 %v1638_v53, %v1543_v31  ;;  %v6194_v45 = vld [vmem:[#allocation20_spill] sm:$0xff]  ;;  %v6195_v31 = vld [vmem:[#allocation13_spill] sm:$0xff]  ;;  %v6196_v53 = vld [vmem:[#allocation74_spill] sm:$0xff] }
 0x239   : > { %1899 = vmatmul.f32.gmra.mxu0 %v6189_v1  ;;  %v1544_v47 = vadd.f32 %v1496_v0, %v1271_v17 }
 0x23a   : > { %2044 = vmatmul.f32.gmra.mxu1 %v6190_v36  ;;  %2339 = vmatmul.f32.gmra.mxu3 %v6179_v63 }
 0x23c   : > { %2199 = vmatmul.f32.gmra.mxu2 %v6192_v13 }
 0x23d   : > { %v1784_v55 = vpop.f32.mrf.mxu3 }
 0x23e   : > { %v5279_v62 = vadd.f32 %v1784_v55, %v1685_v38  ;;  %v1273_v29 = vpop.f32.mrf.mxu0 }
 0x23f   : > { %v1499_v32 = vpop.f32.mrf.mxu1  ;;  %v1641_v23 = vpop.f32.mrf.mxu2  ;;  %v1274_v36 = vadd.f32 %v1273_v29, %v6196_v53 }
 0x240   : > { %6193 = vst [vmem:[#allocation59_spill] sm:$0xff] %v5279_v62  ;;  %v1689_v27 = vadd.f32 %v1641_v23, %v1544_v47  ;;  %v6198_v62 = vld [vmem:[#allocation72_spill] sm:$0xff]  ;;  %v6199_v47 = vld [vmem:[#allocation5_spill] sm:$0xff]  ;;  %v6200_v23 = vld [vmem:[#allocation11_spill] sm:$0xff] }
 0x241   : > { %1902 = vmatmul.f32.gmra.mxu0 %v6194_v45  ;;  %v1545_v20 = vadd.f32 %v1499_v32, %v1274_v36 }
 0x242   : > { %2047 = vmatmul.f32.gmra.mxu1 %v6195_v31  ;;  %2342 = vmatmul.f32.gmra.mxu3 %v6184_v2 }
 0x244   : > { %2202 = vmatmul.f32.gmra.mxu2 %v6197_v30 }
 0x245   : > { %v1787_v63 = vpop.f32.mrf.mxu3 }
 0x246   : > { %v5286_v13 = vadd.f32 %v1787_v63, %v1686_v42  ;;  %v1276_v38 = vpop.f32.mrf.mxu0  ;;  %v6201_v63 = vld [vmem:[#allocation43_spill] sm:$0xff] }
 0x247   : > { %v1502_v0 = vpop.f32.mrf.mxu1  ;;  %v1644_v17 = vpop.f32.mrf.mxu2  ;;  %v1277_v31 = vadd.f32 %v1276_v38, %v6200_v23 }
 0x248   : > { %v1690_v55 = vadd.f32 %v1644_v17, %v1545_v20  ;;  %v6202_v20 = vld [vmem:[#allocation24_spill] sm:$0xff]  ;;  %v6203_v17 = vld [vmem:[#allocation77_spill] sm:$0xff] }
 0x249   : > { %1905 = vmatmul.f32.gmra.mxu0 %v6198_v62  ;;  %v1546_v29 = vadd.f32 %v1502_v0, %v1277_v31 }
 0x24a   : > { %2050 = vmatmul.f32.gmra.mxu1 %v6199_v47  ;;  %2345 = vmatmul.f32.gmra.mxu3 %v6189_v1 }
 0x24c   : > { %2205 = vmatmul.f32.gmra.mxu2 %v6113_v24 }
 0x24d   : > { %v1790_v2 = vpop.f32.mrf.mxu3 }
 0x24e   : > { %v5293_v53 = vadd.f32 %v1790_v2, %v1687_v39  ;;  %v1279_v42 = vpop.f32.mrf.mxu0  ;;  %v6204_v2 = vld [vmem:[#allocation75_spill] sm:$0xff] }
 0x24f   : > { %v1505_v32 = vpop.f32.mrf.mxu1  ;;  %v1647_v36 = vpop.f32.mrf.mxu2  ;;  %v1280_v47 = vadd.f32 %v1279_v42, %v6203_v17 }
 0x250   : > { %v1691_v30 = vadd.f32 %v1647_v36, %v1546_v29  ;;  %v6205_v29 = vld [vmem:[#allocation8_spill] sm:$0xff] }
 0x251   : > { %1908 = vmatmul.f32.gmra.mxu0 %v6201_v63  ;;  %v1547_v24 = vadd.f32 %v1505_v32, %v1280_v47  ;;  %v6206_v47 = vld [vmem:[#allocation23_spill] sm:$0xff] }
 0x252   : > { %2053 = vmatmul.f32.gmra.mxu1 %v6202_v20  ;;  %2348 = vmatmul.f32.gmra.mxu3 %v6194_v45 }
 0x254   : > { %2208 = vmatmul.f32.gmra.mxu2 %v6116_v9 }
 0x255   : > { %v1793_v1 = vpop.f32.mrf.mxu3 }
 0x256   : > { %v5300_v38 = vadd.f32 %v1793_v1, %v1688_v34  ;;  %v1282_v39 = vpop.f32.mrf.mxu0  ;;  %v6207_v1 = vld [vmem:[#allocation46_spill] sm:$0xff] }
 0x257   : > { %v1508_v0 = vpop.f32.mrf.mxu1  ;;  %v1650_v23 = vpop.f32.mrf.mxu2  ;;  %v1283_v36 = vadd.f32 %v1282_v39, %v6205_v29 }
 0x258   : > { %v1692_v31 = vadd.f32 %v1650_v23, %v1547_v24  ;;  %v6208_v24 = vld [vmem:[#allocation51_spill] sm:$0xff] }
 0x259   : > { %1911 = vmatmul.f32.gmra.mxu0 %v6204_v2  ;;  %v1548_v9 = vadd.f32 %v1508_v0, %v1283_v36  ;;  %v6209_v36 = vld [vmem:[#allocation79_spill] sm:$0xff] }
 0x25a   : > { %2056 = vmatmul.f32.gmra.mxu1 %v6106_v15  ;;  %2351 = vmatmul.f32.gmra.mxu3 %v6198_v62 }
 0x25c   : > { %2211 = vmatmul.f32.gmra.mxu2 %v6120_v3 }
 0x25d   : > { %v1796_v45 = vpop.f32.mrf.mxu3 }
 0x25e   : > { %v5307_v42 = vadd.f32 %v1796_v45, %v1689_v27  ;;  %v1285_v34 = vpop.f32.mrf.mxu0  ;;  %v6210_v45 = vld [vmem:[#allocation10_spill] sm:$0xff] }
 0x25f   : > { %v1511_v32 = vpop.f32.mrf.mxu1  ;;  %v1653_v20 = vpop.f32.mrf.mxu2  ;;  %v1286_v15 = vadd.f32 %v1285_v34, %v6208_v24 }
 0x260   : > { %v1693_v17 = vadd.f32 %v1653_v20, %v1548_v9  ;;  %v6211_v9 = vld [vmem:[#allocation7_spill] sm:$0xff] }
 0x261   : > { %1914 = vmatmul.f32.gmra.mxu0 %v6206_v47  ;;  %v1549_v3 = vadd.f32 %v1511_v32, %v1286_v15  ;;  %v6212_v15 = vld [vmem:[#allocation27_spill] sm:$0xff] }
 0x262   : > { %2059 = vmatmul.f32.gmra.mxu1 %v6207_v1  ;;  %2354 = vmatmul.f32.gmra.mxu3 %v6201_v63 }
 0x264   : > { %2214 = vmatmul.f32.gmra.mxu2 %v6122_v44 }
 0x265   : > { %v1799_v62 = vpop.f32.mrf.mxu3 }
 0x266   : > { %v5314_v39 = vadd.f32 %v1799_v62, %v1690_v55  ;;  %v1288_v27 = vpop.f32.mrf.mxu0  ;;  %v6213_v62 = vld [vmem:[#allocation12_spill] sm:$0xff] }
 0x267   : > { %v1514_v0 = vpop.f32.mrf.mxu1  ;;  %v1656_v23 = vpop.f32.mrf.mxu2  ;;  %v1289_v20 = vadd.f32 %v1288_v27, %v6211_v9 }
 0x268   : > { %v1694_v29 = vadd.f32 %v1656_v23, %v1549_v3  ;;  %v6214_v3 = vld [vmem:[#allocation67_spill] sm:$0xff] }
 0x269   : > { %1917 = vmatmul.f32.gmra.mxu0 %v6209_v36  ;;  %v1550_v44 = vadd.f32 %v1514_v0, %v1289_v20  ;;  %v785_v23 = vmul.f32 0.0017361111, %v6214_v3  ;;  %v6217_v3 = vld [vmem:[#allocation33_spill] sm:$0xff] }
 0x26a   : > { %2062 = vmatmul.f32.gmra.mxu1 %v6210_v45  ;;  %2357 = vmatmul.f32.gmra.mxu3 %v6204_v2  ;;  %v6215_v45 = vld [vmem:[#allocation19_spill] sm:$0xff] }
 0x26b   : > { %v786_v2 = vadd.f32 1e-05, %v785_v23 }
 0x26c   : > { %2217 = vmatmul.f32.gmra.mxu2 %v6125_v6 }
 0x26d   : > { %v1802_v63 = vpop.f32.mrf.mxu3  ;;  %2879 = vrsqrt.f32 %v786_v2  ;;  %vm793_vm3 = vweird.f32 %v786_v2 }
 0x26e   : > { %v5321_v34 = vadd.f32 %v1802_v63, %v1691_v30  ;;  %v1291_v55 = vpop.f32.mrf.mxu0 }
 0x26f   : > { %v1517_v32 = vpop.f32.mrf.mxu1  ;;  %v1659_v1 = vpop.f32.mrf.mxu2  ;;  %v1292_v27 = vadd.f32 %v1291_v55, %v6215_v45 }
 0x270   : > { %v1695_v24 = vadd.f32 %v1659_v1, %v1550_v44  ;;  %v6216_v1 = vld [vmem:[#allocation80_spill] sm:$0xff] }
 0x271   : > { %1920 = vmatmul.f32.gmra.mxu0 %v6212_v15  ;;  %v1551_v30 = vadd.f32 %v1517_v32, %v1292_v27 }
 0x272   : > { %2065 = vmatmul.f32.gmra.mxu1 %v6213_v62  ;;  %2360 = vmatmul.f32.gmra.mxu3 %v6206_v47 }
 0x273   : > { %v2880_v62 = vpop.eup %2879 }
 0x274   : > { %2220 = vmatmul.f32.gmra.mxu2 %v4707_v12  ;;  %v788_v23 = vmul.f32 %v2880_v62, %v786_v2  ;;  %vm794_vm2 = vweird.f32 %v2880_v62 }
 0x275   : > { %v1805_v6 = vpop.f32.mrf.mxu3  ;;  %vm795_vm4 = vmor %vm793_vm3, %vm794_vm2 }
 0x276   : > { %v5329_v0 = vadd.f32 %v1805_v6, %v1692_v31  ;;  %v1876_v9 = vpop.f32.mrf.mxu0 }
 0x277   : > { %v2021_v20 = vpop.f32.mrf.mxu1  ;;  %v1662_v63 = vpop.f32.mrf.mxu2 }
 0x278   : > { %v1696_v44 = vadd.f32 %v1662_v63, %v1551_v30 }
 0x279   : > { %1923 = vmatmul.f32.gmra.mxu0 %v6216_v1 }
 0x27a   : > { %2068 = vmatmul.f32.gmra.mxu1 %v4710_v40  ;;  %2363 = vmatmul.f32.gmra.mxu3 %v6209_v36 }
 0x27c   : > { %2223 = vmatmul.f32.gmra.mxu2 %v4812_v37 }
 0x27d   : > { %v1808_v47 = vpop.f32.mrf.mxu3 }
 0x27e   : > { %v5335_v12 = vadd.f32 %v1808_v47, %v1693_v17  ;;  %v1879_v55 = vpop.f32.mrf.mxu0  ;;  %v789_v17 = vmul.f32 %v2880_v62, %v788_v23  ;;  %v6219_v47 = vld [vmem:[#allocation40_spill] sm:$0xff] }
 0x27f   : > { %v2024_v32 = vpop.f32.mrf.mxu1  ;;  %v2176_v31 = vpop.f32.mrf.mxu2  ;;  %v6220_v23 = vld [vmem:[#allocation44_spill] sm:$0xff] }
 0x281   : > { %1926 = vmatmul.f32.gmra.mxu0 %v6217_v3 }
 0x282   : > { %2071 = vmatmul.f32.gmra.mxu1 %v4195_v21  ;;  %2366 = vmatmul.f32.gmra.mxu3 %v6212_v15  ;;  %v790_v21 = vmul.f32 0.5, %v789_v17 }
 0x284   : > { %2226 = vmatmul.f32.gmra.mxu2 %v6134_v48  ;;  %v791_v30 = vsub.f32 1.5, %v790_v21 }
 0x285   : > { %v1811_v40 = vpop.f32.mrf.mxu3 }
 0x286   : > { %v5341_v36 = vadd.f32 %v1811_v40, %v1694_v29  ;;  %v1882_v37 = vpop.f32.mrf.mxu0 }
 0x287   : > { %v5343_v45 = vpop.f32.mrf.mxu1  ;;  %v2179_v27 = vpop.f32.mrf.mxu2 }
 0x289   : > { %1929 = vmatmul.f32.gmra.mxu0 %v5097_v10 }
 0x28a   : > { %2074 = vmatmul.f32.gmra.mxu1 %v6126_v35  ;;  %2369 = vmatmul.f32.gmra.mxu3 %v6216_v1  ;;  %v792_v35 = vmul.f32 %v2880_v62, %v791_v30  ;;  %v6223_v30 = vld [vmem:[#allocation36_spill] sm:$0xff] }
 0x28c   : > { %2229 = vmatmul.f32.gmra.mxu2 %v6137_v43 }
 0x28d   : > { %v1814_v15 = vpop.f32.mrf.mxu3 }
 0x28e   : > { %v5349_v6 = vadd.f32 %v1814_v15, %v1695_v24  ;;  %v5351_v48 = vpop.f32.mrf.mxu0  ;;  %v6221_v24 = vld [vmem:[#allocation18_spill] sm:$0xff]  ;;  %v796_v15 = vsel %vm795_vm4, %v2880_v62, %v792_v35  ;;  %v1973_v62 = vadd.f32 %v1879_v55, %v6223_v30 }
 0x28f   : > { %v5353_v29 = vpop.f32.mrf.mxu1  ;;  %v2182_v63 = vpop.f32.mrf.mxu2  ;;  %v1972_v1 = vadd.f32 %v1876_v9, %v6221_v24 }
 0x290   : > { %6218 = vst [vmem:[#allocation30_spill] sm:$0xff] %v5349_v6  ;;  %v2118_v55 = vadd.f32 %v2024_v32, %v1973_v62 }
 0x291   : > { %1932 = vmatmul.f32.gmra.mxu0 %v6219_v47  ;;  %v2117_v2 = vadd.f32 %v2021_v20, %v1972_v1 }
 0x292   : > { %2077 = vmatmul.f32.gmra.mxu1 %v6220_v23  ;;  %2372 = vmatmul.f32.gmra.mxu3 %v6217_v3  ;;  %v6222_v23 = vld [vmem:[#allocation81_spill] sm:$0xff]  ;;  %v2273_v1 = vadd.f32 %v2179_v27, %v2118_v55 }
 0x293   : > { %v2272_v3 = vadd.f32 %v2176_v31, %v2117_v2  ;;  %v6224_v31 = vld [vmem:[#allocation34_spill] sm:$0xff] }
 0x294   : > { %2232 = vmatmul.f32.gmra.mxu2 %v6140_v25  ;;  %v797_v25 = vmul.f32 0.041666668, %v796_v15  ;;  %v6225_v2 = vld [vmem:[#allocation38_spill] sm:$0xff] }
 0x295   : > { %v1817_v43 = vpop.f32.mrf.mxu3 }
 0x296   : > { %v5360_v40 = vadd.f32 %v1817_v43, %v1696_v44  ;;  %v5362_v17 = vpop.f32.mrf.mxu0  ;;  %v5372_v44 = vperm.slane %v797_v25, 0  ;;  %v5378_v43 = vld [vmem:[%s5699_s5] ss:$0 sm:$0xff] }
 0x297   : > { %v5364_v21 = vpop.f32.mrf.mxu1  ;;  %v5366_v6 = vpop.f32.mrf.mxu2 }
 0x299   : > { %1935 = vmatmul.f32.gmra.mxu0 %v6222_v23 }
 0x29a   : > { %2080 = vmatmul.f32.gmra.mxu1 %v6131_v49  ;;  %2375 = vmatmul.f32.gmra.mxu3 %v5097_v10 }
 0x29c   : > { %2235 = vmatmul.f32.gmra.mxu2 %v6144_v8 }
 0x29d   : > { %v2328_v9 = vpop.f32.mrf.mxu3 }
 0x29e   : > { %v2424_v35 = vadd.f32 %v2328_v9, %v2272_v3  ;;  %v5380_v49 = vpop.f32.mrf.mxu0  ;;  %v1974_v3 = vadd.f32 %v1882_v37, %v6225_v2 }
 0x29f   : > { %v5382_v20 = vpop.f32.mrf.mxu1  ;;  %v5384_v10 = vpop.f32.mrf.mxu2 }
 0x2a0   : > { %v2457_v8 = vmul.f32 %v5372_v44, %v2424_v35 }
 0x2a1   : > { %1938 = vmatmul.f32.gmra.mxu0 %v6224_v31 }
 0x2a2   : > { %2083 = vmatmul.f32.gmra.mxu1 %v4413_v50  ;;  %v2493_v24 = vadd.f32 %v5378_v43, %v2457_v8  ;;  %2378 = vmatmul.f32.gmra.mxu3 %v6219_v47 }
 0x2a4   : > { %vm2525_vm5 = vcmp.ge.f32.partialorder %v2493_v24, 0.0  ;;  %v2557_v15 = vmul.f32 0.2, %v2493_v24  ;;  %2238 = vmatmul.f32.gmra.mxu2 %v6147_v54  ;;  %v2119_v54 = vadd.f32 %v5343_v45, %v1974_v3 }
 0x2a5   : > { %v2331_v25 = vpop.f32.mrf.mxu3 }
 0x2a6   : > { %v2589_v9 = vsel %vm2525_vm5, %v2493_v24, %v2557_v15  ;;  %v2425_v30 = vadd.f32 %v2331_v25, %v2273_v1  ;;  %v5396_v35 = vpop.f32.mrf.mxu0  ;;  %v2274_v27 = vadd.f32 %v2182_v63, %v2119_v54  ;;  %v6226_v24 = vld [vmem:[#allocation6_spill] sm:$0xff] }
 0x2a7   : > { %v5398_v50 = vpop.f32.mrf.mxu1  ;;  %v2621_v32 = vmul.f32 1.4142135, %v2589_v9  ;;  %v5400_v62 = vpop.f32.mrf.mxu2  ;;  %v1975_v1 = vadd.f32 %v5351_v48, %v6226_v24  ;;  %v6227_v63 = vld [vmem:[#allocation54_spill] sm:$0xff] }
 0x2a8   : > { %v2458_v47 = vmul.f32 %v5372_v44, %v2425_v30 }
 0x2a9   : > { %2653 = vst [vmem:[%s5403_s20] sm:$0xff] %v2621_v32  ;;  %1941 = vmatmul.f32.gmra.mxu0 %v5136_v33 }
 0x2aa   : > { %2086 = vmatmul.f32.gmra.mxu1 %v6138_v52  ;;  %v2494_v37 = vadd.f32 %v5378_v43, %v2458_v47  ;;  %2381 = vmatmul.f32.gmra.mxu3 %v6222_v23  ;;  %v6228_v47 = vld [vmem:[#allocation45_spill] sm:$0xff] }
 0x2ab   : > { %v1976_v54 = vadd.f32 %v5362_v17, %v6228_v47 }
 0x2ac   : > { %vm2526_vm6 = vcmp.ge.f32.partialorder %v2494_v37, 0.0  ;;  %v2558_v8 = vmul.f32 0.2, %v2494_v37  ;;  %2241 = vmatmul.f32.gmra.mxu2 %v6151_v59  ;;  %v2120_v59 = vadd.f32 %v5353_v29, %v1975_v1 }
 0x2ad   : > { %v2334_v55 = vpop.f32.mrf.mxu3 }
 0x2ae   : > { %v2590_v15 = vsel %vm2526_vm6, %v2494_v37, %v2558_v8  ;;  %v2426_v25 = vadd.f32 %v2334_v55, %v2274_v27  ;;  %v5414_v2 = vpop.f32.mrf.mxu0  ;;  %v2275_v9 = vadd.f32 %v5366_v6, %v2120_v59  ;;  %v6229_v6 = vld [vmem:[#allocation31_spill] sm:$0xff] }
 0x2af   : > { %v5416_v52 = vpop.f32.mrf.mxu1  ;;  %v2622_v45 = vmul.f32 1.4142135, %v2590_v15  ;;  %v5418_v3 = vpop.f32.mrf.mxu2 }
 0x2b0   : > { %v2459_v23 = vmul.f32 %v5372_v44, %v2426_v25  ;;  %v6230_v25 = vld [vmem:[#allocation35_spill] sm:$0xff] }
 0x2b1   : > { %2654 = vst [vmem:[%s5403_s20 + $0x8] sm:$0xff] %v2622_v45  ;;  %1944 = vmatmul.f32.gmra.mxu0 %v6227_v63  ;;  %v1977_v45 = vadd.f32 %v5380_v49, %v6230_v25 }
 0x2b2   : > { %2089 = vmatmul.f32.gmra.mxu1 %v4594_v61  ;;  %v2495_v48 = vadd.f32 %v5378_v43, %v2459_v23  ;;  %2384 = vmatmul.f32.gmra.mxu3 %v6224_v31 }
 0x2b4   : > { %vm2527_vm7 = vcmp.ge.f32.partialorder %v2495_v48, 0.0  ;;  %v2559_v30 = vmul.f32 0.2, %v2495_v48  ;;  %2244 = vmatmul.f32.gmra.mxu2 %v6154_v46  ;;  %v2121_v46 = vadd.f32 %v5364_v21, %v1976_v54  ;;  %v6232_v54 = vld [vmem:[#allocation15_spill] sm:$0xff] }
 0x2b5   : > { %v2337_v32 = vpop.f32.mrf.mxu3 }
 0x2b6   : > { %v2591_v37 = vsel %vm2527_vm7, %v2495_v48, %v2559_v30  ;;  %v2427_v27 = vadd.f32 %v2337_v32, %v2275_v9  ;;  %v5431_v61 = vpop.f32.mrf.mxu0  ;;  %v2276_v24 = vadd.f32 %v5384_v10, %v2121_v46  ;;  %v6231_v10 = vld [vmem:[#allocation41_spill] sm:$0xff] }
 0x2b7   : > { %v5433_v29 = vpop.f32.mrf.mxu1  ;;  %v2623_v8 = vmul.f32 1.4142135, %v2591_v37  ;;  %v5435_v55 = vpop.f32.mrf.mxu2  ;;  %v1978_v37 = vadd.f32 %v5396_v35, %v6232_v54 }
 0x2b8   : > { %v2460_v31 = vmul.f32 %v5372_v44, %v2427_v27 }
 0x2b9   : > { %2655 = vst [vmem:[%s5403_s20 + $0x10] sm:$0xff] %v2623_v8  ;;  %1947 = vmatmul.f32.gmra.mxu0 %v6229_v6 }
 0x2ba   : > { %2092 = vmatmul.f32.gmra.mxu1 %v4743_v7  ;;  %v2496_v17 = vadd.f32 %v5378_v43, %v2460_v31  ;;  %2387 = vmatmul.f32.gmra.mxu3 %v5136_v33 }
 0x2bc   : > { %vm2528_vm8 = vcmp.ge.f32.partialorder %v2496_v17, 0.0  ;;  %v2560_v1 = vmul.f32 0.2, %v2496_v17  ;;  %2247 = vmatmul.f32.gmra.mxu2 %v4853_v14  ;;  %v2122_v14 = vadd.f32 %v5382_v20, %v1977_v45 }
 0x2bd   : > { %v2340_v15 = vpop.f32.mrf.mxu3 }
 0x2be   : > { %v2592_v23 = vsel %vm2528_vm8, %v2496_v17, %v2560_v1  ;;  %v2428_v59 = vadd.f32 %v2340_v15, %v2276_v24  ;;  %v5448_v7 = vpop.f32.mrf.mxu0  ;;  %v2277_v30 = vadd.f32 %v5400_v62, %v2122_v14  ;;  %v6233_v62 = vld [vmem:[#allocation82_spill] sm:$0xff] }
 0x2bf   : > { %v5450_v21 = vpop.f32.mrf.mxu1  ;;  %v2624_v48 = vmul.f32 1.4142135, %v2592_v23  ;;  %v5452_v9 = vpop.f32.mrf.mxu2  ;;  %v6234_v15 = vld [vmem:[#allocation14_spill] sm:$0xff] }
 0x2c0   : > { %v2461_v33 = vmul.f32 %v5372_v44, %v2428_v59  ;;  %v1979_v25 = vadd.f32 %v5414_v2, %v6234_v15 }
 0x2c1   : > { %2656 = vst [vmem:[%s5403_s20 + $0x18] sm:$0xff] %v2624_v48  ;;  %1950 = vmatmul.f32.gmra.mxu0 %v6231_v10 }
 0x2c2   : > { %2095 = vmatmul.f32.gmra.mxu1 %v4453_v22  ;;  %v2497_v49 = vadd.f32 %v5378_v43, %v2461_v33  ;;  %2390 = vmatmul.f32.gmra.mxu3 %v6227_v63 }
 0x2c4   : > { %vm2529_vm9 = vcmp.ge.f32.partialorder %v2497_v49, 0.0  ;;  %v2561_v32 = vmul.f32 0.2, %v2497_v49  ;;  %2250 = vmatmul.f32.gmra.mxu2 %v4544_v57  ;;  %v2123_v57 = vadd.f32 %v5398_v50, %v1978_v37 }
 0x2c5   : > { %v2343_v47 = vpop.f32.mrf.mxu3 }
 0x2c6   : > { %v2593_v27 = vsel %vm2529_vm9, %v2497_v49, %v2561_v32  ;;  %v2429_v8 = vadd.f32 %v2343_v47, %v2277_v30  ;;  %v5465_v22 = vpop.f32.mrf.mxu0  ;;  %v2278_v17 = vadd.f32 %v5418_v3, %v2123_v57  ;;  %v6235_v3 = vld [vmem:[#allocation42_spill] sm:$0xff]  ;;  %v6236_v30 = vld [vmem:[#allocation49_spill] sm:$0xff] }
 0x2c7   : > { %v5467_v20 = vpop.f32.mrf.mxu1  ;;  %v2625_v31 = vmul.f32 1.4142135, %v2593_v27  ;;  %v5469_v46 = vpop.f32.mrf.mxu2  ;;  %v1980_v32 = vadd.f32 %v5431_v61, %v6236_v30  ;;  %v6238_v57 = vld [vmem:[#allocation50_spill] sm:$0xff] }
 0x2c8   : > { %v2462_v63 = vmul.f32 %v5372_v44, %v2429_v8 }
 0x2c9   : > { %2657 = vst [vmem:[%s5403_s20 + $0x20] sm:$0xff] %v2625_v31  ;;  %1953 = vmatmul.f32.gmra.mxu0 %v6233_v62 }
 0x2ca   : > { %2098 = vmatmul.f32.gmra.mxu1 %v4515_v4  ;;  %v2498_v35 = vadd.f32 %v5378_v43, %v2462_v63  ;;  %2393 = vmatmul.f32.gmra.mxu3 %v6229_v6 }
 0x2cc   : > { %vm2530_vm10 = vcmp.ge.f32.partialorder %v2498_v35, 0.0  ;;  %v2562_v24 = vmul.f32 0.2, %v2498_v35  ;;  %2253 = vmatmul.f32.gmra.mxu2 %v4888_v18  ;;  %v2124_v18 = vadd.f32 %v5416_v52, %v1979_v25 }
 0x2cd   : > { %v2346_v1 = vpop.f32.mrf.mxu3 }
 0x2ce   : > { %v2594_v45 = vsel %vm2530_vm10, %v2498_v35, %v2562_v24  ;;  %v2430_v23 = vadd.f32 %v2346_v1, %v2278_v17  ;;  %v5482_v4 = vpop.f32.mrf.mxu0  ;;  %v2279_v33 = vadd.f32 %v5435_v55, %v2124_v18  ;;  %v6237_v55 = vld [vmem:[#allocation83_spill] sm:$0xff]  ;;  %v1981_v35 = vadd.f32 %v5448_v7, %v6238_v57 }
 0x2cf   : > { %v5484_v50 = vpop.f32.mrf.mxu1  ;;  %v2626_v59 = vmul.f32 1.4142135, %v2594_v45  ;;  %v5486_v48 = vpop.f32.mrf.mxu2 }
 0x2d0   : > { %v2463_v6 = vmul.f32 %v5372_v44, %v2430_v23  ;;  %v1852_v23 = vrot.slane %v6158_v51, 2 }
 0x2d1   : > { %2658 = vst [vmem:[%s5403_s20 + $0x28] sm:$0xff] %v2626_v59  ;;  %1956 = vmatmul.f32.gmra.mxu0 %v6235_v3 }
 0x2d2   : > { %2101 = vmatmul.f32.gmra.mxu1 %v4522_v26  ;;  %v2499_v2 = vadd.f32 %v5378_v43, %v2463_v6  ;;  %2396 = vmatmul.f32.gmra.mxu3 %v6231_v10  ;;  %v1982_v6 = vadd.f32 %v5465_v22, %v5203_v16 }
 0x2d4   : > { %vm2531_vm11 = vcmp.ge.f32.partialorder %v2499_v2, 0.0  ;;  %v2563_v14 = vmul.f32 0.2, %v2499_v2  ;;  %2256 = vmatmul.f32.gmra.mxu2 %v4584_v28  ;;  %v2125_v28 = vadd.f32 %v5433_v29, %v1980_v32  ;;  %v2127_v16 = vadd.f32 %v5467_v20, %v1982_v6 }
 0x2d5   : > { %v2349_v49 = vpop.f32.mrf.mxu3 }
 0x2d6   : > { %v2595_v47 = vsel %vm2531_vm11, %v2499_v2, %v2563_v14  ;;  %v2431_v54 = vadd.f32 %v2349_v49, %v2279_v33  ;;  %v5499_v26 = vpop.f32.mrf.mxu0  ;;  %v2280_v8 = vadd.f32 %v5452_v9, %v2125_v28  ;;  %v6239_v49 = vrot.slane %v4768_v58, 2 }
 0x2d7   : > { %v5501_v52 = vpop.f32.mrf.mxu1  ;;  %v2627_v37 = vmul.f32 1.4142135, %v2595_v47  ;;  %v5503_v27 = vpop.f32.mrf.mxu2  ;;  %v2282_v30 = vadd.f32 %v5486_v48, %v2127_v16  ;;  %v6241_v47 = vld [vmem:[#allocation61_spill] sm:$0xff]  ;;  %v6242_v48 = vld [vmem:[#allocation60_spill] sm:$0xff] }
 0x2d8   : > { %v2464_v10 = vmul.f32 %v5372_v44, %v2431_v54  ;;  %v1983_v54 = vadd.f32 %v5482_v4, %v5210_v60 }
 0x2d9   : > { %2659 = vst [vmem:[%s5403_s20 + $0x30] sm:$0xff] %v2627_v37  ;;  %1959 = vmatmul.f32.gmra.mxu0 %v6237_v55 }
 0x2da   : > { %2104 = vmatmul.f32.gmra.mxu1 %v6158_v51  ;;  %v2500_v61 = vadd.f32 %v5378_v43, %v2464_v10  ;;  %2399 = vmatmul.f32.gmra.mxu3 %v6233_v62  ;;  %v6240_v51 = vld [vmem:[#allocation56_spill] sm:$0xff] }
 0x2dc   : > { %vm2532_vm12 = vcmp.ge.f32.partialorder %v2500_v61, 0.0  ;;  %v2564_v31 = vmul.f32 0.2, %v2500_v61  ;;  %2259 = vmatmul.f32.gmra.mxu2 %v5230_v19  ;;  %v2126_v19 = vadd.f32 %v5450_v21, %v1981_v35  ;;  %v6244_v35 = vld [vmem:[#allocation62_spill] sm:$0xff] }
 0x2dd   : > { %v2352_v63 = vpop.f32.mrf.mxu3 }
 0x2de   : > { %v2596_v17 = vsel %vm2532_vm12, %v2500_v61, %v2564_v31  ;;  %v2432_v24 = vadd.f32 %v2352_v63, %v2280_v8  ;;  %v5516_v1 = vpop.f32.mrf.mxu0  ;;  %v2281_v9 = vadd.f32 %v5469_v46, %v2126_v19  ;;  %v2128_v63 = vadd.f32 %v5484_v50, %v1983_v54 }
 0x2df   : > { %v5518_v29 = vpop.f32.mrf.mxu1  ;;  %v2628_v15 = vmul.f32 1.4142135, %v2596_v17  ;;  %v5520_v25 = vpop.f32.mrf.mxu2 }
 0x2e0   : > { %v2465_v62 = vmul.f32 %v5372_v44, %v2432_v24  ;;  %v2283_v4 = vadd.f32 %v5503_v27, %v2128_v63  ;;  %v1984_v24 = vadd.f32 %v5499_v26, %v5217_v56  ;;  %v1985_v26 = vadd.f32 %v5516_v1, %v5225_v11  ;;  %v6245_v1 = vld [vmem:[#allocation47_spill] sm:$0xff] }
 0x2e1   : > { %2660 = vst [vmem:[%s5403_s20 + $0x38] sm:$0xff] %v2628_v15  ;;  %1962 = vmatmul.f32.gmra.mxu0 %v6159_v5 }
 0x2e2   : > { %2107 = vmatmul.f32.gmra.mxu1 %v4768_v58  ;;  %v2501_v7 = vadd.f32 %v5378_v43, %v2465_v62  ;;  %2402 = vmatmul.f32.gmra.mxu3 %v6235_v3 }
 0x2e4   : > { %vm2533_vm13 = vcmp.ge.f32.partialorder %v2501_v7, 0.0  ;;  %v2565_v45 = vmul.f32 0.2, %v2501_v7  ;;  %2262 = vmatmul.f32.gmra.mxu2 %v6166_v41  ;;  %v1854_v41 = vsel %vm1294_vm1, %v1852_v23, %v6239_v49 }
 0x2e5   : > { %v2355_v59 = vpop.f32.mrf.mxu3 }
 0x2e6   : > { %v2597_v18 = vsel %vm2533_vm13, %v2501_v7, %v2565_v45  ;;  %v2433_v2 = vadd.f32 %v2355_v59, %v2281_v9  ;;  %v5534_v21 = vpop.f32.mrf.mxu0 }
 0x2e7   : > { %v5536_v33 = vpop.f32.mrf.mxu1  ;;  %v2629_v3 = vmul.f32 1.4142135, %v2597_v18  ;;  %v2215_v14 = vpop.f32.mrf.mxu2 }
 0x2e8   : > { %v2466_v46 = vmul.f32 %v5372_v44, %v2433_v2 }
 0x2e9   : > { %2661 = vst [vmem:[%s5403_s20 + $0x40] sm:$0xff] %v2629_v3  ;;  %1965 = vmatmul.f32.gmra.mxu0 %v1854_v41 }
 0x2ea   : > { %2110 = vmatmul.f32.gmra.mxu1 %v6240_v51  ;;  %v2502_v22 = vadd.f32 %v5378_v43, %v2466_v46  ;;  %2405 = vmatmul.f32.gmra.mxu3 %v6237_v55  ;;  %v6243_v55 = vld [vmem:[#allocation58_spill] sm:$0xff] }
 0x2ec   : > { %vm2534_vm14 = vcmp.ge.f32.partialorder %v2502_v22, 0.0  ;;  %v2566_v32 = vmul.f32 0.2, %v2502_v22  ;;  %2265 = vmatmul.f32.gmra.mxu2 %v6241_v47 }
 0x2ed   : > { %v2358_v58 = vpop.f32.mrf.mxu3 }
 0x2ee   : > { %v2598_v37 = vsel %vm2534_vm14, %v2502_v22, %v2566_v32  ;;  %v2434_v10 = vadd.f32 %v2358_v58, %v2282_v30  ;;  %v5551_v28 = vpop.f32.mrf.mxu0  ;;  %v1986_v22 = vadd.f32 %v5534_v21, %v6245_v1  ;;  %v6247_v21 = vld [vmem:[#allocation53_spill] sm:$0xff] }
 0x2ef   : > { %v2630_v20 = vmul.f32 1.4142135, %v2598_v37  ;;  %v2218_v61 = vpop.f32.mrf.mxu2  ;;  %v5554_v31 = vpop.f32.mrf.mxu1 }
 0x2f0   : > { %v2467_v8 = vmul.f32 %v5372_v44, %v2434_v10  ;;  %v2131_v37 = vadd.f32 %v5536_v33, %v1986_v22  ;;  %v6246_v10 = vld [vmem:[#allocation63_spill] sm:$0xff] }
 0x2f1   : > { %2662 = vst [vmem:[%s5403_s20 + $0x48] sm:$0xff] %v2630_v20  ;;  %1968 = vmatmul.f32.gmra.mxu0 %v6242_v48 }
 0x2f2   : > { %2113 = vmatmul.f32.gmra.mxu1 %v6243_v55  ;;  %v2503_v60 = vadd.f32 %v5378_v43, %v2467_v8  ;;  %2408 = vmatmul.f32.gmra.mxu3 %v6159_v5  ;;  %v2129_v5 = vadd.f32 %v5501_v52, %v1984_v24  ;;  %v2130_v52 = vadd.f32 %v5518_v29, %v1985_v26 }
 0x2f3   : > { %v2286_v20 = vadd.f32 %v2218_v61, %v2131_v37  ;;  %v1987_v55 = vadd.f32 %v5551_v28, %v6247_v21  ;;  %v6248_v61 = vld [vmem:[#allocation64_spill] sm:$0xff]  ;;  %v6251_v37 = vld [vmem:[#allocation21_spill] sm:$0xff] }
 0x2f4   : > { %vm2535_vm15 = vcmp.ge.f32.partialorder %v2503_v60, 0.0  ;;  %v2567_v57 = vmul.f32 0.2, %v2503_v60  ;;  %2268 = vmatmul.f32.gmra.mxu2 %v6244_v35  ;;  %v2284_v23 = vadd.f32 %v5520_v25, %v2129_v5  ;;  %v2285_v25 = vadd.f32 %v2215_v14, %v2130_v52 }
 0x2f5   : > { %v2361_v17 = vpop.f32.mrf.mxu3  ;;  %v2132_v33 = vadd.f32 %v5554_v31, %v1987_v55 }
 0x2f6   : > { %v2599_v15 = vsel %vm2535_vm15, %v2503_v60, %v2567_v57  ;;  %v2435_v62 = vadd.f32 %v2361_v17, %v2283_v4  ;;  %v1924_v19 = vpop.f32.mrf.mxu0 }
 0x2f7   : > { %v2631_v7 = vmul.f32 1.4142135, %v2599_v15  ;;  %v2221_v9 = vpop.f32.mrf.mxu2  ;;  %v2069_v45 = vpop.f32.mrf.mxu1 }
 0x2f8   : > { %v2468_v50 = vmul.f32 %v5372_v44, %v2435_v62  ;;  %v2287_v62 = vadd.f32 %v2221_v9, %v2132_v33 }
 0x2f9   : > { %2663 = vst [vmem:[%s5403_s20 + $0x50] sm:$0xff] %v2631_v7 }
 0x2fa   : > { %v2504_v27 = vadd.f32 %v5378_v43, %v2468_v50  ;;  %2411 = vmatmul.f32.gmra.mxu3 %v1854_v41  ;;  %v6249_v50 = vld [vmem:[#allocation48_spill] sm:$0xff] }
 0x2fb   : > { %v1988_v5 = vadd.f32 %v1924_v19, %v6249_v50 }
 0x2fc   : > { %vm2536_vm0 = vcmp.ge.f32.partialorder %v2504_v27, 0.0  ;;  %v2568_v59 = vmul.f32 0.2, %v2504_v27 }
 0x2fd   : > { %v2364_v56 = vpop.f32.mrf.mxu3 }
 0x2fe   : > { %v2600_v6 = vsel %vm2536_vm0, %v2504_v27, %v2568_v59  ;;  %v2436_v18 = vadd.f32 %v2364_v56, %v2284_v23  ;;  %v1927_v3 = vpop.f32.mrf.mxu0 }
 0x2ff   : > { %v2632_v2 = vmul.f32 1.4142135, %v2600_v6  ;;  %v2224_v46 = vpop.f32.mrf.mxu2  ;;  %v2072_v16 = vpop.f32.mrf.mxu1  ;;  %v2133_v6 = vadd.f32 %v2069_v45, %v1988_v5 }
 0x300   : > { %v2469_v49 = vmul.f32 %v5372_v44, %v2436_v18 }
 0x301   : > { %2664 = vst [vmem:[%s5403_s20 + $0x58] sm:$0xff] %v2632_v2  ;;  %v2288_v2 = vadd.f32 %v2224_v46, %v2133_v6 }
 0x302   : > { %v2505_v41 = vadd.f32 %v5378_v43, %v2469_v49  ;;  %2414 = vmatmul.f32.gmra.mxu3 %v6242_v48 }
 0x304   : > { %vm2537_vm1 = vcmp.ge.f32.partialorder %v2505_v41, 0.0  ;;  %v2569_v51 = vmul.f32 0.2, %v2505_v41 }
 0x305   : > { %v2367_v11 = vpop.f32.mrf.mxu3 }
 0x306   : > { %v2601_v30 = vsel %vm2537_vm1, %v2505_v41, %v2569_v51  ;;  %v2437_v32 = vadd.f32 %v2367_v11, %v2285_v25  ;;  %v1930_v29 = vpop.f32.mrf.mxu0  ;;  %v6250_v41 = vld [vmem:[#allocation57_spill] sm:$0xff] }
 0x307   : > { %v2633_v47 = vmul.f32 1.4142135, %v2601_v30  ;;  %v2227_v58 = vpop.f32.mrf.mxu2  ;;  %v2075_v60 = vpop.f32.mrf.mxu1  ;;  %v1989_v25 = vadd.f32 %v1927_v3, %v6250_v41 }
 0x308   : > { %v2470_v54 = vmul.f32 %v5372_v44, %v2437_v32 }
 0x309   : > { %2665 = vst [vmem:[%s5403_s20 + $0x60] sm:$0xff] %v2633_v47  ;;  %v2134_v22 = vadd.f32 %v2072_v16, %v1989_v25 }
 0x30a   : > { %v2506_v14 = vadd.f32 %v5378_v43, %v2470_v54  ;;  %2417 = vmatmul.f32.gmra.mxu3 %v6246_v10 }
 0x30b   : > { %v2289_v47 = vadd.f32 %v2227_v58, %v2134_v22 }
 0x30c   : > { %vm2538_vm2 = vcmp.ge.f32.partialorder %v2506_v14, 0.0  ;;  %v2570_v8 = vmul.f32 0.2, %v2506_v14 }
 0x30d   : > { %v2370_v48 = vpop.f32.mrf.mxu3 }
 0x30e   : > { %v2602_v63 = vsel %vm2538_vm2, %v2506_v14, %v2570_v8  ;;  %v2438_v4 = vadd.f32 %v2370_v48, %v2286_v20  ;;  %v1933_v15 = vpop.f32.mrf.mxu0  ;;  %v1990_v14 = vadd.f32 %v1930_v29, %v6251_v37 }
 0x30f   : > { %v2634_v57 = vmul.f32 1.4142135, %v2602_v63  ;;  %v2230_v35 = vpop.f32.mrf.mxu2  ;;  %v2078_v56 = vpop.f32.mrf.mxu1 }
 0x310   : > { %v2471_v17 = vmul.f32 %v5372_v44, %v2438_v4  ;;  %v2135_v21 = vadd.f32 %v2075_v60, %v1990_v14 }
 0x311   : > { %2666 = vst [vmem:[%s5403_s20 + $0x68] sm:$0xff] %v2634_v57 }
 0x312   : > { %v2507_v24 = vadd.f32 %v5378_v43, %v2471_v17  ;;  %2420 = vmatmul.f32.gmra.mxu3 %v6248_v61  ;;  %v2290_v55 = vadd.f32 %v2230_v35, %v2135_v21  ;;  %v6252_v17 = vld [vmem:[#allocation76_spill] sm:$0xff] }
 0x313   : > { %v1991_v33 = vadd.f32 %v1933_v15, %v6252_v17 }
 0x314   : > { %vm2539_vm3 = vcmp.ge.f32.partialorder %v2507_v24, 0.0  ;;  %v2571_v7 = vmul.f32 0.2, %v2507_v24 }
 0x315   : > { %v2373_v28 = vpop.f32.mrf.mxu3 }
 0x316   : > { %v2603_v27 = vsel %vm2539_vm3, %v2507_v24, %v2571_v7  ;;  %v2439_v23 = vadd.f32 %v2373_v28, %v2287_v62  ;;  %v1936_v49 = vpop.f32.mrf.mxu0  ;;  %v2136_v28 = vadd.f32 %v2078_v56, %v1991_v33 }
 0x317   : > { %v2635_v59 = vmul.f32 1.4142135, %v2603_v27  ;;  %v2233_v31 = vpop.f32.mrf.mxu2  ;;  %v2081_v30 = vpop.f32.mrf.mxu1  ;;  %v6253_v27 = vld [vmem:[#allocation59_spill] sm:$0xff] }
 0x318   : > { %v2472_v26 = vmul.f32 %v5372_v44, %v2439_v23  ;;  %v2291_v50 = vadd.f32 %v2233_v31, %v2136_v28  ;;  %v1992_v23 = vadd.f32 %v1936_v49, %v6253_v27 }
 0x319   : > { %2667 = vst [vmem:[%s5403_s20 + $0x70] sm:$0xff] %v2635_v59 }
 0x31a   : > { %v2508_v18 = vadd.f32 %v5378_v43, %v2472_v26 }
 0x31c   : > { %vm2540_vm4 = vcmp.ge.f32.partialorder %v2508_v18, 0.0  ;;  %v2572_v9 = vmul.f32 0.2, %v2508_v18 }
 0x31d   : > { %v2376_v52 = vpop.f32.mrf.mxu3 }
 0x31e   : > { %v2604_v19 = vsel %vm2540_vm4, %v2508_v18, %v2572_v9  ;;  %v2440_v51 = vadd.f32 %v2376_v52, %v2288_v2  ;;  %v1939_v8 = vpop.f32.mrf.mxu0  ;;  %v2137_v9 = vadd.f32 %v2081_v30, %v1992_v23 }
 0x31f   : > { %v2636_v11 = vmul.f32 1.4142135, %v2604_v19  ;;  %v2236_v32 = vpop.f32.mrf.mxu2  ;;  %v2084_v63 = vpop.f32.mrf.mxu1  ;;  %v1993_v19 = vadd.f32 %v1939_v8, %v5286_v13 }
 0x320   : > { %v2473_v1 = vmul.f32 %v5372_v44, %v2440_v51  ;;  %v2292_v41 = vadd.f32 %v2236_v32, %v2137_v9 }
 0x321   : > { %2668 = vst [vmem:[%s5403_s20 + $0x78] sm:$0xff] %v2636_v11 }
 0x322   : > { %v2509_v45 = vadd.f32 %v5378_v43, %v2473_v1 }
 0x324   : > { %vm2541_vm5 = vcmp.ge.f32.partialorder %v2509_v45, 0.0  ;;  %v2573_v46 = vmul.f32 0.2, %v2509_v45 }
 0x325   : > { %v2379_v54 = vpop.f32.mrf.mxu3 }
 0x326   : > { %v2605_v10 = vsel %vm2541_vm5, %v2509_v45, %v2573_v46  ;;  %v2441_v3 = vadd.f32 %v2379_v54, %v2289_v47  ;;  %v1942_v7 = vpop.f32.mrf.mxu0  ;;  %v2138_v47 = vadd.f32 %v2084_v63, %v1993_v19 }
 0x327   : > { %v2637_v20 = vmul.f32 1.4142135, %v2605_v10  ;;  %v2239_v4 = vpop.f32.mrf.mxu2  ;;  %v2087_v59 = vpop.f32.mrf.mxu1  ;;  %v1994_v14 = vadd.f32 %v1942_v7, %v5293_v53 }
 0x328   : > { %v2474_v48 = vmul.f32 %v5372_v44, %v2441_v3  ;;  %v2293_v46 = vadd.f32 %v2239_v4, %v2138_v47 }
 0x329   : > { %2669 = vst [vmem:[%s5403_s20 + $0x80] sm:$0xff] %v2637_v20  ;;  %v2139_v8 = vadd.f32 %v2087_v59, %v1994_v14 }
 0x32a   : > { %v2510_v16 = vadd.f32 %v5378_v43, %v2474_v48 }
 0x32c   : > { %vm2542_vm6 = vcmp.ge.f32.partialorder %v2510_v16, 0.0  ;;  %v2574_v58 = vmul.f32 0.2, %v2510_v16 }
 0x32d   : > { %v2382_v57 = vpop.f32.mrf.mxu3 }
 0x32e   : > { %v2606_v29 = vsel %vm2542_vm6, %v2510_v16, %v2574_v58  ;;  %v2442_v24 = vadd.f32 %v2382_v57, %v2290_v55  ;;  %v1945_v52 = vpop.f32.mrf.mxu0 }
 0x32f   : > { %v2638_v61 = vmul.f32 1.4142135, %v2606_v29  ;;  %v2242_v18 = vpop.f32.mrf.mxu2  ;;  %v2090_v1 = vpop.f32.mrf.mxu1  ;;  %v1995_v4 = vadd.f32 %v1945_v52, %v5300_v38 }
 0x330   : > { %v2475_v62 = vmul.f32 %v5372_v44, %v2442_v24  ;;  %v2294_v55 = vadd.f32 %v2242_v18, %v2139_v8 }
 0x331   : > { %2670 = vst [vmem:[%s5403_s20 + $0x88] sm:$0xff] %v2638_v61  ;;  %v2140_v24 = vadd.f32 %v2090_v1, %v1995_v4 }
 0x332   : > { %v2511_v60 = vadd.f32 %v5378_v43, %v2475_v62 }
 0x334   : > { %vm2543_vm7 = vcmp.ge.f32.partialorder %v2511_v60, 0.0  ;;  %v2575_v35 = vmul.f32 0.2, %v2511_v60 }
 0x335   : > { %v2385_v5 = vpop.f32.mrf.mxu3 }
 0x336   : > { %v2607_v26 = vsel %vm2543_vm7, %v2511_v60, %v2575_v35  ;;  %v2443_v15 = vadd.f32 %v2385_v5, %v2291_v50  ;;  %v1948_v54 = vpop.f32.mrf.mxu0 }
 0x337   : > { %v2639_v6 = vmul.f32 1.4142135, %v2607_v26  ;;  %v2245_v45 = vpop.f32.mrf.mxu2  ;;  %v2093_v48 = vpop.f32.mrf.mxu1  ;;  %v1996_v35 = vadd.f32 %v1948_v54, %v5307_v42 }
 0x338   : > { %v2476_v2 = vmul.f32 %v5372_v44, %v2443_v15  ;;  %v2295_v62 = vadd.f32 %v2245_v45, %v2140_v24 }
 0x339   : > { %2671 = vst [vmem:[%s5403_s20 + $0x90] sm:$0xff] %v2639_v6  ;;  %v2141_v26 = vadd.f32 %v2093_v48, %v1996_v35 }
 0x33a   : > { %v2512_v56 = vadd.f32 %v5378_v43, %v2476_v2 }
 0x33c   : > { %vm2544_vm8 = vcmp.ge.f32.partialorder %v2512_v56, 0.0  ;;  %v2576_v31 = vmul.f32 0.2, %v2512_v56 }
 0x33d   : > { %v2388_v25 = vpop.f32.mrf.mxu3 }
 0x33e   : > { %v2608_v49 = vsel %vm2544_vm8, %v2512_v56, %v2576_v31  ;;  %v2444_v51 = vadd.f32 %v2388_v25, %v2292_v41  ;;  %v1951_v17 = vpop.f32.mrf.mxu0 }
 0x33f   : > { %v2640_v11 = vmul.f32 1.4142135, %v2608_v49  ;;  %v2248_v16 = vpop.f32.mrf.mxu2  ;;  %v2096_v7 = vpop.f32.mrf.mxu1  ;;  %v1997_v9 = vadd.f32 %v1951_v17, %v5314_v39 }
 0x340   : > { %v2477_v22 = vmul.f32 %v5372_v44, %v2444_v51  ;;  %v2296_v6 = vadd.f32 %v2248_v16, %v2141_v26 }
 0x341   : > { %2672 = vst [vmem:[%s5403_s20 + $0x98] sm:$0xff] %v2640_v11  ;;  %v2142_v19 = vadd.f32 %v2096_v7, %v1997_v9 }
 0x342   : > { %v2513_v30 = vadd.f32 %v5378_v43, %v2477_v22 }
 0x344   : > { %vm2545_vm9 = vcmp.ge.f32.partialorder %v2513_v30, 0.0  ;;  %v2577_v32 = vmul.f32 0.2, %v2513_v30 }
 0x345   : > { %v2391_v37 = vpop.f32.mrf.mxu3 }
 0x346   : > { %v2609_v13 = vsel %vm2545_vm9, %v2513_v30, %v2577_v32  ;;  %v2445_v10 = vadd.f32 %v2391_v37, %v2293_v46  ;;  %v1954_v59 = vpop.f32.mrf.mxu0 }
 0x347   : > { %v2641_v3 = vmul.f32 1.4142135, %v2609_v13  ;;  %v2251_v60 = vpop.f32.mrf.mxu2  ;;  %v2099_v56 = vpop.f32.mrf.mxu1  ;;  %v1998_v45 = vadd.f32 %v1954_v59, %v5321_v34 }
 0x348   : > { %v2478_v20 = vmul.f32 %v5372_v44, %v2445_v10  ;;  %v2297_v11 = vadd.f32 %v2251_v60, %v2142_v19 }
 0x349   : > { %2673 = vst [vmem:[%s5403_s20 + $0xa0] sm:$0xff] %v2641_v3  ;;  %v2143_v37 = vadd.f32 %v2099_v56, %v1998_v45 }
 0x34a   : > { %v2514_v21 = vadd.f32 %v5378_v43, %v2478_v20 }
 0x34c   : > { %vm2546_vm10 = vcmp.ge.f32.partialorder %v2514_v21, 0.0  ;;  %v2578_v63 = vmul.f32 0.2, %v2514_v21 }
 0x34d   : > { %v2394_v58 = vpop.f32.mrf.mxu3 }
 0x34e   : > { %v2610_v57 = vsel %vm2546_vm10, %v2514_v21, %v2578_v63  ;;  %v2446_v53 = vadd.f32 %v2394_v58, %v2294_v55  ;;  %v1957_v51 = vpop.f32.mrf.mxu0 }
 0x34f   : > { %v2642_v33 = vmul.f32 1.4142135, %v2610_v57  ;;  %v2254_v41 = vpop.f32.mrf.mxu2  ;;  %v2102_v46 = vpop.f32.mrf.mxu1  ;;  %v1999_v8 = vadd.f32 %v1957_v51, %v5329_v0 }
 0x350   : > { %v2479_v29 = vmul.f32 %v5372_v44, %v2446_v53  ;;  %v2298_v13 = vadd.f32 %v2254_v41, %v2143_v37 }
 0x351   : > { %2674 = vst [vmem:[%s5403_s20 + $0xa8] sm:$0xff] %v2642_v33  ;;  %v2144_v55 = vadd.f32 %v2102_v46, %v1999_v8 }
 0x352   : > { %v2515_v61 = vadd.f32 %v5378_v43, %v2479_v29 }
 0x354   : > { %vm2547_vm11 = vcmp.ge.f32.partialorder %v2515_v61, 0.0  ;;  %v2579_v28 = vmul.f32 0.2, %v2515_v61 }
 0x355   : > { %v2397_v50 = vpop.f32.mrf.mxu3 }
 0x356   : > { %v2611_v38 = vsel %vm2547_vm11, %v2515_v61, %v2579_v28  ;;  %v2447_v5 = vadd.f32 %v2397_v50, %v2295_v62  ;;  %v1960_v3 = vpop.f32.mrf.mxu0 }
 0x357   : > { %v2643_v27 = vmul.f32 1.4142135, %v2611_v38  ;;  %v2257_v54 = vpop.f32.mrf.mxu2  ;;  %v2105_v63 = vpop.f32.mrf.mxu1  ;;  %v2000_v33 = vadd.f32 %v1960_v3, %v5335_v12 }
 0x358   : > { %v2480_v23 = vmul.f32 %v5372_v44, %v2447_v5  ;;  %v2299_v57 = vadd.f32 %v2257_v54, %v2144_v55 }
 0x359   : > { %2675 = vst [vmem:[%s5403_s20 + $0xb0] sm:$0xff] %v2643_v27  ;;  %v2145_v7 = vadd.f32 %v2105_v63, %v2000_v33 }
 0x35a   : > { %v2516_v15 = vadd.f32 %v5378_v43, %v2480_v23 }
 0x35c   : > { %vm2548_vm12 = vcmp.ge.f32.partialorder %v2516_v15, 0.0  ;;  %v2580_v18 = vmul.f32 0.2, %v2516_v15 }
 0x35d   : > { %v2400_v2 = vpop.f32.mrf.mxu3 }
 0x35e   : > { %v2612_v52 = vsel %vm2548_vm12, %v2516_v15, %v2580_v18  ;;  %v2448_v42 = vadd.f32 %v2400_v2, %v2296_v6  ;;  %v1963_v24 = vpop.f32.mrf.mxu0 }
 0x35f   : > { %v2644_v31 = vmul.f32 1.4142135, %v2612_v52  ;;  %v2260_v4 = vpop.f32.mrf.mxu2  ;;  %v2108_v60 = vpop.f32.mrf.mxu1  ;;  %v2001_v27 = vadd.f32 %v1963_v24, %v5341_v36  ;;  %v6254_v52 = vld [vmem:[#allocation30_spill] sm:$0xff] }
 0x360   : > { %v2481_v25 = vmul.f32 %v5372_v44, %v2448_v42  ;;  %v2300_v50 = vadd.f32 %v2260_v4, %v2145_v7 }
 0x361   : > { %2676 = vst [vmem:[%s5403_s20 + $0xb8] sm:$0xff] %v2644_v31  ;;  %v2146_v6 = vadd.f32 %v2108_v60, %v2001_v27 }
 0x362   : > { %v2517_v49 = vadd.f32 %v5378_v43, %v2481_v25 }
 0x364   : > { %vm2549_vm13 = vcmp.ge.f32.partialorder %v2517_v49, 0.0  ;;  %v2581_v1 = vmul.f32 0.2, %v2517_v49 }
 0x365   : > { %v2403_v22 = vpop.f32.mrf.mxu3 }
 0x366   : > { %v2613_v39 = vsel %vm2549_vm13, %v2517_v49, %v2581_v1  ;;  %v2449_v47 = vadd.f32 %v2403_v22, %v2297_v11  ;;  %v1966_v15 = vpop.f32.mrf.mxu0 }
 0x367   : > { %v2645_v30 = vmul.f32 1.4142135, %v2613_v39  ;;  %v2263_v38 = vpop.f32.mrf.mxu2  ;;  %v2002_v42 = vadd.f32 %v1966_v15, %v6254_v52  ;;  %v2111_v36 = vpop.f32.mrf.mxu1 }
 0x368   : > { %v2482_v32 = vmul.f32 %v5372_v44, %v2449_v47  ;;  %v2301_v2 = vadd.f32 %v2263_v38, %v2146_v6 }
 0x369   : > { %2677 = vst [vmem:[%s5403_s20 + $0xc0] sm:$0xff] %v2645_v30  ;;  %v2147_v51 = vadd.f32 %v2111_v36, %v2002_v42 }
 0x36a   : > { %v2518_v14 = vadd.f32 %v5378_v43, %v2482_v32 }
 0x36c   : > { %vm2550_vm14 = vcmp.ge.f32.partialorder %v2518_v14, 0.0  ;;  %v2582_v10 = vmul.f32 0.2, %v2518_v14 }
 0x36d   : > { %v2406_v20 = vpop.f32.mrf.mxu3 }
 0x36e   : > { %v2614_v34 = vsel %vm2550_vm14, %v2518_v14, %v2582_v10  ;;  %v2450_v48 = vadd.f32 %v2406_v20, %v2298_v13  ;;  %v1969_v1 = vpop.f32.mrf.mxu0 }
 0x36f   : > { %v2646_v21 = vmul.f32 1.4142135, %v2614_v34  ;;  %v2266_v25 = vpop.f32.mrf.mxu2  ;;  %v2003_v47 = vadd.f32 %v1969_v1, %v5360_v40  ;;  %v2114_v37 = vpop.f32.mrf.mxu1 }
 0x370   : > { %v2483_v16 = vmul.f32 %v5372_v44, %v2450_v48  ;;  %v2302_v22 = vadd.f32 %v2266_v25, %v2147_v51 }
 0x371   : > { %2678 = vst [vmem:[%s5403_s20 + $0xc8] sm:$0xff] %v2646_v21  ;;  %v2148_v13 = vadd.f32 %v2114_v37, %v2003_v47 }
 0x372   : > { %v2519_v58 = vadd.f32 %v5378_v43, %v2483_v16 }
 0x374   : > { %vm2551_vm15 = vcmp.ge.f32.partialorder %v2519_v58, 0.0  ;;  %v2583_v53 = vmul.f32 0.2, %v2519_v58 }
 0x375   : > { %v2409_v17 = vpop.f32.mrf.mxu3 }
 0x376   : > { %v2615_v29 = vsel %vm2551_vm15, %v2519_v58, %v2583_v53  ;;  %v2451_v0 = vadd.f32 %v2409_v17, %v2299_v57 }
 0x377   : > { %v2647_v61 = vmul.f32 1.4142135, %v2615_v29  ;;  %v2269_v14 = vpop.f32.mrf.mxu2 }
 0x378   : > { %v2484_v62 = vmul.f32 %v5372_v44, %v2451_v0  ;;  %v2303_v3 = vadd.f32 %v2269_v14, %v2148_v13 }
 0x379   : > { %2679 = vst [vmem:[%s5403_s20 + $0xd0] sm:$0xff] %v2647_v61 }
 0x37a   : > { %v2520_v28 = vadd.f32 %v5378_v43, %v2484_v62 }
 0x37c   : > { %vm2552_vm0 = vcmp.ge.f32.partialorder %v2520_v28, 0.0  ;;  %v2584_v35 = vmul.f32 0.2, %v2520_v28 }
 0x37d   : > { %v2412_v5 = vpop.f32.mrf.mxu3 }
 0x37e   : > { %v2616_v12 = vsel %vm2552_vm0, %v2520_v28, %v2584_v35  ;;  %v2452_v23 = vadd.f32 %v2412_v5, %v2300_v50 }
 0x37f   : > { %v2648_v59 = vmul.f32 1.4142135, %v2616_v12 }
 0x380   : > { %v2485_v26 = vmul.f32 %v5372_v44, %v2452_v23 }
 0x381   : > { %2680 = vst [vmem:[%s5403_s20 + $0xd8] sm:$0xff] %v2648_v59 }
 0x382   : > { %v2521_v18 = vadd.f32 %v5378_v43, %v2485_v26 }
 0x384   : > { %vm2553_vm1 = vcmp.ge.f32.partialorder %v2521_v18, 0.0  ;;  %v2585_v9 = vmul.f32 0.2, %v2521_v18 }
 0x385   : > { %v2415_v56 = vpop.f32.mrf.mxu3 }
 0x386   : > { %v2617_v41 = vsel %vm2553_vm1, %v2521_v18, %v2585_v9  ;;  %v2453_v31 = vadd.f32 %v2415_v56, %v2301_v2 }
 0x387   : > { %v2649_v19 = vmul.f32 1.4142135, %v2617_v41 }
 0x388   : > { %v2486_v49 = vmul.f32 %v5372_v44, %v2453_v31 }
 0x389   : > { %2681 = vst [vmem:[%s5403_s20 + $0xe0] sm:$0xff] %v2649_v19 }
 0x38a   : > { %v2522_v11 = vadd.f32 %v5378_v43, %v2486_v49 }
 0x38c   : > { %vm2554_vm2 = vcmp.ge.f32.partialorder %v2522_v11, 0.0  ;;  %v2586_v45 = vmul.f32 0.2, %v2522_v11 }
 0x38d   : > { %v2418_v39 = vpop.f32.mrf.mxu3 }
 0x38e   : > { %v2618_v30 = vsel %vm2554_vm2, %v2522_v11, %v2586_v45  ;;  %v2454_v46 = vadd.f32 %v2418_v39, %v2302_v22 }
 0x38f   : > { %v2650_v32 = vmul.f32 1.4142135, %v2618_v30 }
 0x390   : > { %v2487_v54 = vmul.f32 %v5372_v44, %v2454_v46 }
 0x391   : > { %2682 = vst [vmem:[%s5403_s20 + $0xe8] sm:$0xff] %v2650_v32 }
 0x392   : > { %v2523_v10 = vadd.f32 %v5378_v43, %v2487_v54 }
 0x394   : > { %vm2555_vm3 = vcmp.ge.f32.partialorder %v2523_v10, 0.0  ;;  %v2587_v20 = vmul.f32 0.2, %v2523_v10 }
 0x395   : > { %v2421_v8 = vpop.f32.mrf.mxu3 }
 0x396   : > { %v2619_v40 = vsel %vm2555_vm3, %v2523_v10, %v2587_v20  ;;  %v2455_v34 = vadd.f32 %v2421_v8, %v2303_v3 }
 0x397   : > { %v2651_v48 = vmul.f32 1.4142135, %v2619_v40 }
 0x398   : > { %v2488_v21 = vmul.f32 %v5372_v44, %v2455_v34 }
 0x399   : > { %2683 = vst [vmem:[%s5403_s20 + $0xf0] sm:$0xff] %v2651_v48 }
 0x39a   : > { %v2524_v16 = vadd.f32 %v5378_v43, %v2488_v21 }
 0x39c   : > { %vm2556_vm4 = vcmp.ge.f32.partialorder %v2524_v16, 0.0  ;;  %v2588_v55 = vmul.f32 0.2, %v2524_v16 }
 0x39e   : > { %v2620_v63 = vsel %vm2556_vm4, %v2524_v16, %v2588_v55 }
 0x39f   : > { %v2652_v58 = vmul.f32 1.4142135, %v2620_v63 }
 0x3a1   : > { %2684 = vst [vmem:[%s5403_s20 + $0xf8] sm:$0xff] %v2652_v58 }
 0x3a2   : > { %2949 = shalt.err (!%p2946_p3)
}
 0x3a3   : > { %s2986_s17 = smov 128   ;;  %s2987_s20 = smov 8  }
 0x3a4   : > { %2837 = dma.vmem_to_hbm [thread:$0]  (%p3061_p5), %s2699_s19, 4096, %s2701_s26, %s2686_s25, %s2986_s17, %s2986_s17, %s2987_s20  }
 0x3a5 PF: > { %p2843_p4 = scmp.ge.s32.totalorder %s2984_s24, 2  ;;  %s2715_s28 = sand.u32 1, %s2972_s21  }
 0x3a6   : > { %s2716_s29 = scalar_lea.sflag [#allocation3], %s2715_s28 }
 0x3a7   : > { %p2840_p7 = pnand %p2843_p4, %p3065_p6 }
 0x3a9   : > { %p2841_p8 = pneg %p2840_p7 }
 0x3ab   : > { %2967 = dma.done.wait (%p2841_p8), %s2716_s29, 4096  }
 0x3ac   : > { %2969 = vsyncadd (%p2841_p8), %s2716_s29, 4294963200  ;;  %p16_p9 = scmp.ge.s32.totalorder %s3048_s27, 4   ;;  %s6255_s21 = smov %s2976_s22 }
 0x3ad   : > { %s6256_s22 = smov %s2980_s23  ;;  %s6257_s23 = smov %s3059_s30 }
 0x3ae   : > { %s6258_s24 = smov %s3048_s27  ;;  %18 = sbr.rel (!%p16_p9) target bundleno = 3 (0x3), region = 82 }
 0x3b3   :  { %2722 = vsyncpa [#allocation3], 1 }
 0x3b4   :  { %2724 = vsyncpa [#allocation3 + $0x1], 1 }

// kernel: styled_conv_block.2
= control target key start
LH: loop header
LB: loop body
LE: loop exit
PB: predicated region body
PF: predicated region fallthrough
CT: control target
= control target key end

     0   :  { %s2910_s21 = smov 0   ;;  %s5514_s0 = inlined_call_operand.vmem [shape: f32[2,18,18,128], index: 0, kind: input, shape index: {}]   ;;  %s5515_s1 = inlined_call_operand.vmem [shape: f32[2,1,256], index: 1, kind: input, shape index: {}]   ;;  %s5516_s2 = inlined_call_operand.vmem [shape: f32[256,128], index: 2, kind: input, shape index: {}]   ;;  %s5517_s3 = inlined_call_operand.vmem [shape: f32[1,128], index: 3, kind: input, shape index: {}]   ;;  %s5518_s4 = inlined_call_operand.vmem [shape: f32[9,128,128], index: 4, kind: input, shape index: {}]   ;;  %s5519_s5 = inlined_call_operand.vmem [shape: f32[1,128], index: 5, kind: input, shape index: {}]   ;;  %s5520_s6 = inlined_call_operand.vmem [shape: f32[2,256,128], index: 6, kind: output, shape index: {}]  }
   0x1 LB: > { %s2754_s22 = sadd.s32 4294967295, %s2873_s21   ;;  %p2758_p0 = scmp.ge.s32.totalorder %s2873_s21, 1  ;;  %s2873_s21 = sphi %s2910_s21, %s16_s21  }
   0x2   : > { %p221_p1 = scmp.lt.s32.totalorder %s2873_s21, 3 }
   0x4   : > { %p222_p2 = pnand %p2758_p0, %p221_p1 }
   0x6   : > { %225 = sbr.rel (%p222_p2) target bundleno = 922 (0x39a), region = 44 }
   0xb   : > { %v285_v0 = vld [vmem:[%s5516_s2 + $0x78] sm:$0xff]  ;;  %v284_v2 = vld [vmem:[%s5516_s2 + $0x70] sm:$0xff]  ;;  %v283_v4 = vld [vmem:[%s5516_s2 + $0x68] sm:$0xff]  ;;  %p2956_p3 = scmp.lt.s32.totalorder %s2754_s22, 1  ;;  %vm957_vm0 = vcmask 1046528   ;;  %vm1296_vm1 = vcmask 1045504  }
   0xc   : > { %v301_v1 = vld [vmem:[%s5516_s2 + $0xf8] sm:$0xff]  ;;  %307 = vmatpush.msra.mxu0 %v285_v0  ;;  %v300_v3 = vld [vmem:[%s5516_s2 + $0xf0] sm:$0xff]  ;;  %v299_v5 = vld [vmem:[%s5516_s2 + $0xe8] sm:$0xff] }
   0xd   : > { %327 = vmatpush.msra.mxu1 %v301_v1  ;;  %v282_v6 = vld [vmem:[%s5516_s2 + $0x60] sm:$0xff]  ;;  %v281_v8 = vld [vmem:[%s5516_s2 + $0x58] sm:$0xff]  ;;  %v280_v10 = vld [vmem:[%s5516_s2 + $0x50] sm:$0xff]  ;;  %s6075_s22 = smov (!%p2956_p3, %s2754_s22), 1 }
   0xe   : > { %308 = vmatpush.msra.mxu0 %v284_v2  ;;  %v298_v7 = vld [vmem:[%s5516_s2 + $0xe0] sm:$0xff]  ;;  %v297_v9 = vld [vmem:[%s5516_s2 + $0xd8] sm:$0xff]  ;;  %v296_v11 = vld [vmem:[%s5516_s2 + $0xd0] sm:$0xff]  ;;  %s2760_s30 = sshll.u32 %s6075_s22, 1  ;;  %s2814_s11 = smul.u32 432, %s6075_s22 }
   0xf   : > { %328 = vmatpush.msra.mxu1 %v300_v3  ;;  %v279_v12 = vld [vmem:[%s5516_s2 + $0x48] sm:$0xff]  ;;  %v278_v14 = vld [vmem:[%s5516_s2 + $0x40] sm:$0xff]  ;;  %v2975_v16 = vld [vmem:[%s5518_s4 + $0x78] sm:$0xff]  ;;  %s263_s8 = scalar_lea.vmem %s5515_s1, %s2760_s30  ;;  %s2765_s9 = sshll.u32 %s6075_s22, 8 }
  0x10   : > { %309 = vmatpush.msra.mxu0 %v283_v4  ;;  %v295_v13 = vld [vmem:[%s5516_s2 + $0xc8] sm:$0xff]  ;;  %v294_v15 = vld [vmem:[%s5516_s2 + $0xc0] sm:$0xff]  ;;  %v2980_v17 = vld [vmem:[%s5518_s4 + $0xf8] sm:$0xff]  ;;  %v509_v24 = vmul.f32 %v2975_v16, %v2975_v16  ;;  %s4020_s13 = scalar_lea.vmem %s5514_s0, %s2814_s11  ;;  %s5247_s12 = scalar_lea.vmem %s5520_s6, %s2765_s9 }
  0x11   : > { %329 = vmatpush.msra.mxu1 %v299_v5  ;;  %v397_v18 = vld [vmem:[%s5518_s4 + $0x178] sm:$0xff]  ;;  %v525_v25 = vmul.f32 %v2980_v17, %v2980_v17  ;;  %2768 = vmatpush.msra.mxu3 %v2980_v17  ;;  %v276_v30 = vld [vmem:[%s5516_s2 + $0x30] sm:$0xff]  ;;  %v275_v43 = vld [vmem:[%s5516_s2 + $0x28] sm:$0xff] }
  0x12   : > { %310 = vmatpush.msra.mxu0 %v282_v6  ;;  %v277_v19 = vld [vmem:[%s5516_s2 + $0x38] sm:$0xff]  ;;  %v557_v26 = vmul.f32 %v397_v18, %v397_v18  ;;  %v3030_v34 = vld [vmem:[%s5518_s4 + $0x70] sm:$0xff]  ;;  %v291_v44 = vld [vmem:[%s5516_s2 + $0xa8] sm:$0xff] }
  0x13   : > { %330 = vmatpush.msra.mxu1 %v298_v7  ;;  %v293_v20 = vld [vmem:[%s5516_s2 + $0xb8] sm:$0xff]  ;;  %v541_v31 = vadd.f32 %v525_v25, %v509_v24  ;;  %v3035_v35 = vld [vmem:[%s5518_s4 + $0xf0] sm:$0xff]  ;;  %v508_v40 = vmul.f32 %v3030_v34, %v3030_v34  ;;  %v3082_v54 = vld [vmem:[%s5518_s4 + $0x68] sm:$0xff] }
  0x14   : > { %311 = vmatpush.msra.mxu0 %v281_v8  ;;  %v413_v21 = vld [vmem:[%s5518_s4 + $0x1f8] sm:$0xff]  ;;  %v3040_v36 = vld [vmem:[%s5518_s4 + $0x170] sm:$0xff]  ;;  %v524_v41 = vmul.f32 %v3035_v35, %v3035_v35  ;;  %2771 = vmatpush.msra.mxu3 %v3035_v35  ;;  %v3087_v55 = vld [vmem:[%s5518_s4 + $0xe8] sm:$0xff]  ;;  %v507_v62 = vmul.f32 %v3082_v54, %v3082_v54 }
  0x15   : > { %331 = vmatpush.msra.mxu1 %v297_v9  ;;  %v3003_v22 = vld [vmem:[%s5518_s4 + $0x278] sm:$0xff]  ;;  %v589_v32 = vmul.f32 %v413_v21, %v413_v21  ;;  %v292_v37 = vld [vmem:[%s5516_s2 + $0xb0] sm:$0xff]  ;;  %v556_v42 = vmul.f32 %v3040_v36, %v3040_v36  ;;  %v573_v45 = vadd.f32 %v557_v26, %v541_v31  ;;  %v3092_v56 = vld [vmem:[%s5518_s4 + $0x168] sm:$0xff]  ;;  %v523_v63 = vmul.f32 %v3087_v55, %v3087_v55 }
  0x16   : > { %312 = vmatpush.msra.mxu0 %v280_v10  ;;  %v445_v23 = vld [vmem:[%s5518_s4 + $0x2f8] sm:$0xff]  ;;  %v621_v33 = vmul.f32 %v3003_v22, %v3003_v22  ;;  %v412_v38 = vld [vmem:[%s5518_s4 + $0x1f0] sm:$0xff]  ;;  %v540_v52 = vadd.f32 %v524_v41, %v508_v40  ;;  %v411_v61 = vld [vmem:[%s5518_s4 + $0x1e8] sm:$0xff]  ;;  %2774 = vmatpush.msra.mxu3 %v3087_v55  ;;  %v555_v5 = vmul.f32 %v3092_v56, %v3092_v56 }
  0x17   : > { %332 = vmatpush.msra.mxu1 %v296_v11  ;;  %v461_v27 = vld [vmem:[%s5518_s4 + $0x378] sm:$0xff]  ;;  %v3051_v39 = vld [vmem:[%s5518_s4 + $0x270] sm:$0xff]  ;;  %v653_v46 = vmul.f32 %v445_v23, %v445_v23  ;;  %v588_v53 = vmul.f32 %v412_v38, %v412_v38  ;;  %v605_v57 = vadd.f32 %v589_v32, %v573_v45  ;;  %v274_v0 = vld [vmem:[%s5516_s2 + $0x20] sm:$0xff]  ;;  %v539_v8 = vadd.f32 %v523_v63, %v507_v62 }
  0x18   : > { %313 = vmatpush.msra.mxu0 %v279_v12  ;;  %v477_v28 = vld [vmem:[%s5518_s4 + $0x3f8] sm:$0xff]  ;;  %v3066_v47 = vmul.f32 %v461_v27, %v461_v27  ;;  %v444_v49 = vld [vmem:[%s5518_s4 + $0x2f0] sm:$0xff]  ;;  %v620_v60 = vmul.f32 %v3051_v39, %v3051_v39  ;;  %v290_v1 = vld [vmem:[%s5516_s2 + $0xa0] sm:$0xff]  ;;  %v572_v2 = vadd.f32 %v556_v42, %v540_v52  ;;  %v587_v9 = vmul.f32 %v411_v61, %v411_v61 }
  0x19   : > { %333 = vmatpush.msra.mxu1 %v295_v13  ;;  %v493_v29 = vld [vmem:[%s5518_s4 + $0x478] sm:$0xff]  ;;  %v3068_v48 = vmul.f32 %v477_v28, %v477_v28  ;;  %v460_v50 = vld [vmem:[%s5518_s4 + $0x370] sm:$0xff]  ;;  %v652_v3 = vmul.f32 %v444_v49, %v444_v49  ;;  %v3122_v4 = vld [vmem:[%s5518_s4 + $0x268] sm:$0xff]  ;;  %v637_v6 = vadd.f32 %v621_v33, %v605_v57  ;;  %v571_v25 = vadd.f32 %v555_v5, %v539_v8 }
  0x1a   : > { %314 = vmatpush.msra.mxu0 %v278_v14  ;;  %v3077_v51 = vmul.f32 %v493_v29, %v493_v29  ;;  %v476_v58 = vld [vmem:[%s5518_s4 + $0x3f0] sm:$0xff]  ;;  %v684_v7 = vmul.f32 %v460_v50, %v460_v50  ;;  %v3129_v10 = vld [vmem:[%s5518_s4 + $0x60] sm:$0xff]  ;;  %v273_v13 = vld [vmem:[%s5516_s2 + $0x18] sm:$0xff]  ;;  %v604_v14 = vadd.f32 %v588_v53, %v572_v2  ;;  %v619_v26 = vmul.f32 %v3122_v4, %v3122_v4 }
  0x1b   : > { %334 = vmatpush.msra.mxu1 %v294_v15  ;;  %v492_v59 = vld [vmem:[%s5518_s4 + $0x470] sm:$0xff]  ;;  %v3134_v11 = vld [vmem:[%s5518_s4 + $0xe0] sm:$0xff]  ;;  %v716_v15 = vmul.f32 %v476_v58, %v476_v58  ;;  %v289_v21 = vld [vmem:[%s5516_s2 + $0x98] sm:$0xff]  ;;  %v669_v24 = vadd.f32 %v653_v46, %v637_v6  ;;  %v506_v28 = vmul.f32 %v3129_v10, %v3129_v10  ;;  %v603_v42 = vadd.f32 %v587_v9, %v571_v25 }
  0x1c   : > { %315 = vmatpush.msra.mxu0 %v277_v19  ;;  %v3139_v12 = vld [vmem:[%s5518_s4 + $0x160] sm:$0xff]  ;;  %v3144_v18 = vmul.f32 %v492_v59, %v492_v59  ;;  %v443_v19 = vld [vmem:[%s5518_s4 + $0x2e8] sm:$0xff]  ;;  %2777 = vmatpush.msra.mxu3 %v3134_v11  ;;  %v636_v29 = vadd.f32 %v620_v60, %v604_v14  ;;  %v522_v32 = vmul.f32 %v3134_v11, %v3134_v11  ;;  %v272_v38 = vld [vmem:[%s5516_s2 + $0x10] sm:$0xff] }
  0x1d   : > { %335 = vmatpush.msra.mxu1 %v293_v20  ;;  %v459_v20 = vld [vmem:[%s5518_s4 + $0x368] sm:$0xff]  ;;  %v3155_v23 = vld [vmem:[%s263_s8] sm:$0x3]  ;;  %v554_v33 = vmul.f32 %v3139_v12, %v3139_v12  ;;  %v288_v40 = vld [vmem:[%s5516_s2 + $0x90] sm:$0xff]  ;;  %v701_v41 = vadd.f32 %v3066_v47, %v669_v24  ;;  %v635_v59 = vadd.f32 %v619_v26, %v603_v42 }
  0x1e   : > { %316 = vmatpush.msra.mxu0 %v276_v30  ;;  %v410_v27 = vld [vmem:[%s5518_s4 + $0x1e0] sm:$0xff]  ;;  %v475_v30 = vld [vmem:[%s5518_s4 + $0x3e8] sm:$0xff]  ;;  %v303_v46 = vperm.slane %v3155_v23, 0  ;;  %v668_v49 = vadd.f32 %v652_v3, %v636_v29  ;;  %v538_v50 = vadd.f32 %v522_v32, %v506_v28  ;;  %v3197_v47 = vld [vmem:[%s5518_s4 + $0x58] sm:$0xff]  ;;  %v304_v63 = vperm.slane %v3155_v23, 1 }
  0x1f   : > { %336 = vmatpush.msra.mxu1 %v292_v37  ;;  %v3171_v31 = vld [vmem:[%s5518_s4 + $0x260] sm:$0xff]  ;;  %v3180_v37 = vld [vmem:[%s5518_s4 + $0xd8] sm:$0xff]  ;;  %v586_v52 = vmul.f32 %v410_v27, %v410_v27  ;;  %v271_v53 = vld [vmem:[%s5516_s2 + $0x8] sm:$0xff]  ;;  %v733_v58 = vadd.f32 %v3068_v48, %v701_v41  ;;  %v715_v60 = vmul.f32 %v475_v30, %v475_v30  ;;  %v505_v14 = vmul.f32 %v3197_v47, %v3197_v47 }
  0x20   : > { %317 = vmatpush.msra.mxu0 %v275_v43  ;;  %v651_v43 = vmul.f32 %v443_v19, %v443_v19  ;;  %v442_v45 = vld [vmem:[%s5518_s4 + $0x2e0] sm:$0xff]  ;;  %2780 = vmatpush.msra.mxu3 %v3180_v37  ;;  %v287_v57 = vld [vmem:[%s5516_s2 + $0x88] sm:$0xff]  ;;  %v618_v61 = vmul.f32 %v3171_v31, %v3171_v31  ;;  %v3211_v62 = vld [vmem:[%s5518_s4 + $0x158] sm:$0xff]  ;;  %v570_v48 = vadd.f32 %v554_v33, %v538_v50 }
  0x21   : > { %337 = vmatpush.msra.mxu1 %v291_v44  ;;  %v683_v44 = vmul.f32 %v459_v20, %v459_v20  ;;  %v650_v2 = vmul.f32 %v442_v45, %v442_v45  ;;  %v409_v3 = vld [vmem:[%s5518_s4 + $0x1d8] sm:$0xff]  ;;  %v3223_v5 = vld [vmem:[%s5518_s4 + $0xd0] sm:$0xff]  ;;  %v270_v6 = vld [vmem:[%s5516_s2] sm:$0xff]  ;;  %v765_v8 = vadd.f32 %v3077_v51, %v733_v58  ;;  %v521_v19 = vmul.f32 %v3180_v37, %v3180_v37 }
  0x22   : > { %318 = vmatpush.msra.mxu0 %v274_v0  ;;  %v700_v0 = vadd.f32 %v684_v7, %v668_v49  ;;  %5703 = vst [vmem:[#allocation2_spill] sm:$0xff] %v3223_v5  ;;  %v286_v7 = vld [vmem:[%s5516_s2 + $0x80] sm:$0xff]  ;;  %v667_v9 = vadd.f32 %v651_v43, %v635_v59  ;;  %2783 = vmatpush.msra.mxu3 %v3223_v5  ;;  %v3243_v51 = vld [vmem:[%s5518_s4 + $0x258] sm:$0xff]  ;;  %v3256_v29 = vld [vmem:[%s5518_s4 + $0x50] sm:$0xff] }
  0x23   : > { %338 = vmatpush.msra.mxu1 %v290_v1  ;;  %v491_v1 = vld [vmem:[%s5518_s4 + $0x468] sm:$0xff]  ;;  %v553_v23 = vmul.f32 %v3211_v62, %v3211_v62  ;;  %767 = vmatpush.msra.mxu2 %v765_v8  ;;  %v474_v26 = vld [vmem:[%s5518_s4 + $0x3e0] sm:$0xff]  ;;  %v537_v27 = vadd.f32 %v521_v19, %v505_v14  ;;  %v585_v28 = vmul.f32 %v409_v3, %v409_v3  ;;  %v457_v45 = vld [vmem:[%s5518_s4 + $0x358] sm:$0xff] }
  0x24   : > { %319 = vmatpush.msra.mxu0 %v273_v13  ;;  %v458_v13 = vld [vmem:[%s5518_s4 + $0x360] sm:$0xff]  ;;  %v732_v20 = vadd.f32 %v716_v15, %v700_v0  ;;  %v699_v24 = vadd.f32 %v683_v44, %v667_v9  ;;  %v747_v25 = vmul.f32 %v491_v1, %v491_v1  ;;  %v441_v15 = vld [vmem:[%s5518_s4 + $0x2d8] sm:$0xff]  ;;  %v617_v43 = vmul.f32 %v3243_v51, %v3243_v51  ;;  %v3298_v1 = vld [vmem:[%s5518_s4 + $0x250] sm:$0xff] }
  0x25   : > { %339 = vmatpush.msra.mxu1 %v289_v21  ;;  %v602_v21 = vadd.f32 %v586_v52, %v570_v48  ;;  %v682_v33 = vmul.f32 %v458_v13, %v458_v13  ;;  %v490_v41 = vld [vmem:[%s5518_s4 + $0x460] sm:$0xff]  ;;  %v569_v42 = vadd.f32 %v553_v23, %v537_v27  ;;  %v714_v44 = vmul.f32 %v474_v26, %v474_v26  ;;  %v3303_v48 = vld [vmem:[%s5518_s4 + $0x148] sm:$0xff]  ;;  %v456_v19 = vld [vmem:[%s5518_s4 + $0x350] sm:$0xff] }
  0x26   : > { %320 = vmatpush.msra.mxu0 %v272_v38  ;;  %v764_v30 = vadd.f32 %v3144_v18, %v732_v20  ;;  %v3262_v38 = vld [vmem:[%s5518_s4 + $0x150] sm:$0xff]  ;;  %v649_v49 = vmul.f32 %v441_v15, %v441_v15  ;;  %v504_v50 = vmul.f32 %v3256_v29, %v3256_v29  ;;  %v520_v58 = vmul.f32 %v3223_v5, %v3223_v5  ;;  %v3312_v9 = vld [vmem:[%s5518_s4 + $0x1c8] sm:$0xff]  ;;  %v3337_v27 = vld [vmem:[%s5518_s4 + $0x40] sm:$0xff] }
  0x27   : > { %340 = vmatpush.msra.mxu1 %v288_v40  ;;  %v634_v32 = vadd.f32 %v618_v61, %v602_v21  ;;  %v731_v40 = vadd.f32 %v715_v60, %v699_v24  ;;  %v552_v59 = vmul.f32 %v3262_v38, %v3262_v38  ;;  %v3287_v60 = vld [vmem:[%s5518_s4 + $0x48] sm:$0xff]  ;;  %v746_v0 = vmul.f32 %v490_v41, %v490_v41 }
  0x28   : > { %321 = vmatpush.msra.mxu0 %v271_v53  ;;  %768 = vmatpush.msra.mxu2 %v764_v30  ;;  %v473_v53 = vld [vmem:[%s5518_s4 + $0x3d8] sm:$0xff]  ;;  %v3292_v61 = vld [vmem:[%s5518_s4 + $0xc8] sm:$0xff]  ;;  %5705 = vst [vmem:[#allocation4_spill] sm:$0xff] %v3312_v9  ;;  %v503_v20 = vmul.f32 %v3287_v60, %v3287_v60  ;;  %v551_v15 = vmul.f32 %v3303_v48, %v3303_v48 }
  0x29   : > { %341 = vmatpush.msra.mxu1 %v287_v57  ;;  %v666_v18 = vadd.f32 %v650_v2, %v634_v32  ;;  %v763_v52 = vadd.f32 %v747_v25, %v731_v40  ;;  %v601_v57 = vadd.f32 %v585_v28, %v569_v42  ;;  %5704 = vst [vmem:[#allocation3_spill] sm:$0xff] %v3292_v61  ;;  %v489_v2 = vld [vmem:[%s5518_s4 + $0x458] sm:$0xff]  ;;  %v3330_v26 = vld [vmem:[%s5518_s4 + $0x248] sm:$0xff]  ;;  %v3342_v28 = vld [vmem:[%s5518_s4 + $0xc0] sm:$0xff] }
  0x2a   : > { %322 = vmatpush.msra.mxu0 %v270_v6  ;;  %v681_v6 = vmul.f32 %v457_v45, %v457_v45  ;;  %v713_v14 = vmul.f32 %v473_v53, %v473_v53  ;;  %v519_v21 = vmul.f32 %v3292_v61, %v3292_v61  ;;  %v616_v25 = vmul.f32 %v3298_v1, %v3298_v1  ;;  %v3353_v42 = vld [vmem:[%s5518_s4 + $0x140] sm:$0xff]  ;;  %v439_v45 = vld [vmem:[%s5518_s4 + $0x2c8] sm:$0xff] }
  0x2b   : > { %342 = vmatpush.msra.mxu1 %v286_v7  ;;  %323 = vmatmul.f32.vlgmr.msra.gmra.mxu0 %v303_v46  ;;  %v408_v46 = vld [vmem:[%s5518_s4 + $0x1d0] sm:$0xff]  ;;  %v633_v3 = vadd.f32 %v617_v43, %v601_v57  ;;  %v536_v7 = vadd.f32 %v520_v58, %v504_v50  ;;  %5706 = vst [vmem:[#allocation5_spill] sm:$0xff] %v3342_v28  ;;  %v455_v50 = vld [vmem:[%s5518_s4 + $0x348] sm:$0xff] }
  0x2c   : > { %343 = vmatmul.f32.vlgmr.msra.gmra.mxu1 %v304_v63  ;;  %1070 = vmatpush.msrb.mxu0 %v2980_v17  ;;  %v698_v63 = vadd.f32 %v682_v33, %v666_v18  ;;  %v584_v8 = vmul.f32 %v408_v46, %v408_v46  ;;  %v745_v32 = vmul.f32 %v489_v2, %v489_v2  ;;  %v472_v33 = vld [vmem:[%s5518_s4 + $0x3d0] sm:$0xff]  ;;  %v3382_v2 = vld [vmem:[%s5518_s4 + $0x240] sm:$0xff] }
  0x2d   : > { %2766 = vmatpush.msrb.mxu1 %v2980_v17  ;;  %769 = vmatpush.msra.mxu2 %v763_v52  ;;  %v440_v17 = vld [vmem:[%s5518_s4 + $0x2d0] sm:$0xff]  ;;  %v665_v23 = vadd.f32 %v649_v49, %v633_v3  ;;  %v568_v24 = vadd.f32 %v552_v59, %v536_v7  ;;  %v535_v40 = vadd.f32 %v519_v21, %v503_v20  ;;  %v3362_v49 = vld [vmem:[%s5518_s4 + $0x1c0] sm:$0xff]  ;;  %v471_v7 = vld [vmem:[%s5518_s4 + $0x3c8] sm:$0xff] }
  0x2e   : > { %v730_v13 = vadd.f32 %v714_v44, %v698_v63  ;;  %1071 = vmatpush.msrb.mxu0 %v3035_v35  ;;  %v583_v41 = vmul.f32 %v3312_v9, %v3312_v9  ;;  %v680_v44 = vmul.f32 %v456_v19, %v456_v19  ;;  %5707 = vst [vmem:[#allocation6_spill] sm:$0xff] %v3362_v49  ;;  %v3368_v46 = vld [vmem:[%s5518_s4 + $0x450] sm:$0xff]  ;;  %v3400_v19 = vld [vmem:[%s5518_s4 + $0xb8] sm:$0xff] }
  0x2f   : > { %2769 = vmatpush.msrb.mxu1 %v3035_v35  ;;  %v697_v43 = vadd.f32 %v681_v6, %v665_v23  ;;  %v600_v18 = vadd.f32 %v584_v8, %v568_v24  ;;  %v648_v35 = vmul.f32 %v440_v17, %v440_v17  ;;  %5708 = vst [vmem:[#allocation7_spill] sm:$0xff] %v3368_v46  ;;  %v3389_v6 = vld [vmem:[%s5518_s4 + $0x38] sm:$0xff] }
  0x30   : > { %v762_v30 = vadd.f32 %v746_v0, %v730_v13  ;;  %1072 = vmatpush.msrb.mxu0 %v3087_v55  ;;  %v567_v52 = vadd.f32 %v551_v15, %v535_v40  ;;  %v615_v53 = vmul.f32 %v3330_v26, %v3330_v26  ;;  %v502_v57 = vmul.f32 %v3337_v27, %v3337_v27  ;;  %v3405_v20 = vld [vmem:[%s5518_s4 + $0x138] sm:$0xff] }
  0x31   : > { %2772 = vmatpush.msrb.mxu1 %v3087_v55  ;;  %v518_v58 = vmul.f32 %v3342_v28, %v3342_v28  ;;  %v729_v59 = vadd.f32 %v713_v14, %v697_v43  ;;  %v632_v63 = vadd.f32 %v616_v25, %v600_v18  ;;  %v712_v0 = vmul.f32 %v472_v33, %v472_v33  ;;  %v3413_v25 = vld [vmem:[%s5518_s4 + $0x448] sm:$0xff]  ;;  %v3431_v43 = vld [vmem:[%s5518_s4 + $0x1b8] sm:$0xff] }
  0x32   : > { %770 = vmatpush.msra.mxu2 %v762_v30  ;;  %v550_v3 = vmul.f32 %v3353_v42, %v3353_v42  ;;  %1073 = vmatpush.msrb.mxu0 %v3134_v11  ;;  %v599_v8 = vadd.f32 %v583_v41, %v567_v52  ;;  %v647_v13 = vmul.f32 %v439_v45, %v439_v45  ;;  %v3418_v30 = vld [vmem:[%s5518_s4 + $0x2c0] sm:$0xff] }
  0x33   : > { %v534_v14 = vadd.f32 %v518_v58, %v502_v57  ;;  %v582_v17 = vmul.f32 %v3362_v49, %v3362_v49  ;;  %5709 = vst [vmem:[#allocation8_spill] sm:$0xff] %v3400_v19  ;;  %2775 = vmatpush.msrb.mxu1 %v3134_v11  ;;  %v761_v21 = vadd.f32 %v745_v32, %v729_v59  ;;  %v3424_v32 = vld [vmem:[%s5518_s4 + $0x340] sm:$0xff]  ;;  %v3448_v57 = vld [vmem:[%s5518_s4 + $0x30] sm:$0xff] }
  0x34   : > { %v664_v23 = vadd.f32 %v648_v35, %v632_v63  ;;  %v744_v24 = vmul.f32 %v3368_v46, %v3368_v46  ;;  %5710 = vst [vmem:[#allocation9_spill] sm:$0xff] %v3413_v25  ;;  %v679_v15 = vmul.f32 %v455_v50, %v455_v50  ;;  %1074 = vmatpush.msrb.mxu0 %v3180_v37  ;;  %v3439_v50 = vld [vmem:[%s5518_s4 + $0x238] sm:$0xff] }
  0x35   : > { %5711 = vst [vmem:[#allocation10_spill] sm:$0xff] %v3418_v30  ;;  %v631_v33 = vadd.f32 %v615_v53, %v599_v8  ;;  %v566_v40 = vadd.f32 %v550_v3, %v534_v14  ;;  %v614_v41 = vmul.f32 %v3382_v2, %v3382_v2  ;;  %v501_v18 = vmul.f32 %v3389_v6, %v3389_v6  ;;  %v3457_v3 = vld [vmem:[%s5518_s4 + $0xb0] sm:$0xff]  ;;  %v3471_v14 = vld [vmem:[%s5518_s4 + $0x440] sm:$0xff] }
  0x36   : > { %5712 = vst [vmem:[#allocation11_spill] sm:$0xff] %v3424_v32  ;;  %2778 = vmatpush.msrb.mxu1 %v3180_v37  ;;  %771 = vmatpush.msra.mxu2 %v761_v21  ;;  %v696_v35 = vadd.f32 %v680_v44, %v664_v23  ;;  %v711_v45 = vmul.f32 %v471_v7, %v471_v7  ;;  %v3462_v7 = vld [vmem:[%s5518_s4 + $0x130] sm:$0xff] }
  0x37   : > { %5713 = vst [vmem:[#allocation12_spill] sm:$0xff] %v3431_v43  ;;  %v517_v52 = vmul.f32 %v3400_v19, %v3400_v19  ;;  %v549_v53 = vmul.f32 %v3405_v20, %v3405_v20  ;;  %v663_v58 = vadd.f32 %v647_v13, %v631_v33  ;;  %v743_v44 = vmul.f32 %v3413_v25, %v3413_v25  ;;  %v470_v13 = vld [vmem:[%s5518_s4 + $0x3c0] sm:$0xff] }
  0x38   : > { %v598_v59 = vadd.f32 %v582_v17, %v566_v40  ;;  %v646_v63 = vmul.f32 %v3418_v30, %v3418_v30  ;;  %5714 = vst [vmem:[#allocation13_spill] sm:$0xff] %v3457_v3  ;;  %1075 = vmatpush.msrb.mxu0 %v3223_v5  ;;  %v728_v8 = vadd.f32 %v712_v0, %v696_v35  ;;  %v3481_v40 = vld [vmem:[%s5518_s4 + $0x2b8] sm:$0xff] }
  0x39   : > { %5715 = vst [vmem:[#allocation14_spill] sm:$0xff] %v3471_v14  ;;  %v678_v17 = vmul.f32 %v3424_v32, %v3424_v32  ;;  %v533_v21 = vadd.f32 %v517_v52, %v501_v18  ;;  %v581_v23 = vmul.f32 %v3431_v43, %v3431_v43  ;;  %2781 = vmatpush.msrb.mxu1 %v3223_v5  ;;  %v3488_v32 = vld [vmem:[%s5518_s4 + $0x1b0] sm:$0xff]  ;;  %v3590_v5 = vld [vmem:[%s5518_s4 + $0xa0] sm:$0xff] }
  0x3a   : > { %v695_v33 = vadd.f32 %v679_v15, %v663_v58  ;;  %v630_v0 = vadd.f32 %v614_v41, %v598_v59  ;;  %5716 = vst [vmem:[#allocation15_spill] sm:$0xff] %v3481_v40  ;;  %v613_v35 = vmul.f32 %v3439_v50, %v3439_v50  ;;  %v500_v18 = vmul.f32 %v3448_v57, %v3448_v57  ;;  %v3496_v41 = vld [vmem:[%s5518_s4 + $0x338] sm:$0xff]  ;;  %v3501_v58 = vld [vmem:[%s5518_s4 + $0x230] sm:$0xff] }
  0x3b   : > { %5717 = vst [vmem:[#allocation16_spill] sm:$0xff] %v3488_v32  ;;  %1076 = vmatpush.msrb.mxu0 %v3292_v61  ;;  %v760_v15 = vadd.f32 %v744_v24, %v728_v8  ;;  %v565_v52 = vadd.f32 %v549_v53, %v533_v21  ;;  %v516_v59 = vmul.f32 %v3457_v3, %v3457_v3  ;;  %v3513_v53 = vld [vmem:[%s5518_s4 + $0x28] sm:$0xff] }
  0x3c   : > { %5718 = vst [vmem:[#allocation17_spill] sm:$0xff] %v3496_v41  ;;  %v548_v30 = vmul.f32 %v3462_v7, %v3462_v7  ;;  %2784 = vmatpush.msrb.mxu1 %v3292_v61  ;;  %v727_v24 = vadd.f32 %v711_v45, %v695_v33  ;;  %v662_v8 = vadd.f32 %v646_v63, %v630_v0  ;;  %v3518_v21 = vld [vmem:[%s5518_s4 + $0xa8] sm:$0xff]  ;;  %v469_v45 = vld [vmem:[%s5518_s4 + $0x3b8] sm:$0xff]  ;;  %v3529_v33 = vld [vmem:[%s5518_s4 + $0x2b0] sm:$0xff] }
  0x3d   : > { %v710_v25 = vmul.f32 %v470_v13, %v470_v13  ;;  %v742_v46 = vmul.f32 %v3471_v14, %v3471_v14  ;;  %5719 = vst [vmem:[#allocation18_spill] sm:$0xff] %v3513_v53  ;;  %2786 = vmatpush.msra.mxu3 %v3292_v61  ;;  %772 = vmatpush.msra.mxu2 %v760_v15  ;;  %v3536_v15 = vld [vmem:[%s5518_s4 + $0x128] sm:$0xff] }
  0x3e   : > { %5720 = vst [vmem:[#allocation19_spill] sm:$0xff] %v3518_v21  ;;  %v597_v63 = vadd.f32 %v581_v23, %v565_v52  ;;  %v645_v13 = vmul.f32 %v3481_v40, %v3481_v40  ;;  %v532_v0 = vadd.f32 %v516_v59, %v500_v18  ;;  %v580_v14 = vmul.f32 %v3488_v32, %v3488_v32  ;;  %v3545_v18 = vld [vmem:[%s5518_s4 + $0x1a8] sm:$0xff]  ;;  %v3551_v59 = vld [vmem:[%s5518_s4 + $0x438] sm:$0xff] }
  0x3f   : > { %5721 = vst [vmem:[#allocation20_spill] sm:$0xff] %v3529_v33  ;;  %v759_v43 = vadd.f32 %v743_v44, %v727_v24  ;;  %v694_v49 = vadd.f32 %v678_v17, %v662_v8  ;;  %v677_v23 = vmul.f32 %v3496_v41, %v3496_v41  ;;  %v612_v52 = vmul.f32 %v3501_v58, %v3501_v58  ;;  %v3556_v17 = vld [vmem:[%s5518_s4 + $0x330] sm:$0xff]  ;;  %v3561_v8 = vld [vmem:[%s5518_s4 + $0x228] sm:$0xff] }
  0x40   : > { %5722 = vst [vmem:[#allocation21_spill] sm:$0xff] %v3536_v15  ;;  %1077 = vmatpush.msrb.mxu0 %v3342_v28  ;;  %v629_v44 = vadd.f32 %v613_v35, %v597_v63  ;;  %v564_v24 = vadd.f32 %v548_v30, %v532_v0  ;;  %v499_v41 = vmul.f32 %v3513_v53, %v3513_v53  ;;  %v468_v30 = vld [vmem:[%s5518_s4 + $0x3b0] sm:$0xff]  ;;  %v3673_v53 = vld [vmem:[%s5518_s4 + $0x320] sm:$0xff] }
  0x41   : > { %5723 = vst [vmem:[#allocation22_spill] sm:$0xff] %v3545_v18  ;;  %v515_v40 = vmul.f32 %v3518_v21, %v3518_v21  ;;  %2787 = vmatpush.msrb.mxu1 %v3342_v28  ;;  %773 = vmatpush.msra.mxu2 %v759_v43  ;;  %v726_v35 = vadd.f32 %v710_v25, %v694_v49  ;;  %v3574_v0 = vld [vmem:[%s5518_s4 + $0x430] sm:$0xff]  ;;  %v3583_v49 = vld [vmem:[%s5518_s4 + $0x20] sm:$0xff] }
  0x42   : > { %5724 = vst [vmem:[#allocation23_spill] sm:$0xff] %v3551_v59  ;;  %v709_v63 = vmul.f32 %v469_v45, %v469_v45  ;;  %v644_v32 = vmul.f32 %v3529_v33, %v3529_v33  ;;  %v547_v9 = vmul.f32 %v3536_v15, %v3536_v15  ;;  %v661_v25 = vadd.f32 %v645_v13, %v629_v44  ;;  %v3595_v33 = vld [vmem:[%s5518_s4 + $0x120] sm:$0xff] }
  0x43   : > { %5725 = vst [vmem:[#allocation24_spill] sm:$0xff] %v3556_v17  ;;  %v596_v43 = vadd.f32 %v580_v14, %v564_v24  ;;  %v531_v45 = vadd.f32 %v515_v40, %v499_v41  ;;  %v579_v61 = vmul.f32 %v3545_v18, %v3545_v18  ;;  %2789 = vmatpush.msra.mxu3 %v3342_v28  ;;  %v3605_v41 = vld [vmem:[%s5518_s4 + $0x2a8] sm:$0xff] }
  0x44   : > { %5726 = vst [vmem:[#allocation25_spill] sm:$0xff] %v3561_v8  ;;  %v758_v15 = vadd.f32 %v742_v46, %v726_v35  ;;  %v741_v14 = vmul.f32 %v3551_v59, %v3551_v59  ;;  %v676_v40 = vmul.f32 %v3556_v17, %v3556_v17  ;;  %v611_v13 = vmul.f32 %v3561_v8, %v3561_v8  ;;  %v3613_v46 = vld [vmem:[%s5518_s4 + $0x328] sm:$0xff]  ;;  %v3621_v59 = vld [vmem:[%s5518_s4 + $0x1a0] sm:$0xff] }
  0x45   : > { %5727 = vst [vmem:[#allocation26_spill] sm:$0xff] %v3574_v0  ;;  %1078 = vmatpush.msrb.mxu0 %v3400_v19  ;;  %v693_v44 = vadd.f32 %v677_v23, %v661_v25  ;;  %v628_v24 = vadd.f32 %v612_v52, %v596_v43  ;;  %v467_v35 = vld [vmem:[%s5518_s4 + $0x3a8] sm:$0xff]  ;;  %v563_v17 = vadd.f32 %v547_v9, %v531_v45  ;;  %v3635_v43 = vld [vmem:[%s5518_s4 + $0x18] sm:$0xff] }
  0x46   : > { %5728 = vst [vmem:[#allocation27_spill] sm:$0xff] %v3583_v49  ;;  %v498_v18 = vmul.f32 %v3583_v49, %v3583_v49  ;;  %2790 = vmatpush.msrb.mxu1 %v3400_v19  ;;  %774 = vmatpush.msra.mxu2 %v758_v15  ;;  %v708_v23 = vmul.f32 %v468_v30, %v468_v30  ;;  %v3642_v30 = vld [vmem:[%s5518_s4 + $0x220] sm:$0xff] }
  0x47   : > { %5729 = vst [vmem:[#allocation28_spill] sm:$0xff] %v3590_v5  ;;  %v740_v52 = vmul.f32 %v3574_v0, %v3574_v0  ;;  %v514_v25 = vmul.f32 %v3590_v5, %v3590_v5  ;;  %v546_v9 = vmul.f32 %v3595_v33, %v3595_v33  ;;  %v725_v45 = vadd.f32 %v709_v63, %v693_v44  ;;  %v3647_v0 = vld [vmem:[%s5518_s4 + $0x98] sm:$0xff]  ;;  %v3665_v63 = vld [vmem:[%s5518_s4 + $0x2a0] sm:$0xff] }
  0x48   : > { %5730 = vst [vmem:[#allocation29_spill] sm:$0xff] %v3595_v33  ;;  %v660_v28 = vadd.f32 %v644_v32, %v628_v24  ;;  %v595_v49 = vadd.f32 %v579_v61, %v563_v17  ;;  %v643_v15 = vmul.f32 %v3605_v41, %v3605_v41  ;;  %v3652_v33 = vld [vmem:[%s5518_s4 + $0x118] sm:$0xff]  ;;  %2792 = vmatpush.msra.mxu3 %v3400_v19  ;;  %v3658_v61 = vld [vmem:[%s5518_s4 + $0x428] sm:$0xff] }
  0x49   : > { %5731 = vst [vmem:[#allocation30_spill] sm:$0xff] %v3605_v41  ;;  %v675_v32 = vmul.f32 %v3613_v46, %v3613_v46  ;;  %v707_v17 = vmul.f32 %v467_v35, %v467_v35  ;;  %v530_v44 = vadd.f32 %v514_v25, %v498_v18  ;;  %v578_v24 = vmul.f32 %v3621_v59, %v3621_v59  ;;  %v3678_v35 = vld [vmem:[%s5518_s4 + $0x198] sm:$0xff] }
  0x4a   : > { %5732 = vst [vmem:[#allocation31_spill] sm:$0xff] %v3613_v46  ;;  %1079 = vmatpush.msrb.mxu0 %v3457_v3  ;;  %v757_v41 = vadd.f32 %v741_v14, %v725_v45  ;;  %v692_v19 = vadd.f32 %v676_v40, %v660_v28  ;;  %v627_v8 = vadd.f32 %v611_v13, %v595_v49  ;;  %v3688_v49 = vld [vmem:[%s5518_s4 + $0x218] sm:$0xff]  ;;  %v3697_v13 = vld [vmem:[%s5518_s4 + $0x10] sm:$0xff] }
  0x4b   : > { %5733 = vst [vmem:[#allocation32_spill] sm:$0xff] %v3621_v59  ;;  %v497_v18 = vmul.f32 %v3635_v43, %v3635_v43  ;;  %2793 = vmatpush.msrb.mxu1 %v3457_v3  ;;  %v562_v25 = vadd.f32 %v546_v9, %v530_v44  ;;  %v610_v28 = vmul.f32 %v3642_v30, %v3642_v30  ;;  %v3707_v59 = vld [vmem:[%s5518_s4 + $0x90] sm:$0xff] }
  0x4c   : > { %5734 = vst [vmem:[#allocation33_spill] sm:$0xff] %v3635_v43  ;;  %v513_v14 = vmul.f32 %v3647_v0, %v3647_v0  ;;  %v545_v40 = vmul.f32 %v3652_v33, %v3652_v33  ;;  %2795 = vmatpush.msra.mxu3 %v3457_v3  ;;  %775 = vmatpush.msra.mxu2 %v757_v41 }
  0x4d   : > { %5735 = vst [vmem:[#allocation34_spill] sm:$0xff] %v3642_v30  ;;  %v724_v9 = vadd.f32 %v708_v23, %v692_v19  ;;  %v659_v45 = vadd.f32 %v643_v15, %v627_v8  ;;  %v739_v44 = vmul.f32 %v3658_v61, %v3658_v61  ;;  %v642_v46 = vmul.f32 %v3665_v63, %v3665_v63  ;;  %v466_v19 = vld [vmem:[%s5518_s4 + $0x3a0] sm:$0xff]  ;;  %v3727_v15 = vld [vmem:[%s5518_s4 + $0x298] sm:$0xff] }
  0x4e   : > { %5736 = vst [vmem:[#allocation35_spill] sm:$0xff] %v3647_v0  ;;  %v3720_v8 = vld [vmem:[%s5518_s4 + $0x420] sm:$0xff]  ;;  %v594_v41 = vadd.f32 %v578_v24, %v562_v25  ;;  %v674_v23 = vmul.f32 %v3673_v53, %v3673_v53  ;;  %1080 = vmatpush.msrb.mxu0 %v3518_v21  ;;  %v609_v30 = vmul.f32 %v3688_v49, %v3688_v49  ;;  %v3737_v24 = vld [vmem:[%s5518_s4 + $0x190] sm:$0xff] }
  0x4f   : > { %5737 = vst [vmem:[#allocation36_spill] sm:$0xff] %v3652_v33  ;;  %v3712_v33 = vld [vmem:[%s5518_s4 + $0x110] sm:$0xff]  ;;  %v756_v3 = vadd.f32 %v740_v52, %v724_v9  ;;  %v691_v43 = vadd.f32 %v675_v32, %v659_v45  ;;  %v496_v25 = vmul.f32 %v3697_v13, %v3697_v13  ;;  %2796 = vmatpush.msrb.mxu1 %v3518_v21 }
  0x50   : > { %5738 = vst [vmem:[#allocation37_spill] sm:$0xff] %v3658_v61  ;;  %v577_v61 = vmul.f32 %v3678_v35, %v3678_v35  ;;  %v3750_v32 = vld [vmem:[%s5518_s4 + $0x210] sm:$0xff]  ;;  %v512_v9 = vmul.f32 %v3707_v59, %v3707_v59  ;;  %v544_v45 = vmul.f32 %v3712_v33, %v3712_v33  ;;  %2798 = vmatpush.msra.mxu3 %v3518_v21 }
  0x51   : > { %5739 = vst [vmem:[#allocation38_spill] sm:$0xff] %v3665_v63  ;;  %v529_v63 = vadd.f32 %v513_v14, %v497_v18  ;;  %v626_v18 = vadd.f32 %v610_v28, %v594_v41  ;;  %v3745_v14 = vld [vmem:[%s5518_s4 + $0x318] sm:$0xff]  ;;  %v3759_v28 = vld [vmem:[%s5518_s4 + $0x8] sm:$0xff]  ;;  %776 = vmatpush.msra.mxu2 %v756_v3  ;;  %v738_v41 = vmul.f32 %v3720_v8, %v3720_v8  ;;  %v3777_v3 = vld [vmem:[%s5518_s4 + $0x290] sm:$0xff] }
  0x52   : > { %5740 = vst [vmem:[#allocation39_spill] sm:$0xff] %v3673_v53  ;;  %v465_v53 = vld [vmem:[%s5518_s4 + $0x398] sm:$0xff]  ;;  %1081 = vmatpush.msrb.mxu0 %v3590_v5  ;;  %2799 = vmatpush.msrb.mxu1 %v3590_v5 }
  0x53   : > { %5741 = vst [vmem:[#allocation40_spill] sm:$0xff] %v3678_v35  ;;  %v561_v52 = vadd.f32 %v545_v40, %v529_v63  ;;  %v723_v63 = vadd.f32 %v707_v17, %v691_v43  ;;  %v706_v40 = vmul.f32 %v466_v19, %v466_v19  ;;  %v641_v35 = vmul.f32 %v3727_v15, %v3727_v15  ;;  %v3784_v19 = vld [vmem:[%s5518_s4 + $0x108] sm:$0xff] }
  0x54   : > { %5742 = vst [vmem:[#allocation41_spill] sm:$0xff] %v3688_v49  ;;  %v528_v43 = vadd.f32 %v512_v9, %v496_v25  ;;  %v576_v17 = vmul.f32 %v3737_v24, %v3737_v24  ;;  %v673_v25 = vmul.f32 %v3745_v14, %v3745_v14  ;;  %2801 = vmatpush.msra.mxu3 %v3590_v5 }
  0x55   : > { %5743 = vst [vmem:[#allocation42_spill] sm:$0xff] %v3697_v13  ;;  %v658_v13 = vadd.f32 %v642_v46, %v626_v18  ;;  %v593_v21 = vadd.f32 %v577_v61, %v561_v52  ;;  %v755_v46 = vadd.f32 %v739_v44, %v723_v63  ;;  %v3795_v61 = vld [vmem:[%s5518_s4 + $0x418] sm:$0xff]  ;;  %v608_v18 = vmul.f32 %v3750_v32, %v3750_v32  ;;  %v3807_v44 = vld [vmem:[%s5518_s4 + $0x310] sm:$0xff] }
  0x56   : > { %5744 = vst [vmem:[#allocation43_spill] sm:$0xff] %v3712_v33  ;;  %v3772_v33 = vld [vmem:[%s5518_s4 + $0x88] sm:$0xff]  ;;  %v495_v52 = vmul.f32 %v3759_v28, %v3759_v28  ;;  %v560_v63 = vadd.f32 %v544_v45, %v528_v43  ;;  %1082 = vmatpush.msrb.mxu0 %v3647_v0  ;;  %2802 = vmatpush.msrb.mxu1 %v3647_v0 }
  0x57   : > { %5745 = vst [vmem:[#allocation44_spill] sm:$0xff] %v3720_v8  ;;  %v690_v9 = vadd.f32 %v674_v23, %v658_v13  ;;  %v625_v8 = vadd.f32 %v609_v30, %v593_v21  ;;  %777 = vmatpush.msra.mxu2 %v755_v46  ;;  %v705_v21 = vmul.f32 %v465_v53, %v465_v53  ;;  %v3836_v53 = vld [vmem:[%s5518_s4 + $0x80] sm:$0xff] }
  0x58   : > { %5746 = vst [vmem:[#allocation45_spill] sm:$0xff] %v3727_v15  ;;  %v3789_v15 = vld [vmem:[%s5518_s4 + $0x188] sm:$0xff]  ;;  %v640_v30 = vmul.f32 %v3777_v3, %v3777_v3  ;;  %v543_v13 = vmul.f32 %v3784_v19, %v3784_v19  ;;  %v592_v49 = vadd.f32 %v576_v17, %v560_v63  ;;  %v3841_v46 = vld [vmem:[%s5518_s4 + $0x100] sm:$0xff]  ;;  %v3861_v63 = vld [vmem:[%s5518_s4 + $0x410] sm:$0xff]  ;;  %2804 = vmatpush.msra.mxu3 %v3647_v0 }
  0x59   : > { %5747 = vst [vmem:[#allocation46_spill] sm:$0xff] %v3737_v24  ;;  %v511_v24 = vmul.f32 %v3772_v33, %v3772_v33  ;;  %v575_v23 = vmul.f32 %v3789_v15, %v3789_v15  ;;  %v722_v45 = vadd.f32 %v706_v40, %v690_v9  ;;  %v657_v43 = vadd.f32 %v641_v35, %v625_v8  ;;  %v3893_v0 = vld [vmem:[%s5518_s4 + $0x388] sm:$0xff] }
  0x5a   : > { %5748 = vst [vmem:[#allocation47_spill] sm:$0xff] %v3745_v14  ;;  %v3812_v14 = vld [vmem:[%s5518_s4 + $0x208] sm:$0xff]  ;;  %v737_v35 = vmul.f32 %v3795_v61, %v3795_v61  ;;  %v672_v8 = vmul.f32 %v3807_v44, %v3807_v44  ;;  %1083 = vmatpush.msrb.mxu0 %v3707_v59  ;;  %2805 = vmatpush.msrb.mxu1 %v3707_v59 }
  0x5b   : > { %5749 = vst [vmem:[#allocation48_spill] sm:$0xff] %v3750_v32  ;;  %v3831_v32 = vld [vmem:[%s5518_s4 + $0x390] sm:$0xff]  ;;  %v527_v5 = vadd.f32 %v511_v24, %v495_v52  ;;  %v3851_v24 = vld [vmem:[%s5518_s4 + $0x288] sm:$0xff]  ;;  %v607_v40 = vmul.f32 %v3812_v14, %v3812_v14  ;;  %v754_v52 = vadd.f32 %v738_v41, %v722_v45  ;;  %v689_v9 = vadd.f32 %v673_v25, %v657_v43  ;;  %v3886_v43 = vld [vmem:[%s5518_s4 + $0x200] sm:$0xff] }
  0x5c   : > { %5750 = vst [vmem:[#allocation49_spill] sm:$0xff] %v3759_v28  ;;  %v3819_v28 = vld [vmem:[%s5518_s4] sm:$0xff]  ;;  %v704_v41 = vmul.f32 %v3831_v32, %v3831_v32  ;;  %v510_v25 = vmul.f32 %v3836_v53, %v3836_v53  ;;  %v639_v45 = vmul.f32 %v3851_v24, %v3851_v24  ;;  %2807 = vmatpush.msra.mxu3 %v3707_v59 }
  0x5d   : > { %5751 = vst [vmem:[#allocation50_spill] sm:$0xff] %v3777_v3  ;;  %v494_v17 = vmul.f32 %v3819_v28, %v3819_v28  ;;  %v3866_v3 = vld [vmem:[%s5518_s4 + $0x308] sm:$0xff]  ;;  %778 = vmatpush.msra.mxu2 %v754_v52  ;;  %1084 = vmatpush.msrb.mxu0 %v3772_v33 }
  0x5e   : > { %5752 = vst [vmem:[#allocation51_spill] sm:$0xff] %v3789_v15  ;;  %v3871_v15 = vld [vmem:[%s5518_s4 + $0x180] sm:$0xff]  ;;  %2808 = vmatpush.msrb.mxu1 %v3772_v33  ;;  %2810 = vmatpush.msra.mxu3 %v3772_v33 }
  0x5f   : > { %5753 = vst [vmem:[#allocation52_spill] sm:$0xff] %v3795_v61  ;;  %v559_v61 = vadd.f32 %v543_v13, %v527_v5  ;;  %v721_v5 = vadd.f32 %v705_v21, %v689_v9  ;;  %v574_v21 = vmul.f32 %v3871_v15, %v3871_v15  ;;  %v3903_v9 = vld [vmem:[%s5518_s4 + $0x280] sm:$0xff]  ;;  %1085 = vmatpush.msrb.mxu0 %v3836_v53 }
  0x60   : > { %5754 = vst [vmem:[#allocation53_spill] sm:$0xff] %v3807_v44  ;;  %v624_v44 = vadd.f32 %v608_v18, %v592_v49  ;;  %v542_v49 = vmul.f32 %v3841_v46, %v3841_v46  ;;  %2811 = vmatpush.msrb.mxu1 %v3836_v53  ;;  %2813 = vmatpush.msra.mxu3 %v3836_v53 }
  0x61   : > { %5755 = vst [vmem:[#allocation54_spill] sm:$0xff] %v3831_v32  ;;  %v591_v13 = vadd.f32 %v575_v23, %v559_v61  ;;  %v736_v32 = vmul.f32 %v3861_v63, %v3861_v63  ;;  %v526_v61 = vadd.f32 %v510_v25, %v494_v17  ;;  %v3910_v17 = vld [vmem:[%s5518_s4 + $0x408] sm:$0xff]  ;;  %1183 = vmatpush.msra.mxu0 %v2975_v16 }
  0x62   : > { %v656_v18 = vadd.f32 %v640_v30, %v624_v44  ;;  %v671_v44 = vmul.f32 %v3866_v3, %v3866_v3  ;;  %v753_v30 = vadd.f32 %v737_v35, %v721_v5  ;;  %v606_v35 = vmul.f32 %v3886_v43, %v3886_v43  ;;  %1709 = vmatpush.msrb.mxu3 %v3003_v22 }
  0x63   : > { %v623_v52 = vadd.f32 %v607_v40, %v591_v13  ;;  %v558_v25 = vadd.f32 %v542_v49, %v526_v61  ;;  %v703_v5 = vmul.f32 %v3893_v0, %v3893_v0  ;;  %v638_v49 = vmul.f32 %v3903_v9, %v3903_v9  ;;  %1184 = vmatpush.msra.mxu0 %v3030_v34 }
  0x64   : > { %v688_v23 = vadd.f32 %v672_v8, %v656_v18  ;;  %779 = vmatpush.msra.mxu2 %v753_v30  ;;  %v3920_v18 = vld [vmem:[%s5518_s4 + $0x300] sm:$0xff]  ;;  %v735_v61 = vmul.f32 %v3910_v17, %v3910_v17  ;;  %1710 = vmatpush.msrb.mxu3 %v3051_v39  ;;  %v2827_v39 = vld [vmem:[%s5518_s4 + $0xf8] sm:$0xff] }
  0x65   : > { %v655_v40 = vadd.f32 %v639_v45, %v623_v52  ;;  %v590_v13 = vadd.f32 %v574_v21, %v558_v25  ;;  %v3932_v30 = vld [vmem:[%s5518_s4 + $0x380] sm:$0xff]  ;;  %1185 = vmatpush.msra.mxu0 %v3082_v54  ;;  %v2828_v54 = vld [vmem:[%s5518_s4 + $0xf0] sm:$0xff] }
  0x66   : > { %v720_v8 = vadd.f32 %v704_v41, %v688_v23  ;;  %v670_v23 = vmul.f32 %v3920_v18, %v3920_v18  ;;  %v3945_v52 = vld [vmem:[%s5518_s4 + $0x400] sm:$0xff]  ;;  %v702_v25 = vmul.f32 %v3932_v30, %v3932_v30  ;;  %1711 = vmatpush.msrb.mxu3 %v3122_v4 }
  0x67   : > { %v687_v45 = vadd.f32 %v671_v44, %v655_v40  ;;  %v622_v21 = vadd.f32 %v606_v35, %v590_v13  ;;  %1186 = vmatpush.msra.mxu0 %v3129_v10  ;;  %v5758_v4 = vld [vmem:[#allocation2_spill] sm:$0xff]  ;;  %v5759_v10 = vld [vmem:[#allocation21_spill] sm:$0xff]  ;;  %v822_v13 = vld [vmem:[%s4020_s13 + $0xb0] sm:$0xff] }
  0x68   : > { %v752_v41 = vadd.f32 %v736_v32, %v720_v8  ;;  %v2826_v32 = vld [vmem:[%s5518_s4 + $0x178] sm:$0xff]  ;;  %v734_v8 = vmul.f32 %v3945_v52, %v3945_v52  ;;  %1712 = vmatpush.msrb.mxu3 %v3171_v31  ;;  %v5762_v31 = vld [vmem:[#allocation3_spill] sm:$0xff]  ;;  %v832_v40 = vld [vmem:[%s4020_s13 + $0x100] sm:$0x3] }
  0x69   : > { %1409 = vmatpush.msra.mxu1 %v2826_v32  ;;  %v719_v44 = vadd.f32 %v703_v5, %v687_v45  ;;  %v654_v16 = vadd.f32 %v638_v49, %v622_v21  ;;  %1187 = vmatpush.msra.mxu0 %v3197_v47  ;;  %v5763_v47 = vld [vmem:[#allocation29_spill] sm:$0xff]  ;;  %v821_v5 = vld [vmem:[%s4020_s13 + $0xa8] sm:$0xff] }
  0x6a   : > { %780 = vmatpush.msra.mxu2 %v752_v41  ;;  %1713 = vmatpush.msrb.mxu3 %v3243_v51  ;;  %v5766_v51 = vld [vmem:[#allocation5_spill] sm:$0xff] }
  0x6b   : > { %1410 = vmatpush.msra.mxu1 %v3040_v36  ;;  %v751_v22 = vadd.f32 %v735_v61, %v719_v44  ;;  %v686_v35 = vadd.f32 %v670_v23, %v654_v16  ;;  %1188 = vmatpush.msra.mxu0 %v3256_v29  ;;  %v5767_v29 = vld [vmem:[#allocation36_spill] sm:$0xff] }
  0x6c   : > { %1714 = vmatpush.msrb.mxu3 %v3298_v1  ;;  %v5770_v1 = vld [vmem:[#allocation8_spill] sm:$0xff] }
  0x6d   : > { %1411 = vmatpush.msra.mxu1 %v3092_v56  ;;  %781 = vmatpush.msra.mxu2 %v751_v22  ;;  %v718_v34 = vadd.f32 %v702_v25, %v686_v35  ;;  %v5756_v56 = vld [vmem:[#allocation18_spill] sm:$0xff]  ;;  %v802_v16 = vld [vmem:[%s4020_s13 + $0x10] sm:$0x3]  ;;  %v2829_v22 = vld [vmem:[%s5518_s4 + $0x1f8] sm:$0xff] }
  0x6e   : > { %1715 = vmatpush.msrb.mxu3 %v3330_v26  ;;  %1189 = vmatpush.msra.mxu0 %v3287_v60  ;;  %v5769_v60 = vld [vmem:[#allocation48_spill] sm:$0xff]  ;;  %v5772_v26 = vld [vmem:[#allocation49_spill] sm:$0xff]  ;;  %v812_v25 = vld [vmem:[%s4020_s13 + $0x60] sm:$0xff] }
  0x6f   : > { %1412 = vmatpush.msra.mxu1 %v3139_v12  ;;  %v750_v36 = vadd.f32 %v734_v8, %v718_v34  ;;  %v5760_v12 = vld [vmem:[#allocation27_spill] sm:$0xff] }
  0x70   : > { %1190 = vmatpush.msra.mxu0 %v3337_v27  ;;  %1716 = vmatpush.msrb.mxu3 %v3382_v2  ;;  %v5773_v27 = vld [vmem:[#allocation13_spill] sm:$0xff]  ;;  %v5775_v2 = vld [vmem:[#allocation28_spill] sm:$0xff] }
  0x71   : > { %1413 = vmatpush.msra.mxu1 %v3211_v62  ;;  %782 = vmatpush.msra.mxu2 %v750_v36  ;;  %v5764_v62 = vld [vmem:[#allocation33_spill] sm:$0xff] }
  0x72   : > { %1191 = vmatpush.msra.mxu0 %v3389_v6  ;;  %1717 = vmatpush.msrb.mxu3 %v3439_v50  ;;  %v5776_v6 = vld [vmem:[#allocation35_spill] sm:$0xff] }
  0x73   : > { %2767 = vmatpush.msrb.mxu2 %v2827_v39  ;;  %1414 = vmatpush.msra.mxu1 %v3262_v38  ;;  %v5768_v38 = vld [vmem:[#allocation42_spill] sm:$0xff]  ;;  %v813_v39 = vld [vmem:[%s4020_s13 + $0x68] sm:$0xff] }
  0x74   : > { %1192 = vmatpush.msra.mxu0 %v3448_v57  ;;  %1718 = vmatpush.msrb.mxu3 %v3501_v58 }
  0x75   : > { %2770 = vmatpush.msrb.mxu2 %v2828_v54  ;;  %1415 = vmatpush.msra.mxu1 %v3303_v48  ;;  %v5771_v48 = vld [vmem:[#allocation43_spill] sm:$0xff] }
  0x76   : > { %1193 = vmatpush.msra.mxu0 %v5756_v56 }
  0x77   : > { %2773 = vmatpush.msrb.mxu2 %v3087_v55  ;;  %1416 = vmatpush.msra.mxu1 %v3353_v42  ;;  %v5757_v55 = vld [vmem:[#allocation25_spill] sm:$0xff]  ;;  %v5774_v42 = vld [vmem:[#allocation19_spill] sm:$0xff] }
  0x78   : > { %1719 = vmatpush.msrb.mxu3 %v5757_v55  ;;  %1194 = vmatpush.msra.mxu0 %v5760_v12  ;;  %v834_v12 = vld [vmem:[%s4020_s13 + $0x110] sm:$0xff] }
  0x79   : > { %2776 = vmatpush.msrb.mxu2 %v3134_v11  ;;  %1417 = vmatpush.msra.mxu1 %v3405_v20  ;;  %v5761_v11 = vld [vmem:[#allocation34_spill] sm:$0xff] }
  0x7a   : > { %1720 = vmatpush.msrb.mxu3 %v5761_v11  ;;  %1195 = vmatpush.msra.mxu0 %v5764_v62  ;;  %v2830_v11 = vld [vmem:[%s5518_s4 + $0x1f0] sm:$0xff] }
  0x7b   : > { %2779 = vmatpush.msrb.mxu2 %v3180_v37  ;;  %1418 = vmatpush.msra.mxu1 %v3462_v7  ;;  %v5765_v37 = vld [vmem:[#allocation41_spill] sm:$0xff]  ;;  %v348_v7 = vld [vmem:[%s5517_s3] sm:$0x1] }
  0x7c   : > { %1721 = vmatpush.msrb.mxu3 %v5765_v37  ;;  %1196 = vmatpush.msra.mxu0 %v5768_v38 }
  0x7d   : > { %2782 = vmatpush.msrb.mxu2 %v5758_v4  ;;  %1419 = vmatpush.msra.mxu1 %v5759_v10  ;;  %v833_v10 = vld [vmem:[%s4020_s13 + $0x108] sm:$0xff] }
  0x7e   : > { %1722 = vmatpush.msrb.mxu3 %v5769_v60  ;;  %1197 = vmatpush.msra.mxu0 %v5772_v26 }
  0x7f   : > { %2785 = vmatpush.msrb.mxu2 %v5762_v31  ;;  %1420 = vmatpush.msra.mxu1 %v5763_v47 }
  0x80   : > { %1723 = vmatpush.msrb.mxu3 %v3812_v14  ;;  %1198 = vmatpush.msra.mxu0 %v3819_v28  ;;  %v801_v14 = vld [vmem:[%s4020_s13 + $0x8] sm:$0xff]  ;;  %v810_v28 = vld [vmem:[%s4020_s13 + $0x50] sm:$0xff] }
  0x81   : > { %2788 = vmatpush.msrb.mxu2 %v5766_v51  ;;  %1421 = vmatpush.msra.mxu1 %v5767_v29  ;;  %v823_v51 = vld [vmem:[%s4020_s13 + $0xb8] sm:$0x3] }
  0x82   : > { %1724 = vmatpush.msrb.mxu3 %v3886_v43 }
  0x83   : > { %2791 = vmatpush.msrb.mxu2 %v5770_v1  ;;  %1422 = vmatpush.msra.mxu1 %v5771_v48  ;;  %v2831_v48 = vld [vmem:[%s5518_s4 + $0x1e8] sm:$0xff] }
  0x85   : > { %2794 = vmatpush.msrb.mxu2 %v5773_v27  ;;  %1423 = vmatpush.msra.mxu1 %v3784_v19  ;;  %v811_v19 = vld [vmem:[%s4020_s13 + $0x58] sm:$0x3] }
  0x87   : > { %2797 = vmatpush.msrb.mxu2 %v5774_v42  ;;  %1424 = vmatpush.msra.mxu1 %v3841_v46  ;;  %v803_v42 = vld [vmem:[%s4020_s13 + $0x18] sm:$0xff] }
  0x89   : > { %2800 = vmatpush.msrb.mxu2 %v5775_v2  ;;  %v2832_v2 = vld [vmem:[%s5518_s4 + $0x2f8] sm:$0xff] }
  0x8b   : > { %2803 = vmatpush.msrb.mxu2 %v5776_v6  ;;  %v2833_v6 = vld [vmem:[%s5518_s4 + $0x478] sm:$0xff] }
  0x8d   : > { %2806 = vmatpush.msrb.mxu2 %v3707_v59  ;;  %v800_v59 = vld [vmem:[%s4020_s13] sm:$0xff] }
  0x8f   : > { %2809 = vmatpush.msrb.mxu2 %v3772_v33 }
  0x91   : > { %2812 = vmatpush.msrb.mxu2 %v3836_v53  ;;  %v831_v53 = vld [vmem:[%s4020_s13 + $0xf8] sm:$0xff] }
  0xa8   : > { %v324_v20 = vpop.f32.mrf.mxu0 }
  0xa9   : > { %v344_v50 = vpop.f32.mrf.mxu1 }
  0xaa   : > { %v345_v57 = vadd.f32 %v344_v50, %v324_v20 }
  0xac   : > { %v347_v58 = vmul.f32 0.088388346, %v345_v57 }
  0xae   : > { %v349_v33 = vadd.f32 %v348_v7, %v347_v58  ;;  %v804_v7 = vld [vmem:[%s4020_s13 + $0x20] sm:$0xff]  ;;  %v2834_v58 = vld [vmem:[%s5518_s4 + $0x378] sm:$0xff] }
  0xb0   : > { %v766_v46 = vmul.f32 %v349_v33, %v349_v33  ;;  %v4030_v43 = vperm.slane %v349_v33, 0 }
  0xb2   : > { %783 = vmatmul.f32.vlgmr.msra.gmra.mxu2 %v766_v46  ;;  %v4036_v49 = vmul.f32 %v4030_v43, %v800_v59  ;;  %v4039_v41 = vmul.f32 %v4030_v43, %v801_v14  ;;  %v4042_v45 = vmul.f32 %v4030_v43, %v810_v28  ;;  %v4045_v61 = vmul.f32 %v4030_v43, %v811_v19  ;;  %v814_v14 = vld [vmem:[%s4020_s13 + $0x70] sm:$0x3]  ;;  %v2835_v28 = vld [vmem:[%s5518_s4 + $0x1e0] sm:$0xff]  ;;  %v835_v46 = vld [vmem:[%s4020_s13 + $0x118] sm:$0x3] }
  0xb3   : > { %v4048_v21 = vmul.f32 %v4030_v43, %v831_v53  ;;  %v4051_v23 = vmul.f32 %v4030_v43, %v832_v40  ;;  %v4054_v32 = vmul.f32 %v4030_v43, %v821_v5  ;;  %v4057_v44 = vmul.f32 %v4030_v43, %v822_v13  ;;  %1554 = vmatpush.msra.mxu2 %v2829_v22  ;;  %v2836_v19 = vld [vmem:[%s5518_s4 + $0x2f0] sm:$0xff] }
  0xb4   : > { %5777 = vst [vmem:[#allocation18_spill] sm:$0xff] %v4042_v45  ;;  %v958_v35 = vrot.slane %v4036_v49, 1  ;;  %v959_v8 = vrot.slane %v4039_v41, 1  ;;  %v5575_v34 = vrot.slane %v4042_v45, 1  ;;  %v976_v36 = vrot.slane %v4045_v61, 1  ;;  %v2837_v40 = vld [vmem:[%s5518_s4 + $0x470] sm:$0xff] }
  0xb5   : > { %5778 = vst [vmem:[#allocation25_spill] sm:$0xff] %v4045_v61  ;;  %v5574_v54 = vrot.slane %v4048_v21, 1  ;;  %v1011_v56 = vrot.slane %v4051_v23, 1  ;;  %v993_v55 = vrot.slane %v4054_v32, 1  ;;  %v994_v4 = vrot.slane %v4057_v44, 1  ;;  %1555 = vmatpush.msra.mxu2 %v2830_v11  ;;  %v2838_v5 = vld [vmem:[%s5518_s4 + $0x370] sm:$0xff] }
  0xb6   : > { %5779 = vst [vmem:[#allocation2_spill] sm:$0xff] %v4054_v32  ;;  %v960_v31 = vsel %vm957_vm0, %v958_v35, %v959_v8  ;;  %v4082_v47 = vsel %vm957_vm0, %v5575_v34, %v976_v36  ;;  %v4085_v62 = vmul.f32 %v4030_v43, %v802_v16  ;;  %v4088_v37 = vmul.f32 %v4030_v43, %v812_v25  ;;  %v2839_v25 = vld [vmem:[%s5518_s4 + $0x1d8] sm:$0xff]  ;;  %v5828_v61 = vld [vmem:[#allocation24_spill] sm:$0xff] }
  0xb7   : > { %5780 = vst [vmem:[#allocation21_spill] sm:$0xff] %v4057_v44  ;;  %1086 = vmatmul.f32.vlgmr.msrb.gmra.mxu0 %v960_v31  ;;  %1107 = vmatmul.f32.vlgmr.msrb.gmra.mxu1 %v4082_v47  ;;  %v4095_v29 = vsel %vm957_vm0, %v5574_v54, %v1011_v56  ;;  %v4098_v38 = vmul.f32 %v4030_v43, %v813_v39  ;;  %v824_v39 = vld [vmem:[%s4020_s13 + $0xc0] sm:$0xff]  ;;  %v825_v56 = vld [vmem:[%s4020_s13 + $0xc8] sm:$0xff]  ;;  %v2842_v31 = vld [vmem:[%s5518_s4 + $0x1d0] sm:$0xff] }
  0xb8   : > { %5781 = vst [vmem:[#allocation27_spill] sm:$0xff] %v4082_v47  ;;  %1149 = vmatmul.f32.vlgmr.msra.gmra.mxu3 %v4095_v29  ;;  %v4102_v60 = vmul.f32 %v4030_v43, %v833_v10  ;;  %v4105_v1 = vmul.f32 %v4030_v43, %v834_v12  ;;  %1556 = vmatpush.msra.mxu2 %v2831_v48  ;;  %v961_v20 = vrot.slane %v4085_v62, 1  ;;  %v978_v50 = vrot.slane %v4088_v37, 1  ;;  %v2841_v10 = vld [vmem:[%s5518_s4 + $0x468] sm:$0xff]  ;;  %v5821_v32 = vld [vmem:[#allocation17_spill] sm:$0xff]  ;;  %v840_v47 = vld [vmem:[%s4020_s13 + $0x140] sm:$0xff] }
  0xb9   : > { %5782 = vst [vmem:[#allocation34_spill] sm:$0xff] %v4088_v37  ;;  %v4113_v26 = vsel %vm957_vm0, %v993_v55, %v994_v4  ;;  %v4116_v27 = vmul.f32 %v4030_v43, %v823_v51  ;;  %1861 = vmatpush.msrb.mxu0 %v2832_v2  ;;  %2313 = vmatpush.msra.mxu3 %v2833_v6  ;;  %v979_v57 = vrot.slane %v4098_v38, 1  ;;  %v2840_v55 = vld [vmem:[%s5518_s4 + $0x2e8] sm:$0xff] }
  0xba   : > { %5783 = vst [vmem:[#allocation3_spill] sm:$0xff] %v4095_v29  ;;  %1128 = vmatmul.f32.vlgmr.msrb.gmra.mxu2 %v4113_v26  ;;  %2006 = vmatpush.msrb.mxu1 %v2834_v58  ;;  %v1013_v33 = vrot.slane %v4102_v60, 1  ;;  %v1014_v59 = vrot.slane %v4105_v1, 1  ;;  %v4143_v53 = vmul.f32 %v4030_v43, %v803_v42  ;;  %v4154_v16 = vmul.f32 %v4030_v43, %v804_v7  ;;  %v2843_v6 = vld [vmem:[%s5518_s4 + $0x368] sm:$0xff] }
  0xbb   : > { %5784 = vst [vmem:[#allocation29_spill] sm:$0xff] %v4098_v38  ;;  %1557 = vmatpush.msra.mxu2 %v2835_v28  ;;  %1862 = vmatpush.msrb.mxu0 %v2836_v19  ;;  %v996_v13 = vrot.slane %v4116_v27, 1  ;;  %v962_v22 = vsel %vm957_vm0, %v959_v8, %v961_v20  ;;  %v4163_v35 = vsel %vm957_vm0, %v978_v50, %v979_v57  ;;  %v2845_v50 = vld [vmem:[%s5518_s4 + $0x460] sm:$0xff]  ;;  %v805_v58 = vld [vmem:[%s4020_s13 + $0x28] sm:$0x3]  ;;  %v5793_v28 = vld [vmem:[#allocation4_spill] sm:$0xff] }
  0xbc   : > { %5785 = vst [vmem:[#allocation33_spill] sm:$0xff] %v4102_v60  ;;  %2314 = vmatpush.msra.mxu3 %v2837_v40  ;;  %2007 = vmatpush.msrb.mxu1 %v2838_v5  ;;  %v4166_v36 = vmul.f32 %v4030_v43, %v814_v14  ;;  %v4180_v8 = vsel %vm957_vm0, %v1013_v33, %v1014_v59  ;;  %v963_v11 = vrot.slane %v4143_v53, 1  ;;  %v5577_v48 = vrot.slane %v4154_v16, 1  ;;  %v815_v33 = vld [vmem:[%s4020_s13 + $0x78] sm:$0xff]  ;;  %v816_v14 = vld [vmem:[%s4020_s13 + $0x80] sm:$0xff]  ;;  %v5811_v60 = vld [vmem:[#allocation11_spill] sm:$0xff] }
  0xbd   : > { %5786 = vst [vmem:[#allocation41_spill] sm:$0xff] %v4105_v1  ;;  %1558 = vmatpush.msra.mxu2 %v2839_v25  ;;  %1863 = vmatpush.msrb.mxu0 %v2840_v55  ;;  %v4183_v12 = vmul.f32 %v4030_v43, %v835_v46  ;;  %v4193_v51 = vsel %vm957_vm0, %v994_v4, %v996_v13  ;;  %v2844_v4 = vld [vmem:[%s5518_s4 + $0x2e0] sm:$0xff]  ;;  %v837_v46 = vld [vmem:[%s4020_s13 + $0x128] sm:$0xff]  ;;  %v2847_v5 = vld [vmem:[%s5518_s4 + $0x2d8] sm:$0xff] }
  0xbe   : > { %5787 = vst [vmem:[#allocation5_spill] sm:$0xff] %v4113_v26  ;;  %2315 = vmatpush.msra.mxu3 %v2841_v10  ;;  %v4197_v42 = vmul.f32 %v4030_v43, %v824_v39  ;;  %v4200_v2 = vmul.f32 %v4030_v43, %v825_v56  ;;  %2008 = vmatpush.msrb.mxu1 %v2843_v6  ;;  %v981_v20 = vrot.slane %v4166_v36, 1  ;;  %v836_v19 = vld [vmem:[%s4020_s13 + $0x120] sm:$0xff]  ;;  %v826_v39 = vld [vmem:[%s4020_s13 + $0xd0] sm:$0x3]  ;;  %v2848_v55 = vld [vmem:[%s5518_s4 + $0x458] sm:$0xff] }
  0xbf   : > { %5788 = vst [vmem:[#allocation36_spill] sm:$0xff] %v4163_v35  ;;  %1089 = vmatmul.f32.gmra.mxu0 %v962_v22  ;;  %1110 = vmatmul.f32.gmra.mxu1 %v4163_v35  ;;  %v1016_v7 = vrot.slane %v4183_v12, 1  ;;  %v2846_v40 = vld [vmem:[%s5518_s4 + $0x360] sm:$0xff]  ;;  %v4229_v13 = vsel %vm957_vm0, %v963_v11, %v5577_v48  ;;  %v4244_v11 = vmul.f32 %v4030_v43, %v805_v58  ;;  %v809_v37 = vld [vmem:[%s4020_s13 + $0x48] sm:$0xff] }
  0xc0   : > { %5789 = vst [vmem:[#allocation42_spill] sm:$0xff] %v4180_v8  ;;  %1152 = vmatmul.f32.gmra.mxu3 %v4180_v8  ;;  %1559 = vmatpush.msra.mxu2 %v2842_v31  ;;  %v998_v25 = vrot.slane %v4197_v42, 1  ;;  %v5576_v22 = vrot.slane %v4200_v2, 1  ;;  %v5794_v56 = vld [vmem:[#allocation6_spill] sm:$0xff]  ;;  %v4241_v10 = vsel %vm957_vm0, %v979_v57, %v981_v20  ;;  %v4247_v31 = vmul.f32 %v4030_v43, %v815_v33  ;;  %v5800_v33 = vld [vmem:[#allocation12_spill] sm:$0xff] }
  0xc1   : > { %5790 = vst [vmem:[#allocation48_spill] sm:$0xff] %v4193_v51  ;;  %1864 = vmatpush.msrb.mxu0 %v2844_v4  ;;  %2316 = vmatpush.msra.mxu3 %v2845_v50  ;;  %v4250_v6 = vmul.f32 %v4030_v43, %v816_v14  ;;  %v2849_v4 = vld [vmem:[%s5518_s4 + $0x358] sm:$0xff]  ;;  %v4260_v57 = vsel %vm957_vm0, %v1014_v59, %v1016_v7  ;;  %v806_v7 = vld [vmem:[%s4020_s13 + $0x30] sm:$0xff]  ;;  %v5806_v8 = vld [vmem:[#allocation10_spill] sm:$0xff] }
  0xc2   : > { %5791 = vst [vmem:[#allocation8_spill] sm:$0xff] %v4197_v42  ;;  %1131 = vmatmul.f32.gmra.mxu2 %v4193_v51  ;;  %2009 = vmatpush.msrb.mxu1 %v2846_v40  ;;  %v4263_v20 = vmul.f32 %v4030_v43, %v836_v19  ;;  %v4266_v50 = vmul.f32 %v4030_v43, %v837_v46  ;;  %v843_v14 = vld [vmem:[%s4020_s13 + $0x158] sm:$0xff]  ;;  %v5802_v19 = vld [vmem:[#allocation7_spill] sm:$0xff]  ;;  %v966_v46 = vrot.slane %v4244_v11, 1  ;;  %v983_v40 = vrot.slane %v4247_v31, 1 }
  0xc3   : > { %5792 = vst [vmem:[#allocation43_spill] sm:$0xff] %v4200_v2  ;;  %1560 = vmatpush.msra.mxu2 %v5793_v28  ;;  %1865 = vmatpush.msrb.mxu0 %v2847_v5  ;;  %v4270_v58 = vmul.f32 %v4030_v43, %v826_v39  ;;  %v4276_v59 = vsel %vm957_vm0, %v998_v25, %v5576_v22  ;;  %v2850_v28 = vld [vmem:[%s5518_s4 + $0x2d0] sm:$0xff]  ;;  %v807_v25 = vld [vmem:[%s4020_s13 + $0x38] sm:$0xff]  ;;  %v817_v39 = vld [vmem:[%s4020_s13 + $0x88] sm:$0x3] }
  0xc4   : > { %2317 = vmatpush.msra.mxu3 %v2848_v55  ;;  %5795 = vst [vmem:[#allocation49_spill] sm:$0xff] %v4241_v10  ;;  %2010 = vmatpush.msrb.mxu1 %v2849_v4  ;;  %v1018_v55 = vrot.slane %v4263_v20, 1  ;;  %v4302_v34 = vmul.f32 %v4030_v43, %v806_v7  ;;  %v4306_v22 = vmul.f32 %v4030_v43, %v843_v14  ;;  %v844_v4 = vld [vmem:[%s4020_s13 + $0x160] sm:$0x3]  ;;  %v5804_v5 = vld [vmem:[#allocation9_spill] sm:$0xff]  ;;  %v845_v14 = vld [vmem:[%s4020_s13 + $0x168] sm:$0xff] }
  0xc5   : > { %1561 = vmatpush.msra.mxu2 %v5794_v56  ;;  %5796 = vst [vmem:[#allocation13_spill] sm:$0xff] %v4247_v31  ;;  %1866 = vmatpush.msrb.mxu0 %v2850_v28  ;;  %v2851_v56 = vld [vmem:[%s5518_s4 + $0x350] sm:$0xff]  ;;  %v1001_v54 = vrot.slane %v4270_v58, 1  ;;  %v4317_v48 = vmul.f32 %v4030_v43, %v817_v39  ;;  %v828_v7 = vld [vmem:[%s4020_s13 + $0xe0] sm:$0xff]  ;;  %v5820_v42 = vld [vmem:[#allocation23_spill] sm:$0xff] }
  0xc6   : > { %5797 = vst [vmem:[#allocation19_spill] sm:$0xff] %v4250_v6  ;;  %2318 = vmatpush.msra.mxu3 %v5802_v19  ;;  %2011 = vmatpush.msrb.mxu1 %v2851_v56  ;;  %v5803_v28 = vld [vmem:[#allocation16_spill] sm:$0xff]  ;;  %v2852_v19 = vld [vmem:[%s5518_s4 + $0x2c8] sm:$0xff]  ;;  %v827_v56 = vld [vmem:[%s4020_s13 + $0xd8] sm:$0xff] }
  0xc7   : > { %1092 = vmatmul.f32.gmra.mxu0 %v4229_v13  ;;  %1113 = vmatmul.f32.gmra.mxu1 %v4241_v10  ;;  %5798 = vst [vmem:[#allocation28_spill] sm:$0xff] %v4260_v57  ;;  %v986_v51 = vrot.slane %v4317_v48, 1  ;;  %v5823_v10 = vld [vmem:[#allocation40_spill] sm:$0xff]  ;;  %v5827_v31 = vld [vmem:[#allocation26_spill] sm:$0xff] }
  0xc8   : > { %5799 = vst [vmem:[#allocation35_spill] sm:$0xff] %v4263_v20  ;;  %1155 = vmatmul.f32.gmra.mxu3 %v4260_v57  ;;  %1562 = vmatpush.msra.mxu2 %v5800_v33  ;;  %v838_v33 = vld [vmem:[%s4020_s13 + $0x130] sm:$0x3]  ;;  %v5805_v57 = vld [vmem:[#allocation22_spill] sm:$0xff] }
  0xc9   : > { %5801 = vst [vmem:[#allocation4_spill] sm:$0xff] %v4276_v59  ;;  %1867 = vmatpush.msrb.mxu0 %v2852_v19  ;;  %2319 = vmatpush.msra.mxu3 %v5804_v5  ;;  %v4314_v19 = vmul.f32 %v4030_v43, %v807_v25  ;;  %v5807_v5 = vrot.slane %v4154_v16, 1  ;;  %v4334_v39 = vmul.f32 %v4030_v43, %v838_v33  ;;  %v846_v20 = vld [vmem:[%s4020_s13 + $0x170] sm:$0xff] }
  0xca   : > { %1134 = vmatmul.f32.gmra.mxu2 %v4276_v59  ;;  %v818_v59 = vld [vmem:[%s4020_s13 + $0x90] sm:$0xff]  ;;  %v4375_v26 = vmul.f32 %v4030_v43, %v846_v20 }
  0xcb   : > { %1563 = vmatpush.msra.mxu2 %v5803_v28  ;;  %v2853_v28 = vld [vmem:[%s5518_s4 + $0x348] sm:$0xff]  ;;  %1868 = vmatpush.msrb.mxu0 %v5806_v8  ;;  %v4326_v29 = vsel %vm957_vm0, %v5807_v5, %v966_v46  ;;  %v5812_v8 = vrot.slane %v4266_v50, 1  ;;  %v4351_v5 = vmul.f32 %v4030_v43, %v844_v4  ;;  %v5818_v33 = vld [vmem:[#allocation32_spill] sm:$0xff]  ;;  %v4368_v4 = vmul.f32 %v4030_v43, %v845_v14 }
  0xcc   : > { %2012 = vmatpush.msrb.mxu1 %v2853_v28  ;;  %v5808_v28 = vrot.slane %v4250_v6, 1  ;;  %v1021_v14 = vrot.slane %v4334_v39, 1  ;;  %v4390_v20 = vmul.f32 %v4030_v43, %v818_v59 }
  0xcd   : > { %1564 = vmatpush.msra.mxu2 %v5805_v57  ;;  %v5810_v57 = vld [vmem:[#allocation14_spill] sm:$0xff]  ;;  %v4344_v46 = vsel %vm957_vm0, %v1018_v55, %v5812_v8  ;;  %v968_v55 = vrot.slane %v4302_v34, 1  ;;  %v4362_v8 = vmul.f32 %v4030_v43, %v828_v7  ;;  %v5819_v7 = vld [vmem:[#allocation15_spill] sm:$0xff] }
  0xce   : > { %v4331_v25 = vsel %vm957_vm0, %v983_v40, %v5808_v28  ;;  %2320 = vmatpush.msra.mxu3 %v5810_v57  ;;  %2013 = vmatpush.msrb.mxu1 %v5811_v60  ;;  %5813 = vst [vmem:[#allocation12_spill] sm:$0xff] %v4344_v46  ;;  %v4347_v40 = vmul.f32 %v4030_v43, %v827_v56  ;;  %v847_v28 = vld [vmem:[%s4020_s13 + $0x178] sm:$0x3]  ;;  %v5815_v60 = vrot.slane %v4200_v2, 1  ;;  %v808_v56 = vld [vmem:[%s4020_s13 + $0x40] sm:$0x3] }
  0xcf   : > { %5809 = vst [vmem:[#allocation6_spill] sm:$0xff] %v4331_v25  ;;  %1095 = vmatmul.f32.gmra.mxu0 %v4326_v29  ;;  %1116 = vmatmul.f32.gmra.mxu1 %v4331_v25  ;;  %v4387_v25 = vmul.f32 %v4030_v43, %v808_v56  ;;  %v5832_v56 = vld [vmem:[#allocation46_spill] sm:$0xff] }
  0xd0   : > { %5814 = vst [vmem:[#allocation7_spill] sm:$0xff] %v4347_v40  ;;  %1158 = vmatmul.f32.gmra.mxu3 %v4344_v46  ;;  %v4358_v57 = vsel %vm957_vm0, %v5815_v60, %v1001_v54  ;;  %1565 = vmatpush.msra.mxu2 %v5818_v33  ;;  %v819_v54 = vld [vmem:[%s4020_s13 + $0x98] sm:$0xff]  ;;  %v1031_v60 = vrot.slane %v4351_v5, 1  ;;  %v820_v33 = vld [vmem:[%s4020_s13 + $0xa0] sm:$0x3]  ;;  %v4383_v46 = vmul.f32 %v4030_v43, %v847_v28  ;;  %v5825_v28 = vld [vmem:[#allocation20_spill] sm:$0xff] }
  0xd1   : > { %5816 = vst [vmem:[#allocation16_spill] sm:$0xff] %v4358_v57  ;;  %1869 = vmatpush.msrb.mxu0 %v5819_v7  ;;  %2321 = vmatpush.msra.mxu3 %v5820_v42  ;;  %v839_v7 = vld [vmem:[%s4020_s13 + $0x138] sm:$0xff]  ;;  %v5824_v42 = vrot.slane %v4306_v22, 1  ;;  %v4404_v59 = vmul.f32 %v4030_v43, %v819_v54  ;;  %v4421_v54 = vmul.f32 %v4030_v43, %v820_v33  ;;  %v5842_v33 = vld [vmem:[#allocation51_spill] sm:$0xff] }
  0xd2   : > { %5817 = vst [vmem:[#allocation9_spill] sm:$0xff] %v4362_v8  ;;  %1137 = vmatmul.f32.gmra.mxu2 %v4358_v57  ;;  %2014 = vmatpush.msrb.mxu1 %v5821_v32  ;;  %v1003_v32 = vrot.slane %v4347_v40, 1  ;;  %v5833_v40 = vld [vmem:[#allocation30_spill] sm:$0xff] }
  0xd3   : > { %5822 = vst [vmem:[#allocation22_spill] sm:$0xff] %v4390_v20  ;;  %1566 = vmatpush.msra.mxu2 %v5823_v10  ;;  %v4397_v57 = vsel %vm957_vm0, %v5824_v42, %v1031_v60  ;;  %1870 = vmatpush.msrb.mxu0 %v5825_v28  ;;  %v1036_v10 = vrot.slane %v4383_v46, 1  ;;  %v5829_v60 = vrot.slane %v4314_v19, 1  ;;  %v5830_v28 = vrot.slane %v4250_v6, 1 }
  0xd4   : > { %5826 = vst [vmem:[#allocation10_spill] sm:$0xff] %v4404_v59  ;;  %2322 = vmatpush.msra.mxu3 %v5827_v31  ;;  %2015 = vmatpush.msrb.mxu1 %v5828_v61  ;;  %v5834_v61 = vrot.slane %v4266_v50, 1 }
  0xd5   : > { %v4413_v42 = vsel %vm957_vm0, %v968_v55, %v5829_v60  ;;  %v4418_v35 = vsel %vm957_vm0, %v5830_v28, %v986_v51  ;;  %1567 = vmatpush.msra.mxu2 %v5832_v56  ;;  %1871 = vmatpush.msrb.mxu0 %v5833_v40  ;;  %v4431_v55 = vmul.f32 %v4030_v43, %v839_v7  ;;  %v829_v60 = vld [vmem:[%s4020_s13 + $0xe8] sm:$0x3]  ;;  %v5837_v51 = vrot.slane %v4375_v26, 1  ;;  %v5838_v56 = vld [vmem:[#allocation37_spill] sm:$0xff] }
  0xd6   : > { %5831 = vst [vmem:[#allocation14_spill] sm:$0xff] %v4418_v35  ;;  %v4428_v31 = vsel %vm957_vm0, %v5834_v61, %v1021_v14  ;;  %2323 = vmatpush.msra.mxu3 %v5838_v56  ;;  %v5839_v40 = vld [vmem:[#allocation31_spill] sm:$0xff]  ;;  %v971_v14 = vrot.slane %v4387_v25, 1  ;;  %v988_v7 = vrot.slane %v4390_v20, 1  ;;  %v4447_v61 = vmul.f32 %v4030_v43, %v840_v47 }
  0xd7   : > { %5835 = vst [vmem:[#allocation11_spill] sm:$0xff] %v4428_v31  ;;  %v4437_v28 = vsel %vm957_vm0, %v5837_v51, %v1036_v10  ;;  %2016 = vmatpush.msrb.mxu1 %v5839_v40  ;;  %1098 = vmatmul.f32.gmra.mxu0 %v4413_v42  ;;  %v1320_v10 = vrot.slane %v4166_v36, 2  ;;  %v5840_v51 = vrot.slane %v4362_v8, 1  ;;  %v1325_v20 = vrot.slane %v4317_v48, 2  ;;  %v5845_v40 = vld [vmem:[#allocation38_spill] sm:$0xff] }
  0xd8   : > { %5836 = vst [vmem:[#allocation32_spill] sm:$0xff] %v4431_v55  ;;  %1119 = vmatmul.f32.gmra.mxu1 %v4418_v35  ;;  %1161 = vmatmul.f32.gmra.mxu3 %v4428_v31  ;;  %v5626_v35 = vrot.slane %v4250_v6, 2  ;;  %v884_v47 = vmul.f32 %v4030_v43, %v829_v60  ;;  %v5843_v36 = vrot.slane %v4098_v38, 2  ;;  %v5630_v60 = vrot.slane %v4057_v44, 2 }
  0xd9   : > { %v4454_v56 = vsel %vm957_vm0, %v1003_v32, %v5840_v51  ;;  %1568 = vmatpush.msra.mxu2 %v5842_v33  ;;  %v1330_v51 = vrot.slane %v4421_v54, 2  ;;  %1872 = vmatpush.msrb.mxu0 %v5845_v40  ;;  %v5846_v33 = vld [vmem:[#allocation44_spill] sm:$0xff]  ;;  %v1023_v32 = vrot.slane %v4431_v55, 1  ;;  %v841_v40 = vld [vmem:[%s4020_s13 + $0x148] sm:$0x3] }
  0xda   : > { %5841 = vst [vmem:[#allocation15_spill] sm:$0xff] %v4454_v56  ;;  %v4465_v31 = vsel %vm1296_vm1, %v5843_v36, %v1320_v10  ;;  %2324 = vmatpush.msra.mxu3 %v5846_v33  ;;  %1140 = vmatmul.f32.gmra.mxu2 %v4454_v56  ;;  %v4475_v48 = vsel %vm1296_vm1, %v5626_v35, %v1325_v20  ;;  %v1335_v10 = vrot.slane %v4116_v27, 2  ;;  %v5848_v36 = vld [vmem:[#allocation39_spill] sm:$0xff]  ;;  %v5849_v33 = vrot.slane %v4404_v59, 2  ;;  %v5851_v35 = vld [vmem:[#allocation45_spill] sm:$0xff] }
  0xdb   : > { %5844 = vst [vmem:[#allocation23_spill] sm:$0xff] %v4465_v31  ;;  %2017 = vmatpush.msrb.mxu1 %v5848_v36  ;;  %1569 = vmatpush.msra.mxu2 %v3871_v15  ;;  %v5852_v27 = vrot.slane %v4314_v19, 1  ;;  %v4497_v31 = vmul.f32 %v4030_v43, %v809_v37  ;;  %v2854_v15 = vld [vmem:[%s5518_s4 + $0x3f8] sm:$0xff]  ;;  %v1006_v37 = vrot.slane %v884_v47, 1  ;;  %v5631_v20 = vrot.slane %v4362_v8, 2 }
  0xdc   : > { %5847 = vst [vmem:[#allocation17_spill] sm:$0xff] %v4475_v48  ;;  %v4487_v56 = vsel %vm1296_vm1, %v5849_v33, %v1330_v51  ;;  %1873 = vmatpush.msrb.mxu0 %v5851_v35  ;;  %v4505_v51 = vsel %vm1296_vm1, %v5630_v60, %v1335_v10  ;;  %v1340_v35 = vrot.slane %v4270_v58, 2  ;;  %v5854_v33 = vld [vmem:[#allocation52_spill] sm:$0xff]  ;;  %v1345_v55 = vrot.slane %v884_v47, 2 }
  0xdd   : > { %5850 = vst [vmem:[#allocation40_spill] sm:$0xff] %v4487_v56  ;;  %v4494_v36 = vsel %vm957_vm0, %v5852_v27, %v971_v14  ;;  %2161 = vmatpush.msrb.mxu2 %v2854_v15  ;;  %2325 = vmatpush.msra.mxu3 %v5854_v33  ;;  %v5855_v14 = vrot.slane %v4404_v59, 1  ;;  %v5857_v56 = vld [vmem:[#allocation47_spill] sm:$0xff]  ;;  %v5858_v15 = vld [vmem:[#allocation50_spill] sm:$0xff]  ;;  %v4518_v10 = vmul.f32 %v4030_v43, %v841_v40  ;;  %v830_v60 = vld [vmem:[%s4020_s13 + $0xf0] sm:$0xff]  ;;  %v5634_v47 = vrot.slane %v4048_v21, 2 }
  0xde   : > { %5853 = vst [vmem:[#allocation20_spill] sm:$0xff] %v4505_v51  ;;  %2018 = vmatpush.msrb.mxu1 %v5857_v56  ;;  %1874 = vmatpush.msrb.mxu0 %v5858_v15  ;;  %v2855_v58 = vld [vmem:[%s5518_s4 + $0x3f0] sm:$0xff]  ;;  %v1350_v56 = vrot.slane %v4051_v23, 2  ;;  %v5861_v40 = vrot.slane %v4447_v61, 1  ;;  %v5635_v23 = vrot.slane %v4105_v1, 2  ;;  %v1355_v15 = vrot.slane %v4183_v12, 2 }
  0xdf   : > { %v4512_v27 = vsel %vm957_vm0, %v988_v7, %v5855_v14  ;;  %2162 = vmatpush.msrb.mxu2 %v2855_v58  ;;  %v5859_v7 = vrot.slane %v4200_v2, 2  ;;  %2326 = vmatpush.msra.mxu3 %v3861_v63  ;;  %v973_v63 = vrot.slane %v4497_v31, 1  ;;  %v2856_v58 = vld [vmem:[%s5518_s4 + $0x3e8] sm:$0xff] }
  0xe0   : > { %5856 = vst [vmem:[#allocation26_spill] sm:$0xff] %v4512_v27  ;;  %1101 = vmatmul.f32.gmra.mxu0 %v4494_v36  ;;  %1122 = vmatmul.f32.gmra.mxu1 %v4512_v27  ;;  %v4537_v14 = vsel %vm957_vm0, %v1023_v32, %v5861_v40  ;;  %v4554_v32 = vsel %vm1296_vm1, %v5634_v47, %v1350_v56  ;;  %v5867_v56 = vld [vmem:[#allocation53_spill] sm:$0xff]  ;;  %v848_v47 = vld [vmem:[%s4020_s13 + $0x180] sm:$0xff] }
  0xe1   : > { %v4527_v33 = vsel %vm1296_vm1, %v5859_v7, %v1340_v35  ;;  %5862 = vst [vmem:[#allocation46_spill] sm:$0xff] %v4537_v14  ;;  %v4542_v35 = vsel %vm1296_vm1, %v5631_v20, %v1345_v55  ;;  %1164 = vmatmul.f32.gmra.mxu3 %v4537_v14  ;;  %2163 = vmatpush.msrb.mxu2 %v2856_v58  ;;  %v5865_v7 = vrot.slane %v4362_v8, 1  ;;  %v842_v20 = vld [vmem:[%s4020_s13 + $0x150] sm:$0xff]  ;;  %v1360_v14 = vrot.slane %v4334_v39, 2 }
  0xe2   : > { %5860 = vst [vmem:[#allocation24_spill] sm:$0xff] %v4527_v33  ;;  %v4563_v40 = vmul.f32 %v4030_v43, %v830_v60  ;;  %v4569_v58 = vsel %vm1296_vm1, %v5635_v23, %v1355_v15  ;;  %2019 = vmatpush.msrb.mxu1 %v5867_v56  ;;  %1875 = vmatpush.msrb.mxu0 %v3851_v24  ;;  %v1026_v60 = vrot.slane %v4518_v10, 1  ;;  %v1365_v55 = vrot.slane %v4518_v10, 2  ;;  %v849_v15 = vld [vmem:[%s4020_s13 + $0x188] sm:$0xff]  ;;  %v2857_v24 = vld [vmem:[%s5518_s4 + $0x3e0] sm:$0xff] }
  0xe3   : > { %5863 = vst [vmem:[#allocation30_spill] sm:$0xff] %v4542_v35  ;;  %v4560_v12 = vsel %vm957_vm0, %v5865_v7, %v1006_v37  ;;  %v991_v37 = vrot.slane %v4421_v54, 1  ;;  %2327 = vmatpush.msra.mxu3 %v3910_v17  ;;  %v1297_v39 = vrot.slane %v4036_v49, 2  ;;  %2164 = vmatpush.msrb.mxu2 %v2857_v24  ;;  %v5868_v56 = vrot.slane %v4266_v50, 2  ;;  %v850_v17 = vld [vmem:[%s4020_s13 + $0x190] sm:$0x3] }
  0xe4   : > { %5864 = vst [vmem:[#allocation37_spill] sm:$0xff] %v4554_v32  ;;  %1143 = vmatmul.f32.gmra.mxu2 %v4560_v12  ;;  %v5639_v23 = vrot.slane %v4306_v22, 2  ;;  %v1370_v10 = vrot.slane %v4351_v5, 2  ;;  %2020 = vmatpush.msrb.mxu1 %v3866_v3  ;;  %v4596_v7 = vmul.f32 %v4030_v43, %v842_v20  ;;  %v851_v3 = vld [vmem:[%s4020_s13 + $0x198] sm:$0xff]  ;;  %v1008_v5 = vrot.slane %v4563_v40, 1 }
  0xe5   : > { %5866 = vst [vmem:[#allocation31_spill] sm:$0xff] %v4569_v58  ;;  %v4589_v54 = vsel %vm1296_vm1, %v5868_v56, %v1360_v14  ;;  %v5870_v58 = vrot.slane %v4447_v61, 2  ;;  %v4605_v56 = vmul.f32 %v4030_v43, %v848_v47  ;;  %1876 = vmatpush.msrb.mxu0 %v3903_v9  ;;  %2328 = vmatpush.msra.mxu3 %v3945_v52  ;;  %v2858_v20 = vld [vmem:[%s5518_s4 + $0x3d8] sm:$0xff]  ;;  %v1375_v47 = vrot.slane %v4383_v46, 2  ;;  %v852_v9 = vld [vmem:[%s4020_s13 + $0x1a0] sm:$0xff] }
  0xe6   : > { %5869 = vst [vmem:[#allocation51_spill] sm:$0xff] %v4589_v54  ;;  %2165 = vmatpush.msrb.mxu2 %v2858_v20  ;;  %2021 = vmatpush.msrb.mxu1 %v3920_v18  ;;  %v853_v52 = vld [vmem:[%s4020_s13 + $0x1a8] sm:$0x3]  ;;  %v5874_v14 = vrot.slane %v4042_v45, 1  ;;  %v5876_v20 = vrot.slane %v4404_v59, 1  ;;  %v5880_v18 = vrot.slane %v4375_v26, 2 }
  0xe7   : > { %v4601_v24 = vsel %vm1296_vm1, %v5870_v58, %v1365_v55  ;;  %5872 = vst [vmem:[#allocation44_spill] sm:$0xff] %v4605_v56  ;;  %v4617_v55 = vsel %vm1296_vm1, %v5639_v23, %v1370_v10  ;;  %v4621_v58 = vmul.f32 %v4030_v43, %v849_v15  ;;  %v5878_v10 = vrot.slane %v4447_v61, 1 }
  0xe8   : > { %5871 = vst [vmem:[#allocation38_spill] sm:$0xff] %v4601_v24  ;;  %v4629_v56 = vsel %vm957_vm0, %v973_v63, %v5874_v14  ;;  %v4634_v24 = vsel %vm957_vm0, %v5876_v20, %v991_v37  ;;  %v905_v15 = vmul.f32 %v4030_v43, %v850_v17  ;;  %v4647_v63 = vsel %vm1296_vm1, %v5880_v18, %v1375_v47 }
  0xe9   : > { %5873 = vst [vmem:[#allocation39_spill] sm:$0xff] %v4617_v55  ;;  %v4639_v46 = vsel %vm957_vm0, %v5878_v10, %v1026_v60  ;;  %1104 = vmatmul.f32.gmra.mxu0 %v4629_v56  ;;  %1125 = vmatmul.f32.gmra.mxu1 %v4634_v24  ;;  %v4652_v20 = vmul.f32 %v4030_v43, %v851_v3  ;;  %v2859_v60 = vld [vmem:[%s5518_s4 + $0x3d0] sm:$0xff]  ;;  %v5884_v23 = vrot.slane %v4048_v21, 1  ;;  %v1298_v3 = vrot.slane %v4039_v41, 2 }
  0xea   : > { %5875 = vst [vmem:[#allocation45_spill] sm:$0xff] %v4629_v56  ;;  %1167 = vmatmul.f32.gmra.mxu3 %v4639_v46  ;;  %2166 = vmatpush.msrb.mxu2 %v2859_v60  ;;  %v1705_v17 = vrot.slane %v905_v15, 1  ;;  %v4659_v10 = vmul.f32 %v4030_v43, %v852_v9  ;;  %v1857_v47 = vrot.slane %v905_v15, 2  ;;  %v908_v18 = vmul.f32 %v4030_v43, %v853_v52 }
  0xeb   : > { %5877 = vst [vmem:[#allocation52_spill] sm:$0xff] %v4634_v24  ;;  %v4665_v37 = vsel %vm957_vm0, %v1008_v5, %v5884_v23  ;;  %v2154_v14 = vrot.slane %v4652_v20, 1  ;;  %v5885_v60 = vrot.slane %v4621_v58, 1  ;;  %v5887_v52 = vrot.slane %v4621_v58, 2 }
  0xec   : > { %5879 = vst [vmem:[#allocation47_spill] sm:$0xff] %v4639_v46  ;;  %1146 = vmatmul.f32.gmra.mxu2 %v4665_v37  ;;  %v2155_v43 = vrot.slane %v4659_v10, 1  ;;  %v2157_v5 = vrot.slane %v908_v18, 1  ;;  %v1028_v15 = vrot.slane %v4596_v7, 1  ;;  %v2307_v46 = vrot.slane %v4659_v10, 2 }
  0xed   : > { %5881 = vst [vmem:[#allocation50_spill] sm:$0xff] %v4647_v63  ;;  %v2306_v63 = vrot.slane %v4652_v20, 2  ;;  %v4674_v9 = vsel %vm957_vm0, %v5885_v60, %v1705_v17  ;;  %v4680_v23 = vsel %vm1296_vm1, %v5887_v52, %v1857_v47  ;;  %v2309_v55 = vrot.slane %v908_v18, 2  ;;  %v2861_v47 = vld [vmem:[%s5518_s4 + $0x3c0] sm:$0xff] }
  0xee   : > { %5882 = vst [vmem:[#allocation53_spill] sm:$0xff] %v4652_v20  ;;  %v2860_v20 = vld [vmem:[%s5518_s4 + $0x3c8] sm:$0xff]  ;;  %v4688_v17 = vsel %vm957_vm0, %v2154_v14, %v2155_v43  ;;  %v4691_v60 = vsel %vm957_vm0, %v2155_v43, %v2157_v5  ;;  %v5893_v18 = vrot.slane %v4306_v22, 1  ;;  %v1302_v43 = vrot.slane %v4143_v53, 2 }
  0xef   : > { %5883 = vst [vmem:[#allocation55_spill] sm:$0xff] %v4659_v10  ;;  %2167 = vmatpush.msrb.mxu2 %v2860_v20  ;;  %v4697_v52 = vsel %vm1296_vm1, %v2306_v63, %v2307_v46  ;;  %v1299_v20 = vsel %vm1296_vm1, %v1297_v39, %v1298_v3  ;;  %v2862_v63 = vld [vmem:[%s5518_s4 + $0x3b8] sm:$0xff]  ;;  %v2863_v39 = vld [vmem:[%s5518_s4 + $0x3b0] sm:$0xff]  ;;  %v1303_v5 = vrot.slane %v4154_v16, 2 }
  0xf0   : > { %5886 = vst [vmem:[#allocation56_spill] sm:$0xff] %v4674_v9  ;;  %v4706_v14 = vsel %vm957_vm0, %v1028_v15, %v5893_v18  ;;  %v1033_v15 = vrot.slane %v4368_v4, 1  ;;  %v5930_v9 = vrot.slane %v4200_v2, 2 }
  0xf1   : > { %5888 = vst [vmem:[#allocation57_spill] sm:$0xff] %v4680_v23  ;;  %2168 = vmatpush.msrb.mxu2 %v2861_v47  ;;  %v4700_v23 = vsel %vm1296_vm1, %v2307_v46, %v2309_v55  ;;  %1199 = vmatmul.f32.vlgmr.msra.gmra.mxu0 %v4036_v49  ;;  %v1300_v55 = vrot.slane %v4085_v62, 2  ;;  %v2864_v49 = vld [vmem:[%s5518_s4 + $0x3a8] sm:$0xff]  ;;  %v2865_v62 = vld [vmem:[%s5518_s4 + $0x3a0] sm:$0xff]  ;;  %v4736_v47 = vsel %vm1296_vm1, %v1302_v43, %v1303_v5 }
  0xf2   : > { %5889 = vst [vmem:[#allocation58_spill] sm:$0xff] %v4688_v17  ;;  %1425 = vmatmul.f32.vlgmr.msra.gmra.mxu1 %v1299_v20  ;;  %1170 = vmatmul.f32.gmra.mxu3 %v4706_v14  ;;  %v5895_v20 = vrot.slane %v4375_v26, 1 }
  0xf3   : > { %5890 = vst [vmem:[#allocation59_spill] sm:$0xff] %v4691_v60  ;;  %2169 = vmatpush.msrb.mxu2 %v2862_v63  ;;  %v1301_v46 = vsel %vm1296_vm1, %v1298_v3, %v1300_v55  ;;  %v5894_v3 = vld [vmem:[#allocation54_spill] sm:$0xff]  ;;  %v1305_v63 = vrot.slane %v4244_v11, 2  ;;  %v1312_v11 = vrot.slane %v4497_v31, 2 }
  0xf4   : > { %5891 = vst [vmem:[#allocation60_spill] sm:$0xff] %v4697_v52  ;;  %1570 = vmatmul.f32.vlgmr.msra.gmra.mxu2 %v4143_v53  ;;  %v4741_v18 = vsel %vm957_vm0, %v1033_v15, %v5895_v20  ;;  %v5911_v52 = vld [vmem:[#allocation22_spill] sm:$0xff] }
  0xf5   : > { %5892 = vst [vmem:[#allocation61_spill] sm:$0xff] %v4700_v23  ;;  %2170 = vmatpush.msrb.mxu2 %v2863_v39  ;;  %v4751_v55 = vsel %vm1296_vm1, %v1303_v5, %v1305_v63  ;;  %v5901_v5 = vrot.slane %v4098_v38, 2  ;;  %v5910_v23 = vld [vmem:[#allocation36_spill] sm:$0xff] }
  0xf7   : > { %2171 = vmatpush.msrb.mxu2 %v2864_v49  ;;  %v1313_v49 = vrot.slane %v4042_v45, 2 }
  0xf9   : > { %1202 = vmatmul.f32.gmra.mxu0 %v4039_v41  ;;  %2172 = vmatpush.msrb.mxu2 %v2865_v62  ;;  %v2866_v41 = vld [vmem:[%s5518_s4 + $0x398] sm:$0xff] }
  0xfa   : > { %1428 = vmatmul.f32.gmra.mxu1 %v1301_v46  ;;  %1173 = vmatmul.f32.gmra.mxu3 %v4397_v57  ;;  %v5899_v46 = vld [vmem:[#allocation25_spill] sm:$0xff] }
  0xfb   : > { %2173 = vmatpush.msrb.mxu2 %v2866_v41  ;;  %v1315_v62 = vrot.slane %v5899_v46, 2  ;;  %v5903_v41 = vld [vmem:[#allocation13_spill] sm:$0xff] }
  0xfc   : > { %1573 = vmatmul.f32.gmra.mxu2 %v4154_v16 }
  0xfd   : > { %2174 = vmatpush.msrb.mxu2 %v5894_v3 }
  0xff   : > { %2175 = vmatpush.msrb.mxu2 %v3893_v0  ;;  %v1308_v0 = vrot.slane %v4314_v19, 2 }
 0x101   : > { %1205 = vmatmul.f32.gmra.mxu0 %v4143_v53  ;;  %2176 = vmatpush.msrb.mxu2 %v3932_v30  ;;  %v1307_v53 = vrot.slane %v4302_v34, 2  ;;  %v1310_v30 = vrot.slane %v4387_v25, 2  ;;  %v5898_v25 = vld [vmem:[#allocation34_spill] sm:$0xff] }
 0x102   : > { %1431 = vmatmul.f32.gmra.mxu1 %v4736_v47  ;;  %1176 = vmatmul.f32.gmra.mxu3 %v4741_v18  ;;  %v1317_v43 = vrot.slane %v5898_v25, 2 }
 0x103   : > { %v4760_v39 = vsel %vm1296_vm1, %v1307_v53, %v1308_v0  ;;  %v5905_v53 = vld [vmem:[#allocation23_spill] sm:$0xff] }
 0x104   : > { %1576 = vmatmul.f32.gmra.mxu2 %v4302_v34  ;;  %v4795_v15 = vsel %vm1296_vm1, %v1317_v43, %v5901_v5  ;;  %v5908_v43 = vrot.slane %v4250_v6, 2 }
 0x105   : > { %5902 = vst [vmem:[#allocation63_spill] sm:$0xff] %v4795_v15 }
 0x109   : > { %1208 = vmatmul.f32.gmra.mxu0 %v4154_v16  ;;  %v4768_v16 = vsel %vm1296_vm1, %v1308_v0, %v1310_v30  ;;  %v5906_v0 = vld [vmem:[#allocation27_spill] sm:$0xff]  ;;  %v1322_v30 = vrot.slane %v5903_v41, 2 }
 0x10a   : > { %1434 = vmatmul.f32.gmra.mxu1 %v4751_v55  ;;  %1179 = vmatmul.f32.gmra.mxu3 %v4437_v28  ;;  %5896 = vst [vmem:[#allocation54_spill] sm:$0xff] %v4768_v16 }
 0x10b   : > { %v4823_v5 = vsel %vm1296_vm1, %v1322_v30, %v5908_v43  ;;  %v5913_v30 = vld [vmem:[#allocation49_spill] sm:$0xff]  ;;  %v1327_v43 = vrot.slane %v5911_v52, 2 }
 0x10c   : > { %1579 = vmatmul.f32.gmra.mxu2 %v4314_v19  ;;  %5909 = vst [vmem:[#allocation66_spill] sm:$0xff] %v4823_v5 }
 0x111   : > { %1211 = vmatmul.f32.gmra.mxu0 %v4302_v34 }
 0x112   : > { %1437 = vmatmul.f32.gmra.mxu1 %v4760_v39  ;;  %1725 = vmatmul.f32.vlgmr.msrb.gmra.mxu3 %v4229_v13  ;;  %v4777_v13 = vsel %vm1296_vm1, %v1312_v11, %v1313_v49 }
 0x113   : > { %5897 = vst [vmem:[#allocation62_spill] sm:$0xff] %v4777_v13 }
 0x114   : > { %1582 = vmatmul.f32.gmra.mxu2 %v4497_v31 }
 0x119   : > { %1214 = vmatmul.f32.gmra.mxu0 %v4314_v19 }
 0x11a   : > { %1440 = vmatmul.f32.gmra.mxu1 %v4768_v16  ;;  %1728 = vmatmul.f32.gmra.mxu3 %v4326_v29  ;;  %v4785_v29 = vsel %vm1296_vm1, %v1313_v49, %v1315_v62 }
 0x11b   : > { %5900 = vst [vmem:[#allocation25_spill] sm:$0xff] %v4785_v29 }
 0x11c   : > { %1585 = vmatmul.f32.gmra.mxu2 %v4042_v45 }
 0x121   : > { %1217 = vmatmul.f32.gmra.mxu0 %v4497_v31 }
 0x122   : > { %1443 = vmatmul.f32.gmra.mxu1 %v4777_v13  ;;  %1731 = vmatmul.f32.gmra.mxu3 %v4413_v42 }
 0x124   : > { %1588 = vmatmul.f32.gmra.mxu2 %v5898_v25 }
 0x129   : > { %1220 = vmatmul.f32.gmra.mxu0 %v4042_v45 }
 0x12a   : > { %1446 = vmatmul.f32.gmra.mxu1 %v4785_v29  ;;  %1734 = vmatmul.f32.gmra.mxu3 %v4494_v36 }
 0x12c   : > { %1591 = vmatmul.f32.gmra.mxu2 %v4098_v38 }
 0x131   : > { %1223 = vmatmul.f32.gmra.mxu0 %v5898_v25  ;;  %v5923_v25 = vrot.slane %v4057_v44, 2 }
 0x132   : > { %1449 = vmatmul.f32.gmra.mxu1 %v4795_v15  ;;  %1737 = vmatmul.f32.gmra.mxu3 %v4629_v56  ;;  %v5915_v15 = vrot.slane %v4404_v59, 2 }
 0x134   : > { %1594 = vmatmul.f32.gmra.mxu2 %v5903_v41  ;;  %v4801_v3 = vpop.f32.mrf.mxu0  ;;  %v4803_v20 = vpop.f32.mrf.mxu1 }
 0x135   : > { %v4805_v63 = vpop.f32.mrf.mxu2 }
 0x136   : > { %5904 = vst [vmem:[#allocation64_spill] sm:$0xff] %v4805_v63 }
 0x139   : > { %1226 = vmatmul.f32.gmra.mxu0 %v4098_v38 }
 0x13a   : > { %1452 = vmatmul.f32.gmra.mxu1 %v5905_v53  ;;  %1740 = vmatmul.f32.gmra.mxu3 %v5906_v0 }
 0x13b   : > { %v4812_v11 = vpop.f32.mrf.mxu3 }
 0x13c   : > { %1597 = vmatmul.f32.gmra.mxu2 %v4250_v6  ;;  %5907 = vst [vmem:[#allocation65_spill] sm:$0xff] %v4812_v11  ;;  %v4814_v49 = vpop.f32.mrf.mxu0  ;;  %v4816_v46 = vpop.f32.mrf.mxu1 }
 0x13d   : > { %v4818_v62 = vpop.f32.mrf.mxu2 }
 0x141   : > { %1229 = vmatmul.f32.gmra.mxu0 %v5903_v41 }
 0x142   : > { %1455 = vmatmul.f32.gmra.mxu1 %v4823_v5  ;;  %1743 = vmatmul.f32.gmra.mxu3 %v5910_v23 }
 0x143   : > { %v4829_v60 = vpop.f32.mrf.mxu3 }
 0x144   : > { %1600 = vmatmul.f32.gmra.mxu2 %v5911_v52  ;;  %5912 = vst [vmem:[#allocation67_spill] sm:$0xff] %v4829_v60  ;;  %v4831_v10 = vpop.f32.mrf.mxu0  ;;  %v4833_v17 = vpop.f32.mrf.mxu1 }
 0x145   : > { %v4835_v63 = vpop.f32.mrf.mxu2 }
 0x149   : > { %1232 = vmatmul.f32.gmra.mxu0 %v4250_v6  ;;  %v4853_v6 = vsel %vm1296_vm1, %v1327_v43, %v5915_v15  ;;  %v5920_v15 = vld [vmem:[#allocation40_spill] sm:$0xff]  ;;  %v5921_v43 = vld [vmem:[#allocation14_spill] sm:$0xff] }
 0x14a   : > { %1458 = vmatmul.f32.gmra.mxu1 %v4475_v48  ;;  %1746 = vmatmul.f32.gmra.mxu3 %v5913_v30  ;;  %5916 = vst [vmem:[#allocation69_spill] sm:$0xff] %v4853_v6  ;;  %v5917_v48 = vld [vmem:[#allocation6_spill] sm:$0xff] }
 0x14b   : > { %v4842_v5 = vpop.f32.mrf.mxu3  ;;  %v5918_v30 = vld [vmem:[#allocation2_spill] sm:$0xff] }
 0x14c   : > { %1603 = vmatmul.f32.gmra.mxu2 %v4404_v59  ;;  %5914 = vst [vmem:[#allocation68_spill] sm:$0xff] %v4842_v5  ;;  %v4844_v53 = vpop.f32.mrf.mxu0  ;;  %v4846_v60 = vpop.f32.mrf.mxu1 }
 0x14d   : > { %v4848_v41 = vpop.f32.mrf.mxu2 }
 0x151   : > { %1235 = vmatmul.f32.gmra.mxu0 %v5911_v52 }
 0x152   : > { %1461 = vmatmul.f32.gmra.mxu1 %v4853_v6  ;;  %1749 = vmatmul.f32.gmra.mxu3 %v5917_v48  ;;  %v1332_v6 = vrot.slane %v5918_v30, 2 }
 0x153   : > { %v4859_v5 = vpop.f32.mrf.mxu3 }
 0x154   : > { %1606 = vmatmul.f32.gmra.mxu2 %v5918_v30  ;;  %5919 = vst [vmem:[#allocation70_spill] sm:$0xff] %v4859_v5  ;;  %v4861_v11 = vpop.f32.mrf.mxu0 }
 0x155   : > { %v4863_v38 = vpop.f32.mrf.mxu1  ;;  %v4865_v29 = vpop.f32.mrf.mxu2 }
 0x159   : > { %1238 = vmatmul.f32.gmra.mxu0 %v4404_v59  ;;  %v4883_v59 = vsel %vm1296_vm1, %v1332_v6, %v5923_v25 }
 0x15a   : > { %1464 = vmatmul.f32.gmra.mxu1 %v5920_v15  ;;  %1752 = vmatmul.f32.gmra.mxu3 %v5921_v43  ;;  %5924 = vst [vmem:[#allocation72_spill] sm:$0xff] %v4883_v59  ;;  %v5925_v15 = vld [vmem:[#allocation8_spill] sm:$0xff] }
 0x15b   : > { %v4872_v52 = vpop.f32.mrf.mxu3  ;;  %v1337_v6 = vrot.slane %v5925_v15, 2 }
 0x15c   : > { %1609 = vmatmul.f32.gmra.mxu2 %v4057_v44  ;;  %5922 = vst [vmem:[#allocation71_spill] sm:$0xff] %v4872_v52 }
 0x15d   : > { %v4874_v48 = vpop.f32.mrf.mxu0  ;;  %v4876_v5 = vpop.f32.mrf.mxu1 }
 0x15e   : > { %v4878_v23 = vpop.f32.mrf.mxu2 }
 0x161   : > { %1241 = vmatmul.f32.gmra.mxu0 %v5918_v30 }
 0x162   : > { %1467 = vmatmul.f32.gmra.mxu1 %v4883_v59  ;;  %1755 = vmatmul.f32.gmra.mxu3 %v4512_v27 }
 0x164   : > { %1612 = vmatmul.f32.gmra.mxu2 %v5925_v15  ;;  %v4889_v52 = vpop.f32.mrf.mxu3 }
 0x165   : > { %5926 = vst [vmem:[#allocation8_spill] sm:$0xff] %v4889_v52 }
 0x166   : > { %v4891_v43 = vpop.f32.mrf.mxu0  ;;  %v4893_v13 = vpop.f32.mrf.mxu1 }
 0x167   : > { %v4895_v0 = vpop.f32.mrf.mxu2 }
 0x168   : > { %5927 = vst [vmem:[#allocation73_spill] sm:$0xff] %v4895_v0  ;;  %v5933_v0 = vld [vmem:[#allocation7_spill] sm:$0xff] }
 0x169   : > { %1244 = vmatmul.f32.gmra.mxu0 %v4057_v44  ;;  %v4910_v44 = vsel %vm1296_vm1, %v1337_v6, %v5930_v9  ;;  %v5935_v9 = vld [vmem:[#allocation48_spill] sm:$0xff] }
 0x16a   : > { %1470 = vmatmul.f32.gmra.mxu1 %v4505_v51  ;;  %1758 = vmatmul.f32.gmra.mxu3 %v4634_v24  ;;  %5931 = vst [vmem:[#allocation76_spill] sm:$0xff] %v4910_v44  ;;  %v5932_v24 = vld [vmem:[#allocation5_spill] sm:$0xff] }
 0x16c   : > { %1615 = vmatmul.f32.gmra.mxu2 %v4200_v2 }
 0x16d   : > { %v4902_v25 = vpop.f32.mrf.mxu3 }
 0x16e   : > { %5928 = vst [vmem:[#allocation74_spill] sm:$0xff] %v4902_v25  ;;  %v1200_v59 = vpop.f32.mrf.mxu0 }
 0x16f   : > { %v1426_v52 = vpop.f32.mrf.mxu1  ;;  %v1201_v30 = vadd.f32 %v1200_v59, %v4801_v3  ;;  %v4905_v27 = vpop.f32.mrf.mxu2 }
 0x170   : > { %5929 = vst [vmem:[#allocation75_spill] sm:$0xff] %v4905_v27 }
 0x171   : > { %v1522_v51 = vadd.f32 %v1426_v52, %v1201_v30  ;;  %1247 = vmatmul.f32.gmra.mxu0 %v5925_v15  ;;  %v1342_v52 = vrot.slane %v5933_v0, 2 }
 0x172   : > { %1473 = vmatmul.f32.gmra.mxu1 %v4910_v44  ;;  %1761 = vmatmul.f32.gmra.mxu3 %v5932_v24 }
 0x174   : > { %1618 = vmatmul.f32.gmra.mxu2 %v5933_v0 }
 0x175   : > { %v4916_v25 = vpop.f32.mrf.mxu3 }
 0x176   : > { %5934 = vst [vmem:[#allocation5_spill] sm:$0xff] %v4916_v25  ;;  %v1203_v45 = vpop.f32.mrf.mxu0 }
 0x177   : > { %v1429_v59 = vpop.f32.mrf.mxu1  ;;  %v1204_v3 = vadd.f32 %v1203_v45, %v4814_v49  ;;  %v1571_v27 = vpop.f32.mrf.mxu2 }
 0x178   : > { %v1667_v16 = vadd.f32 %v1571_v27, %v1522_v51  ;;  %v5937_v51 = vrot.slane %v4362_v8, 2 }
 0x179   : > { %v1523_v56 = vadd.f32 %v1429_v59, %v1204_v3  ;;  %1250 = vmatmul.f32.gmra.mxu0 %v4200_v2  ;;  %v5939_v3 = vld [vmem:[#allocation4_spill] sm:$0xff] }
 0x17a   : > { %1476 = vmatmul.f32.gmra.mxu1 %v4527_v33  ;;  %1764 = vmatmul.f32.gmra.mxu3 %v5935_v9  ;;  %v4930_v27 = vsel %vm1296_vm1, %v1342_v52, %v5937_v51 }
 0x17b   : > { %5938 = vst [vmem:[#allocation77_spill] sm:$0xff] %v4930_v27 }
 0x17c   : > { %1621 = vmatmul.f32.gmra.mxu2 %v4362_v8 }
 0x17d   : > { %v4924_v30 = vpop.f32.mrf.mxu3 }
 0x17e   : > { %5936 = vst [vmem:[#allocation48_spill] sm:$0xff] %v4924_v30  ;;  %v1206_v6 = vpop.f32.mrf.mxu0 }
 0x17f   : > { %v1432_v44 = vpop.f32.mrf.mxu1  ;;  %v1207_v25 = vadd.f32 %v1206_v6, %v4831_v10  ;;  %v1574_v45 = vpop.f32.mrf.mxu2 }
 0x180   : > { %v1668_v49 = vadd.f32 %v1574_v45, %v1523_v56 }
 0x181   : > { %v1524_v59 = vadd.f32 %v1432_v44, %v1207_v25  ;;  %1253 = vmatmul.f32.gmra.mxu0 %v5933_v0  ;;  %v5941_v44 = vld [vmem:[#allocation16_spill] sm:$0xff]  ;;  %v1347_v25 = vrot.slane %v4563_v40, 2 }
 0x182   : > { %1479 = vmatmul.f32.gmra.mxu1 %v4930_v27  ;;  %1767 = vmatmul.f32.gmra.mxu3 %v5939_v3 }
 0x184   : > { %1624 = vmatmul.f32.gmra.mxu2 %v4563_v40 }
 0x185   : > { %v4936_v33 = vpop.f32.mrf.mxu3 }
 0x186   : > { %5940 = vst [vmem:[#allocation4_spill] sm:$0xff] %v4936_v33  ;;  %v1209_v30 = vpop.f32.mrf.mxu0 }
 0x187   : > { %v1435_v10 = vpop.f32.mrf.mxu1  ;;  %v1210_v56 = vadd.f32 %v1209_v30, %v4844_v53  ;;  %v1577_v6 = vpop.f32.mrf.mxu2 }
 0x188   : > { %v1669_v45 = vadd.f32 %v1577_v6, %v1524_v59  ;;  %v5943_v59 = vrot.slane %v4048_v21, 2  ;;  %v5944_v6 = vld [vmem:[#allocation15_spill] sm:$0xff] }
 0x189   : > { %v1525_v2 = vadd.f32 %v1435_v10, %v1210_v56  ;;  %1256 = vmatmul.f32.gmra.mxu0 %v4362_v8 }
 0x18a   : > { %1482 = vmatmul.f32.gmra.mxu1 %v4542_v35  ;;  %1770 = vmatmul.f32.gmra.mxu3 %v5941_v44  ;;  %v4950_v10 = vsel %vm1296_vm1, %v1347_v25, %v5943_v59  ;;  %v5945_v35 = vld [vmem:[#allocation33_spill] sm:$0xff] }
 0x18c   : > { %1627 = vmatmul.f32.gmra.mxu2 %v4048_v21 }
 0x18d   : > { %v4944_v52 = vpop.f32.mrf.mxu3 }
 0x18e   : > { %5942 = vst [vmem:[#allocation16_spill] sm:$0xff] %v4944_v52  ;;  %v1212_v51 = vpop.f32.mrf.mxu0 }
 0x18f   : > { %v1438_v27 = vpop.f32.mrf.mxu1  ;;  %v1213_v33 = vadd.f32 %v1212_v51, %v4861_v11  ;;  %v1580_v53 = vpop.f32.mrf.mxu2 }
 0x190   : > { %v1670_v30 = vadd.f32 %v1580_v53, %v1525_v2 }
 0x191   : > { %v1526_v56 = vadd.f32 %v1438_v27, %v1213_v33  ;;  %1259 = vmatmul.f32.gmra.mxu0 %v4563_v40  ;;  %v1352_v33 = vrot.slane %v5945_v35, 2 }
 0x192   : > { %1485 = vmatmul.f32.gmra.mxu1 %v4950_v10  ;;  %1773 = vmatmul.f32.gmra.mxu3 %v5944_v6 }
 0x194   : > { %1630 = vmatmul.f32.gmra.mxu2 %v5945_v35 }
 0x195   : > { %v1726_v52 = vpop.f32.mrf.mxu3 }
 0x196   : > { %v4956_v8 = vadd.f32 %v1726_v52, %v1667_v16  ;;  %v1215_v11 = vpop.f32.mrf.mxu0 }
 0x197   : > { %v1441_v51 = vpop.f32.mrf.mxu1  ;;  %v1216_v2 = vadd.f32 %v1215_v11, %v4874_v48  ;;  %v1583_v53 = vpop.f32.mrf.mxu2 }
 0x198   : > { %5946 = vst [vmem:[#allocation15_spill] sm:$0xff] %v4956_v8  ;;  %v1671_v0 = vadd.f32 %v1583_v53, %v1526_v56 }
 0x199   : > { %v1527_v25 = vadd.f32 %v1441_v51, %v1216_v2  ;;  %1262 = vmatmul.f32.gmra.mxu0 %v4048_v21  ;;  %v5948_v51 = vrot.slane %v4105_v1, 2 }
 0x19a   : > { %1488 = vmatmul.f32.gmra.mxu1 %v4554_v32  ;;  %1776 = vmatmul.f32.gmra.mxu3 %v4560_v12 }
 0x19b   : > { %v4970_v2 = vsel %vm1296_vm1, %v1352_v33, %v5948_v51  ;;  %v5952_v33 = vld [vmem:[#allocation31_spill] sm:$0xff] }
 0x19c   : > { %1633 = vmatmul.f32.gmra.mxu2 %v4105_v1  ;;  %5949 = vst [vmem:[#allocation78_spill] sm:$0xff] %v4970_v2 }
 0x19d   : > { %v1729_v27 = vpop.f32.mrf.mxu3 }
 0x19e   : > { %v4964_v16 = vadd.f32 %v1729_v27, %v1668_v49  ;;  %v1218_v52 = vpop.f32.mrf.mxu0  ;;  %v5950_v49 = vld [vmem:[#allocation35_spill] sm:$0xff] }
 0x19f   : > { %v1444_v59 = vpop.f32.mrf.mxu1  ;;  %v1219_v48 = vadd.f32 %v1218_v52, %v4891_v43  ;;  %v1586_v11 = vpop.f32.mrf.mxu2  ;;  %v1357_v51 = vrot.slane %v5950_v49, 2 }
 0x1a0   : > { %5947 = vst [vmem:[#allocation33_spill] sm:$0xff] %v4964_v16  ;;  %v1672_v56 = vadd.f32 %v1586_v11, %v1527_v25 }
 0x1a1   : > { %v1528_v53 = vadd.f32 %v1444_v59, %v1219_v48  ;;  %1265 = vmatmul.f32.gmra.mxu0 %v5945_v35  ;;  %v5953_v48 = vld [vmem:[#allocation3_spill] sm:$0xff] }
 0x1a2   : > { %1491 = vmatmul.f32.gmra.mxu1 %v4970_v2  ;;  %1779 = vmatmul.f32.gmra.mxu3 %v4665_v37 }
 0x1a4   : > { %1636 = vmatmul.f32.gmra.mxu2 %v5950_v49 }
 0x1a5   : > { %v1732_v27 = vpop.f32.mrf.mxu3 }
 0x1a6   : > { %v4976_v16 = vadd.f32 %v1732_v27, %v1669_v45  ;;  %v1221_v43 = vpop.f32.mrf.mxu0 }
 0x1a7   : > { %v1447_v52 = vpop.f32.mrf.mxu1  ;;  %v1589_v25 = vpop.f32.mrf.mxu2  ;;  %v1222_v59 = vadd.f32 %v1221_v43, %v4803_v20  ;;  %v5956_v43 = vld [vmem:[#allocation42_spill] sm:$0xff] }
 0x1a8   : > { %5951 = vst [vmem:[#allocation35_spill] sm:$0xff] %v4976_v16  ;;  %v1673_v11 = vadd.f32 %v1589_v25, %v1528_v53  ;;  %v5955_v25 = vrot.slane %v4266_v50, 2 }
 0x1a9   : > { %1268 = vmatmul.f32.gmra.mxu0 %v4105_v1  ;;  %v1529_v8 = vadd.f32 %v1447_v52, %v1222_v59  ;;  %v5957_v52 = vld [vmem:[#allocation32_spill] sm:$0xff] }
 0x1aa   : > { %1494 = vmatmul.f32.gmra.mxu1 %v5952_v33  ;;  %1782 = vmatmul.f32.gmra.mxu3 %v5953_v48  ;;  %v4989_v33 = vsel %vm1296_vm1, %v1357_v51, %v5955_v25  ;;  %v5959_v25 = vld [vmem:[#allocation28_spill] sm:$0xff] }
 0x1ac   : > { %1639 = vmatmul.f32.gmra.mxu2 %v4266_v50 }
 0x1ad   : > { %v1735_v2 = vpop.f32.mrf.mxu3 }
 0x1ae   : > { %v4984_v45 = vadd.f32 %v1735_v2, %v1670_v30  ;;  %v1224_v27 = vpop.f32.mrf.mxu0 }
 0x1af   : > { %v1450_v16 = vpop.f32.mrf.mxu1  ;;  %v1592_v32 = vpop.f32.mrf.mxu2  ;;  %v1225_v20 = vadd.f32 %v1224_v27, %v4816_v46  ;;  %v1362_v46 = vrot.slane %v5957_v52, 2 }
 0x1b0   : > { %5954 = vst [vmem:[#allocation3_spill] sm:$0xff] %v4984_v45  ;;  %v1674_v53 = vadd.f32 %v1592_v32, %v1529_v8 }
 0x1b1   : > { %1271 = vmatmul.f32.gmra.mxu0 %v5950_v49  ;;  %v1530_v2 = vadd.f32 %v1450_v16, %v1225_v20 }
 0x1b2   : > { %1497 = vmatmul.f32.gmra.mxu1 %v4989_v33  ;;  %1785 = vmatmul.f32.gmra.mxu3 %v5956_v43 }
 0x1b4   : > { %1642 = vmatmul.f32.gmra.mxu2 %v5957_v52 }
 0x1b5   : > { %v1738_v30 = vpop.f32.mrf.mxu3 }
 0x1b6   : > { %v4996_v59 = vadd.f32 %v1738_v30, %v1671_v0  ;;  %v1227_v8 = vpop.f32.mrf.mxu0 }
 0x1b7   : > { %v1453_v32 = vpop.f32.mrf.mxu1  ;;  %v1595_v45 = vpop.f32.mrf.mxu2  ;;  %v1228_v51 = vadd.f32 %v1227_v8, %v4833_v17  ;;  %v5963_v8 = vld [vmem:[#allocation12_spill] sm:$0xff] }
 0x1b8   : > { %5958 = vst [vmem:[#allocation42_spill] sm:$0xff] %v4996_v59  ;;  %v1675_v1 = vadd.f32 %v1595_v45, %v1530_v2  ;;  %v5961_v2 = vrot.slane %v4447_v61, 2 }
 0x1b9   : > { %1274 = vmatmul.f32.gmra.mxu0 %v4266_v50  ;;  %v1531_v16 = vadd.f32 %v1453_v32, %v1228_v51 }
 0x1ba   : > { %1500 = vmatmul.f32.gmra.mxu1 %v4589_v54  ;;  %1788 = vmatmul.f32.gmra.mxu3 %v5959_v25  ;;  %v5009_v54 = vsel %vm1296_vm1, %v1362_v46, %v5961_v2  ;;  %v5965_v46 = vld [vmem:[#allocation38_spill] sm:$0xff] }
 0x1bb   : > { %5962 = vst [vmem:[#allocation28_spill] sm:$0xff] %v5009_v54 }
 0x1bc   : > { %1645 = vmatmul.f32.gmra.mxu2 %v4447_v61 }
 0x1bd   : > { %v1741_v27 = vpop.f32.mrf.mxu3 }
 0x1be   : > { %v5004_v0 = vadd.f32 %v1741_v27, %v1672_v56  ;;  %v1230_v20 = vpop.f32.mrf.mxu0 }
 0x1bf   : > { %v1456_v30 = vpop.f32.mrf.mxu1  ;;  %v1598_v59 = vpop.f32.mrf.mxu2  ;;  %v1231_v17 = vadd.f32 %v1230_v20, %v4846_v60  ;;  %v1367_v60 = vrot.slane %v4596_v7, 2 }
 0x1c0   : > { %5960 = vst [vmem:[#allocation32_spill] sm:$0xff] %v5004_v0  ;;  %v1676_v45 = vadd.f32 %v1598_v59, %v1531_v16 }
 0x1c1   : > { %1277 = vmatmul.f32.gmra.mxu0 %v5957_v52  ;;  %v1532_v32 = vadd.f32 %v1456_v30, %v1231_v17 }
 0x1c2   : > { %1503 = vmatmul.f32.gmra.mxu1 %v5009_v54  ;;  %1791 = vmatmul.f32.gmra.mxu3 %v5963_v8  ;;  %v5966_v54 = vld [vmem:[#allocation11_spill] sm:$0xff] }
 0x1c4   : > { %1648 = vmatmul.f32.gmra.mxu2 %v4596_v7 }
 0x1c5   : > { %v1744_v56 = vpop.f32.mrf.mxu3 }
 0x1c6   : > { %v5016_v51 = vadd.f32 %v1744_v56, %v1673_v11  ;;  %v1233_v59 = vpop.f32.mrf.mxu0 }
 0x1c7   : > { %v1459_v27 = vpop.f32.mrf.mxu1  ;;  %v1601_v16 = vpop.f32.mrf.mxu2  ;;  %v1234_v2 = vadd.f32 %v1233_v59, %v4863_v38  ;;  %v5970_v59 = vld [vmem:[#allocation46_spill] sm:$0xff] }
 0x1c8   : > { %5964 = vst [vmem:[#allocation12_spill] sm:$0xff] %v5016_v51  ;;  %v1677_v0 = vadd.f32 %v1601_v16, %v1532_v32  ;;  %v5968_v16 = vrot.slane %v4306_v22, 2 }
 0x1c9   : > { %1280 = vmatmul.f32.gmra.mxu0 %v4447_v61  ;;  %v1533_v30 = vadd.f32 %v1459_v27, %v1234_v2 }
 0x1ca   : > { %1506 = vmatmul.f32.gmra.mxu1 %v5965_v46  ;;  %1794 = vmatmul.f32.gmra.mxu3 %v5966_v54  ;;  %v5029_v46 = vsel %vm1296_vm1, %v1367_v60, %v5968_v16  ;;  %v5972_v60 = vld [vmem:[#allocation39_spill] sm:$0xff] }
 0x1cb   : > { %5969 = vst [vmem:[#allocation79_spill] sm:$0xff] %v5029_v46 }
 0x1cc   : > { %1651 = vmatmul.f32.gmra.mxu2 %v4306_v22 }
 0x1cd   : > { %v1747_v20 = vpop.f32.mrf.mxu3 }
 0x1ce   : > { %v5024_v11 = vadd.f32 %v1747_v20, %v1674_v53  ;;  %v1236_v17 = vpop.f32.mrf.mxu0 }
 0x1cf   : > { %v1462_v56 = vpop.f32.mrf.mxu1  ;;  %v1604_v51 = vpop.f32.mrf.mxu2  ;;  %v1237_v38 = vadd.f32 %v1236_v17, %v4876_v5  ;;  %v1372_v5 = vrot.slane %v4368_v4, 2 }
 0x1d0   : > { %5967 = vst [vmem:[#allocation11_spill] sm:$0xff] %v5024_v11  ;;  %v1678_v32 = vadd.f32 %v1604_v51, %v1533_v30 }
 0x1d1   : > { %1283 = vmatmul.f32.gmra.mxu0 %v4596_v7  ;;  %v1534_v27 = vadd.f32 %v1462_v56, %v1237_v38 }
 0x1d2   : > { %1509 = vmatmul.f32.gmra.mxu1 %v5029_v46  ;;  %1797 = vmatmul.f32.gmra.mxu3 %v5970_v59  ;;  %v5973_v46 = vld [vmem:[#allocation47_spill] sm:$0xff] }
 0x1d4   : > { %1654 = vmatmul.f32.gmra.mxu2 %v4368_v4 }
 0x1d5   : > { %v1750_v53 = vpop.f32.mrf.mxu3 }
 0x1d6   : > { %v5036_v2 = vadd.f32 %v1750_v53, %v1675_v1  ;;  %v1239_v51 = vpop.f32.mrf.mxu0 }
 0x1d7   : > { %v1465_v20 = vpop.f32.mrf.mxu1  ;;  %v1607_v30 = vpop.f32.mrf.mxu2  ;;  %v1240_v16 = vadd.f32 %v1239_v51, %v4893_v13  ;;  %v5977_v51 = vld [vmem:[#allocation44_spill] sm:$0xff] }
 0x1d8   : > { %5971 = vst [vmem:[#allocation46_spill] sm:$0xff] %v5036_v2  ;;  %v1679_v11 = vadd.f32 %v1607_v30, %v1534_v27  ;;  %v5975_v30 = vrot.slane %v4375_v26, 2 }
 0x1d9   : > { %1286 = vmatmul.f32.gmra.mxu0 %v4306_v22  ;;  %v1535_v56 = vadd.f32 %v1465_v20, %v1240_v16 }
 0x1da   : > { %1512 = vmatmul.f32.gmra.mxu1 %v5972_v60  ;;  %1800 = vmatmul.f32.gmra.mxu3 %v5973_v46  ;;  %v5049_v60 = vsel %vm1296_vm1, %v1372_v5, %v5975_v30  ;;  %v5978_v5 = vld [vmem:[#allocation50_spill] sm:$0xff] }
 0x1db   : > { %5976 = vst [vmem:[#allocation80_spill] sm:$0xff] %v5049_v60 }
 0x1dc   : > { %1657 = vmatmul.f32.gmra.mxu2 %v4375_v26 }
 0x1dd   : > { %v1753_v17 = vpop.f32.mrf.mxu3 }
 0x1de   : > { %v5044_v1 = vadd.f32 %v1753_v17, %v1676_v45  ;;  %v1242_v38 = vpop.f32.mrf.mxu0 }
 0x1df   : > { %v1468_v53 = vpop.f32.mrf.mxu1  ;;  %v1610_v2 = vpop.f32.mrf.mxu2  ;;  %v1243_v13 = vadd.f32 %v1242_v38, %v4818_v62 }
 0x1e0   : > { %5974 = vst [vmem:[#allocation47_spill] sm:$0xff] %v5044_v1  ;;  %v1680_v27 = vadd.f32 %v1610_v2, %v1535_v56 }
 0x1e1   : > { %1289 = vmatmul.f32.gmra.mxu0 %v4368_v4  ;;  %v1536_v20 = vadd.f32 %v1468_v53, %v1243_v13 }
 0x1e2   : > { %1515 = vmatmul.f32.gmra.mxu1 %v5049_v60  ;;  %1803 = vmatmul.f32.gmra.mxu3 %v4706_v14 }
 0x1e4   : > { %1660 = vmatmul.f32.gmra.mxu2 %v5977_v51 }
 0x1e5   : > { %v1756_v45 = vpop.f32.mrf.mxu3 }
 0x1e6   : > { %v5056_v16 = vadd.f32 %v1756_v45, %v1677_v0  ;;  %v1245_v2 = vpop.f32.mrf.mxu0 }
 0x1e7   : > { %v1471_v17 = vpop.f32.mrf.mxu1  ;;  %v1613_v56 = vpop.f32.mrf.mxu2  ;;  %v1246_v30 = vadd.f32 %v1245_v2, %v4835_v63 }
 0x1e8   : > { %v1681_v1 = vadd.f32 %v1613_v56, %v1536_v20 }
 0x1e9   : > { %1292 = vmatmul.f32.gmra.mxu0 %v4375_v26  ;;  %v1537_v38 = vadd.f32 %v1471_v17, %v1246_v30 }
 0x1ea   : > { %1518 = vmatmul.f32.gmra.mxu1 %v5978_v5  ;;  %1806 = vmatmul.f32.gmra.mxu3 %v4397_v57 }
 0x1ec   : > { %1663 = vmatmul.f32.gmra.mxu2 %v4621_v58 }
 0x1ed   : > { %v1759_v62 = vpop.f32.mrf.mxu3 }
 0x1ee   : > { %v5063_v60 = vadd.f32 %v1759_v62, %v1678_v32  ;;  %v1248_v0 = vpop.f32.mrf.mxu0 }
 0x1ef   : > { %v1474_v53 = vpop.f32.mrf.mxu1  ;;  %v1616_v13 = vpop.f32.mrf.mxu2  ;;  %v1249_v20 = vadd.f32 %v1248_v0, %v4848_v41 }
 0x1f0   : > { %v1682_v45 = vadd.f32 %v1616_v13, %v1537_v38 }
 0x1f1   : > { %1877 = vmatmul.f32.vlgmr.msrb.gmra.mxu0 %v4736_v47  ;;  %v1538_v2 = vadd.f32 %v1474_v53, %v1249_v20 }
 0x1f2   : > { %2022 = vmatmul.f32.vlgmr.msrb.gmra.mxu1 %v4302_v34  ;;  %1809 = vmatmul.f32.gmra.mxu3 %v4741_v18 }
 0x1f4   : > { %2177 = vmatmul.f32.vlgmr.msrb.gmra.mxu2 %v4413_v42  ;;  %v1702_v42 = vrot.slane %v5977_v51, 1 }
 0x1f5   : > { %v1762_v63 = vpop.f32.mrf.mxu3 }
 0x1f6   : > { %v5070_v56 = vadd.f32 %v1762_v63, %v1679_v11  ;;  %v1251_v32 = vpop.f32.mrf.mxu0 }
 0x1f7   : > { %v1477_v17 = vpop.f32.mrf.mxu1  ;;  %v1619_v30 = vpop.f32.mrf.mxu2  ;;  %v1252_v34 = vadd.f32 %v1251_v32, %v4865_v29  ;;  %v5980_v29 = vld [vmem:[#allocation45_spill] sm:$0xff] }
 0x1f8   : > { %v1683_v62 = vadd.f32 %v1619_v30, %v1538_v2 }
 0x1f9   : > { %1880 = vmatmul.f32.gmra.mxu0 %v4751_v55  ;;  %v1539_v41 = vadd.f32 %v1477_v17, %v1252_v34  ;;  %v5979_v55 = vrot.slane %v4621_v58, 1  ;;  %v5982_v34 = vld [vmem:[#allocation54_spill] sm:$0xff] }
 0x1fa   : > { %2025 = vmatmul.f32.gmra.mxu1 %v4314_v19  ;;  %1812 = vmatmul.f32.gmra.mxu3 %v4437_v28 }
 0x1fb   : > { %v5083_v19 = vsel %vm957_vm0, %v1702_v42, %v5979_v55  ;;  %v5984_v42 = vld [vmem:[#allocation73_spill] sm:$0xff] }
 0x1fc   : > { %2180 = vmatmul.f32.gmra.mxu2 %v4494_v36 }
 0x1fd   : > { %v1765_v47 = vpop.f32.mrf.mxu3 }
 0x1fe   : > { %v5078_v11 = vadd.f32 %v1765_v47, %v1680_v27  ;;  %v1254_v38 = vpop.f32.mrf.mxu0  ;;  %v5983_v47 = vld [vmem:[#allocation18_spill] sm:$0xff] }
 0x1ff   : > { %v1480_v0 = vpop.f32.mrf.mxu1  ;;  %v1622_v53 = vpop.f32.mrf.mxu2  ;;  %v1255_v36 = vadd.f32 %v1254_v38, %v4878_v23  ;;  %v5986_v23 = vld [vmem:[#allocation27_spill] sm:$0xff] }
 0x200   : > { %v1684_v13 = vadd.f32 %v1622_v53, %v1539_v41  ;;  %v5985_v41 = vld [vmem:[#allocation56_spill] sm:$0xff] }
 0x201   : > { %1883 = vmatmul.f32.gmra.mxu0 %v4760_v39  ;;  %v1540_v20 = vadd.f32 %v1480_v0, %v1255_v36 }
 0x202   : > { %2028 = vmatmul.f32.gmra.mxu1 %v4497_v31  ;;  %1815 = vmatmul.f32.gmra.mxu3 %v5083_v19 }
 0x204   : > { %2183 = vmatmul.f32.gmra.mxu2 %v5980_v29 }
 0x205   : > { %v1768_v27 = vpop.f32.mrf.mxu3 }
 0x206   : > { %v5090_v63 = vadd.f32 %v1768_v27, %v1681_v1  ;;  %v1257_v2 = vpop.f32.mrf.mxu0  ;;  %v5988_v27 = vld [vmem:[#allocation62_spill] sm:$0xff] }
 0x207   : > { %v1483_v32 = vpop.f32.mrf.mxu1  ;;  %v1625_v17 = vpop.f32.mrf.mxu2  ;;  %v1258_v31 = vadd.f32 %v1257_v2, %v5984_v42  ;;  %v5991_v2 = vld [vmem:[#allocation36_spill] sm:$0xff] }
 0x208   : > { %5981 = vst [vmem:[#allocation44_spill] sm:$0xff] %v5090_v63  ;;  %v1685_v30 = vadd.f32 %v1625_v17, %v1540_v20  ;;  %v5989_v20 = vld [vmem:[#allocation34_spill] sm:$0xff]  ;;  %v5990_v17 = vld [vmem:[#allocation75_spill] sm:$0xff] }
 0x209   : > { %1886 = vmatmul.f32.gmra.mxu0 %v5982_v34  ;;  %v1541_v53 = vadd.f32 %v1483_v32, %v1258_v31 }
 0x20a   : > { %2031 = vmatmul.f32.gmra.mxu1 %v5983_v47  ;;  %1818 = vmatmul.f32.gmra.mxu3 %v5985_v41 }
 0x20c   : > { %2186 = vmatmul.f32.gmra.mxu2 %v5986_v23 }
 0x20d   : > { %v1771_v38 = vpop.f32.mrf.mxu3 }
 0x20e   : > { %v5097_v55 = vadd.f32 %v1771_v38, %v1682_v45  ;;  %v1260_v1 = vpop.f32.mrf.mxu0 }
 0x20f   : > { %v1486_v0 = vpop.f32.mrf.mxu1  ;;  %v1628_v36 = vpop.f32.mrf.mxu2  ;;  %v1261_v47 = vadd.f32 %v1260_v1, %v5990_v17  ;;  %v5996_v1 = vld [vmem:[#allocation49_spill] sm:$0xff] }
 0x210   : > { %5987 = vst [vmem:[#allocation50_spill] sm:$0xff] %v5097_v55  ;;  %v1686_v29 = vadd.f32 %v1628_v36, %v1541_v53  ;;  %v5993_v55 = vld [vmem:[#allocation25_spill] sm:$0xff] }
 0x211   : > { %1889 = vmatmul.f32.gmra.mxu0 %v5988_v27  ;;  %v1542_v23 = vadd.f32 %v1486_v0, %v1261_v47  ;;  %v5994_v53 = vld [vmem:[#allocation29_spill] sm:$0xff] }
 0x212   : > { %2034 = vmatmul.f32.gmra.mxu1 %v5989_v20  ;;  %2329 = vmatmul.f32.vlgmr.msra.gmra.mxu3 %v4760_v39  ;;  %v5995_v36 = vld [vmem:[#allocation65_spill] sm:$0xff] }
 0x214   : > { %2189 = vmatmul.f32.gmra.mxu2 %v5991_v2 }
 0x215   : > { %v1774_v42 = vpop.f32.mrf.mxu3 }
 0x216   : > { %v5104_v63 = vadd.f32 %v1774_v42, %v1683_v62  ;;  %v1263_v45 = vpop.f32.mrf.mxu0 }
 0x217   : > { %v1489_v32 = vpop.f32.mrf.mxu1  ;;  %v1631_v31 = vpop.f32.mrf.mxu2  ;;  %v1264_v20 = vadd.f32 %v1263_v45, %v5995_v36  ;;  %v6001_v45 = vld [vmem:[#allocation6_spill] sm:$0xff] }
 0x218   : > { %5992 = vst [vmem:[#allocation45_spill] sm:$0xff] %v5104_v63  ;;  %v1687_v38 = vadd.f32 %v1631_v31, %v1542_v23  ;;  %v5998_v63 = vld [vmem:[#allocation63_spill] sm:$0xff]  ;;  %v5999_v23 = vld [vmem:[#allocation13_spill] sm:$0xff] }
 0x219   : > { %1892 = vmatmul.f32.gmra.mxu0 %v5993_v55  ;;  %v1543_v17 = vadd.f32 %v1489_v32, %v1264_v20  ;;  %v6000_v31 = vld [vmem:[#allocation67_spill] sm:$0xff] }
 0x21a   : > { %2037 = vmatmul.f32.gmra.mxu1 %v5994_v53  ;;  %2332 = vmatmul.f32.gmra.mxu3 %v5982_v34 }
 0x21c   : > { %2192 = vmatmul.f32.gmra.mxu2 %v5996_v1 }
 0x21d   : > { %v1777_v39 = vpop.f32.mrf.mxu3 }
 0x21e   : > { %v5111_v2 = vadd.f32 %v1777_v39, %v1684_v13  ;;  %v1266_v62 = vpop.f32.mrf.mxu0 }
 0x21f   : > { %v1492_v0 = vpop.f32.mrf.mxu1  ;;  %v1634_v47 = vpop.f32.mrf.mxu2  ;;  %v1267_v53 = vadd.f32 %v1266_v62, %v6000_v31  ;;  %v6006_v62 = vld [vmem:[#allocation14_spill] sm:$0xff] }
 0x220   : > { %5997 = vst [vmem:[#allocation54_spill] sm:$0xff] %v5111_v2  ;;  %v1688_v42 = vadd.f32 %v1634_v47, %v1543_v17  ;;  %v6003_v2 = vld [vmem:[#allocation23_spill] sm:$0xff]  ;;  %v6005_v47 = vld [vmem:[#allocation68_spill] sm:$0xff] }
 0x221   : > { %1895 = vmatmul.f32.gmra.mxu0 %v5998_v63  ;;  %v1544_v36 = vadd.f32 %v1492_v0, %v1267_v53  ;;  %v6004_v17 = vld [vmem:[#allocation19_spill] sm:$0xff] }
 0x222   : > { %2040 = vmatmul.f32.gmra.mxu1 %v5999_v23  ;;  %2335 = vmatmul.f32.gmra.mxu3 %v5988_v27 }
 0x224   : > { %2195 = vmatmul.f32.gmra.mxu2 %v6001_v45 }
 0x225   : > { %v1780_v34 = vpop.f32.mrf.mxu3 }
 0x226   : > { %v5118_v1 = vadd.f32 %v1780_v34, %v1685_v30  ;;  %v1269_v13 = vpop.f32.mrf.mxu0 }
 0x227   : > { %v1495_v32 = vpop.f32.mrf.mxu1  ;;  %v1637_v20 = vpop.f32.mrf.mxu2  ;;  %v1270_v23 = vadd.f32 %v1269_v13, %v6005_v47  ;;  %v6011_v13 = vld [vmem:[#allocation26_spill] sm:$0xff] }
 0x228   : > { %6002 = vst [vmem:[#allocation18_spill] sm:$0xff] %v5118_v1  ;;  %v1689_v39 = vadd.f32 %v1637_v20, %v1544_v36  ;;  %v6008_v1 = vld [vmem:[#allocation66_spill] sm:$0xff] }
 0x229   : > { %1898 = vmatmul.f32.gmra.mxu0 %v6003_v2  ;;  %v1545_v31 = vadd.f32 %v1495_v32, %v1270_v23  ;;  %v6009_v36 = vld [vmem:[#allocation22_spill] sm:$0xff] }
 0x22a   : > { %2043 = vmatmul.f32.gmra.mxu1 %v6004_v17  ;;  %2338 = vmatmul.f32.gmra.mxu3 %v5993_v55  ;;  %v6010_v20 = vld [vmem:[#allocation70_spill] sm:$0xff] }
 0x22c   : > { %2198 = vmatmul.f32.gmra.mxu2 %v6006_v62 }
 0x22d   : > { %v1783_v27 = vpop.f32.mrf.mxu3 }
 0x22e   : > { %v5125_v45 = vadd.f32 %v1783_v27, %v1686_v29  ;;  %v1272_v30 = vpop.f32.mrf.mxu0 }
 0x22f   : > { %v1498_v0 = vpop.f32.mrf.mxu1  ;;  %v1640_v53 = vpop.f32.mrf.mxu2  ;;  %v1273_v17 = vadd.f32 %v1272_v30, %v6010_v20  ;;  %v6016_v30 = vld [vmem:[#allocation52_spill] sm:$0xff] }
 0x230   : > { %6007 = vst [vmem:[#allocation73_spill] sm:$0xff] %v5125_v45  ;;  %v1690_v34 = vadd.f32 %v1640_v53, %v1545_v31  ;;  %v6013_v45 = vld [vmem:[#allocation17_spill] sm:$0xff]  ;;  %v6014_v31 = vld [vmem:[#allocation10_spill] sm:$0xff]  ;;  %v6015_v53 = vld [vmem:[#allocation71_spill] sm:$0xff] }
 0x231   : > { %1901 = vmatmul.f32.gmra.mxu0 %v6008_v1  ;;  %v1546_v47 = vadd.f32 %v1498_v0, %v1273_v17 }
 0x232   : > { %2046 = vmatmul.f32.gmra.mxu1 %v6009_v36  ;;  %2341 = vmatmul.f32.gmra.mxu3 %v5998_v63 }
 0x234   : > { %2201 = vmatmul.f32.gmra.mxu2 %v6011_v13 }
 0x235   : > { %v1786_v55 = vpop.f32.mrf.mxu3 }
 0x236   : > { %v5132_v62 = vadd.f32 %v1786_v55, %v1687_v38  ;;  %v1275_v29 = vpop.f32.mrf.mxu0 }
 0x237   : > { %v1501_v32 = vpop.f32.mrf.mxu1  ;;  %v1643_v23 = vpop.f32.mrf.mxu2  ;;  %v1276_v36 = vadd.f32 %v1275_v29, %v6015_v53 }
 0x238   : > { %6012 = vst [vmem:[#allocation56_spill] sm:$0xff] %v5132_v62  ;;  %v1691_v27 = vadd.f32 %v1643_v23, %v1546_v47  ;;  %v6017_v62 = vld [vmem:[#allocation69_spill] sm:$0xff]  ;;  %v6018_v47 = vld [vmem:[#allocation2_spill] sm:$0xff]  ;;  %v6019_v23 = vld [vmem:[#allocation8_spill] sm:$0xff] }
 0x239   : > { %1904 = vmatmul.f32.gmra.mxu0 %v6013_v45  ;;  %v1547_v20 = vadd.f32 %v1501_v32, %v1276_v36 }
 0x23a   : > { %2049 = vmatmul.f32.gmra.mxu1 %v6014_v31  ;;  %2344 = vmatmul.f32.gmra.mxu3 %v6003_v2 }
 0x23c   : > { %2204 = vmatmul.f32.gmra.mxu2 %v6016_v30 }
 0x23d   : > { %v1789_v63 = vpop.f32.mrf.mxu3 }
 0x23e   : > { %v5139_v13 = vadd.f32 %v1789_v63, %v1688_v42  ;;  %v1278_v38 = vpop.f32.mrf.mxu0  ;;  %v6020_v63 = vld [vmem:[#allocation40_spill] sm:$0xff] }
 0x23f   : > { %v1504_v0 = vpop.f32.mrf.mxu1  ;;  %v1646_v17 = vpop.f32.mrf.mxu2  ;;  %v1279_v31 = vadd.f32 %v1278_v38, %v6019_v23 }
 0x240   : > { %v1692_v55 = vadd.f32 %v1646_v17, %v1547_v20  ;;  %v6021_v20 = vld [vmem:[#allocation21_spill] sm:$0xff]  ;;  %v6022_v17 = vld [vmem:[#allocation74_spill] sm:$0xff] }
 0x241   : > { %1907 = vmatmul.f32.gmra.mxu0 %v6017_v62  ;;  %v1548_v29 = vadd.f32 %v1504_v0, %v1279_v31 }
 0x242   : > { %2052 = vmatmul.f32.gmra.mxu1 %v6018_v47  ;;  %2347 = vmatmul.f32.gmra.mxu3 %v6008_v1 }
 0x244   : > { %2207 = vmatmul.f32.gmra.mxu2 %v5932_v24 }
 0x245   : > { %v1792_v2 = vpop.f32.mrf.mxu3 }
 0x246   : > { %v5146_v53 = vadd.f32 %v1792_v2, %v1689_v39  ;;  %v1281_v42 = vpop.f32.mrf.mxu0  ;;  %v6023_v2 = vld [vmem:[#allocation72_spill] sm:$0xff] }
 0x247   : > { %v1507_v32 = vpop.f32.mrf.mxu1  ;;  %v1649_v36 = vpop.f32.mrf.mxu2  ;;  %v1282_v47 = vadd.f32 %v1281_v42, %v6022_v17 }
 0x248   : > { %v1693_v30 = vadd.f32 %v1649_v36, %v1548_v29  ;;  %v6024_v29 = vld [vmem:[#allocation5_spill] sm:$0xff] }
 0x249   : > { %1910 = vmatmul.f32.gmra.mxu0 %v6020_v63  ;;  %v1549_v24 = vadd.f32 %v1507_v32, %v1282_v47  ;;  %v6025_v47 = vld [vmem:[#allocation20_spill] sm:$0xff] }
 0x24a   : > { %2055 = vmatmul.f32.gmra.mxu1 %v6021_v20  ;;  %2350 = vmatmul.f32.gmra.mxu3 %v6013_v45 }
 0x24c   : > { %2210 = vmatmul.f32.gmra.mxu2 %v5935_v9 }
 0x24d   : > { %v1795_v1 = vpop.f32.mrf.mxu3 }
 0x24e   : > { %v5153_v38 = vadd.f32 %v1795_v1, %v1690_v34  ;;  %v1284_v39 = vpop.f32.mrf.mxu0  ;;  %v6026_v1 = vld [vmem:[#allocation43_spill] sm:$0xff] }
 0x24f   : > { %v1510_v0 = vpop.f32.mrf.mxu1  ;;  %v1652_v23 = vpop.f32.mrf.mxu2  ;;  %v1285_v36 = vadd.f32 %v1284_v39, %v6024_v29 }
 0x250   : > { %v1694_v31 = vadd.f32 %v1652_v23, %v1549_v24  ;;  %v6027_v24 = vld [vmem:[#allocation48_spill] sm:$0xff] }
 0x251   : > { %1913 = vmatmul.f32.gmra.mxu0 %v6023_v2  ;;  %v1550_v9 = vadd.f32 %v1510_v0, %v1285_v36  ;;  %v6028_v36 = vld [vmem:[#allocation76_spill] sm:$0xff] }
 0x252   : > { %2058 = vmatmul.f32.gmra.mxu1 %v5925_v15  ;;  %2353 = vmatmul.f32.gmra.mxu3 %v6017_v62 }
 0x254   : > { %2213 = vmatmul.f32.gmra.mxu2 %v5939_v3 }
 0x255   : > { %v1798_v45 = vpop.f32.mrf.mxu3 }
 0x256   : > { %v5160_v42 = vadd.f32 %v1798_v45, %v1691_v27  ;;  %v1287_v34 = vpop.f32.mrf.mxu0  ;;  %v6029_v45 = vld [vmem:[#allocation7_spill] sm:$0xff] }
 0x257   : > { %v1513_v32 = vpop.f32.mrf.mxu1  ;;  %v1655_v20 = vpop.f32.mrf.mxu2  ;;  %v1288_v15 = vadd.f32 %v1287_v34, %v6027_v24 }
 0x258   : > { %v1695_v17 = vadd.f32 %v1655_v20, %v1550_v9  ;;  %v6030_v9 = vld [vmem:[#allocation4_spill] sm:$0xff] }
 0x259   : > { %1916 = vmatmul.f32.gmra.mxu0 %v6025_v47  ;;  %v1551_v3 = vadd.f32 %v1513_v32, %v1288_v15  ;;  %v6031_v15 = vld [vmem:[#allocation24_spill] sm:$0xff] }
 0x25a   : > { %2061 = vmatmul.f32.gmra.mxu1 %v6026_v1  ;;  %2356 = vmatmul.f32.gmra.mxu3 %v6020_v63 }
 0x25c   : > { %2216 = vmatmul.f32.gmra.mxu2 %v5941_v44 }
 0x25d   : > { %v1801_v62 = vpop.f32.mrf.mxu3 }
 0x25e   : > { %v5167_v39 = vadd.f32 %v1801_v62, %v1692_v55  ;;  %v1290_v27 = vpop.f32.mrf.mxu0  ;;  %v6032_v62 = vld [vmem:[#allocation9_spill] sm:$0xff] }
 0x25f   : > { %v1516_v0 = vpop.f32.mrf.mxu1  ;;  %v1658_v23 = vpop.f32.mrf.mxu2  ;;  %v1291_v20 = vadd.f32 %v1290_v27, %v6030_v9 }
 0x260   : > { %v1696_v29 = vadd.f32 %v1658_v23, %v1551_v3  ;;  %v6033_v3 = vld [vmem:[#allocation64_spill] sm:$0xff] }
 0x261   : > { %1919 = vmatmul.f32.gmra.mxu0 %v6028_v36  ;;  %v1552_v44 = vadd.f32 %v1516_v0, %v1291_v20  ;;  %v787_v23 = vmul.f32 0.0017361111, %v6033_v3  ;;  %v6036_v3 = vld [vmem:[#allocation30_spill] sm:$0xff] }
 0x262   : > { %2064 = vmatmul.f32.gmra.mxu1 %v6029_v45  ;;  %2359 = vmatmul.f32.gmra.mxu3 %v6023_v2  ;;  %v6034_v45 = vld [vmem:[#allocation16_spill] sm:$0xff] }
 0x263   : > { %v788_v2 = vadd.f32 1e-05, %v787_v23 }
 0x264   : > { %2219 = vmatmul.f32.gmra.mxu2 %v5944_v6 }
 0x265   : > { %v1804_v63 = vpop.f32.mrf.mxu3  ;;  %2824 = vrsqrt.f32 %v788_v2  ;;  %vm795_vm3 = vweird.f32 %v788_v2 }
 0x266   : > { %v5174_v34 = vadd.f32 %v1804_v63, %v1693_v30  ;;  %v1293_v55 = vpop.f32.mrf.mxu0 }
 0x267   : > { %v1519_v32 = vpop.f32.mrf.mxu1  ;;  %v1661_v1 = vpop.f32.mrf.mxu2  ;;  %v1294_v27 = vadd.f32 %v1293_v55, %v6034_v45 }
 0x268   : > { %v1697_v24 = vadd.f32 %v1661_v1, %v1552_v44  ;;  %v6035_v1 = vld [vmem:[#allocation77_spill] sm:$0xff] }
 0x269   : > { %1922 = vmatmul.f32.gmra.mxu0 %v6031_v15  ;;  %v1553_v30 = vadd.f32 %v1519_v32, %v1294_v27 }
 0x26a   : > { %2067 = vmatmul.f32.gmra.mxu1 %v6032_v62  ;;  %2362 = vmatmul.f32.gmra.mxu3 %v6025_v47 }
 0x26b   : > { %v2825_v62 = vpop.eup %2824 }
 0x26c   : > { %2222 = vmatmul.f32.gmra.mxu2 %v4560_v12  ;;  %v790_v23 = vmul.f32 %v2825_v62, %v788_v2  ;;  %vm796_vm2 = vweird.f32 %v2825_v62 }
 0x26d   : > { %v1807_v6 = vpop.f32.mrf.mxu3  ;;  %vm797_vm4 = vmor %vm795_vm3, %vm796_vm2 }
 0x26e   : > { %v5182_v0 = vadd.f32 %v1807_v6, %v1694_v31  ;;  %v1878_v9 = vpop.f32.mrf.mxu0 }
 0x26f   : > { %v2023_v20 = vpop.f32.mrf.mxu1  ;;  %v1664_v63 = vpop.f32.mrf.mxu2 }
 0x270   : > { %v1698_v44 = vadd.f32 %v1664_v63, %v1553_v30 }
 0x271   : > { %1925 = vmatmul.f32.gmra.mxu0 %v6035_v1 }
 0x272   : > { %2070 = vmatmul.f32.gmra.mxu1 %v4563_v40  ;;  %2365 = vmatmul.f32.gmra.mxu3 %v6028_v36 }
 0x274   : > { %2225 = vmatmul.f32.gmra.mxu2 %v4665_v37 }
 0x275   : > { %v1810_v47 = vpop.f32.mrf.mxu3 }
 0x276   : > { %v5188_v12 = vadd.f32 %v1810_v47, %v1695_v17  ;;  %v1881_v55 = vpop.f32.mrf.mxu0  ;;  %v791_v17 = vmul.f32 %v2825_v62, %v790_v23  ;;  %v6038_v47 = vld [vmem:[#allocation37_spill] sm:$0xff] }
 0x277   : > { %v2026_v32 = vpop.f32.mrf.mxu1  ;;  %v2178_v31 = vpop.f32.mrf.mxu2  ;;  %v6039_v23 = vld [vmem:[#allocation41_spill] sm:$0xff] }
 0x279   : > { %1928 = vmatmul.f32.gmra.mxu0 %v6036_v3 }
 0x27a   : > { %2073 = vmatmul.f32.gmra.mxu1 %v4048_v21  ;;  %2368 = vmatmul.f32.gmra.mxu3 %v6031_v15  ;;  %v792_v21 = vmul.f32 0.5, %v791_v17 }
 0x27c   : > { %2228 = vmatmul.f32.gmra.mxu2 %v5953_v48  ;;  %v793_v30 = vsub.f32 1.5, %v792_v21 }
 0x27d   : > { %v1813_v40 = vpop.f32.mrf.mxu3 }
 0x27e   : > { %v5194_v36 = vadd.f32 %v1813_v40, %v1696_v29  ;;  %v1884_v37 = vpop.f32.mrf.mxu0 }
 0x27f   : > { %v5196_v45 = vpop.f32.mrf.mxu1  ;;  %v2181_v27 = vpop.f32.mrf.mxu2 }
 0x281   : > { %1931 = vmatmul.f32.gmra.mxu0 %v4950_v10 }
 0x282   : > { %2076 = vmatmul.f32.gmra.mxu1 %v5945_v35  ;;  %2371 = vmatmul.f32.gmra.mxu3 %v6035_v1  ;;  %v794_v35 = vmul.f32 %v2825_v62, %v793_v30 }
 0x284   : > { %2231 = vmatmul.f32.gmra.mxu2 %v5956_v43 }
 0x285   : > { %v1816_v15 = vpop.f32.mrf.mxu3 }
 0x286   : > { %v5202_v6 = vadd.f32 %v1816_v15, %v1697_v24  ;;  %v5204_v48 = vpop.f32.mrf.mxu0  ;;  %v6040_v24 = vld [vmem:[#allocation15_spill] sm:$0xff]  ;;  %v798_v15 = vsel %vm797_vm4, %v2825_v62, %v794_v35  ;;  %v5229_v62 = vld [vmem:[%s5519_s5] ss:$0 sm:$0xff] }
 0x287   : > { %v5206_v29 = vpop.f32.mrf.mxu1  ;;  %v2184_v63 = vpop.f32.mrf.mxu2  ;;  %v1974_v1 = vadd.f32 %v1878_v9, %v6040_v24 }
 0x288   : > { %6037 = vst [vmem:[#allocation27_spill] sm:$0xff] %v5202_v6 }
 0x289   : > { %1934 = vmatmul.f32.gmra.mxu0 %v6038_v47  ;;  %v2119_v30 = vadd.f32 %v2023_v20, %v1974_v1 }
 0x28a   : > { %2079 = vmatmul.f32.gmra.mxu1 %v6039_v23  ;;  %2374 = vmatmul.f32.gmra.mxu3 %v6036_v3  ;;  %v6041_v23 = vld [vmem:[#allocation78_spill] sm:$0xff]  ;;  %v799_v3 = vmul.f32 0.041666668, %v798_v15 }
 0x28c   : > { %2234 = vmatmul.f32.gmra.mxu2 %v5959_v25  ;;  %v2274_v25 = vadd.f32 %v2178_v31, %v2119_v30  ;;  %v5223_v9 = vperm.slane %v799_v3, 0  ;;  %v6044_v30 = vld [vmem:[#allocation35_spill] sm:$0xff] }
 0x28d   : > { %v1819_v43 = vpop.f32.mrf.mxu3 }
 0x28e   : > { %v5213_v40 = vadd.f32 %v1819_v43, %v1698_v44  ;;  %v5215_v17 = vpop.f32.mrf.mxu0  ;;  %v6042_v44 = vld [vmem:[#allocation33_spill] sm:$0xff] }
 0x28f   : > { %v5217_v21 = vpop.f32.mrf.mxu1  ;;  %v2187_v6 = vpop.f32.mrf.mxu2  ;;  %v1975_v43 = vadd.f32 %v1881_v55, %v6042_v44 }
 0x291   : > { %1937 = vmatmul.f32.gmra.mxu0 %v6041_v23  ;;  %v2120_v35 = vadd.f32 %v2026_v32, %v1975_v43 }
 0x292   : > { %2082 = vmatmul.f32.gmra.mxu1 %v5950_v49  ;;  %2377 = vmatmul.f32.gmra.mxu3 %v4950_v10 }
 0x293   : > { %v2275_v1 = vadd.f32 %v2181_v27, %v2120_v35 }
 0x294   : > { %2237 = vmatmul.f32.gmra.mxu2 %v5963_v8  ;;  %v6043_v8 = vld [vmem:[#allocation31_spill] sm:$0xff] }
 0x295   : > { %v2330_v2 = vpop.f32.mrf.mxu3 }
 0x296   : > { %v2426_v24 = vadd.f32 %v2330_v2, %v2274_v25  ;;  %v5231_v49 = vpop.f32.mrf.mxu0 }
 0x297   : > { %v5233_v20 = vpop.f32.mrf.mxu1  ;;  %v5235_v10 = vpop.f32.mrf.mxu2 }
 0x298   : > { %v2459_v31 = vmul.f32 %v5223_v9, %v2426_v24 }
 0x299   : > { %1940 = vmatmul.f32.gmra.mxu0 %v6043_v8 }
 0x29a   : > { %2085 = vmatmul.f32.gmra.mxu1 %v4266_v50  ;;  %v2495_v55 = vadd.f32 %v5229_v62, %v2459_v31  ;;  %2380 = vmatmul.f32.gmra.mxu3 %v6038_v47  ;;  %v1976_v50 = vadd.f32 %v1884_v37, %v6044_v30 }
 0x29c   : > { %vm2527_vm5 = vcmp.ge.f32.partialorder %v2495_v55, 0.0  ;;  %v2559_v15 = vmul.f32 0.2, %v2495_v55  ;;  %2240 = vmatmul.f32.gmra.mxu2 %v5966_v54  ;;  %v2121_v43 = vadd.f32 %v5196_v45, %v1976_v50 }
 0x29d   : > { %v2333_v3 = vpop.f32.mrf.mxu3 }
 0x29e   : > { %v2591_v32 = vsel %vm2527_vm5, %v2495_v55, %v2559_v15  ;;  %v2427_v25 = vadd.f32 %v2333_v3, %v2275_v1  ;;  %v5250_v2 = vpop.f32.mrf.mxu0  ;;  %v2276_v24 = vadd.f32 %v2184_v63, %v2121_v43  ;;  %v6045_v55 = vld [vmem:[#allocation3_spill] sm:$0xff] }
 0x29f   : > { %v5252_v47 = vpop.f32.mrf.mxu1  ;;  %v2623_v27 = vmul.f32 1.4142135, %v2591_v32  ;;  %v5254_v44 = vpop.f32.mrf.mxu2  ;;  %v1977_v1 = vadd.f32 %v5204_v48, %v6045_v55  ;;  %v6046_v63 = vld [vmem:[#allocation51_spill] sm:$0xff] }
 0x2a0   : > { %v2460_v54 = vmul.f32 %v5223_v9, %v2427_v25 }
 0x2a1   : > { %2655 = vst [vmem:[%s5247_s12] sm:$0xff] %v2623_v27  ;;  %1943 = vmatmul.f32.gmra.mxu0 %v4989_v33 }
 0x2a2   : > { %2088 = vmatmul.f32.gmra.mxu1 %v5957_v52  ;;  %v2496_v37 = vadd.f32 %v5229_v62, %v2460_v54  ;;  %2383 = vmatmul.f32.gmra.mxu3 %v6041_v23  ;;  %v6047_v54 = vld [vmem:[#allocation42_spill] sm:$0xff] }
 0x2a3   : > { %v1978_v43 = vadd.f32 %v5215_v17, %v6047_v54 }
 0x2a4   : > { %vm2528_vm6 = vcmp.ge.f32.partialorder %v2496_v37, 0.0  ;;  %v2560_v31 = vmul.f32 0.2, %v2496_v37  ;;  %2243 = vmatmul.f32.gmra.mxu2 %v5970_v59  ;;  %v2122_v59 = vadd.f32 %v5206_v29, %v1977_v1 }
 0x2a5   : > { %v2336_v35 = vpop.f32.mrf.mxu3 }
 0x2a6   : > { %v2592_v15 = vsel %vm2528_vm6, %v2496_v37, %v2560_v31  ;;  %v2428_v3 = vadd.f32 %v2336_v35, %v2276_v24  ;;  %v5266_v30 = vpop.f32.mrf.mxu0  ;;  %v2277_v32 = vadd.f32 %v2187_v6, %v2122_v59  ;;  %v6048_v6 = vld [vmem:[#allocation28_spill] sm:$0xff] }
 0x2a7   : > { %v5268_v52 = vpop.f32.mrf.mxu1  ;;  %v2624_v45 = vmul.f32 1.4142135, %v2592_v15  ;;  %v5270_v50 = vpop.f32.mrf.mxu2 }
 0x2a8   : > { %v2461_v23 = vmul.f32 %v5223_v9, %v2428_v3  ;;  %v6049_v3 = vld [vmem:[#allocation32_spill] sm:$0xff] }
 0x2a9   : > { %2656 = vst [vmem:[%s5247_s12 + $0x8] sm:$0xff] %v2624_v45  ;;  %1946 = vmatmul.f32.gmra.mxu0 %v6046_v63  ;;  %v1979_v45 = vadd.f32 %v5231_v49, %v6049_v3 }
 0x2aa   : > { %2091 = vmatmul.f32.gmra.mxu1 %v4447_v61  ;;  %v2497_v48 = vadd.f32 %v5229_v62, %v2461_v23  ;;  %2386 = vmatmul.f32.gmra.mxu3 %v6043_v8 }
 0x2ac   : > { %vm2529_vm7 = vcmp.ge.f32.partialorder %v2497_v48, 0.0  ;;  %v2561_v25 = vmul.f32 0.2, %v2497_v48  ;;  %2246 = vmatmul.f32.gmra.mxu2 %v5973_v46  ;;  %v2123_v46 = vadd.f32 %v5217_v21, %v1978_v43  ;;  %v6051_v43 = vld [vmem:[#allocation12_spill] sm:$0xff] }
 0x2ad   : > { %v2339_v27 = vpop.f32.mrf.mxu3 }
 0x2ae   : > { %v2593_v37 = vsel %vm2529_vm7, %v2497_v48, %v2561_v25  ;;  %v2429_v24 = vadd.f32 %v2339_v27, %v2277_v32  ;;  %v5282_v31 = vpop.f32.mrf.mxu0  ;;  %v2278_v55 = vadd.f32 %v5235_v10, %v2123_v46  ;;  %v6050_v10 = vld [vmem:[#allocation38_spill] sm:$0xff] }
 0x2af   : > { %v5284_v61 = vpop.f32.mrf.mxu1  ;;  %v2625_v29 = vmul.f32 1.4142135, %v2593_v37  ;;  %v5286_v35 = vpop.f32.mrf.mxu2  ;;  %v1980_v37 = vadd.f32 %v5250_v2, %v6051_v43 }
 0x2b0   : > { %v2462_v8 = vmul.f32 %v5223_v9, %v2429_v24 }
 0x2b1   : > { %2657 = vst [vmem:[%s5247_s12 + $0x10] sm:$0xff] %v2625_v29  ;;  %1949 = vmatmul.f32.gmra.mxu0 %v6048_v6 }
 0x2b2   : > { %2094 = vmatmul.f32.gmra.mxu1 %v4596_v7  ;;  %v2498_v17 = vadd.f32 %v5229_v62, %v2462_v8  ;;  %2389 = vmatmul.f32.gmra.mxu3 %v4989_v33 }
 0x2b4   : > { %vm2530_vm8 = vcmp.ge.f32.partialorder %v2498_v17, 0.0  ;;  %v2562_v1 = vmul.f32 0.2, %v2498_v17  ;;  %2249 = vmatmul.f32.gmra.mxu2 %v4706_v14  ;;  %v2124_v14 = vadd.f32 %v5233_v20, %v1979_v45 }
 0x2b5   : > { %v2342_v15 = vpop.f32.mrf.mxu3 }
 0x2b6   : > { %v2594_v23 = vsel %vm2530_vm8, %v2498_v17, %v2562_v1  ;;  %v2430_v59 = vadd.f32 %v2342_v15, %v2278_v55  ;;  %v5299_v7 = vpop.f32.mrf.mxu0  ;;  %v2279_v25 = vadd.f32 %v5254_v44, %v2124_v14  ;;  %v6052_v44 = vld [vmem:[#allocation79_spill] sm:$0xff] }
 0x2b7   : > { %v5301_v21 = vpop.f32.mrf.mxu1  ;;  %v2626_v48 = vmul.f32 1.4142135, %v2594_v23  ;;  %v5303_v32 = vpop.f32.mrf.mxu2  ;;  %v6053_v15 = vld [vmem:[#allocation11_spill] sm:$0xff] }
 0x2b8   : > { %v2463_v33 = vmul.f32 %v5223_v9, %v2430_v59  ;;  %v1981_v3 = vadd.f32 %v5266_v30, %v6053_v15 }
 0x2b9   : > { %2658 = vst [vmem:[%s5247_s12 + $0x18] sm:$0xff] %v2626_v48  ;;  %1952 = vmatmul.f32.gmra.mxu0 %v6050_v10 }
 0x2ba   : > { %2097 = vmatmul.f32.gmra.mxu1 %v4306_v22  ;;  %v2499_v49 = vadd.f32 %v5229_v62, %v2463_v33  ;;  %2392 = vmatmul.f32.gmra.mxu3 %v6046_v63 }
 0x2bc   : > { %vm2531_vm9 = vcmp.ge.f32.partialorder %v2499_v49, 0.0  ;;  %v2563_v27 = vmul.f32 0.2, %v2499_v49  ;;  %2252 = vmatmul.f32.gmra.mxu2 %v4397_v57  ;;  %v2125_v57 = vadd.f32 %v5252_v47, %v1980_v37 }
 0x2bd   : > { %v2345_v54 = vpop.f32.mrf.mxu3 }
 0x2be   : > { %v2595_v24 = vsel %vm2531_vm9, %v2499_v49, %v2563_v27  ;;  %v2431_v29 = vadd.f32 %v2345_v54, %v2279_v25  ;;  %v5316_v22 = vpop.f32.mrf.mxu0  ;;  %v2280_v17 = vadd.f32 %v5270_v50, %v2125_v57  ;;  %v6054_v50 = vld [vmem:[#allocation39_spill] sm:$0xff]  ;;  %v6055_v25 = vld [vmem:[#allocation46_spill] sm:$0xff] }
 0x2bf   : > { %v5318_v20 = vpop.f32.mrf.mxu1  ;;  %v2627_v8 = vmul.f32 1.4142135, %v2595_v24  ;;  %v5320_v46 = vpop.f32.mrf.mxu2  ;;  %v1982_v27 = vadd.f32 %v5282_v31, %v6055_v25  ;;  %v6057_v57 = vld [vmem:[#allocation47_spill] sm:$0xff] }
 0x2c0   : > { %v2464_v63 = vmul.f32 %v5223_v9, %v2431_v29 }
 0x2c1   : > { %2659 = vst [vmem:[%s5247_s12 + $0x20] sm:$0xff] %v2627_v8  ;;  %1955 = vmatmul.f32.gmra.mxu0 %v6052_v44 }
 0x2c2   : > { %2100 = vmatmul.f32.gmra.mxu1 %v4368_v4  ;;  %v2500_v2 = vadd.f32 %v5229_v62, %v2464_v63  ;;  %2395 = vmatmul.f32.gmra.mxu3 %v6048_v6 }
 0x2c4   : > { %vm2532_vm10 = vcmp.ge.f32.partialorder %v2500_v2, 0.0  ;;  %v2564_v55 = vmul.f32 0.2, %v2500_v2  ;;  %2255 = vmatmul.f32.gmra.mxu2 %v4741_v18  ;;  %v2126_v18 = vadd.f32 %v5268_v52, %v1981_v3 }
 0x2c5   : > { %v2348_v1 = vpop.f32.mrf.mxu3 }
 0x2c6   : > { %v2596_v45 = vsel %vm2532_vm10, %v2500_v2, %v2564_v55  ;;  %v2432_v23 = vadd.f32 %v2348_v1, %v2280_v17  ;;  %v5333_v4 = vpop.f32.mrf.mxu0  ;;  %v2281_v33 = vadd.f32 %v5286_v35, %v2126_v18  ;;  %v6056_v35 = vld [vmem:[#allocation80_spill] sm:$0xff]  ;;  %v1983_v2 = vadd.f32 %v5299_v7, %v6057_v57 }
 0x2c7   : > { %v5335_v47 = vpop.f32.mrf.mxu1  ;;  %v2628_v59 = vmul.f32 1.4142135, %v2596_v45  ;;  %v5337_v48 = vpop.f32.mrf.mxu2 }
 0x2c8   : > { %v2465_v6 = vmul.f32 %v5223_v9, %v2432_v23  ;;  %v1854_v23 = vrot.slane %v5977_v51, 2 }
 0x2c9   : > { %2660 = vst [vmem:[%s5247_s12 + $0x28] sm:$0xff] %v2628_v59  ;;  %1958 = vmatmul.f32.gmra.mxu0 %v6054_v50 }
 0x2ca   : > { %2103 = vmatmul.f32.gmra.mxu1 %v4375_v26  ;;  %v2501_v30 = vadd.f32 %v5229_v62, %v2465_v6  ;;  %2398 = vmatmul.f32.gmra.mxu3 %v6050_v10  ;;  %v1984_v6 = vadd.f32 %v5316_v22, %v5056_v16 }
 0x2cc   : > { %vm2533_vm11 = vcmp.ge.f32.partialorder %v2501_v30, 0.0  ;;  %v2565_v14 = vmul.f32 0.2, %v2501_v30  ;;  %2258 = vmatmul.f32.gmra.mxu2 %v4437_v28  ;;  %v2127_v28 = vadd.f32 %v5284_v61, %v1982_v27  ;;  %v2129_v16 = vadd.f32 %v5318_v20, %v1984_v6 }
 0x2cd   : > { %v2351_v49 = vpop.f32.mrf.mxu3 }
 0x2ce   : > { %v2597_v54 = vsel %vm2533_vm11, %v2501_v30, %v2565_v14  ;;  %v2433_v43 = vadd.f32 %v2351_v49, %v2281_v33  ;;  %v5350_v26 = vpop.f32.mrf.mxu0  ;;  %v2282_v29 = vadd.f32 %v5303_v32, %v2127_v28  ;;  %v6058_v49 = vrot.slane %v4621_v58, 2 }
 0x2cf   : > { %v5352_v52 = vpop.f32.mrf.mxu1  ;;  %v2629_v37 = vmul.f32 1.4142135, %v2597_v54  ;;  %v5354_v24 = vpop.f32.mrf.mxu2  ;;  %v2284_v25 = vadd.f32 %v5337_v48, %v2129_v16  ;;  %v6060_v54 = vld [vmem:[#allocation58_spill] sm:$0xff]  ;;  %v6061_v48 = vld [vmem:[#allocation57_spill] sm:$0xff] }
 0x2d0   : > { %v2466_v10 = vmul.f32 %v5223_v9, %v2433_v43  ;;  %v1985_v43 = vadd.f32 %v5333_v4, %v5063_v60 }
 0x2d1   : > { %2661 = vst [vmem:[%s5247_s12 + $0x30] sm:$0xff] %v2629_v37  ;;  %1961 = vmatmul.f32.gmra.mxu0 %v6056_v35 }
 0x2d2   : > { %2106 = vmatmul.f32.gmra.mxu1 %v5977_v51  ;;  %v2502_v31 = vadd.f32 %v5229_v62, %v2466_v10  ;;  %2401 = vmatmul.f32.gmra.mxu3 %v6052_v44  ;;  %v6059_v51 = vld [vmem:[#allocation53_spill] sm:$0xff] }
 0x2d4   : > { %vm2534_vm12 = vcmp.ge.f32.partialorder %v2502_v31, 0.0  ;;  %v2566_v8 = vmul.f32 0.2, %v2502_v31  ;;  %2261 = vmatmul.f32.gmra.mxu2 %v5083_v19  ;;  %v2128_v19 = vadd.f32 %v5301_v21, %v1983_v2  ;;  %v6063_v2 = vld [vmem:[#allocation59_spill] sm:$0xff] }
 0x2d5   : > { %v2354_v63 = vpop.f32.mrf.mxu3 }
 0x2d6   : > { %v2598_v17 = vsel %vm2534_vm12, %v2502_v31, %v2566_v8  ;;  %v2434_v55 = vadd.f32 %v2354_v63, %v2282_v29  ;;  %v5367_v1 = vpop.f32.mrf.mxu0  ;;  %v2283_v32 = vadd.f32 %v5320_v46, %v2128_v19  ;;  %v2130_v63 = vadd.f32 %v5335_v47, %v1985_v43 }
 0x2d7   : > { %v5369_v61 = vpop.f32.mrf.mxu1  ;;  %v2630_v15 = vmul.f32 1.4142135, %v2598_v17  ;;  %v5371_v3 = vpop.f32.mrf.mxu2 }
 0x2d8   : > { %v2467_v44 = vmul.f32 %v5223_v9, %v2434_v55  ;;  %v2285_v4 = vadd.f32 %v5354_v24, %v2130_v63  ;;  %v1986_v55 = vadd.f32 %v5350_v26, %v5070_v56  ;;  %v1987_v26 = vadd.f32 %v5367_v1, %v5078_v11  ;;  %v6064_v1 = vld [vmem:[#allocation44_spill] sm:$0xff] }
 0x2d9   : > { %2662 = vst [vmem:[%s5247_s12 + $0x38] sm:$0xff] %v2630_v15  ;;  %1964 = vmatmul.f32.gmra.mxu0 %v5978_v5 }
 0x2da   : > { %2109 = vmatmul.f32.gmra.mxu1 %v4621_v58  ;;  %v2503_v7 = vadd.f32 %v5229_v62, %v2467_v44  ;;  %2404 = vmatmul.f32.gmra.mxu3 %v6054_v50 }
 0x2dc   : > { %vm2535_vm13 = vcmp.ge.f32.partialorder %v2503_v7, 0.0  ;;  %v2567_v45 = vmul.f32 0.2, %v2503_v7  ;;  %2264 = vmatmul.f32.gmra.mxu2 %v5985_v41  ;;  %v1856_v41 = vsel %vm1296_vm1, %v1854_v23, %v6058_v49 }
 0x2dd   : > { %v2357_v59 = vpop.f32.mrf.mxu3 }
 0x2de   : > { %v2599_v18 = vsel %vm2535_vm13, %v2503_v7, %v2567_v45  ;;  %v2435_v30 = vadd.f32 %v2357_v59, %v2283_v32  ;;  %v5385_v21 = vpop.f32.mrf.mxu0 }
 0x2df   : > { %v5387_v33 = vpop.f32.mrf.mxu1  ;;  %v2631_v50 = vmul.f32 1.4142135, %v2599_v18  ;;  %v2217_v14 = vpop.f32.mrf.mxu2 }
 0x2e0   : > { %v2468_v46 = vmul.f32 %v5223_v9, %v2435_v30 }
 0x2e1   : > { %2663 = vst [vmem:[%s5247_s12 + $0x40] sm:$0xff] %v2631_v50  ;;  %1967 = vmatmul.f32.gmra.mxu0 %v1856_v41 }
 0x2e2   : > { %2112 = vmatmul.f32.gmra.mxu1 %v6059_v51  ;;  %v2504_v22 = vadd.f32 %v5229_v62, %v2468_v46  ;;  %2407 = vmatmul.f32.gmra.mxu3 %v6056_v35  ;;  %v6062_v35 = vld [vmem:[#allocation55_spill] sm:$0xff] }
 0x2e4   : > { %vm2536_vm14 = vcmp.ge.f32.partialorder %v2504_v22, 0.0  ;;  %v2568_v27 = vmul.f32 0.2, %v2504_v22  ;;  %2267 = vmatmul.f32.gmra.mxu2 %v6060_v54 }
 0x2e5   : > { %v2360_v58 = vpop.f32.mrf.mxu3 }
 0x2e6   : > { %v2600_v37 = vsel %vm2536_vm14, %v2504_v22, %v2568_v27  ;;  %v2436_v10 = vadd.f32 %v2360_v58, %v2284_v25  ;;  %v5402_v28 = vpop.f32.mrf.mxu0  ;;  %v1988_v22 = vadd.f32 %v5385_v21, %v6064_v1  ;;  %v6066_v21 = vld [vmem:[#allocation50_spill] sm:$0xff] }
 0x2e7   : > { %v2632_v20 = vmul.f32 1.4142135, %v2600_v37  ;;  %v2220_v31 = vpop.f32.mrf.mxu2  ;;  %v5405_v8 = vpop.f32.mrf.mxu1 }
 0x2e8   : > { %v2469_v29 = vmul.f32 %v5223_v9, %v2436_v10  ;;  %v2133_v37 = vadd.f32 %v5387_v33, %v1988_v22  ;;  %v6065_v10 = vld [vmem:[#allocation60_spill] sm:$0xff] }
 0x2e9   : > { %2664 = vst [vmem:[%s5247_s12 + $0x48] sm:$0xff] %v2632_v20  ;;  %1970 = vmatmul.f32.gmra.mxu0 %v6061_v48 }
 0x2ea   : > { %2115 = vmatmul.f32.gmra.mxu1 %v6062_v35  ;;  %v2505_v60 = vadd.f32 %v5229_v62, %v2469_v29  ;;  %2410 = vmatmul.f32.gmra.mxu3 %v5978_v5  ;;  %v2131_v5 = vadd.f32 %v5352_v52, %v1986_v55  ;;  %v2132_v52 = vadd.f32 %v5369_v61, %v1987_v26 }
 0x2eb   : > { %v2288_v20 = vadd.f32 %v2220_v31, %v2133_v37  ;;  %v1989_v35 = vadd.f32 %v5402_v28, %v6066_v21  ;;  %v6067_v31 = vld [vmem:[#allocation61_spill] sm:$0xff]  ;;  %v6070_v37 = vld [vmem:[#allocation18_spill] sm:$0xff] }
 0x2ec   : > { %vm2537_vm15 = vcmp.ge.f32.partialorder %v2505_v60, 0.0  ;;  %v2569_v57 = vmul.f32 0.2, %v2505_v60  ;;  %2270 = vmatmul.f32.gmra.mxu2 %v6063_v2  ;;  %v2286_v23 = vadd.f32 %v5371_v3, %v2131_v5  ;;  %v2287_v3 = vadd.f32 %v2217_v14, %v2132_v52 }
 0x2ed   : > { %v2363_v17 = vpop.f32.mrf.mxu3  ;;  %v2134_v33 = vadd.f32 %v5405_v8, %v1989_v35 }
 0x2ee   : > { %v2601_v15 = vsel %vm2537_vm15, %v2505_v60, %v2569_v57  ;;  %v2437_v44 = vadd.f32 %v2363_v17, %v2285_v4  ;;  %v1926_v19 = vpop.f32.mrf.mxu0 }
 0x2ef   : > { %v2633_v7 = vmul.f32 1.4142135, %v2601_v15  ;;  %v2223_v32 = vpop.f32.mrf.mxu2  ;;  %v2071_v45 = vpop.f32.mrf.mxu1 }
 0x2f0   : > { %v2470_v47 = vmul.f32 %v5223_v9, %v2437_v44  ;;  %v2289_v44 = vadd.f32 %v2223_v32, %v2134_v33 }
 0x2f1   : > { %2665 = vst [vmem:[%s5247_s12 + $0x50] sm:$0xff] %v2633_v7 }
 0x2f2   : > { %v2506_v24 = vadd.f32 %v5229_v62, %v2470_v47  ;;  %2413 = vmatmul.f32.gmra.mxu3 %v1856_v41  ;;  %v6068_v47 = vld [vmem:[#allocation45_spill] sm:$0xff] }
 0x2f3   : > { %v1990_v5 = vadd.f32 %v1926_v19, %v6068_v47 }
 0x2f4   : > { %vm2538_vm0 = vcmp.ge.f32.partialorder %v2506_v24, 0.0  ;;  %v2570_v59 = vmul.f32 0.2, %v2506_v24 }
 0x2f5   : > { %v2366_v56 = vpop.f32.mrf.mxu3 }
 0x2f6   : > { %v2602_v6 = vsel %vm2538_vm0, %v2506_v24, %v2570_v59  ;;  %v2438_v18 = vadd.f32 %v2366_v56, %v2286_v23  ;;  %v1929_v50 = vpop.f32.mrf.mxu0 }
 0x2f7   : > { %v2634_v30 = vmul.f32 1.4142135, %v2602_v6  ;;  %v2226_v46 = vpop.f32.mrf.mxu2  ;;  %v2074_v16 = vpop.f32.mrf.mxu1  ;;  %v2135_v6 = vadd.f32 %v2071_v45, %v1990_v5 }
 0x2f8   : > { %v2471_v49 = vmul.f32 %v5223_v9, %v2438_v18 }
 0x2f9   : > { %2666 = vst [vmem:[%s5247_s12 + $0x58] sm:$0xff] %v2634_v30  ;;  %v2290_v30 = vadd.f32 %v2226_v46, %v2135_v6 }
 0x2fa   : > { %v2507_v41 = vadd.f32 %v5229_v62, %v2471_v49  ;;  %2416 = vmatmul.f32.gmra.mxu3 %v6061_v48 }
 0x2fc   : > { %vm2539_vm1 = vcmp.ge.f32.partialorder %v2507_v41, 0.0  ;;  %v2571_v51 = vmul.f32 0.2, %v2507_v41 }
 0x2fd   : > { %v2369_v11 = vpop.f32.mrf.mxu3 }
 0x2fe   : > { %v2603_v25 = vsel %vm2539_vm1, %v2507_v41, %v2571_v51  ;;  %v2439_v27 = vadd.f32 %v2369_v11, %v2287_v3  ;;  %v1932_v61 = vpop.f32.mrf.mxu0  ;;  %v6069_v41 = vld [vmem:[#allocation54_spill] sm:$0xff] }
 0x2ff   : > { %v2635_v54 = vmul.f32 1.4142135, %v2603_v25  ;;  %v2229_v58 = vpop.f32.mrf.mxu2  ;;  %v2077_v60 = vpop.f32.mrf.mxu1  ;;  %v1991_v3 = vadd.f32 %v1929_v50, %v6069_v41 }
 0x300   : > { %v2472_v43 = vmul.f32 %v5223_v9, %v2439_v27 }
 0x301   : > { %2667 = vst [vmem:[%s5247_s12 + $0x60] sm:$0xff] %v2635_v54  ;;  %v2136_v22 = vadd.f32 %v2074_v16, %v1991_v3 }
 0x302   : > { %v2508_v14 = vadd.f32 %v5229_v62, %v2472_v43  ;;  %2419 = vmatmul.f32.gmra.mxu3 %v6065_v10 }
 0x303   : > { %v2291_v54 = vadd.f32 %v2229_v58, %v2136_v22 }
 0x304   : > { %vm2540_vm2 = vcmp.ge.f32.partialorder %v2508_v14, 0.0  ;;  %v2572_v29 = vmul.f32 0.2, %v2508_v14 }
 0x305   : > { %v2372_v48 = vpop.f32.mrf.mxu3 }
 0x306   : > { %v2604_v63 = vsel %vm2540_vm2, %v2508_v14, %v2572_v29  ;;  %v2440_v4 = vadd.f32 %v2372_v48, %v2288_v20  ;;  %v1935_v15 = vpop.f32.mrf.mxu0  ;;  %v1992_v14 = vadd.f32 %v1932_v61, %v6070_v37 }
 0x307   : > { %v2636_v57 = vmul.f32 1.4142135, %v2604_v63  ;;  %v2232_v2 = vpop.f32.mrf.mxu2  ;;  %v2080_v56 = vpop.f32.mrf.mxu1 }
 0x308   : > { %v2473_v17 = vmul.f32 %v5223_v9, %v2440_v4  ;;  %v2137_v21 = vadd.f32 %v2077_v60, %v1992_v14 }
 0x309   : > { %2668 = vst [vmem:[%s5247_s12 + $0x68] sm:$0xff] %v2636_v57 }
 0x30a   : > { %v2509_v55 = vadd.f32 %v5229_v62, %v2473_v17  ;;  %2422 = vmatmul.f32.gmra.mxu3 %v6067_v31  ;;  %v2292_v35 = vadd.f32 %v2232_v2, %v2137_v21  ;;  %v6071_v17 = vld [vmem:[#allocation73_spill] sm:$0xff] }
 0x30b   : > { %v1993_v33 = vadd.f32 %v1935_v15, %v6071_v17 }
 0x30c   : > { %vm2541_vm3 = vcmp.ge.f32.partialorder %v2509_v55, 0.0  ;;  %v2573_v7 = vmul.f32 0.2, %v2509_v55 }
 0x30d   : > { %v2375_v28 = vpop.f32.mrf.mxu3 }
 0x30e   : > { %v2605_v24 = vsel %vm2541_vm3, %v2509_v55, %v2573_v7  ;;  %v2441_v23 = vadd.f32 %v2375_v28, %v2289_v44  ;;  %v1938_v49 = vpop.f32.mrf.mxu0  ;;  %v2138_v28 = vadd.f32 %v2080_v56, %v1993_v33 }
 0x30f   : > { %v2637_v59 = vmul.f32 1.4142135, %v2605_v24  ;;  %v2235_v8 = vpop.f32.mrf.mxu2  ;;  %v2083_v25 = vpop.f32.mrf.mxu1  ;;  %v6072_v24 = vld [vmem:[#allocation56_spill] sm:$0xff] }
 0x310   : > { %v2474_v26 = vmul.f32 %v5223_v9, %v2441_v23  ;;  %v2293_v47 = vadd.f32 %v2235_v8, %v2138_v28  ;;  %v1994_v23 = vadd.f32 %v1938_v49, %v6072_v24 }
 0x311   : > { %2669 = vst [vmem:[%s5247_s12 + $0x70] sm:$0xff] %v2637_v59 }
 0x312   : > { %v2510_v18 = vadd.f32 %v5229_v62, %v2474_v26 }
 0x314   : > { %vm2542_vm4 = vcmp.ge.f32.partialorder %v2510_v18, 0.0  ;;  %v2574_v32 = vmul.f32 0.2, %v2510_v18 }
 0x315   : > { %v2378_v52 = vpop.f32.mrf.mxu3 }
 0x316   : > { %v2606_v19 = vsel %vm2542_vm4, %v2510_v18, %v2574_v32  ;;  %v2442_v51 = vadd.f32 %v2378_v52, %v2290_v30  ;;  %v1941_v29 = vpop.f32.mrf.mxu0  ;;  %v2139_v32 = vadd.f32 %v2083_v25, %v1994_v23 }
 0x317   : > { %v2638_v11 = vmul.f32 1.4142135, %v2606_v19  ;;  %v2238_v27 = vpop.f32.mrf.mxu2  ;;  %v2086_v63 = vpop.f32.mrf.mxu1  ;;  %v1995_v19 = vadd.f32 %v1941_v29, %v5139_v13 }
 0x318   : > { %v2475_v1 = vmul.f32 %v5223_v9, %v2442_v51  ;;  %v2294_v41 = vadd.f32 %v2238_v27, %v2139_v32 }
 0x319   : > { %2670 = vst [vmem:[%s5247_s12 + $0x78] sm:$0xff] %v2638_v11 }
 0x31a   : > { %v2511_v45 = vadd.f32 %v5229_v62, %v2475_v1 }
 0x31c   : > { %vm2543_vm5 = vcmp.ge.f32.partialorder %v2511_v45, 0.0  ;;  %v2575_v46 = vmul.f32 0.2, %v2511_v45 }
 0x31d   : > { %v2381_v43 = vpop.f32.mrf.mxu3 }
 0x31e   : > { %v2607_v10 = vsel %vm2543_vm5, %v2511_v45, %v2575_v46  ;;  %v2443_v50 = vadd.f32 %v2381_v43, %v2291_v54  ;;  %v1944_v7 = vpop.f32.mrf.mxu0  ;;  %v2140_v54 = vadd.f32 %v2086_v63, %v1995_v19 }
 0x31f   : > { %v2639_v20 = vmul.f32 1.4142135, %v2607_v10  ;;  %v2241_v4 = vpop.f32.mrf.mxu2  ;;  %v2089_v59 = vpop.f32.mrf.mxu1  ;;  %v1996_v14 = vadd.f32 %v1944_v7, %v5146_v53 }
 0x320   : > { %v2476_v48 = vmul.f32 %v5223_v9, %v2443_v50  ;;  %v2295_v46 = vadd.f32 %v2241_v4, %v2140_v54 }
 0x321   : > { %2671 = vst [vmem:[%s5247_s12 + $0x80] sm:$0xff] %v2639_v20  ;;  %v2141_v29 = vadd.f32 %v2089_v59, %v1996_v14 }
 0x322   : > { %v2512_v16 = vadd.f32 %v5229_v62, %v2476_v48 }
 0x324   : > { %vm2544_vm6 = vcmp.ge.f32.partialorder %v2512_v16, 0.0  ;;  %v2576_v58 = vmul.f32 0.2, %v2512_v16 }
 0x325   : > { %v2384_v57 = vpop.f32.mrf.mxu3 }
 0x326   : > { %v2608_v61 = vsel %vm2544_vm6, %v2512_v16, %v2576_v58  ;;  %v2444_v55 = vadd.f32 %v2384_v57, %v2292_v35  ;;  %v1947_v52 = vpop.f32.mrf.mxu0 }
 0x327   : > { %v2640_v31 = vmul.f32 1.4142135, %v2608_v61  ;;  %v2244_v18 = vpop.f32.mrf.mxu2  ;;  %v2092_v1 = vpop.f32.mrf.mxu1  ;;  %v1997_v4 = vadd.f32 %v1947_v52, %v5153_v38 }
 0x328   : > { %v2477_v44 = vmul.f32 %v5223_v9, %v2444_v55  ;;  %v2296_v35 = vadd.f32 %v2244_v18, %v2141_v29 }
 0x329   : > { %2672 = vst [vmem:[%s5247_s12 + $0x88] sm:$0xff] %v2640_v31  ;;  %v2142_v55 = vadd.f32 %v2092_v1, %v1997_v4 }
 0x32a   : > { %v2513_v60 = vadd.f32 %v5229_v62, %v2477_v44 }
 0x32c   : > { %vm2545_vm7 = vcmp.ge.f32.partialorder %v2513_v60, 0.0  ;;  %v2577_v2 = vmul.f32 0.2, %v2513_v60 }
 0x32d   : > { %v2387_v5 = vpop.f32.mrf.mxu3 }
 0x32e   : > { %v2609_v26 = vsel %vm2545_vm7, %v2513_v60, %v2577_v2  ;;  %v2445_v15 = vadd.f32 %v2387_v5, %v2293_v47  ;;  %v1950_v43 = vpop.f32.mrf.mxu0 }
 0x32f   : > { %v2641_v6 = vmul.f32 1.4142135, %v2609_v26  ;;  %v2247_v45 = vpop.f32.mrf.mxu2  ;;  %v2095_v48 = vpop.f32.mrf.mxu1  ;;  %v1998_v2 = vadd.f32 %v1950_v43, %v5160_v42 }
 0x330   : > { %v2478_v30 = vmul.f32 %v5223_v9, %v2445_v15  ;;  %v2297_v44 = vadd.f32 %v2247_v45, %v2142_v55 }
 0x331   : > { %2673 = vst [vmem:[%s5247_s12 + $0x90] sm:$0xff] %v2641_v6  ;;  %v2143_v26 = vadd.f32 %v2095_v48, %v1998_v2 }
 0x332   : > { %v2514_v56 = vadd.f32 %v5229_v62, %v2478_v30 }
 0x334   : > { %vm2546_vm8 = vcmp.ge.f32.partialorder %v2514_v56, 0.0  ;;  %v2578_v8 = vmul.f32 0.2, %v2514_v56 }
 0x335   : > { %v2390_v3 = vpop.f32.mrf.mxu3 }
 0x336   : > { %v2610_v49 = vsel %vm2546_vm8, %v2514_v56, %v2578_v8  ;;  %v2446_v51 = vadd.f32 %v2390_v3, %v2294_v41  ;;  %v1953_v17 = vpop.f32.mrf.mxu0 }
 0x337   : > { %v2642_v11 = vmul.f32 1.4142135, %v2610_v49  ;;  %v2250_v16 = vpop.f32.mrf.mxu2  ;;  %v2098_v7 = vpop.f32.mrf.mxu1  ;;  %v1999_v32 = vadd.f32 %v1953_v17, %v5167_v39 }
 0x338   : > { %v2479_v22 = vmul.f32 %v5223_v9, %v2446_v51  ;;  %v2298_v6 = vadd.f32 %v2250_v16, %v2143_v26 }
 0x339   : > { %2674 = vst [vmem:[%s5247_s12 + $0x98] sm:$0xff] %v2642_v11  ;;  %v2144_v19 = vadd.f32 %v2098_v7, %v1999_v32 }
 0x33a   : > { %v2515_v25 = vadd.f32 %v5229_v62, %v2479_v22 }
 0x33c   : > { %vm2547_vm9 = vcmp.ge.f32.partialorder %v2515_v25, 0.0  ;;  %v2579_v27 = vmul.f32 0.2, %v2515_v25 }
 0x33d   : > { %v2393_v37 = vpop.f32.mrf.mxu3 }
 0x33e   : > { %v2611_v13 = vsel %vm2547_vm9, %v2515_v25, %v2579_v27  ;;  %v2447_v10 = vadd.f32 %v2393_v37, %v2295_v46  ;;  %v1956_v59 = vpop.f32.mrf.mxu0 }
 0x33f   : > { %v2643_v50 = vmul.f32 1.4142135, %v2611_v13  ;;  %v2253_v60 = vpop.f32.mrf.mxu2  ;;  %v2101_v56 = vpop.f32.mrf.mxu1  ;;  %v2000_v45 = vadd.f32 %v1956_v59, %v5174_v34 }
 0x340   : > { %v2480_v20 = vmul.f32 %v5223_v9, %v2447_v10  ;;  %v2299_v11 = vadd.f32 %v2253_v60, %v2144_v19 }
 0x341   : > { %2675 = vst [vmem:[%s5247_s12 + $0xa0] sm:$0xff] %v2643_v50  ;;  %v2145_v37 = vadd.f32 %v2101_v56, %v2000_v45 }
 0x342   : > { %v2516_v21 = vadd.f32 %v5229_v62, %v2480_v20 }
 0x344   : > { %vm2548_vm10 = vcmp.ge.f32.partialorder %v2516_v21, 0.0  ;;  %v2580_v63 = vmul.f32 0.2, %v2516_v21 }
 0x345   : > { %v2396_v58 = vpop.f32.mrf.mxu3 }
 0x346   : > { %v2612_v57 = vsel %vm2548_vm10, %v2516_v21, %v2580_v63  ;;  %v2448_v53 = vadd.f32 %v2396_v58, %v2296_v35  ;;  %v1959_v51 = vpop.f32.mrf.mxu0 }
 0x347   : > { %v2644_v33 = vmul.f32 1.4142135, %v2612_v57  ;;  %v2256_v41 = vpop.f32.mrf.mxu2  ;;  %v2104_v46 = vpop.f32.mrf.mxu1  ;;  %v2001_v29 = vadd.f32 %v1959_v51, %v5182_v0 }
 0x348   : > { %v2481_v61 = vmul.f32 %v5223_v9, %v2448_v53  ;;  %v2300_v13 = vadd.f32 %v2256_v41, %v2145_v37 }
 0x349   : > { %2676 = vst [vmem:[%s5247_s12 + $0xa8] sm:$0xff] %v2644_v33  ;;  %v2146_v35 = vadd.f32 %v2104_v46, %v2001_v29 }
 0x34a   : > { %v2517_v31 = vadd.f32 %v5229_v62, %v2481_v61 }
 0x34c   : > { %vm2549_vm11 = vcmp.ge.f32.partialorder %v2517_v31, 0.0  ;;  %v2581_v28 = vmul.f32 0.2, %v2517_v31 }
 0x34d   : > { %v2399_v47 = vpop.f32.mrf.mxu3 }
 0x34e   : > { %v2613_v38 = vsel %vm2549_vm11, %v2517_v31, %v2581_v28  ;;  %v2449_v5 = vadd.f32 %v2399_v47, %v2297_v44  ;;  %v1962_v50 = vpop.f32.mrf.mxu0 }
 0x34f   : > { %v2645_v24 = vmul.f32 1.4142135, %v2613_v38  ;;  %v2259_v43 = vpop.f32.mrf.mxu2  ;;  %v2107_v63 = vpop.f32.mrf.mxu1  ;;  %v2002_v33 = vadd.f32 %v1962_v50, %v5188_v12 }
 0x350   : > { %v2482_v23 = vmul.f32 %v5223_v9, %v2449_v5  ;;  %v2301_v57 = vadd.f32 %v2259_v43, %v2146_v35 }
 0x351   : > { %2677 = vst [vmem:[%s5247_s12 + $0xb0] sm:$0xff] %v2645_v24  ;;  %v2147_v7 = vadd.f32 %v2107_v63, %v2002_v33 }
 0x352   : > { %v2518_v15 = vadd.f32 %v5229_v62, %v2482_v23 }
 0x354   : > { %vm2550_vm12 = vcmp.ge.f32.partialorder %v2518_v15, 0.0  ;;  %v2582_v18 = vmul.f32 0.2, %v2518_v15 }
 0x355   : > { %v2402_v30 = vpop.f32.mrf.mxu3 }
 0x356   : > { %v2614_v52 = vsel %vm2550_vm12, %v2518_v15, %v2582_v18  ;;  %v2450_v42 = vadd.f32 %v2402_v30, %v2298_v6  ;;  %v1965_v55 = vpop.f32.mrf.mxu0 }
 0x357   : > { %v2646_v8 = vmul.f32 1.4142135, %v2614_v52  ;;  %v2262_v4 = vpop.f32.mrf.mxu2  ;;  %v2110_v60 = vpop.f32.mrf.mxu1  ;;  %v2003_v24 = vadd.f32 %v1965_v55, %v5194_v36  ;;  %v6073_v52 = vld [vmem:[#allocation27_spill] sm:$0xff] }
 0x358   : > { %v2483_v3 = vmul.f32 %v5223_v9, %v2450_v42  ;;  %v2302_v47 = vadd.f32 %v2262_v4, %v2147_v7 }
 0x359   : > { %2678 = vst [vmem:[%s5247_s12 + $0xb8] sm:$0xff] %v2646_v8  ;;  %v2148_v6 = vadd.f32 %v2110_v60, %v2003_v24 }
 0x35a   : > { %v2519_v49 = vadd.f32 %v5229_v62, %v2483_v3 }
 0x35c   : > { %vm2551_vm13 = vcmp.ge.f32.partialorder %v2519_v49, 0.0  ;;  %v2583_v1 = vmul.f32 0.2, %v2519_v49 }
 0x35d   : > { %v2405_v22 = vpop.f32.mrf.mxu3 }
 0x35e   : > { %v2615_v39 = vsel %vm2551_vm13, %v2519_v49, %v2583_v1  ;;  %v2451_v54 = vadd.f32 %v2405_v22, %v2299_v11  ;;  %v1968_v15 = vpop.f32.mrf.mxu0 }
 0x35f   : > { %v2647_v25 = vmul.f32 1.4142135, %v2615_v39  ;;  %v2265_v38 = vpop.f32.mrf.mxu2  ;;  %v2004_v42 = vadd.f32 %v1968_v15, %v6073_v52  ;;  %v2113_v36 = vpop.f32.mrf.mxu1 }
 0x360   : > { %v2484_v27 = vmul.f32 %v5223_v9, %v2451_v54  ;;  %v2303_v30 = vadd.f32 %v2265_v38, %v2148_v6 }
 0x361   : > { %2679 = vst [vmem:[%s5247_s12 + $0xc0] sm:$0xff] %v2647_v25  ;;  %v2149_v51 = vadd.f32 %v2113_v36, %v2004_v42 }
 0x362   : > { %v2520_v14 = vadd.f32 %v5229_v62, %v2484_v27 }
 0x364   : > { %vm2552_vm14 = vcmp.ge.f32.partialorder %v2520_v14, 0.0  ;;  %v2584_v10 = vmul.f32 0.2, %v2520_v14 }
 0x365   : > { %v2408_v20 = vpop.f32.mrf.mxu3 }
 0x366   : > { %v2616_v34 = vsel %vm2552_vm14, %v2520_v14, %v2584_v10  ;;  %v2452_v48 = vadd.f32 %v2408_v20, %v2300_v13  ;;  %v1971_v1 = vpop.f32.mrf.mxu0 }
 0x367   : > { %v2648_v21 = vmul.f32 1.4142135, %v2616_v34  ;;  %v2268_v3 = vpop.f32.mrf.mxu2  ;;  %v2005_v54 = vadd.f32 %v1971_v1, %v5213_v40  ;;  %v2116_v37 = vpop.f32.mrf.mxu1 }
 0x368   : > { %v2485_v16 = vmul.f32 %v5223_v9, %v2452_v48  ;;  %v2304_v22 = vadd.f32 %v2268_v3, %v2149_v51 }
 0x369   : > { %2680 = vst [vmem:[%s5247_s12 + $0xc8] sm:$0xff] %v2648_v21  ;;  %v2150_v13 = vadd.f32 %v2116_v37, %v2005_v54 }
 0x36a   : > { %v2521_v58 = vadd.f32 %v5229_v62, %v2485_v16 }
 0x36c   : > { %vm2553_vm15 = vcmp.ge.f32.partialorder %v2521_v58, 0.0  ;;  %v2585_v53 = vmul.f32 0.2, %v2521_v58 }
 0x36d   : > { %v2411_v17 = vpop.f32.mrf.mxu3 }
 0x36e   : > { %v2617_v61 = vsel %vm2553_vm15, %v2521_v58, %v2585_v53  ;;  %v2453_v0 = vadd.f32 %v2411_v17, %v2301_v57 }
 0x36f   : > { %v2649_v31 = vmul.f32 1.4142135, %v2617_v61  ;;  %v2271_v14 = vpop.f32.mrf.mxu2 }
 0x370   : > { %v2486_v44 = vmul.f32 %v5223_v9, %v2453_v0  ;;  %v2305_v50 = vadd.f32 %v2271_v14, %v2150_v13 }
 0x371   : > { %2681 = vst [vmem:[%s5247_s12 + $0xd0] sm:$0xff] %v2649_v31 }
 0x372   : > { %v2522_v28 = vadd.f32 %v5229_v62, %v2486_v44 }
 0x374   : > { %vm2554_vm0 = vcmp.ge.f32.partialorder %v2522_v28, 0.0  ;;  %v2586_v2 = vmul.f32 0.2, %v2522_v28 }
 0x375   : > { %v2414_v5 = vpop.f32.mrf.mxu3 }
 0x376   : > { %v2618_v12 = vsel %vm2554_vm0, %v2522_v28, %v2586_v2  ;;  %v2454_v23 = vadd.f32 %v2414_v5, %v2302_v47 }
 0x377   : > { %v2650_v59 = vmul.f32 1.4142135, %v2618_v12 }
 0x378   : > { %v2487_v26 = vmul.f32 %v5223_v9, %v2454_v23 }
 0x379   : > { %2682 = vst [vmem:[%s5247_s12 + $0xd8] sm:$0xff] %v2650_v59 }
 0x37a   : > { %v2523_v18 = vadd.f32 %v5229_v62, %v2487_v26 }
 0x37c   : > { %vm2555_vm1 = vcmp.ge.f32.partialorder %v2523_v18, 0.0  ;;  %v2587_v32 = vmul.f32 0.2, %v2523_v18 }
 0x37d   : > { %v2417_v56 = vpop.f32.mrf.mxu3 }
 0x37e   : > { %v2619_v41 = vsel %vm2555_vm1, %v2523_v18, %v2587_v32  ;;  %v2455_v8 = vadd.f32 %v2417_v56, %v2303_v30 }
 0x37f   : > { %v2651_v19 = vmul.f32 1.4142135, %v2619_v41 }
 0x380   : > { %v2488_v49 = vmul.f32 %v5223_v9, %v2455_v8 }
 0x381   : > { %2683 = vst [vmem:[%s5247_s12 + $0xe0] sm:$0xff] %v2651_v19 }
 0x382   : > { %v2524_v11 = vadd.f32 %v5229_v62, %v2488_v49 }
 0x384   : > { %vm2556_vm2 = vcmp.ge.f32.partialorder %v2524_v11, 0.0  ;;  %v2588_v45 = vmul.f32 0.2, %v2524_v11 }
 0x385   : > { %v2420_v39 = vpop.f32.mrf.mxu3 }
 0x386   : > { %v2620_v25 = vsel %vm2556_vm2, %v2524_v11, %v2588_v45  ;;  %v2456_v46 = vadd.f32 %v2420_v39, %v2304_v22 }
 0x387   : > { %v2652_v27 = vmul.f32 1.4142135, %v2620_v25 }
 0x388   : > { %v2489_v43 = vmul.f32 %v5223_v9, %v2456_v46 }
 0x389   : > { %2684 = vst [vmem:[%s5247_s12 + $0xe8] sm:$0xff] %v2652_v27 }
 0x38a   : > { %v2525_v10 = vadd.f32 %v5229_v62, %v2489_v43 }
 0x38c   : > { %vm2557_vm3 = vcmp.ge.f32.partialorder %v2525_v10, 0.0  ;;  %v2589_v20 = vmul.f32 0.2, %v2525_v10 }
 0x38d   : > { %v2423_v29 = vpop.f32.mrf.mxu3 }
 0x38e   : > { %v2621_v34 = vsel %vm2557_vm3, %v2525_v10, %v2589_v20  ;;  %v2457_v48 = vadd.f32 %v2423_v29, %v2305_v50 }
 0x38f   : > { %v2653_v40 = vmul.f32 1.4142135, %v2621_v34 }
 0x390   : > { %v2490_v21 = vmul.f32 %v5223_v9, %v2457_v48 }
 0x391   : > { %2685 = vst [vmem:[%s5247_s12 + $0xf0] sm:$0xff] %v2653_v40 }
 0x392   : > { %v2526_v16 = vadd.f32 %v5229_v62, %v2490_v21 }
 0x394   : > { %vm2558_vm4 = vcmp.ge.f32.partialorder %v2526_v16, 0.0  ;;  %v2590_v35 = vmul.f32 0.2, %v2526_v16 }
 0x396   : > { %v2622_v63 = vsel %vm2558_vm4, %v2526_v16, %v2590_v35 }
 0x397   : > { %v2654_v58 = vmul.f32 1.4142135, %v2622_v63 }
 0x399   : > { %2686 = vst [vmem:[%s5247_s12 + $0xf8] sm:$0xff] %v2654_v58 }
 0x39a PF: > { %s16_s21 = sadd.s32 1, %s2873_s21  }
 0x39b   : > { %p13_p4 = scmp.ge.s32.totalorder %s16_s21, 4  }
 0x39d   :  { %15 = sbr.rel (!%p13_p4) target bundleno = 1 (0x1), region = 77 }

</bundles_post_ra>
